<compile_context>
chip_gen: v6e
topology: v6e:2x2x1
jax: 0.10.0
libtpu: 0.0.40
codegen_flags: <defaults>
</compile_context>

<pallas_src>
import functools

import jax
import jax.numpy as jnp
from jax.experimental import pallas as pl
from jax.experimental.pallas import tpu as pltpu

EPS = 1e-5


def _bn_relu_2d(z, gamma, beta):
    """Training-mode batchnorm over axis 0 of an (M, C) tile, then ReLU."""
    mean = jnp.mean(z, axis=0, keepdims=True)
    var = jnp.mean((z - mean) * (z - mean), axis=0, keepdims=True)
    inv = jax.lax.rsqrt(var + EPS)
    z = (z - mean) * (gamma * inv) + beta
    return jnp.maximum(z, 0.0)


def _dsconv_bn_relu(pad_ref, x_nhwc, wdw, wpw, gamma, beta, *, K, H, W):
    """One depthwise-separable conv + BN + ReLU, entirely in VMEM.

    pad_ref : VMEM scratch (N, H+2p, W+2p, C_in) used as the zero halo.
    x_nhwc  : f32 value (N, H, W, C_in).
    wdw     : (K*K, C_in) depthwise taps.   wpw : (C_in, C_out) pointwise.
    """
    N = x_nhwc.shape[0]
    Cin = x_nhwc.shape[3]
    Cout = wpw.shape[1]
    p = K // 2

    # In-kernel zero padding: zero-fill the halo scratch, write the interior.
    pad_ref[...] = jnp.zeros_like(pad_ref)
    pad_ref[:, p:p + H, p:p + W, :] = x_nhwc

    # Depthwise KxK: shifted-window accumulate on the VPU.
    # Per-tap weight reshapes hoisted out of the accumulation loop.
    taps = [wdw[i, :].reshape(1, 1, 1, Cin) for i in range(K * K)]
    acc = jnp.zeros((N, H, W, Cin), jnp.float32)
    for dy in range(K):
        for dx in range(K):
            acc = acc + pad_ref[:, dy:dy + H, dx:dx + W, :] * taps[dy * K + dx]

    # Pointwise 1x1 conv == matmul on the MXU (bf16 operands, f32 accumulate).
    # (For very small Cin a VPU fallback would avoid MXU latency entirely.)
    z = acc.reshape(N * H * W, Cin)
    z = jnp.dot(z.astype(jnp.bfloat16), wpw.astype(jnp.bfloat16),
                preferred_element_type=jnp.float32)

    # BatchNorm (batch statistics) + ReLU.
    z = _bn_relu_2d(z, gamma, beta)
    return z.reshape(N, H, W, Cout)


def down_dsconv2_kernel(x_ref, wdw1_ref, wpw1_ref, g1_ref, b1_ref,
                        wdw2_ref, wpw2_ref, g2_ref, b2_ref,
                        pooled_ref, idx_ref, pad1_ref, pad2_ref, *, K):
    N, H, W, _ = x_ref.shape
    Cout = wpw1_ref.shape[1]
    H2, W2 = H // 2, W // 2

    # conv1 -> BN -> ReLU
    y = _dsconv_bn_relu(pad1_ref, x_ref[...], wdw1_ref[...], wpw1_ref[...],
                        g1_ref[...], b1_ref[...], K=K, H=H, W=W)
    # conv2 -> BN -> ReLU (the intermediate never leaves VMEM)
    y = _dsconv_bn_relu(pad2_ref, y, wdw2_ref[...], wpw2_ref[...],
                        g2_ref[...], b2_ref[...], K=K, H=H, W=W)

    # --- 2x2 max-pool with PyTorch flattened plane indices (h*W + w) ------
    # Row (H) pairing: leading-dim reshape + static index (layout no-op).
    yr = y.reshape(N, H2, 2, W, Cout)
    top = yr[:, :, 0, :, :]          # rows 0, 2, 4, ...  -> (N, H2, W, Cout)
    bot = yr[:, :, 1, :, :]          # rows 1, 3, 5, ...

    h2_iota = jax.lax.broadcasted_iota(jnp.int32, (N, H2, 1, Cout), 1)
    row_base = 2 * h2_iota * W       # flat index of element (2*h2, 0)

    # Column (W) pairing: static size-1 sublane slices, fully unrolled.
    for w2 in range(W2):
        v00 = top[:, :, 2 * w2:2 * w2 + 1, :]
        v01 = top[:, :, 2 * w2 + 1:2 * w2 + 2, :]
        v10 = bot[:, :, 2 * w2:2 * w2 + 1, :]
        v11 = bot[:, :, 2 * w2 + 1:2 * w2 + 2, :]

        # PyTorch tie-break: first maximum in row-major window order.
        best = v00
        dy_sel = jnp.zeros_like(h2_iota)
        dx_sel = jnp.zeros_like(h2_iota)
        for v, dy, dx in ((v01, 0, 1), (v10, 1, 0), (v11, 1, 1)):
            upd = v > best
            dy_sel = jnp.where(upd, jnp.int32(dy), dy_sel)
            dx_sel = jnp.where(upd, jnp.int32(dx), dx_sel)
            best = jnp.maximum(best, v)

        flat = row_base + dy_sel * W + (2 * w2) + dx_sel
        pooled_ref[:, :, w2:w2 + 1, :] = best
        idx_ref[:, :, w2:w2 + 1, :] = flat


@functools.partial(jax.jit, static_argnames=("K",))
def _down_dsconv2_core(x_nchw, params, K):
    N, Cin, H, W = x_nchw.shape
    Cout = params["wpw1"].shape[1]
    p = K // 2
    H2, W2 = H // 2, W // 2

    x = jnp.transpose(x_nchw, (0, 2, 3, 1)).astype(jnp.float32)  # NCHW->NHWC

    vmem_specs = [pl.BlockSpec(memory_space=pltpu.MemorySpace.VMEM)
                  for _ in range(9)]
    out_specs = (pl.BlockSpec(memory_space=pltpu.MemorySpace.VMEM),
                 pl.BlockSpec(memory_space=pltpu.MemorySpace.VMEM))

    pooled, idx = pl.pallas_call(
        functools.partial(down_dsconv2_kernel, K=K),
        out_shape=(jax.ShapeDtypeStruct((N, H2, W2, Cout), jnp.float32),
                   jax.ShapeDtypeStruct((N, H2, W2, Cout), jnp.int32)),
        in_specs=vmem_specs,
        out_specs=out_specs,
        scratch_shapes=[
            pltpu.VMEM((N, H + 2 * p, W + 2 * p, Cin), jnp.float32),
            pltpu.VMEM((N, H + 2 * p, W + 2 * p, Cout), jnp.float32),
        ],
    )(x, params["wdw1"], params["wpw1"], params["g1"], params["b1"],
      params["wdw2"], params["wpw2"], params["g2"], params["b2"])

    pooled = jnp.transpose(pooled, (0, 3, 1, 2))  # NHWC -> NCHW
    idx = jnp.transpose(idx, (0, 3, 1, 2))
    return pooled, idx


def down_dsconv2(x_nchw, params, K=3):
    """Forward pass of DownDSConv2: returns (pooled, indices, pool_shape)."""
    pooled, idx = _down_dsconv2_core(x_nchw, params, K=K)
    N, _, H, W = x_nchw.shape
    Cout = params["wpw1"].shape[1]
    pool_shape = (N, Cout, H, W)        # shape of y before pooling
    return pooled, idx, pool_shape


# ----------------------------------------------------------------------------
# Deterministic parameter initialization (torch layout mapped to NHWC kernels)
#   depthwise weight (C, 1, K, K) -> (K*K, C);  pointwise (Co, Ci, 1, 1) -> (Ci, Co)
#   BatchNorm fresh init: gamma = 1, beta = 0.  Both convs are bias-free.
# ----------------------------------------------------------------------------
def make_params(key, cin, cout, K):
    k1, k2, k3, k4 = jax.random.split(key, 4)
    wdw1 = jax.random.normal(k1, (K * K, cin), jnp.float32) * (1.0 / K)
    wpw1 = jax.random.normal(k2, (cin, cout), jnp.float32) / jnp.sqrt(float(cin))
    wdw2 = jax.random.normal(k3, (K * K, cout), jnp.float32) * (1.0 / K)
    wpw2 = jax.random.normal(k4, (cout, cout), jnp.float32) / jnp.sqrt(float(cout))
    return {
        "wdw1": wdw1, "wpw1": wpw1,
        "g1": jnp.ones((1, cout), jnp.float32),
        "b1": jnp.zeros((1, cout), jnp.float32),
        "wdw2": wdw2, "wpw2": wpw2,
        "g2": jnp.ones((1, cout), jnp.float32),
        "b2": jnp.zeros((1, cout), jnp.float32),
    }


if __name__ == "__main__":
    K = 3
    N, CIN, COUT, H, W = 2, 4, 32, 16, 16

    key = jax.random.PRNGKey(0)
    k_par, k_in = jax.random.split(key)
    params = make_params(k_par, CIN, COUT, K)
    x = jax.random.normal(k_in, (N, CIN, H, W), jnp.float32)   # NCHW

    pooled, idx, pool_shape = down_dsconv2(x, params, K=K)
    pooled, idx = jax.block_until_ready((pooled, idx))

    assert pooled.shape == (N, COUT, H // 2, W // 2), pooled.shape
    assert idx.shape == (N, COUT, H // 2, W // 2), idx.shape
    assert pool_shape == (N, COUT, H, W), pool_shape
    assert bool(jnp.all(jnp.isfinite(pooled)))
    assert bool(jnp.all(idx >= 0)) and bool(jnp.all(idx < H * W))
    print("KERNEL_OK")
</pallas_src>

<mosaic_0001>
module attributes {stable_mosaic.version = 11 : i64} {
  func.func @down_dsconv2_kernel(%arg0: memref<2x16x16x4xf32, #tpu.memory_space<vmem>>, %arg1: memref<9x4xf32, #tpu.memory_space<vmem>>, %arg2: memref<4x32xf32, #tpu.memory_space<vmem>>, %arg3: memref<1x32xf32, #tpu.memory_space<vmem>>, %arg4: memref<1x32xf32, #tpu.memory_space<vmem>>, %arg5: memref<9x32xf32, #tpu.memory_space<vmem>>, %arg6: memref<32x32xf32, #tpu.memory_space<vmem>>, %arg7: memref<1x32xf32, #tpu.memory_space<vmem>>, %arg8: memref<1x32xf32, #tpu.memory_space<vmem>>, %arg9: memref<2x8x8x32xf32, #tpu.memory_space<vmem>>, %arg10: memref<2x8x8x32xi32, #tpu.memory_space<vmem>>, %arg11: memref<2x18x18x4xf32, #tpu.memory_space<vmem>>, %arg12: memref<2x18x18x32xf32, #tpu.memory_space<vmem>>) attributes {dimension_semantics = [], scalar_prefetch = 0 : i64, scratch_operands = 2 : i64, tpu.core_type = #tpu.core_type<tc>} {
    %c0 = arith.constant 0 : index
    %c0_0 = arith.constant 0 : index
    %c0_1 = arith.constant 0 : index
    %c0_2 = arith.constant 0 : index
    %0 = vector.load %arg0[%c0, %c0_0, %c0_1, %c0_2] : memref<2x16x16x4xf32, #tpu.memory_space<vmem>>, vector<2x16x16x4xf32>
    %c0_3 = arith.constant 0 : index
    %c0_4 = arith.constant 0 : index
    %1 = vector.load %arg1[%c0_3, %c0_4] : memref<9x4xf32, #tpu.memory_space<vmem>>, vector<9x4xf32>
    %c0_5 = arith.constant 0 : index
    %c0_6 = arith.constant 0 : index
    %2 = vector.load %arg2[%c0_5, %c0_6] : memref<4x32xf32, #tpu.memory_space<vmem>>, vector<4x32xf32>
    %c0_7 = arith.constant 0 : index
    %c0_8 = arith.constant 0 : index
    %3 = vector.load %arg3[%c0_7, %c0_8] : memref<1x32xf32, #tpu.memory_space<vmem>>, vector<1x32xf32>
    %c0_9 = arith.constant 0 : index
    %c0_10 = arith.constant 0 : index
    %4 = vector.load %arg4[%c0_9, %c0_10] : memref<1x32xf32, #tpu.memory_space<vmem>>, vector<1x32xf32>
    %cst = arith.constant 0.000000e+00 : f32
    %5 = vector.broadcast %cst : f32 to vector<2x18x18x4xf32>
    %c0_11 = arith.constant 0 : index
    %c0_12 = arith.constant 0 : index
    %c0_13 = arith.constant 0 : index
    %c0_14 = arith.constant 0 : index
    %6 = vector.load %arg11[%c0_11, %c0_12, %c0_13, %c0_14] : memref<2x18x18x4xf32, #tpu.memory_space<vmem>>, vector<2x18x18x4xf32>
    tpu.vector_store %arg11[%c0_11, %c0_12, %c0_13, %c0_14], %5 {strides = array<i32>} : memref<2x18x18x4xf32, #tpu.memory_space<vmem>>, vector<2x18x18x4xf32>,
    %c0_15 = arith.constant 0 : index
    %c1 = arith.constant 1 : index
    %c1_16 = arith.constant 1 : index
    %c0_17 = arith.constant 0 : index
    %7 = vector.load %arg11[%c0_15, %c1, %c1_16, %c0_17] : memref<2x18x18x4xf32, #tpu.memory_space<vmem>>, vector<2x16x16x4xf32>
    tpu.vector_store %arg11[%c0_15, %c1, %c1_16, %c0_17], %0 {strides = array<i32>} : memref<2x18x18x4xf32, #tpu.memory_space<vmem>>, vector<2x16x16x4xf32>,
    %8 = vector.extract_strided_slice %1 {offsets = [0, 0], sizes = [1, 4], strides = [1, 1]} : vector<9x4xf32> to vector<1x4xf32>
    %9 = vector.shape_cast %8 : vector<1x4xf32> to vector<4xf32>
    %10 = vector.shape_cast %9 : vector<4xf32> to vector<1x1x1x4xf32>
    %11 = vector.extract_strided_slice %1 {offsets = [1, 0], sizes = [1, 4], strides = [1, 1]} : vector<9x4xf32> to vector<1x4xf32>
    %12 = vector.shape_cast %11 : vector<1x4xf32> to vector<4xf32>
    %13 = vector.shape_cast %12 : vector<4xf32> to vector<1x1x1x4xf32>
    %14 = vector.extract_strided_slice %1 {offsets = [2, 0], sizes = [1, 4], strides = [1, 1]} : vector<9x4xf32> to vector<1x4xf32>
    %15 = vector.shape_cast %14 : vector<1x4xf32> to vector<4xf32>
    %16 = vector.shape_cast %15 : vector<4xf32> to vector<1x1x1x4xf32>
    %17 = vector.extract_strided_slice %1 {offsets = [3, 0], sizes = [1, 4], strides = [1, 1]} : vector<9x4xf32> to vector<1x4xf32>
    %18 = vector.shape_cast %17 : vector<1x4xf32> to vector<4xf32>
    %19 = vector.shape_cast %18 : vector<4xf32> to vector<1x1x1x4xf32>
    %20 = vector.extract_strided_slice %1 {offsets = [4, 0], sizes = [1, 4], strides = [1, 1]} : vector<9x4xf32> to vector<1x4xf32>
    %21 = vector.shape_cast %20 : vector<1x4xf32> to vector<4xf32>
    %22 = vector.shape_cast %21 : vector<4xf32> to vector<1x1x1x4xf32>
    %23 = vector.extract_strided_slice %1 {offsets = [5, 0], sizes = [1, 4], strides = [1, 1]} : vector<9x4xf32> to vector<1x4xf32>
    %24 = vector.shape_cast %23 : vector<1x4xf32> to vector<4xf32>
    %25 = vector.shape_cast %24 : vector<4xf32> to vector<1x1x1x4xf32>
    %26 = vector.extract_strided_slice %1 {offsets = [6, 0], sizes = [1, 4], strides = [1, 1]} : vector<9x4xf32> to vector<1x4xf32>
    %27 = vector.shape_cast %26 : vector<1x4xf32> to vector<4xf32>
    %28 = vector.shape_cast %27 : vector<4xf32> to vector<1x1x1x4xf32>
    %29 = vector.extract_strided_slice %1 {offsets = [7, 0], sizes = [1, 4], strides = [1, 1]} : vector<9x4xf32> to vector<1x4xf32>
    %30 = vector.shape_cast %29 : vector<1x4xf32> to vector<4xf32>
    %31 = vector.shape_cast %30 : vector<4xf32> to vector<1x1x1x4xf32>
    %32 = vector.extract_strided_slice %1 {offsets = [8, 0], sizes = [1, 4], strides = [1, 1]} : vector<9x4xf32> to vector<1x4xf32>
    %33 = vector.shape_cast %32 : vector<1x4xf32> to vector<4xf32>
    %34 = vector.shape_cast %33 : vector<4xf32> to vector<1x1x1x4xf32>
    %cst_18 = arith.constant 0.000000e+00 : f32
    %35 = vector.broadcast %cst_18 : f32 to vector<2x16x16x4xf32>
    %c0_19 = arith.constant 0 : index
    %c0_20 = arith.constant 0 : index
    %c0_21 = arith.constant 0 : index
    %c0_22 = arith.constant 0 : index
    %36 = vector.load %arg11[%c0_19, %c0_20, %c0_21, %c0_22] : memref<2x18x18x4xf32, #tpu.memory_space<vmem>>, vector<2x16x16x4xf32>
    %37 = vector.broadcast %10 : vector<1x1x1x4xf32> to vector<2x16x16x4xf32>
    %38 = arith.mulf %36, %37 : vector<2x16x16x4xf32>
    %39 = arith.addf %35, %38 : vector<2x16x16x4xf32>
    %c0_23 = arith.constant 0 : index
    %c0_24 = arith.constant 0 : index
    %c1_25 = arith.constant 1 : index
    %c0_26 = arith.constant 0 : index
    %40 = vector.load %arg11[%c0_23, %c0_24, %c1_25, %c0_26] : memref<2x18x18x4xf32, #tpu.memory_space<vmem>>, vector<2x16x16x4xf32>
    %41 = vector.broadcast %13 : vector<1x1x1x4xf32> to vector<2x16x16x4xf32>
    %42 = arith.mulf %40, %41 : vector<2x16x16x4xf32>
    %43 = arith.addf %39, %42 : vector<2x16x16x4xf32>
    %c0_27 = arith.constant 0 : index
    %c0_28 = arith.constant 0 : index
    %c2 = arith.constant 2 : index
    %c0_29 = arith.constant 0 : index
    %44 = vector.load %arg11[%c0_27, %c0_28, %c2, %c0_29] : memref<2x18x18x4xf32, #tpu.memory_space<vmem>>, vector<2x16x16x4xf32>
    %45 = vector.broadcast %16 : vector<1x1x1x4xf32> to vector<2x16x16x4xf32>
    %46 = arith.mulf %44, %45 : vector<2x16x16x4xf32>
    %47 = arith.addf %43, %46 : vector<2x16x16x4xf32>
    %c0_30 = arith.constant 0 : index
    %c1_31 = arith.constant 1 : index
    %c0_32 = arith.constant 0 : index
    %c0_33 = arith.constant 0 : index
    %48 = vector.load %arg11[%c0_30, %c1_31, %c0_32, %c0_33] : memref<2x18x18x4xf32, #tpu.memory_space<vmem>>, vector<2x16x16x4xf32>
    %49 = vector.broadcast %19 : vector<1x1x1x4xf32> to vector<2x16x16x4xf32>
    %50 = arith.mulf %48, %49 : vector<2x16x16x4xf32>
    %51 = arith.addf %47, %50 : vector<2x16x16x4xf32>
    %c0_34 = arith.constant 0 : index
    %c1_35 = arith.constant 1 : index
    %c1_36 = arith.constant 1 : index
    %c0_37 = arith.constant 0 : index
    %52 = vector.load %arg11[%c0_34, %c1_35, %c1_36, %c0_37] : memref<2x18x18x4xf32, #tpu.memory_space<vmem>>, vector<2x16x16x4xf32>
    %53 = vector.broadcast %22 : vector<1x1x1x4xf32> to vector<2x16x16x4xf32>
    %54 = arith.mulf %52, %53 : vector<2x16x16x4xf32>
    %55 = arith.addf %51, %54 : vector<2x16x16x4xf32>
    %c0_38 = arith.constant 0 : index
    %c1_39 = arith.constant 1 : index
    %c2_40 = arith.constant 2 : index
    %c0_41 = arith.constant 0 : index
    %56 = vector.load %arg11[%c0_38, %c1_39, %c2_40, %c0_41] : memref<2x18x18x4xf32, #tpu.memory_space<vmem>>, vector<2x16x16x4xf32>
    %57 = vector.broadcast %25 : vector<1x1x1x4xf32> to vector<2x16x16x4xf32>
    %58 = arith.mulf %56, %57 : vector<2x16x16x4xf32>
    %59 = arith.addf %55, %58 : vector<2x16x16x4xf32>
    %c0_42 = arith.constant 0 : index
    %c2_43 = arith.constant 2 : index
    %c0_44 = arith.constant 0 : index
    %c0_45 = arith.constant 0 : index
    %60 = vector.load %arg11[%c0_42, %c2_43, %c0_44, %c0_45] : memref<2x18x18x4xf32, #tpu.memory_space<vmem>>, vector<2x16x16x4xf32>
    %61 = vector.broadcast %28 : vector<1x1x1x4xf32> to vector<2x16x16x4xf32>
    %62 = arith.mulf %60, %61 : vector<2x16x16x4xf32>
    %63 = arith.addf %59, %62 : vector<2x16x16x4xf32>
    %c0_46 = arith.constant 0 : index
    %c2_47 = arith.constant 2 : index
    %c1_48 = arith.constant 1 : index
    %c0_49 = arith.constant 0 : index
    %64 = vector.load %arg11[%c0_46, %c2_47, %c1_48, %c0_49] : memref<2x18x18x4xf32, #tpu.memory_space<vmem>>, vector<2x16x16x4xf32>
    %65 = vector.broadcast %31 : vector<1x1x1x4xf32> to vector<2x16x16x4xf32>
    %66 = arith.mulf %64, %65 : vector<2x16x16x4xf32>
    %67 = arith.addf %63, %66 : vector<2x16x16x4xf32>
    %c0_50 = arith.constant 0 : index
    %c2_51 = arith.constant 2 : index
    %c2_52 = arith.constant 2 : index
    %c0_53 = arith.constant 0 : index
    %68 = vector.load %arg11[%c0_50, %c2_51, %c2_52, %c0_53] : memref<2x18x18x4xf32, #tpu.memory_space<vmem>>, vector<2x16x16x4xf32>
    %69 = vector.broadcast %34 : vector<1x1x1x4xf32> to vector<2x16x16x4xf32>
    %70 = arith.mulf %68, %69 : vector<2x16x16x4xf32>
    %71 = arith.addf %67, %70 : vector<2x16x16x4xf32>
    %72 = vector.shape_cast %71 : vector<2x16x16x4xf32> to vector<512x4xf32>
    %73 = arith.truncf %72 : vector<512x4xf32> to vector<512x4xbf16>
    %74 = arith.truncf %2 : vector<4x32xf32> to vector<4x32xbf16>
    %cst_54 = arith.constant dense<0.000000e+00> : vector<512x32xf32>
    %75 = tpu.matmul %73, %74, %cst_54 {dimension_numbers = #tpu.dot_dimension_numbers<[1], [0], [0], [1], [0, 0, 1, 1], [], []>} : vector<512x4xbf16>, vector<4x32xbf16>, vector<512x32xf32> -> vector<512x32xf32>
    %cst_55 = arith.constant dense<0.000000e+00> : vector<32xf32>
    %76 = vector.multi_reduction <add>, %75, %cst_55 [0] : vector<512x32xf32> to vector<32xf32>
    %77 = vector.shape_cast %76 : vector<32xf32> to vector<1x32xf32>
    %cst_56 = arith.constant 5.120000e+02 : f32
    %78 = vector.broadcast %cst_56 : f32 to vector<1x32xf32>
    %79 = arith.divf %77, %78 : vector<1x32xf32>
    %80 = vector.broadcast %79 : vector<1x32xf32> to vector<512x32xf32>
    %81 = arith.subf %75, %80 : vector<512x32xf32>
    %82 = vector.broadcast %79 : vector<1x32xf32> to vector<512x32xf32>
    %83 = arith.subf %75, %82 : vector<512x32xf32>
    %84 = arith.mulf %81, %83 : vector<512x32xf32>
    %cst_57 = arith.constant dense<0.000000e+00> : vector<32xf32>
    %85 = vector.multi_reduction <add>, %84, %cst_57 [0] : vector<512x32xf32> to vector<32xf32>
    %86 = vector.shape_cast %85 : vector<32xf32> to vector<1x32xf32>
    %cst_58 = arith.constant 5.120000e+02 : f32
    %87 = vector.broadcast %cst_58 : f32 to vector<1x32xf32>
    %88 = arith.divf %86, %87 : vector<1x32xf32>
    %cst_59 = arith.constant 9.99999974E-6 : f32
    %89 = vector.broadcast %cst_59 : f32 to vector<1x32xf32>
    %90 = arith.addf %88, %89 : vector<1x32xf32>
    %91 = math.rsqrt %90 : vector<1x32xf32>
    %92 = vector.broadcast %79 : vector<1x32xf32> to vector<512x32xf32>
    %93 = arith.subf %75, %92 : vector<512x32xf32>
    %94 = arith.mulf %3, %91 : vector<1x32xf32>
    %95 = vector.broadcast %94 : vector<1x32xf32> to vector<512x32xf32>
    %96 = arith.mulf %93, %95 : vector<512x32xf32>
    %97 = vector.broadcast %4 : vector<1x32xf32> to vector<512x32xf32>
    %98 = arith.addf %96, %97 : vector<512x32xf32>
    %cst_60 = arith.constant 0.000000e+00 : f32
    %99 = vector.broadcast %cst_60 : f32 to vector<512x32xf32>
    %100 = arith.maximumf %98, %99 : vector<512x32xf32>
    %101 = vector.shape_cast %100 : vector<512x32xf32> to vector<2x16x16x32xf32>
    %c0_61 = arith.constant 0 : index
    %c0_62 = arith.constant 0 : index
    %102 = vector.load %arg5[%c0_61, %c0_62] : memref<9x32xf32, #tpu.memory_space<vmem>>, vector<9x32xf32>
    %c0_63 = arith.constant 0 : index
    %c0_64 = arith.constant 0 : index
    %103 = vector.load %arg6[%c0_63, %c0_64] : memref<32x32xf32, #tpu.memory_space<vmem>>, vector<32x32xf32>
    %c0_65 = arith.constant 0 : index
    %c0_66 = arith.constant 0 : index
    %104 = vector.load %arg7[%c0_65, %c0_66] : memref<1x32xf32, #tpu.memory_space<vmem>>, vector<1x32xf32>
    %c0_67 = arith.constant 0 : index
    %c0_68 = arith.constant 0 : index
    %105 = vector.load %arg8[%c0_67, %c0_68] : memref<1x32xf32, #tpu.memory_space<vmem>>, vector<1x32xf32>
    %cst_69 = arith.constant 0.000000e+00 : f32
    %106 = vector.broadcast %cst_69 : f32 to vector<2x18x18x32xf32>
    %c0_70 = arith.constant 0 : index
    %c0_71 = arith.constant 0 : index
    %c0_72 = arith.constant 0 : index
    %c0_73 = arith.constant 0 : index
    %107 = vector.load %arg12[%c0_70, %c0_71, %c0_72, %c0_73] : memref<2x18x18x32xf32, #tpu.memory_space<vmem>>, vector<2x18x18x32xf32>
    tpu.vector_store %arg12[%c0_70, %c0_71, %c0_72, %c0_73], %106 {strides = array<i32>} : memref<2x18x18x32xf32, #tpu.memory_space<vmem>>, vector<2x18x18x32xf32>,
    %c0_74 = arith.constant 0 : index
    %c1_75 = arith.constant 1 : index
    %c1_76 = arith.constant 1 : index
    %c0_77 = arith.constant 0 : index
    %108 = vector.load %arg12[%c0_74, %c1_75, %c1_76, %c0_77] : memref<2x18x18x32xf32, #tpu.memory_space<vmem>>, vector<2x16x16x32xf32>
    tpu.vector_store %arg12[%c0_74, %c1_75, %c1_76, %c0_77], %101 {strides = array<i32>} : memref<2x18x18x32xf32, #tpu.memory_space<vmem>>, vector<2x16x16x32xf32>,
    %109 = vector.extract_strided_slice %102 {offsets = [0, 0], sizes = [1, 32], strides = [1, 1]} : vector<9x32xf32> to vector<1x32xf32>
    %110 = vector.shape_cast %109 : vector<1x32xf32> to vector<32xf32>
    %111 = vector.shape_cast %110 : vector<32xf32> to vector<1x1x1x32xf32>
    %112 = vector.extract_strided_slice %102 {offsets = [1, 0], sizes = [1, 32], strides = [1, 1]} : vector<9x32xf32> to vector<1x32xf32>
    %113 = vector.shape_cast %112 : vector<1x32xf32> to vector<32xf32>
    %114 = vector.shape_cast %113 : vector<32xf32> to vector<1x1x1x32xf32>
    %115 = vector.extract_strided_slice %102 {offsets = [2, 0], sizes = [1, 32], strides = [1, 1]} : vector<9x32xf32> to vector<1x32xf32>
    %116 = vector.shape_cast %115 : vector<1x32xf32> to vector<32xf32>
    %117 = vector.shape_cast %116 : vector<32xf32> to vector<1x1x1x32xf32>
    %118 = vector.extract_strided_slice %102 {offsets = [3, 0], sizes = [1, 32], strides = [1, 1]} : vector<9x32xf32> to vector<1x32xf32>
    %119 = vector.shape_cast %118 : vector<1x32xf32> to vector<32xf32>
    %120 = vector.shape_cast %119 : vector<32xf32> to vector<1x1x1x32xf32>
    %121 = vector.extract_strided_slice %102 {offsets = [4, 0], sizes = [1, 32], strides = [1, 1]} : vector<9x32xf32> to vector<1x32xf32>
    %122 = vector.shape_cast %121 : vector<1x32xf32> to vector<32xf32>
    %123 = vector.shape_cast %122 : vector<32xf32> to vector<1x1x1x32xf32>
    %124 = vector.extract_strided_slice %102 {offsets = [5, 0], sizes = [1, 32], strides = [1, 1]} : vector<9x32xf32> to vector<1x32xf32>
    %125 = vector.shape_cast %124 : vector<1x32xf32> to vector<32xf32>
    %126 = vector.shape_cast %125 : vector<32xf32> to vector<1x1x1x32xf32>
    %127 = vector.extract_strided_slice %102 {offsets = [6, 0], sizes = [1, 32], strides = [1, 1]} : vector<9x32xf32> to vector<1x32xf32>
    %128 = vector.shape_cast %127 : vector<1x32xf32> to vector<32xf32>
    %129 = vector.shape_cast %128 : vector<32xf32> to vector<1x1x1x32xf32>
    %130 = vector.extract_strided_slice %102 {offsets = [7, 0], sizes = [1, 32], strides = [1, 1]} : vector<9x32xf32> to vector<1x32xf32>
    %131 = vector.shape_cast %130 : vector<1x32xf32> to vector<32xf32>
    %132 = vector.shape_cast %131 : vector<32xf32> to vector<1x1x1x32xf32>
    %133 = vector.extract_strided_slice %102 {offsets = [8, 0], sizes = [1, 32], strides = [1, 1]} : vector<9x32xf32> to vector<1x32xf32>
    %134 = vector.shape_cast %133 : vector<1x32xf32> to vector<32xf32>
    %135 = vector.shape_cast %134 : vector<32xf32> to vector<1x1x1x32xf32>
    %cst_78 = arith.constant 0.000000e+00 : f32
    %136 = vector.broadcast %cst_78 : f32 to vector<2x16x16x32xf32>
    %c0_79 = arith.constant 0 : index
    %c0_80 = arith.constant 0 : index
    %c0_81 = arith.constant 0 : index
    %c0_82 = arith.constant 0 : index
    %137 = vector.load %arg12[%c0_79, %c0_80, %c0_81, %c0_82] : memref<2x18x18x32xf32, #tpu.memory_space<vmem>>, vector<2x16x16x32xf32>
    %138 = vector.broadcast %111 : vector<1x1x1x32xf32> to vector<2x16x16x32xf32>
    %139 = arith.mulf %137, %138 : vector<2x16x16x32xf32>
    %140 = arith.addf %136, %139 : vector<2x16x16x32xf32>
    %c0_83 = arith.constant 0 : index
    %c0_84 = arith.constant 0 : index
    %c1_85 = arith.constant 1 : index
    %c0_86 = arith.constant 0 : index
    %141 = vector.load %arg12[%c0_83, %c0_84, %c1_85, %c0_86] : memref<2x18x18x32xf32, #tpu.memory_space<vmem>>, vector<2x16x16x32xf32>
    %142 = vector.broadcast %114 : vector<1x1x1x32xf32> to vector<2x16x16x32xf32>
    %143 = arith.mulf %141, %142 : vector<2x16x16x32xf32>
    %144 = arith.addf %140, %143 : vector<2x16x16x32xf32>
    %c0_87 = arith.constant 0 : index
    %c0_88 = arith.constant 0 : index
    %c2_89 = arith.constant 2 : index
    %c0_90 = arith.constant 0 : index
    %145 = vector.load %arg12[%c0_87, %c0_88, %c2_89, %c0_90] : memref<2x18x18x32xf32, #tpu.memory_space<vmem>>, vector<2x16x16x32xf32>
    %146 = vector.broadcast %117 : vector<1x1x1x32xf32> to vector<2x16x16x32xf32>
    %147 = arith.mulf %145, %146 : vector<2x16x16x32xf32>
    %148 = arith.addf %144, %147 : vector<2x16x16x32xf32>
    %c0_91 = arith.constant 0 : index
    %c1_92 = arith.constant 1 : index
    %c0_93 = arith.constant 0 : index
    %c0_94 = arith.constant 0 : index
    %149 = vector.load %arg12[%c0_91, %c1_92, %c0_93, %c0_94] : memref<2x18x18x32xf32, #tpu.memory_space<vmem>>, vector<2x16x16x32xf32>
    %150 = vector.broadcast %120 : vector<1x1x1x32xf32> to vector<2x16x16x32xf32>
    %151 = arith.mulf %149, %150 : vector<2x16x16x32xf32>
    %152 = arith.addf %148, %151 : vector<2x16x16x32xf32>
    %c0_95 = arith.constant 0 : index
    %c1_96 = arith.constant 1 : index
    %c1_97 = arith.constant 1 : index
    %c0_98 = arith.constant 0 : index
    %153 = vector.load %arg12[%c0_95, %c1_96, %c1_97, %c0_98] : memref<2x18x18x32xf32, #tpu.memory_space<vmem>>, vector<2x16x16x32xf32>
    %154 = vector.broadcast %123 : vector<1x1x1x32xf32> to vector<2x16x16x32xf32>
    %155 = arith.mulf %153, %154 : vector<2x16x16x32xf32>
    %156 = arith.addf %152, %155 : vector<2x16x16x32xf32>
    %c0_99 = arith.constant 0 : index
    %c1_100 = arith.constant 1 : index
    %c2_101 = arith.constant 2 : index
    %c0_102 = arith.constant 0 : index
    %157 = vector.load %arg12[%c0_99, %c1_100, %c2_101, %c0_102] : memref<2x18x18x32xf32, #tpu.memory_space<vmem>>, vector<2x16x16x32xf32>
    %158 = vector.broadcast %126 : vector<1x1x1x32xf32> to vector<2x16x16x32xf32>
    %159 = arith.mulf %157, %158 : vector<2x16x16x32xf32>
    %160 = arith.addf %156, %159 : vector<2x16x16x32xf32>
    %c0_103 = arith.constant 0 : index
    %c2_104 = arith.constant 2 : index
    %c0_105 = arith.constant 0 : index
    %c0_106 = arith.constant 0 : index
    %161 = vector.load %arg12[%c0_103, %c2_104, %c0_105, %c0_106] : memref<2x18x18x32xf32, #tpu.memory_space<vmem>>, vector<2x16x16x32xf32>
    %162 = vector.broadcast %129 : vector<1x1x1x32xf32> to vector<2x16x16x32xf32>
    %163 = arith.mulf %161, %162 : vector<2x16x16x32xf32>
    %164 = arith.addf %160, %163 : vector<2x16x16x32xf32>
    %c0_107 = arith.constant 0 : index
    %c2_108 = arith.constant 2 : index
    %c1_109 = arith.constant 1 : index
    %c0_110 = arith.constant 0 : index
    %165 = vector.load %arg12[%c0_107, %c2_108, %c1_109, %c0_110] : memref<2x18x18x32xf32, #tpu.memory_space<vmem>>, vector<2x16x16x32xf32>
    %166 = vector.broadcast %132 : vector<1x1x1x32xf32> to vector<2x16x16x32xf32>
    %167 = arith.mulf %165, %166 : vector<2x16x16x32xf32>
    %168 = arith.addf %164, %167 : vector<2x16x16x32xf32>
    %c0_111 = arith.constant 0 : index
    %c2_112 = arith.constant 2 : index
    %c2_113 = arith.constant 2 : index
    %c0_114 = arith.constant 0 : index
    %169 = vector.load %arg12[%c0_111, %c2_112, %c2_113, %c0_114] : memref<2x18x18x32xf32, #tpu.memory_space<vmem>>, vector<2x16x16x32xf32>
    %170 = vector.broadcast %135 : vector<1x1x1x32xf32> to vector<2x16x16x32xf32>
    %171 = arith.mulf %169, %170 : vector<2x16x16x32xf32>
    %172 = arith.addf %168, %171 : vector<2x16x16x32xf32>
    %173 = vector.shape_cast %172 : vector<2x16x16x32xf32> to vector<512x32xf32>
    %174 = arith.truncf %173 : vector<512x32xf32> to vector<512x32xbf16>
    %175 = arith.truncf %103 : vector<32x32xf32> to vector<32x32xbf16>
    %cst_115 = arith.constant dense<0.000000e+00> : vector<512x32xf32>
    %176 = tpu.matmul %174, %175, %cst_115 {dimension_numbers = #tpu.dot_dimension_numbers<[1], [0], [0], [1], [0, 0, 1, 1], [], []>} : vector<512x32xbf16>, vector<32x32xbf16>, vector<512x32xf32> -> vector<512x32xf32>
    %cst_116 = arith.constant dense<0.000000e+00> : vector<32xf32>
    %177 = vector.multi_reduction <add>, %176, %cst_116 [0] : vector<512x32xf32> to vector<32xf32>
    %178 = vector.shape_cast %177 : vector<32xf32> to vector<1x32xf32>
    %cst_117 = arith.constant 5.120000e+02 : f32
    %179 = vector.broadcast %cst_117 : f32 to vector<1x32xf32>
    %180 = arith.divf %178, %179 : vector<1x32xf32>
    %181 = vector.broadcast %180 : vector<1x32xf32> to vector<512x32xf32>
    %182 = arith.subf %176, %181 : vector<512x32xf32>
    %183 = vector.broadcast %180 : vector<1x32xf32> to vector<512x32xf32>
    %184 = arith.subf %176, %183 : vector<512x32xf32>
    %185 = arith.mulf %182, %184 : vector<512x32xf32>
    %cst_118 = arith.constant dense<0.000000e+00> : vector<32xf32>
    %186 = vector.multi_reduction <add>, %185, %cst_118 [0] : vector<512x32xf32> to vector<32xf32>
    %187 = vector.shape_cast %186 : vector<32xf32> to vector<1x32xf32>
    %cst_119 = arith.constant 5.120000e+02 : f32
    %188 = vector.broadcast %cst_119 : f32 to vector<1x32xf32>
    %189 = arith.divf %187, %188 : vector<1x32xf32>
    %cst_120 = arith.constant 9.99999974E-6 : f32
    %190 = vector.broadcast %cst_120 : f32 to vector<1x32xf32>
    %191 = arith.addf %189, %190 : vector<1x32xf32>
    %192 = math.rsqrt %191 : vector<1x32xf32>
    %193 = vector.broadcast %180 : vector<1x32xf32> to vector<512x32xf32>
    %194 = arith.subf %176, %193 : vector<512x32xf32>
    %195 = arith.mulf %104, %192 : vector<1x32xf32>
    %196 = vector.broadcast %195 : vector<1x32xf32> to vector<512x32xf32>
    %197 = arith.mulf %194, %196 : vector<512x32xf32>
    %198 = vector.broadcast %105 : vector<1x32xf32> to vector<512x32xf32>
    %199 = arith.addf %197, %198 : vector<512x32xf32>
    %cst_121 = arith.constant 0.000000e+00 : f32
    %200 = vector.broadcast %cst_121 : f32 to vector<512x32xf32>
    %201 = arith.maximumf %199, %200 : vector<512x32xf32>
    %202 = vector.shape_cast %201 : vector<512x32xf32> to vector<2x16x16x32xf32>
    %203 = vector.shape_cast %202 : vector<2x16x16x32xf32> to vector<2x8x2x16x32xf32>
    %204 = vector.extract_strided_slice %203 {offsets = [0, 0, 0, 0, 0], sizes = [2, 8, 1, 16, 32], strides = [1, 1, 1, 1, 1]} : vector<2x8x2x16x32xf32> to vector<2x8x1x16x32xf32>
    %205 = vector.shape_cast %204 : vector<2x8x1x16x32xf32> to vector<2x8x16x32xf32>
    %206 = vector.extract_strided_slice %203 {offsets = [0, 0, 1, 0, 0], sizes = [2, 8, 1, 16, 32], strides = [1, 1, 1, 1, 1]} : vector<2x8x2x16x32xf32> to vector<2x8x1x16x32xf32>
    %207 = vector.shape_cast %206 : vector<2x8x1x16x32xf32> to vector<2x8x16x32xf32>
    %208 = tpu.iota {dimensions = array<i32: 1>} : vector<2x8x1x32xi32>
    %c2_i32 = arith.constant 2 : i32
    %209 = vector.broadcast %c2_i32 : i32 to vector<2x8x1x32xi32>
    %210 = arith.muli %209, %208 : vector<2x8x1x32xi32>
    %c16_i32 = arith.constant 16 : i32
    %211 = vector.broadcast %c16_i32 : i32 to vector<2x8x1x32xi32>
    %212 = arith.muli %210, %211 : vector<2x8x1x32xi32>
    %213 = vector.extract_strided_slice %205 {offsets = [0, 0, 0, 0], sizes = [2, 8, 1, 32], strides = [1, 1, 1, 1]} : vector<2x8x16x32xf32> to vector<2x8x1x32xf32>
    %214 = vector.extract_strided_slice %205 {offsets = [0, 0, 1, 0], sizes = [2, 8, 1, 32], strides = [1, 1, 1, 1]} : vector<2x8x16x32xf32> to vector<2x8x1x32xf32>
    %215 = vector.extract_strided_slice %207 {offsets = [0, 0, 0, 0], sizes = [2, 8, 1, 32], strides = [1, 1, 1, 1]} : vector<2x8x16x32xf32> to vector<2x8x1x32xf32>
    %216 = vector.extract_strided_slice %207 {offsets = [0, 0, 1, 0], sizes = [2, 8, 1, 32], strides = [1, 1, 1, 1]} : vector<2x8x16x32xf32> to vector<2x8x1x32xf32>
    %c0_i32 = arith.constant 0 : i32
    %217 = vector.broadcast %c0_i32 : i32 to vector<2x8x1x32xi32>
    %c0_i32_122 = arith.constant 0 : i32
    %218 = vector.broadcast %c0_i32_122 : i32 to vector<2x8x1x32xi32>
    %219 = arith.cmpf ogt, %214, %213 : vector<2x8x1x32xf32>
    %c0_i32_123 = arith.constant 0 : i32
    %220 = vector.broadcast %c0_i32_123 : i32 to vector<2x8x1x32xi32>
    %221 = arith.select %219, %220, %217 : vector<2x8x1x32xi1>, vector<2x8x1x32xi32>
    %c1_i32 = arith.constant 1 : i32
    %222 = vector.broadcast %c1_i32 : i32 to vector<2x8x1x32xi32>
    %223 = arith.select %219, %222, %218 : vector<2x8x1x32xi1>, vector<2x8x1x32xi32>
    %224 = arith.maximumf %213, %214 : vector<2x8x1x32xf32>
    %225 = arith.cmpf ogt, %215, %224 : vector<2x8x1x32xf32>
    %c1_i32_124 = arith.constant 1 : i32
    %226 = vector.broadcast %c1_i32_124 : i32 to vector<2x8x1x32xi32>
    %227 = arith.select %225, %226, %221 : vector<2x8x1x32xi1>, vector<2x8x1x32xi32>
    %c0_i32_125 = arith.constant 0 : i32
    %228 = vector.broadcast %c0_i32_125 : i32 to vector<2x8x1x32xi32>
    %229 = arith.select %225, %228, %223 : vector<2x8x1x32xi1>, vector<2x8x1x32xi32>
    %230 = arith.maximumf %224, %215 : vector<2x8x1x32xf32>
    %231 = arith.cmpf ogt, %216, %230 : vector<2x8x1x32xf32>
    %c1_i32_126 = arith.constant 1 : i32
    %232 = vector.broadcast %c1_i32_126 : i32 to vector<2x8x1x32xi32>
    %233 = arith.select %231, %232, %227 : vector<2x8x1x32xi1>, vector<2x8x1x32xi32>
    %c1_i32_127 = arith.constant 1 : i32
    %234 = vector.broadcast %c1_i32_127 : i32 to vector<2x8x1x32xi32>
    %235 = arith.select %231, %234, %229 : vector<2x8x1x32xi1>, vector<2x8x1x32xi32>
    %236 = arith.maximumf %230, %216 : vector<2x8x1x32xf32>
    %c16_i32_128 = arith.constant 16 : i32
    %237 = vector.broadcast %c16_i32_128 : i32 to vector<2x8x1x32xi32>
    %238 = arith.muli %233, %237 : vector<2x8x1x32xi32>
    %239 = arith.addi %212, %238 : vector<2x8x1x32xi32>
    %c0_i32_129 = arith.constant 0 : i32
    %240 = vector.broadcast %c0_i32_129 : i32 to vector<2x8x1x32xi32>
    %241 = arith.addi %239, %240 : vector<2x8x1x32xi32>
    %242 = arith.addi %241, %235 : vector<2x8x1x32xi32>
    %c0_130 = arith.constant 0 : index
    %c0_131 = arith.constant 0 : index
    %c0_132 = arith.constant 0 : index
    %c0_133 = arith.constant 0 : index
    %243 = vector.load %arg9[%c0_130, %c0_131, %c0_132, %c0_133] : memref<2x8x8x32xf32, #tpu.memory_space<vmem>>, vector<2x8x1x32xf32>
    tpu.vector_store %arg9[%c0_130, %c0_131, %c0_132, %c0_133], %236 {strides = array<i32>} : memref<2x8x8x32xf32, #tpu.memory_space<vmem>>, vector<2x8x1x32xf32>,
    %c0_134 = arith.constant 0 : index
    %c0_135 = arith.constant 0 : index
    %c0_136 = arith.constant 0 : index
    %c0_137 = arith.constant 0 : index
    %244 = vector.load %arg10[%c0_134, %c0_135, %c0_136, %c0_137] : memref<2x8x8x32xi32, #tpu.memory_space<vmem>>, vector<2x8x1x32xi32>
    tpu.vector_store %arg10[%c0_134, %c0_135, %c0_136, %c0_137], %242 {strides = array<i32>} : memref<2x8x8x32xi32, #tpu.memory_space<vmem>>, vector<2x8x1x32xi32>,
    %245 = vector.extract_strided_slice %205 {offsets = [0, 0, 2, 0], sizes = [2, 8, 1, 32], strides = [1, 1, 1, 1]} : vector<2x8x16x32xf32> to vector<2x8x1x32xf32>
    %246 = vector.extract_strided_slice %205 {offsets = [0, 0, 3, 0], sizes = [2, 8, 1, 32], strides = [1, 1, 1, 1]} : vector<2x8x16x32xf32> to vector<2x8x1x32xf32>
    %247 = vector.extract_strided_slice %207 {offsets = [0, 0, 2, 0], sizes = [2, 8, 1, 32], strides = [1, 1, 1, 1]} : vector<2x8x16x32xf32> to vector<2x8x1x32xf32>
    %248 = vector.extract_strided_slice %207 {offsets = [0, 0, 3, 0], sizes = [2, 8, 1, 32], strides = [1, 1, 1, 1]} : vector<2x8x16x32xf32> to vector<2x8x1x32xf32>
    %c0_i32_138 = arith.constant 0 : i32
    %249 = vector.broadcast %c0_i32_138 : i32 to vector<2x8x1x32xi32>
    %c0_i32_139 = arith.constant 0 : i32
    %250 = vector.broadcast %c0_i32_139 : i32 to vector<2x8x1x32xi32>
    %251 = arith.cmpf ogt, %246, %245 : vector<2x8x1x32xf32>
    %c0_i32_140 = arith.constant 0 : i32
    %252 = vector.broadcast %c0_i32_140 : i32 to vector<2x8x1x32xi32>
    %253 = arith.select %251, %252, %249 : vector<2x8x1x32xi1>, vector<2x8x1x32xi32>
    %c1_i32_141 = arith.constant 1 : i32
    %254 = vector.broadcast %c1_i32_141 : i32 to vector<2x8x1x32xi32>
    %255 = arith.select %251, %254, %250 : vector<2x8x1x32xi1>, vector<2x8x1x32xi32>
    %256 = arith.maximumf %245, %246 : vector<2x8x1x32xf32>
    %257 = arith.cmpf ogt, %247, %256 : vector<2x8x1x32xf32>
    %c1_i32_142 = arith.constant 1 : i32
    %258 = vector.broadcast %c1_i32_142 : i32 to vector<2x8x1x32xi32>
    %259 = arith.select %257, %258, %253 : vector<2x8x1x32xi1>, vector<2x8x1x32xi32>
    %c0_i32_143 = arith.constant 0 : i32
    %260 = vector.broadcast %c0_i32_143 : i32 to vector<2x8x1x32xi32>
    %261 = arith.select %257, %260, %255 : vector<2x8x1x32xi1>, vector<2x8x1x32xi32>
    %262 = arith.maximumf %256, %247 : vector<2x8x1x32xf32>
    %263 = arith.cmpf ogt, %248, %262 : vector<2x8x1x32xf32>
    %c1_i32_144 = arith.constant 1 : i32
    %264 = vector.broadcast %c1_i32_144 : i32 to vector<2x8x1x32xi32>
    %265 = arith.select %263, %264, %259 : vector<2x8x1x32xi1>, vector<2x8x1x32xi32>
    %c1_i32_145 = arith.constant 1 : i32
    %266 = vector.broadcast %c1_i32_145 : i32 to vector<2x8x1x32xi32>
    %267 = arith.select %263, %266, %261 : vector<2x8x1x32xi1>, vector<2x8x1x32xi32>
    %268 = arith.maximumf %262, %248 : vector<2x8x1x32xf32>
    %c16_i32_146 = arith.constant 16 : i32
    %269 = vector.broadcast %c16_i32_146 : i32 to vector<2x8x1x32xi32>
    %270 = arith.muli %265, %269 : vector<2x8x1x32xi32>
    %271 = arith.addi %212, %270 : vector<2x8x1x32xi32>
    %c2_i32_147 = arith.constant 2 : i32
    %272 = vector.broadcast %c2_i32_147 : i32 to vector<2x8x1x32xi32>
    %273 = arith.addi %271, %272 : vector<2x8x1x32xi32>
    %274 = arith.addi %273, %267 : vector<2x8x1x32xi32>
    %c0_148 = arith.constant 0 : index
    %c0_149 = arith.constant 0 : index
    %c1_150 = arith.constant 1 : index
    %c0_151 = arith.constant 0 : index
    %275 = vector.load %arg9[%c0_148, %c0_149, %c1_150, %c0_151] : memref<2x8x8x32xf32, #tpu.memory_space<vmem>>, vector<2x8x1x32xf32>
    tpu.vector_store %arg9[%c0_148, %c0_149, %c1_150, %c0_151], %268 {strides = array<i32>} : memref<2x8x8x32xf32, #tpu.memory_space<vmem>>, vector<2x8x1x32xf32>,
    %c0_152 = arith.constant 0 : index
    %c0_153 = arith.constant 0 : index
    %c1_154 = arith.constant 1 : index
    %c0_155 = arith.constant 0 : index
    %276 = vector.load %arg10[%c0_152, %c0_153, %c1_154, %c0_155] : memref<2x8x8x32xi32, #tpu.memory_space<vmem>>, vector<2x8x1x32xi32>
    tpu.vector_store %arg10[%c0_152, %c0_153, %c1_154, %c0_155], %274 {strides = array<i32>} : memref<2x8x8x32xi32, #tpu.memory_space<vmem>>, vector<2x8x1x32xi32>,
    %277 = vector.extract_strided_slice %205 {offsets = [0, 0, 4, 0], sizes = [2, 8, 1, 32], strides = [1, 1, 1, 1]} : vector<2x8x16x32xf32> to vector<2x8x1x32xf32>
    %278 = vector.extract_strided_slice %205 {offsets = [0, 0, 5, 0], sizes = [2, 8, 1, 32], strides = [1, 1, 1, 1]} : vector<2x8x16x32xf32> to vector<2x8x1x32xf32>
    %279 = vector.extract_strided_slice %207 {offsets = [0, 0, 4, 0], sizes = [2, 8, 1, 32], strides = [1, 1, 1, 1]} : vector<2x8x16x32xf32> to vector<2x8x1x32xf32>
    %280 = vector.extract_strided_slice %207 {offsets = [0, 0, 5, 0], sizes = [2, 8, 1, 32], strides = [1, 1, 1, 1]} : vector<2x8x16x32xf32> to vector<2x8x1x32xf32>
    %c0_i32_156 = arith.constant 0 : i32
    %281 = vector.broadcast %c0_i32_156 : i32 to vector<2x8x1x32xi32>
    %c0_i32_157 = arith.constant 0 : i32
    %282 = vector.broadcast %c0_i32_157 : i32 to vector<2x8x1x32xi32>
    %283 = arith.cmpf ogt, %278, %277 : vector<2x8x1x32xf32>
    %c0_i32_158 = arith.constant 0 : i32
    %284 = vector.broadcast %c0_i32_158 : i32 to vector<2x8x1x32xi32>
    %285 = arith.select %283, %284, %281 : vector<2x8x1x32xi1>, vector<2x8x1x32xi32>
    %c1_i32_159 = arith.constant 1 : i32
    %286 = vector.broadcast %c1_i32_159 : i32 to vector<2x8x1x32xi32>
    %287 = arith.select %283, %286, %282 : vector<2x8x1x32xi1>, vector<2x8x1x32xi32>
    %288 = arith.maximumf %277, %278 : vector<2x8x1x32xf32>
    %289 = arith.cmpf ogt, %279, %288 : vector<2x8x1x32xf32>
    %c1_i32_160 = arith.constant 1 : i32
    %290 = vector.broadcast %c1_i32_160 : i32 to vector<2x8x1x32xi32>
    %291 = arith.select %289, %290, %285 : vector<2x8x1x32xi1>, vector<2x8x1x32xi32>
    %c0_i32_161 = arith.constant 0 : i32
    %292 = vector.broadcast %c0_i32_161 : i32 to vector<2x8x1x32xi32>
    %293 = arith.select %289, %292, %287 : vector<2x8x1x32xi1>, vector<2x8x1x32xi32>
    %294 = arith.maximumf %288, %279 : vector<2x8x1x32xf32>
    %295 = arith.cmpf ogt, %280, %294 : vector<2x8x1x32xf32>
    %c1_i32_162 = arith.constant 1 : i32
    %296 = vector.broadcast %c1_i32_162 : i32 to vector<2x8x1x32xi32>
    %297 = arith.select %295, %296, %291 : vector<2x8x1x32xi1>, vector<2x8x1x32xi32>
    %c1_i32_163 = arith.constant 1 : i32
    %298 = vector.broadcast %c1_i32_163 : i32 to vector<2x8x1x32xi32>
    %299 = arith.select %295, %298, %293 : vector<2x8x1x32xi1>, vector<2x8x1x32xi32>
    %300 = arith.maximumf %294, %280 : vector<2x8x1x32xf32>
    %c16_i32_164 = arith.constant 16 : i32
    %301 = vector.broadcast %c16_i32_164 : i32 to vector<2x8x1x32xi32>
    %302 = arith.muli %297, %301 : vector<2x8x1x32xi32>
    %303 = arith.addi %212, %302 : vector<2x8x1x32xi32>
    %c4_i32 = arith.constant 4 : i32
    %304 = vector.broadcast %c4_i32 : i32 to vector<2x8x1x32xi32>
    %305 = arith.addi %303, %304 : vector<2x8x1x32xi32>
    %306 = arith.addi %305, %299 : vector<2x8x1x32xi32>
    %c0_165 = arith.constant 0 : index
    %c0_166 = arith.constant 0 : index
    %c2_167 = arith.constant 2 : index
    %c0_168 = arith.constant 0 : index
    %307 = vector.load %arg9[%c0_165, %c0_166, %c2_167, %c0_168] : memref<2x8x8x32xf32, #tpu.memory_space<vmem>>, vector<2x8x1x32xf32>
    tpu.vector_store %arg9[%c0_165, %c0_166, %c2_167, %c0_168], %300 {strides = array<i32>} : memref<2x8x8x32xf32, #tpu.memory_space<vmem>>, vector<2x8x1x32xf32>,
    %c0_169 = arith.constant 0 : index
    %c0_170 = arith.constant 0 : index
    %c2_171 = arith.constant 2 : index
    %c0_172 = arith.constant 0 : index
    %308 = vector.load %arg10[%c0_169, %c0_170, %c2_171, %c0_172] : memref<2x8x8x32xi32, #tpu.memory_space<vmem>>, vector<2x8x1x32xi32>
    tpu.vector_store %arg10[%c0_169, %c0_170, %c2_171, %c0_172], %306 {strides = array<i32>} : memref<2x8x8x32xi32, #tpu.memory_space<vmem>>, vector<2x8x1x32xi32>,
    %309 = vector.extract_strided_slice %205 {offsets = [0, 0, 6, 0], sizes = [2, 8, 1, 32], strides = [1, 1, 1, 1]} : vector<2x8x16x32xf32> to vector<2x8x1x32xf32>
    %310 = vector.extract_strided_slice %205 {offsets = [0, 0, 7, 0], sizes = [2, 8, 1, 32], strides = [1, 1, 1, 1]} : vector<2x8x16x32xf32> to vector<2x8x1x32xf32>
    %311 = vector.extract_strided_slice %207 {offsets = [0, 0, 6, 0], sizes = [2, 8, 1, 32], strides = [1, 1, 1, 1]} : vector<2x8x16x32xf32> to vector<2x8x1x32xf32>
    %312 = vector.extract_strided_slice %207 {offsets = [0, 0, 7, 0], sizes = [2, 8, 1, 32], strides = [1, 1, 1, 1]} : vector<2x8x16x32xf32> to vector<2x8x1x32xf32>
    %c0_i32_173 = arith.constant 0 : i32
    %313 = vector.broadcast %c0_i32_173 : i32 to vector<2x8x1x32xi32>
    %c0_i32_174 = arith.constant 0 : i32
    %314 = vector.broadcast %c0_i32_174 : i32 to vector<2x8x1x32xi32>
    %315 = arith.cmpf ogt, %310, %309 : vector<2x8x1x32xf32>
    %c0_i32_175 = arith.constant 0 : i32
    %316 = vector.broadcast %c0_i32_175 : i32 to vector<2x8x1x32xi32>
    %317 = arith.select %315, %316, %313 : vector<2x8x1x32xi1>, vector<2x8x1x32xi32>
    %c1_i32_176 = arith.constant 1 : i32
    %318 = vector.broadcast %c1_i32_176 : i32 to vector<2x8x1x32xi32>
    %319 = arith.select %315, %318, %314 : vector<2x8x1x32xi1>, vector<2x8x1x32xi32>
    %320 = arith.maximumf %309, %310 : vector<2x8x1x32xf32>
    %321 = arith.cmpf ogt, %311, %320 : vector<2x8x1x32xf32>
    %c1_i32_177 = arith.constant 1 : i32
    %322 = vector.broadcast %c1_i32_177 : i32 to vector<2x8x1x32xi32>
    %323 = arith.select %321, %322, %317 : vector<2x8x1x32xi1>, vector<2x8x1x32xi32>
    %c0_i32_178 = arith.constant 0 : i32
    %324 = vector.broadcast %c0_i32_178 : i32 to vector<2x8x1x32xi32>
    %325 = arith.select %321, %324, %319 : vector<2x8x1x32xi1>, vector<2x8x1x32xi32>
    %326 = arith.maximumf %320, %311 : vector<2x8x1x32xf32>
    %327 = arith.cmpf ogt, %312, %326 : vector<2x8x1x32xf32>
    %c1_i32_179 = arith.constant 1 : i32
    %328 = vector.broadcast %c1_i32_179 : i32 to vector<2x8x1x32xi32>
    %329 = arith.select %327, %328, %323 : vector<2x8x1x32xi1>, vector<2x8x1x32xi32>
    %c1_i32_180 = arith.constant 1 : i32
    %330 = vector.broadcast %c1_i32_180 : i32 to vector<2x8x1x32xi32>
    %331 = arith.select %327, %330, %325 : vector<2x8x1x32xi1>, vector<2x8x1x32xi32>
    %332 = arith.maximumf %326, %312 : vector<2x8x1x32xf32>
    %c16_i32_181 = arith.constant 16 : i32
    %333 = vector.broadcast %c16_i32_181 : i32 to vector<2x8x1x32xi32>
    %334 = arith.muli %329, %333 : vector<2x8x1x32xi32>
    %335 = arith.addi %212, %334 : vector<2x8x1x32xi32>
    %c6_i32 = arith.constant 6 : i32
    %336 = vector.broadcast %c6_i32 : i32 to vector<2x8x1x32xi32>
    %337 = arith.addi %335, %336 : vector<2x8x1x32xi32>
    %338 = arith.addi %337, %331 : vector<2x8x1x32xi32>
    %c0_182 = arith.constant 0 : index
    %c0_183 = arith.constant 0 : index
    %c3 = arith.constant 3 : index
    %c0_184 = arith.constant 0 : index
    %339 = vector.load %arg9[%c0_182, %c0_183, %c3, %c0_184] : memref<2x8x8x32xf32, #tpu.memory_space<vmem>>, vector<2x8x1x32xf32>
    tpu.vector_store %arg9[%c0_182, %c0_183, %c3, %c0_184], %332 {strides = array<i32>} : memref<2x8x8x32xf32, #tpu.memory_space<vmem>>, vector<2x8x1x32xf32>,
    %c0_185 = arith.constant 0 : index
    %c0_186 = arith.constant 0 : index
    %c3_187 = arith.constant 3 : index
    %c0_188 = arith.constant 0 : index
    %340 = vector.load %arg10[%c0_185, %c0_186, %c3_187, %c0_188] : memref<2x8x8x32xi32, #tpu.memory_space<vmem>>, vector<2x8x1x32xi32>
    tpu.vector_store %arg10[%c0_185, %c0_186, %c3_187, %c0_188], %338 {strides = array<i32>} : memref<2x8x8x32xi32, #tpu.memory_space<vmem>>, vector<2x8x1x32xi32>,
    %341 = vector.extract_strided_slice %205 {offsets = [0, 0, 8, 0], sizes = [2, 8, 1, 32], strides = [1, 1, 1, 1]} : vector<2x8x16x32xf32> to vector<2x8x1x32xf32>
    %342 = vector.extract_strided_slice %205 {offsets = [0, 0, 9, 0], sizes = [2, 8, 1, 32], strides = [1, 1, 1, 1]} : vector<2x8x16x32xf32> to vector<2x8x1x32xf32>
    %343 = vector.extract_strided_slice %207 {offsets = [0, 0, 8, 0], sizes = [2, 8, 1, 32], strides = [1, 1, 1, 1]} : vector<2x8x16x32xf32> to vector<2x8x1x32xf32>
    %344 = vector.extract_strided_slice %207 {offsets = [0, 0, 9, 0], sizes = [2, 8, 1, 32], strides = [1, 1, 1, 1]} : vector<2x8x16x32xf32> to vector<2x8x1x32xf32>
    %c0_i32_189 = arith.constant 0 : i32
    %345 = vector.broadcast %c0_i32_189 : i32 to vector<2x8x1x32xi32>
    %c0_i32_190 = arith.constant 0 : i32
    %346 = vector.broadcast %c0_i32_190 : i32 to vector<2x8x1x32xi32>
    %347 = arith.cmpf ogt, %342, %341 : vector<2x8x1x32xf32>
    %c0_i32_191 = arith.constant 0 : i32
    %348 = vector.broadcast %c0_i32_191 : i32 to vector<2x8x1x32xi32>
    %349 = arith.select %347, %348, %345 : vector<2x8x1x32xi1>, vector<2x8x1x32xi32>
    %c1_i32_192 = arith.constant 1 : i32
    %350 = vector.broadcast %c1_i32_192 : i32 to vector<2x8x1x32xi32>
    %351 = arith.select %347, %350, %346 : vector<2x8x1x32xi1>, vector<2x8x1x32xi32>
    %352 = arith.maximumf %341, %342 : vector<2x8x1x32xf32>
    %353 = arith.cmpf ogt, %343, %352 : vector<2x8x1x32xf32>
    %c1_i32_193 = arith.constant 1 : i32
    %354 = vector.broadcast %c1_i32_193 : i32 to vector<2x8x1x32xi32>
    %355 = arith.select %353, %354, %349 : vector<2x8x1x32xi1>, vector<2x8x1x32xi32>
    %c0_i32_194 = arith.constant 0 : i32
    %356 = vector.broadcast %c0_i32_194 : i32 to vector<2x8x1x32xi32>
    %357 = arith.select %353, %356, %351 : vector<2x8x1x32xi1>, vector<2x8x1x32xi32>
    %358 = arith.maximumf %352, %343 : vector<2x8x1x32xf32>
    %359 = arith.cmpf ogt, %344, %358 : vector<2x8x1x32xf32>
    %c1_i32_195 = arith.constant 1 : i32
    %360 = vector.broadcast %c1_i32_195 : i32 to vector<2x8x1x32xi32>
    %361 = arith.select %359, %360, %355 : vector<2x8x1x32xi1>, vector<2x8x1x32xi32>
    %c1_i32_196 = arith.constant 1 : i32
    %362 = vector.broadcast %c1_i32_196 : i32 to vector<2x8x1x32xi32>
    %363 = arith.select %359, %362, %357 : vector<2x8x1x32xi1>, vector<2x8x1x32xi32>
    %364 = arith.maximumf %358, %344 : vector<2x8x1x32xf32>
    %c16_i32_197 = arith.constant 16 : i32
    %365 = vector.broadcast %c16_i32_197 : i32 to vector<2x8x1x32xi32>
    %366 = arith.muli %361, %365 : vector<2x8x1x32xi32>
    %367 = arith.addi %212, %366 : vector<2x8x1x32xi32>
    %c8_i32 = arith.constant 8 : i32
    %368 = vector.broadcast %c8_i32 : i32 to vector<2x8x1x32xi32>
    %369 = arith.addi %367, %368 : vector<2x8x1x32xi32>
    %370 = arith.addi %369, %363 : vector<2x8x1x32xi32>
    %c0_198 = arith.constant 0 : index
    %c0_199 = arith.constant 0 : index
    %c4 = arith.constant 4 : index
    %c0_200 = arith.constant 0 : index
    %371 = vector.load %arg9[%c0_198, %c0_199, %c4, %c0_200] : memref<2x8x8x32xf32, #tpu.memory_space<vmem>>, vector<2x8x1x32xf32>
    tpu.vector_store %arg9[%c0_198, %c0_199, %c4, %c0_200], %364 {strides = array<i32>} : memref<2x8x8x32xf32, #tpu.memory_space<vmem>>, vector<2x8x1x32xf32>,
    %c0_201 = arith.constant 0 : index
    %c0_202 = arith.constant 0 : index
    %c4_203 = arith.constant 4 : index
    %c0_204 = arith.constant 0 : index
    %372 = vector.load %arg10[%c0_201, %c0_202, %c4_203, %c0_204] : memref<2x8x8x32xi32, #tpu.memory_space<vmem>>, vector<2x8x1x32xi32>
    tpu.vector_store %arg10[%c0_201, %c0_202, %c4_203, %c0_204], %370 {strides = array<i32>} : memref<2x8x8x32xi32, #tpu.memory_space<vmem>>, vector<2x8x1x32xi32>,
    %373 = vector.extract_strided_slice %205 {offsets = [0, 0, 10, 0], sizes = [2, 8, 1, 32], strides = [1, 1, 1, 1]} : vector<2x8x16x32xf32> to vector<2x8x1x32xf32>
    %374 = vector.extract_strided_slice %205 {offsets = [0, 0, 11, 0], sizes = [2, 8, 1, 32], strides = [1, 1, 1, 1]} : vector<2x8x16x32xf32> to vector<2x8x1x32xf32>
    %375 = vector.extract_strided_slice %207 {offsets = [0, 0, 10, 0], sizes = [2, 8, 1, 32], strides = [1, 1, 1, 1]} : vector<2x8x16x32xf32> to vector<2x8x1x32xf32>
    %376 = vector.extract_strided_slice %207 {offsets = [0, 0, 11, 0], sizes = [2, 8, 1, 32], strides = [1, 1, 1, 1]} : vector<2x8x16x32xf32> to vector<2x8x1x32xf32>
    %c0_i32_205 = arith.constant 0 : i32
    %377 = vector.broadcast %c0_i32_205 : i32 to vector<2x8x1x32xi32>
    %c0_i32_206 = arith.constant 0 : i32
    %378 = vector.broadcast %c0_i32_206 : i32 to vector<2x8x1x32xi32>
    %379 = arith.cmpf ogt, %374, %373 : vector<2x8x1x32xf32>
    %c0_i32_207 = arith.constant 0 : i32
    %380 = vector.broadcast %c0_i32_207 : i32 to vector<2x8x1x32xi32>
    %381 = arith.select %379, %380, %377 : vector<2x8x1x32xi1>, vector<2x8x1x32xi32>
    %c1_i32_208 = arith.constant 1 : i32
    %382 = vector.broadcast %c1_i32_208 : i32 to vector<2x8x1x32xi32>
    %383 = arith.select %379, %382, %378 : vector<2x8x1x32xi1>, vector<2x8x1x32xi32>
    %384 = arith.maximumf %373, %374 : vector<2x8x1x32xf32>
    %385 = arith.cmpf ogt, %375, %384 : vector<2x8x1x32xf32>
    %c1_i32_209 = arith.constant 1 : i32
    %386 = vector.broadcast %c1_i32_209 : i32 to vector<2x8x1x32xi32>
    %387 = arith.select %385, %386, %381 : vector<2x8x1x32xi1>, vector<2x8x1x32xi32>
    %c0_i32_210 = arith.constant 0 : i32
    %388 = vector.broadcast %c0_i32_210 : i32 to vector<2x8x1x32xi32>
    %389 = arith.select %385, %388, %383 : vector<2x8x1x32xi1>, vector<2x8x1x32xi32>
    %390 = arith.maximumf %384, %375 : vector<2x8x1x32xf32>
    %391 = arith.cmpf ogt, %376, %390 : vector<2x8x1x32xf32>
    %c1_i32_211 = arith.constant 1 : i32
    %392 = vector.broadcast %c1_i32_211 : i32 to vector<2x8x1x32xi32>
    %393 = arith.select %391, %392, %387 : vector<2x8x1x32xi1>, vector<2x8x1x32xi32>
    %c1_i32_212 = arith.constant 1 : i32
    %394 = vector.broadcast %c1_i32_212 : i32 to vector<2x8x1x32xi32>
    %395 = arith.select %391, %394, %389 : vector<2x8x1x32xi1>, vector<2x8x1x32xi32>
    %396 = arith.maximumf %390, %376 : vector<2x8x1x32xf32>
    %c16_i32_213 = arith.constant 16 : i32
    %397 = vector.broadcast %c16_i32_213 : i32 to vector<2x8x1x32xi32>
    %398 = arith.muli %393, %397 : vector<2x8x1x32xi32>
    %399 = arith.addi %212, %398 : vector<2x8x1x32xi32>
    %c10_i32 = arith.constant 10 : i32
    %400 = vector.broadcast %c10_i32 : i32 to vector<2x8x1x32xi32>
    %401 = arith.addi %399, %400 : vector<2x8x1x32xi32>
    %402 = arith.addi %401, %395 : vector<2x8x1x32xi32>
    %c0_214 = arith.constant 0 : index
    %c0_215 = arith.constant 0 : index
    %c5 = arith.constant 5 : index
    %c0_216 = arith.constant 0 : index
    %403 = vector.load %arg9[%c0_214, %c0_215, %c5, %c0_216] : memref<2x8x8x32xf32, #tpu.memory_space<vmem>>, vector<2x8x1x32xf32>
    tpu.vector_store %arg9[%c0_214, %c0_215, %c5, %c0_216], %396 {strides = array<i32>} : memref<2x8x8x32xf32, #tpu.memory_space<vmem>>, vector<2x8x1x32xf32>,
    %c0_217 = arith.constant 0 : index
    %c0_218 = arith.constant 0 : index
    %c5_219 = arith.constant 5 : index
    %c0_220 = arith.constant 0 : index
    %404 = vector.load %arg10[%c0_217, %c0_218, %c5_219, %c0_220] : memref<2x8x8x32xi32, #tpu.memory_space<vmem>>, vector<2x8x1x32xi32>
    tpu.vector_store %arg10[%c0_217, %c0_218, %c5_219, %c0_220], %402 {strides = array<i32>} : memref<2x8x8x32xi32, #tpu.memory_space<vmem>>, vector<2x8x1x32xi32>,
    %405 = vector.extract_strided_slice %205 {offsets = [0, 0, 12, 0], sizes = [2, 8, 1, 32], strides = [1, 1, 1, 1]} : vector<2x8x16x32xf32> to vector<2x8x1x32xf32>
    %406 = vector.extract_strided_slice %205 {offsets = [0, 0, 13, 0], sizes = [2, 8, 1, 32], strides = [1, 1, 1, 1]} : vector<2x8x16x32xf32> to vector<2x8x1x32xf32>
    %407 = vector.extract_strided_slice %207 {offsets = [0, 0, 12, 0], sizes = [2, 8, 1, 32], strides = [1, 1, 1, 1]} : vector<2x8x16x32xf32> to vector<2x8x1x32xf32>
    %408 = vector.extract_strided_slice %207 {offsets = [0, 0, 13, 0], sizes = [2, 8, 1, 32], strides = [1, 1, 1, 1]} : vector<2x8x16x32xf32> to vector<2x8x1x32xf32>
    %c0_i32_221 = arith.constant 0 : i32
    %409 = vector.broadcast %c0_i32_221 : i32 to vector<2x8x1x32xi32>
    %c0_i32_222 = arith.constant 0 : i32
    %410 = vector.broadcast %c0_i32_222 : i32 to vector<2x8x1x32xi32>
    %411 = arith.cmpf ogt, %406, %405 : vector<2x8x1x32xf32>
    %c0_i32_223 = arith.constant 0 : i32
    %412 = vector.broadcast %c0_i32_223 : i32 to vector<2x8x1x32xi32>
    %413 = arith.select %411, %412, %409 : vector<2x8x1x32xi1>, vector<2x8x1x32xi32>
    %c1_i32_224 = arith.constant 1 : i32
    %414 = vector.broadcast %c1_i32_224 : i32 to vector<2x8x1x32xi32>
    %415 = arith.select %411, %414, %410 : vector<2x8x1x32xi1>, vector<2x8x1x32xi32>
    %416 = arith.maximumf %405, %406 : vector<2x8x1x32xf32>
    %417 = arith.cmpf ogt, %407, %416 : vector<2x8x1x32xf32>
    %c1_i32_225 = arith.constant 1 : i32
    %418 = vector.broadcast %c1_i32_225 : i32 to vector<2x8x1x32xi32>
    %419 = arith.select %417, %418, %413 : vector<2x8x1x32xi1>, vector<2x8x1x32xi32>
    %c0_i32_226 = arith.constant 0 : i32
    %420 = vector.broadcast %c0_i32_226 : i32 to vector<2x8x1x32xi32>
    %421 = arith.select %417, %420, %415 : vector<2x8x1x32xi1>, vector<2x8x1x32xi32>
    %422 = arith.maximumf %416, %407 : vector<2x8x1x32xf32>
    %423 = arith.cmpf ogt, %408, %422 : vector<2x8x1x32xf32>
    %c1_i32_227 = arith.constant 1 : i32
    %424 = vector.broadcast %c1_i32_227 : i32 to vector<2x8x1x32xi32>
    %425 = arith.select %423, %424, %419 : vector<2x8x1x32xi1>, vector<2x8x1x32xi32>
    %c1_i32_228 = arith.constant 1 : i32
    %426 = vector.broadcast %c1_i32_228 : i32 to vector<2x8x1x32xi32>
    %427 = arith.select %423, %426, %421 : vector<2x8x1x32xi1>, vector<2x8x1x32xi32>
    %428 = arith.maximumf %422, %408 : vector<2x8x1x32xf32>
    %c16_i32_229 = arith.constant 16 : i32
    %429 = vector.broadcast %c16_i32_229 : i32 to vector<2x8x1x32xi32>
    %430 = arith.muli %425, %429 : vector<2x8x1x32xi32>
    %431 = arith.addi %212, %430 : vector<2x8x1x32xi32>
    %c12_i32 = arith.constant 12 : i32
    %432 = vector.broadcast %c12_i32 : i32 to vector<2x8x1x32xi32>
    %433 = arith.addi %431, %432 : vector<2x8x1x32xi32>
    %434 = arith.addi %433, %427 : vector<2x8x1x32xi32>
    %c0_230 = arith.constant 0 : index
    %c0_231 = arith.constant 0 : index
    %c6 = arith.constant 6 : index
    %c0_232 = arith.constant 0 : index
    %435 = vector.load %arg9[%c0_230, %c0_231, %c6, %c0_232] : memref<2x8x8x32xf32, #tpu.memory_space<vmem>>, vector<2x8x1x32xf32>
    tpu.vector_store %arg9[%c0_230, %c0_231, %c6, %c0_232], %428 {strides = array<i32>} : memref<2x8x8x32xf32, #tpu.memory_space<vmem>>, vector<2x8x1x32xf32>,
    %c0_233 = arith.constant 0 : index
    %c0_234 = arith.constant 0 : index
    %c6_235 = arith.constant 6 : index
    %c0_236 = arith.constant 0 : index
    %436 = vector.load %arg10[%c0_233, %c0_234, %c6_235, %c0_236] : memref<2x8x8x32xi32, #tpu.memory_space<vmem>>, vector<2x8x1x32xi32>
    tpu.vector_store %arg10[%c0_233, %c0_234, %c6_235, %c0_236], %434 {strides = array<i32>} : memref<2x8x8x32xi32, #tpu.memory_space<vmem>>, vector<2x8x1x32xi32>,
    %437 = vector.extract_strided_slice %205 {offsets = [0, 0, 14, 0], sizes = [2, 8, 1, 32], strides = [1, 1, 1, 1]} : vector<2x8x16x32xf32> to vector<2x8x1x32xf32>
    %438 = vector.extract_strided_slice %205 {offsets = [0, 0, 15, 0], sizes = [2, 8, 1, 32], strides = [1, 1, 1, 1]} : vector<2x8x16x32xf32> to vector<2x8x1x32xf32>
    %439 = vector.extract_strided_slice %207 {offsets = [0, 0, 14, 0], sizes = [2, 8, 1, 32], strides = [1, 1, 1, 1]} : vector<2x8x16x32xf32> to vector<2x8x1x32xf32>
    %440 = vector.extract_strided_slice %207 {offsets = [0, 0, 15, 0], sizes = [2, 8, 1, 32], strides = [1, 1, 1, 1]} : vector<2x8x16x32xf32> to vector<2x8x1x32xf32>
    %c0_i32_237 = arith.constant 0 : i32
    %441 = vector.broadcast %c0_i32_237 : i32 to vector<2x8x1x32xi32>
    %c0_i32_238 = arith.constant 0 : i32
    %442 = vector.broadcast %c0_i32_238 : i32 to vector<2x8x1x32xi32>
    %443 = arith.cmpf ogt, %438, %437 : vector<2x8x1x32xf32>
    %c0_i32_239 = arith.constant 0 : i32
    %444 = vector.broadcast %c0_i32_239 : i32 to vector<2x8x1x32xi32>
    %445 = arith.select %443, %444, %441 : vector<2x8x1x32xi1>, vector<2x8x1x32xi32>
    %c1_i32_240 = arith.constant 1 : i32
    %446 = vector.broadcast %c1_i32_240 : i32 to vector<2x8x1x32xi32>
    %447 = arith.select %443, %446, %442 : vector<2x8x1x32xi1>, vector<2x8x1x32xi32>
    %448 = arith.maximumf %437, %438 : vector<2x8x1x32xf32>
    %449 = arith.cmpf ogt, %439, %448 : vector<2x8x1x32xf32>
    %c1_i32_241 = arith.constant 1 : i32
    %450 = vector.broadcast %c1_i32_241 : i32 to vector<2x8x1x32xi32>
    %451 = arith.select %449, %450, %445 : vector<2x8x1x32xi1>, vector<2x8x1x32xi32>
    %c0_i32_242 = arith.constant 0 : i32
    %452 = vector.broadcast %c0_i32_242 : i32 to vector<2x8x1x32xi32>
    %453 = arith.select %449, %452, %447 : vector<2x8x1x32xi1>, vector<2x8x1x32xi32>
    %454 = arith.maximumf %448, %439 : vector<2x8x1x32xf32>
    %455 = arith.cmpf ogt, %440, %454 : vector<2x8x1x32xf32>
    %c1_i32_243 = arith.constant 1 : i32
    %456 = vector.broadcast %c1_i32_243 : i32 to vector<2x8x1x32xi32>
    %457 = arith.select %455, %456, %451 : vector<2x8x1x32xi1>, vector<2x8x1x32xi32>
    %c1_i32_244 = arith.constant 1 : i32
    %458 = vector.broadcast %c1_i32_244 : i32 to vector<2x8x1x32xi32>
    %459 = arith.select %455, %458, %453 : vector<2x8x1x32xi1>, vector<2x8x1x32xi32>
    %460 = arith.maximumf %454, %440 : vector<2x8x1x32xf32>
    %c16_i32_245 = arith.constant 16 : i32
    %461 = vector.broadcast %c16_i32_245 : i32 to vector<2x8x1x32xi32>
    %462 = arith.muli %457, %461 : vector<2x8x1x32xi32>
    %463 = arith.addi %212, %462 : vector<2x8x1x32xi32>
    %c14_i32 = arith.constant 14 : i32
    %464 = vector.broadcast %c14_i32 : i32 to vector<2x8x1x32xi32>
    %465 = arith.addi %463, %464 : vector<2x8x1x32xi32>
    %466 = arith.addi %465, %459 : vector<2x8x1x32xi32>
    %c0_246 = arith.constant 0 : index
    %c0_247 = arith.constant 0 : index
    %c7 = arith.constant 7 : index
    %c0_248 = arith.constant 0 : index
    %467 = vector.load %arg9[%c0_246, %c0_247, %c7, %c0_248] : memref<2x8x8x32xf32, #tpu.memory_space<vmem>>, vector<2x8x1x32xf32>
    tpu.vector_store %arg9[%c0_246, %c0_247, %c7, %c0_248], %460 {strides = array<i32>} : memref<2x8x8x32xf32, #tpu.memory_space<vmem>>, vector<2x8x1x32xf32>,
    %c0_249 = arith.constant 0 : index
    %c0_250 = arith.constant 0 : index
    %c7_251 = arith.constant 7 : index
    %c0_252 = arith.constant 0 : index
    %468 = vector.load %arg10[%c0_249, %c0_250, %c7_251, %c0_252] : memref<2x8x8x32xi32, #tpu.memory_space<vmem>>, vector<2x8x1x32xi32>
    tpu.vector_store %arg10[%c0_249, %c0_250, %c7_251, %c0_252], %466 {strides = array<i32>} : memref<2x8x8x32xi32, #tpu.memory_space<vmem>>, vector<2x8x1x32xi32>,
    return
  }
}

</mosaic_0001>

<bundles_post_ra>
// kernel: _down_dsconv2_core.1
= control target key start
LH: loop header
LB: loop body
LE: loop exit
PB: predicated region body
PF: predicated region fallthrough
CT: control target
= control target key end

     0   :  { %16 = vsyncpa [#allocation5], 0  ;;  %vm2175_vm0 = vcmask 1041408   ;;  %vm106_vm1 = vcmask 31744   ;;  %v345_v3 = vlaneseq  ;;  %vm109_vm2 = vcmask 25600   ;;  %s15066_s0 = inlined_call_operand.vmem [shape: f32[2,16,16,4], index: 0, kind: input, shape index: {}]   ;;  %s15067_s1 = inlined_call_operand.vmem [shape: f32[9,4], index: 1, kind: input, shape index: {}]   ;;  %s15068_s2 = inlined_call_operand.vmem [shape: f32[4,32], index: 2, kind: input, shape index: {}]   ;;  %s15069_s3 = inlined_call_operand.vmem [shape: f32[1,32], index: 3, kind: input, shape index: {}]   ;;  %s15070_s4 = inlined_call_operand.vmem [shape: f32[1,32], index: 4, kind: input, shape index: {}]   ;;  %s15071_s5 = inlined_call_operand.vmem [shape: f32[9,32], index: 5, kind: input, shape index: {}]   ;;  %s15072_s6 = inlined_call_operand.vmem [shape: f32[32,32], index: 6, kind: input, shape index: {}]   ;;  %s15073_s7 = inlined_call_operand.vmem [shape: f32[1,32], index: 7, kind: input, shape index: {}]   ;;  %s15074_s8 = inlined_call_operand.vmem [shape: f32[1,32], index: 8, kind: input, shape index: {}]   ;;  %s15075_s9 = inlined_call_operand.hbm [shape: f32[2,8,8,32], index: 9, kind: output, shape index: {0}]   ;;  %s15076_s10 = inlined_call_operand.hbm [shape: s32[2,8,8,32], index: 10, kind: output, shape index: {1}]  }
   0x1   :  { %v103_v0 = vld [vmem:[%s15068_s2] sm:$0xf]  ;;  %v7839_v2 = vld [vmem:[%s15066_s0 + $0x8] sm:$0xff]  ;;  %v7846_v5 = vld [vmem:[%s15066_s0 + $0x10] sm:$0xff]  ;;  %v7767_v8 = vmov 0.0  }
   0x2   :  { %v7834_v1 = vld [vmem:[%s15066_s0] sm:$0xff]  ;;  %v7841_v4 = vpack.c.bf16 %v103_v0, %v103_v0  ;;  %v7851_v6 = vld [vmem:[%s15066_s0 + $0x18] sm:$0xff]  ;;  %107 = vst.msk [vmem:[#allocation2] sm:$0xff] %vm106_vm1, %v7767_v8  ;;  %108 = vst.msk [vmem:[#allocation2 + $0x8] sm:$0xff] %vm106_vm1, %v7767_v8  ;;  %v7876_v9 = vshrl.u32 %v345_v3, 7 }
   0x3   :  { %v7856_v7 = vld [vmem:[%s15067_s1] sm:$0xff]  ;;  %110 = vst.msk [vmem:[#allocation2 + $0x10] sm:$0x3] %vm109_vm2, %v7767_v8  ;;  %113 = vst.msk [vmem:[#allocation2 + $0x28] sm:$0x3] %vm109_vm2, %v7767_v8  ;;  %v42_v11 = vld [vmem:[%s15066_s0 + $0x28] sm:$0xff] }
   0x4   :  { %111 = vst.msk [vmem:[#allocation2 + $0x18] sm:$0xff] %vm106_vm1, %v7767_v8  ;;  %112 = vst.msk [vmem:[#allocation2 + $0x20] sm:$0xff] %vm106_vm1, %v7767_v8  ;;  %v41_v10 = vld [vmem:[%s15066_s0 + $0x20] sm:$0xff]  ;;  %7707 = vmatprep.subr.msk.bf16.mxu0 %vm2175_vm0, %v7841_v4  ;;  %v2177_v12 = vsel %vm2175_vm0, %v7841_v4, 0  ;;  %v43_v13 = vld [vmem:[%s15066_s0 + $0x30] sm:$0xff]  ;;  %v8106_v16 = vsub.s32 0, %v7876_v9 }
   0x5   :  { %114 = vst.msk [vmem:[#allocation2 + $0x30] sm:$0xff] %vm106_vm1, %v7767_v8  ;;  %115 = vst.msk [vmem:[#allocation2 + $0x38] sm:$0xff] %vm106_vm1, %v7767_v8  ;;  %v44_v14 = vld [vmem:[%s15066_s0 + $0x38] sm:$0xff]  ;;  %v45_v15 = vld [vmem:[%s15066_s0 + $0x40] sm:$0xff]  ;;  %7574 = vmatpush3.bf16.msra.mxu0 %v2177_v12  ;;  %v15083_v17 = vsub.s32 1, %v7876_v9  ;;  %v15082_v18 = vsub.s32 2, %v7876_v9 }
   0x6   :  { %116 = vst.msk [vmem:[#allocation2 + $0x40] sm:$0x3] %vm109_vm2, %v7767_v8  ;;  %15271 = vst [vmem:[#allocation10_spill] sm:$0xff] %v7876_v9  ;;  %v15081_v19 = vsub.s32 3, %v7876_v9  ;;  %v46_v20 = vld [vmem:[%s15066_s0 + $0x48] sm:$0xff]  ;;  %v47_v21 = vld [vmem:[%s15066_s0 + $0x50] sm:$0xff]  ;;  %v8133_v27 = vrot.slane %v7856_v7, %v8106_v16 }
   0x7   :  { %117 = vst.msk [vmem:[#allocation2 + $0x48] sm:$0xff] %vm106_vm1, %v7767_v8  ;;  %118 = vst.msk [vmem:[#allocation2 + $0x50] sm:$0xff] %vm106_vm1, %v7767_v8  ;;  %v15080_v22 = vsub.s32 4, %v7876_v9  ;;  %v15079_v23 = vsub.s32 5, %v7876_v9  ;;  %v15078_v24 = vsub.s32 6, %v7876_v9  ;;  %v48_v25 = vld [vmem:[%s15066_s0 + $0x58] sm:$0xff]  ;;  %v8138_v28 = vrot.slane %v7856_v7, %v15083_v17 }
   0x8   :  { %119 = vst.msk [vmem:[#allocation2 + $0x58] sm:$0x3] %vm109_vm2, %v7767_v8  ;;  %122 = vst.msk [vmem:[#allocation2 + $0x70] sm:$0x3] %vm109_vm2, %v7767_v8  ;;  %v49_v26 = vld [vmem:[%s15066_s0 + $0x60] sm:$0xff]  ;;  %v15077_v29 = vsub.s32 7, %v7876_v9  ;;  %v8155_v33 = vrot.slane %v7856_v7, %v15082_v18  ;;  %v8172_v37 = vrot.slane %v7856_v7, %v15081_v19 }
   0x9   :  { %120 = vst.msk [vmem:[#allocation2 + $0x60] sm:$0xff] %vm106_vm1, %v7767_v8  ;;  %121 = vst.msk [vmem:[#allocation2 + $0x68] sm:$0xff] %vm106_vm1, %v7767_v8  ;;  %v50_v30 = vld [vmem:[%s15066_s0 + $0x68] sm:$0xff]  ;;  %v51_v31 = vld [vmem:[%s15066_s0 + $0x70] sm:$0xff]  ;;  %v8177_v38 = vrot.slane %v7856_v7, %v15080_v22  ;;  %v8194_v45 = vrot.slane %v7856_v7, %v15079_v23  ;;  %v8199_v46 = vrot.slane %v7856_v7, %v15078_v24 }
   0xa   :  { %123 = vst.msk [vmem:[#allocation2 + $0x78] sm:$0xff] %vm106_vm1, %v7767_v8  ;;  %124 = vst.msk [vmem:[#allocation2 + $0x80] sm:$0xff] %vm106_vm1, %v7767_v8  ;;  %v52_v32 = vld [vmem:[%s15066_s0 + $0x78] sm:$0xff]  ;;  %v53_v34 = vld [vmem:[%s15066_s0 + $0x80] sm:$0xff]  ;;  %v8215_v54 = vrot.slane %v7856_v7, %v15077_v29 }
   0xb   :  { %125 = vst.msk [vmem:[#allocation2 + $0x88] sm:$0x3] %vm109_vm2, %v7767_v8  ;;  %128 = vst.msk [vmem:[#allocation2 + $0xa0] sm:$0x3] %vm109_vm2, %v7767_v8  ;;  %v54_v35 = vld [vmem:[%s15066_s0 + $0x88] sm:$0xff]  ;;  %v55_v36 = vld [vmem:[%s15066_s0 + $0x90] sm:$0xff] }
   0xc   :  { %126 = vst.msk [vmem:[#allocation2 + $0x90] sm:$0xff] %vm106_vm1, %v7767_v8  ;;  %127 = vst.msk [vmem:[#allocation2 + $0x98] sm:$0xff] %vm106_vm1, %v7767_v8  ;;  %v56_v39 = vld [vmem:[%s15066_s0 + $0x98] sm:$0xff]  ;;  %v57_v40 = vld [vmem:[%s15066_s0 + $0xa0] sm:$0xff] }
   0xd   :  { %129 = vst.msk [vmem:[#allocation2 + $0xa8] sm:$0xff] %vm106_vm1, %v7767_v8  ;;  %130 = vst.msk [vmem:[#allocation2 + $0xb0] sm:$0xff] %vm106_vm1, %v7767_v8  ;;  %v58_v41 = vld [vmem:[%s15066_s0 + $0xa8] sm:$0xff]  ;;  %v281_v42 = vld [vmem:[#allocation2] sm:$0xff] }
   0xe   :  { %131 = vst.msk [vmem:[#allocation2 + $0xb8] sm:$0x3] %vm109_vm2, %v7767_v8  ;;  %134 = vst.msk [vmem:[#allocation2 + $0xd0] sm:$0x3] %vm109_vm2, %v7767_v8  ;;  %v282_v43 = vld [vmem:[#allocation2 + $0x8] sm:$0xff]  ;;  %v349_v48 = vmul.f32 %v8133_v27, %v281_v42 }
   0xf   :  { %132 = vst.msk [vmem:[#allocation2 + $0xc0] sm:$0xff] %vm106_vm1, %v7767_v8  ;;  %133 = vst.msk [vmem:[#allocation2 + $0xc8] sm:$0xff] %vm106_vm1, %v7767_v8  ;;  %v477_v44 = vld [vmem:[#allocation2 + $0x1] sm:$0xff]  ;;  %v350_v49 = vmul.f32 %v8133_v27, %v282_v43  ;;  %v478_v50 = vld [vmem:[#allocation2 + $0x9] sm:$0xff] }
  0x10   :  { %135 = vst.msk [vmem:[#allocation2 + $0xd8] sm:$0xff] %vm106_vm1, %v7767_v8  ;;  %136 = vst.msk [vmem:[#allocation2 + $0xe0] sm:$0xff] %vm106_vm1, %v7767_v8  ;;  %v8207_v47 = vld [vmem:[%s15067_s1 + $0x8] ss:$0 sm:$0xff]  ;;  %v545_v51 = vmul.f32 %v8138_v28, %v477_v44  ;;  %v674_v53 = vld [vmem:[#allocation2 + $0xa] sm:$0xff]  ;;  %v546_v55 = vmul.f32 %v8138_v28, %v478_v50 }
  0x11   :  { %137 = vst.msk [vmem:[#allocation2 + $0xe8] sm:$0x3] %vm109_vm2, %v7767_v8  ;;  %140 = vst.msk [vmem:[#allocation2 + $0x100] sm:$0x3] %vm109_vm2, %v7767_v8  ;;  %v673_v52 = vld [vmem:[#allocation2 + $0x2] sm:$0xff]  ;;  %v742_v57 = vmul.f32 %v8155_v33, %v674_v53 }
  0x12   :  { %138 = vst.msk [vmem:[#allocation2 + $0xf0] sm:$0xff] %vm106_vm1, %v7767_v8  ;;  %139 = vst.msk [vmem:[#allocation2 + $0xf8] sm:$0xff] %vm106_vm1, %v7767_v8  ;;  %v741_v56 = vmul.f32 %v8155_v33, %v673_v52  ;;  %v609_v61 = vadd.f32 %v545_v51, %v349_v48  ;;  %v610_v4 = vadd.f32 %v546_v55, %v350_v49 }
  0x13   :  { %141 = vst.msk [vmem:[#allocation2 + $0x108] sm:$0xff] %vm106_vm1, %v7767_v8  ;;  %142 = vst.msk [vmem:[#allocation2 + $0x110] sm:$0xff] %vm106_vm1, %v7767_v8 }
  0x14   :  { %143 = vst.msk [vmem:[#allocation2 + $0x118] sm:$0x3] %vm109_vm2, %v7767_v8  ;;  %146 = vst.msk [vmem:[#allocation2 + $0x130] sm:$0x3] %vm109_vm2, %v7767_v8 }
  0x15   :  { %144 = vst.msk [vmem:[#allocation2 + $0x120] sm:$0xff] %vm106_vm1, %v7767_v8  ;;  %145 = vst.msk [vmem:[#allocation2 + $0x128] sm:$0xff] %vm106_vm1, %v7767_v8 }
  0x16   :  { %147 = vst.msk [vmem:[#allocation2 + $0x138] sm:$0xff] %vm106_vm1, %v7767_v8  ;;  %148 = vst.msk [vmem:[#allocation2 + $0x140] sm:$0xff] %vm106_vm1, %v7767_v8 }
  0x17   :  { %149 = vst.msk [vmem:[#allocation2 + $0x148] sm:$0x3] %vm109_vm2, %v7767_v8  ;;  %152 = vst.msk [vmem:[#allocation2 + $0x160] sm:$0x3] %vm109_vm2, %v7767_v8 }
  0x18   :  { %150 = vst.msk [vmem:[#allocation2 + $0x150] sm:$0xff] %vm106_vm1, %v7767_v8  ;;  %151 = vst.msk [vmem:[#allocation2 + $0x158] sm:$0xff] %vm106_vm1, %v7767_v8 }
  0x19   :  { %153 = vst.msk [vmem:[#allocation2 + $0x168] sm:$0xff] %vm106_vm1, %v7767_v8  ;;  %154 = vst.msk [vmem:[#allocation2 + $0x170] sm:$0xff] %vm106_vm1, %v7767_v8 }
  0x1a   :  { %155 = vst.msk [vmem:[#allocation2 + $0x178] sm:$0x3] %vm109_vm2, %v7767_v8  ;;  %158 = vst.msk [vmem:[#allocation2 + $0x190] sm:$0x3] %vm109_vm2, %v7767_v8 }
  0x1b   :  { %156 = vst.msk [vmem:[#allocation2 + $0x180] sm:$0xff] %vm106_vm1, %v7767_v8  ;;  %157 = vst.msk [vmem:[#allocation2 + $0x188] sm:$0xff] %vm106_vm1, %v7767_v8 }
  0x1c   :  { %159 = vst.msk [vmem:[#allocation2 + $0x198] sm:$0xff] %vm106_vm1, %v7767_v8  ;;  %160 = vst.msk [vmem:[#allocation2 + $0x1a0] sm:$0xff] %vm106_vm1, %v7767_v8 }
  0x1d   :  { %161 = vst.msk [vmem:[#allocation2 + $0x1a8] sm:$0x3] %vm109_vm2, %v7767_v8  ;;  %164 = vst.msk [vmem:[#allocation2 + $0x1c0] sm:$0x3] %vm109_vm2, %v7767_v8 }
  0x1e   :  { %162 = vst.msk [vmem:[#allocation2 + $0x1b0] sm:$0xff] %vm106_vm1, %v7767_v8  ;;  %163 = vst.msk [vmem:[#allocation2 + $0x1b8] sm:$0xff] %vm106_vm1, %v7767_v8 }
  0x1f   :  { %165 = vst.msk [vmem:[#allocation2 + $0x1c8] sm:$0xff] %vm106_vm1, %v7767_v8  ;;  %166 = vst.msk [vmem:[#allocation2 + $0x1d0] sm:$0xff] %vm106_vm1, %v7767_v8 }
  0x20   :  { %167 = vst.msk [vmem:[#allocation2 + $0x1d8] sm:$0x3] %vm109_vm2, %v7767_v8  ;;  %170 = vst.msk [vmem:[#allocation2 + $0x1f0] sm:$0x3] %vm109_vm2, %v7767_v8 }
  0x21   :  { %168 = vst.msk [vmem:[#allocation2 + $0x1e0] sm:$0xff] %vm106_vm1, %v7767_v8  ;;  %169 = vst.msk [vmem:[#allocation2 + $0x1e8] sm:$0xff] %vm106_vm1, %v7767_v8 }
  0x22   :  { %171 = vst.msk [vmem:[#allocation2 + $0x1f8] sm:$0xff] %vm106_vm1, %v7767_v8  ;;  %172 = vst.msk [vmem:[#allocation2 + $0x200] sm:$0xff] %vm106_vm1, %v7767_v8 }
  0x23   :  { %173 = vst.msk [vmem:[#allocation2 + $0x208] sm:$0x3] %vm109_vm2, %v7767_v8  ;;  %176 = vst.msk [vmem:[#allocation2 + $0x220] sm:$0x3] %vm109_vm2, %v7767_v8 }
  0x24   :  { %174 = vst.msk [vmem:[#allocation2 + $0x210] sm:$0xff] %vm106_vm1, %v7767_v8  ;;  %175 = vst.msk [vmem:[#allocation2 + $0x218] sm:$0xff] %vm106_vm1, %v7767_v8 }
  0x25   :  { %177 = vst.msk [vmem:[#allocation2 + $0x228] sm:$0xff] %vm106_vm1, %v7767_v8  ;;  %178 = vst.msk [vmem:[#allocation2 + $0x230] sm:$0xff] %vm106_vm1, %v7767_v8 }
  0x26   :  { %179 = vst.msk [vmem:[#allocation2 + $0x238] sm:$0x3] %vm109_vm2, %v7767_v8  ;;  %182 = vst.msk [vmem:[#allocation2 + $0x250] sm:$0x3] %vm109_vm2, %v7767_v8 }
  0x27   :  { %180 = vst.msk [vmem:[#allocation2 + $0x240] sm:$0xff] %vm106_vm1, %v7767_v8  ;;  %181 = vst.msk [vmem:[#allocation2 + $0x248] sm:$0xff] %vm106_vm1, %v7767_v8 }
  0x28   :  { %183 = vst.msk [vmem:[#allocation2 + $0x258] sm:$0xff] %vm106_vm1, %v7767_v8  ;;  %184 = vst.msk [vmem:[#allocation2 + $0x260] sm:$0xff] %vm106_vm1, %v7767_v8 }
  0x29   :  { %185 = vst.msk [vmem:[#allocation2 + $0x268] sm:$0x3] %vm109_vm2, %v7767_v8  ;;  %188 = vst.msk [vmem:[#allocation2 + $0x280] sm:$0x3] %vm109_vm2, %v7767_v8 }
  0x2a   :  { %186 = vst.msk [vmem:[#allocation2 + $0x270] sm:$0xff] %vm106_vm1, %v7767_v8  ;;  %187 = vst.msk [vmem:[#allocation2 + $0x278] sm:$0xff] %vm106_vm1, %v7767_v8 }
  0x2b   :  { %189 = vst.msk [vmem:[#allocation2 + $0x288] sm:$0xff] %vm106_vm1, %v7767_v8  ;;  %190 = vst.msk [vmem:[#allocation2 + $0x290] sm:$0xff] %vm106_vm1, %v7767_v8 }
  0x2c   :  { %191 = vst.msk [vmem:[#allocation2 + $0x298] sm:$0x3] %vm109_vm2, %v7767_v8  ;;  %194 = vst.msk [vmem:[#allocation2 + $0x2b0] sm:$0x3] %vm109_vm2, %v7767_v8 }
  0x2d   :  { %192 = vst.msk [vmem:[#allocation2 + $0x2a0] sm:$0xff] %vm106_vm1, %v7767_v8  ;;  %193 = vst.msk [vmem:[#allocation2 + $0x2a8] sm:$0xff] %vm106_vm1, %v7767_v8 }
  0x2e   :  { %195 = vst.msk [vmem:[#allocation2 + $0x2b8] sm:$0xff] %vm106_vm1, %v7767_v8  ;;  %196 = vst.msk [vmem:[#allocation2 + $0x2c0] sm:$0xff] %vm106_vm1, %v7767_v8 }
  0x2f   :  { %197 = vst.msk [vmem:[#allocation2 + $0x2c8] sm:$0x3] %vm109_vm2, %v7767_v8  ;;  %200 = vst.msk [vmem:[#allocation2 + $0x2e0] sm:$0x3] %vm109_vm2, %v7767_v8 }
  0x30   :  { %198 = vst.msk [vmem:[#allocation2 + $0x2d0] sm:$0xff] %vm106_vm1, %v7767_v8  ;;  %199 = vst.msk [vmem:[#allocation2 + $0x2d8] sm:$0xff] %vm106_vm1, %v7767_v8 }
  0x31   :  { %201 = vst.msk [vmem:[#allocation2 + $0x2e8] sm:$0xff] %vm106_vm1, %v7767_v8  ;;  %202 = vst.msk [vmem:[#allocation2 + $0x2f0] sm:$0xff] %vm106_vm1, %v7767_v8 }
  0x32   :  { %203 = vst.msk [vmem:[#allocation2 + $0x2f8] sm:$0x3] %vm109_vm2, %v7767_v8  ;;  %206 = vst.msk [vmem:[#allocation2 + $0x310] sm:$0x3] %vm109_vm2, %v7767_v8 }
  0x33   :  { %204 = vst.msk [vmem:[#allocation2 + $0x300] sm:$0xff] %vm106_vm1, %v7767_v8  ;;  %205 = vst.msk [vmem:[#allocation2 + $0x308] sm:$0xff] %vm106_vm1, %v7767_v8 }
  0x34   :  { %207 = vst.msk [vmem:[#allocation2 + $0x318] sm:$0xff] %vm106_vm1, %v7767_v8  ;;  %208 = vst.msk [vmem:[#allocation2 + $0x320] sm:$0xff] %vm106_vm1, %v7767_v8 }
  0x35   :  { %209 = vst.msk [vmem:[#allocation2 + $0x328] sm:$0x3] %vm109_vm2, %v7767_v8  ;;  %212 = vst.msk [vmem:[#allocation2 + $0x340] sm:$0x3] %vm109_vm2, %v7767_v8 }
  0x36   :  { %210 = vst.msk [vmem:[#allocation2 + $0x330] sm:$0xff] %vm106_vm1, %v7767_v8  ;;  %211 = vst.msk [vmem:[#allocation2 + $0x338] sm:$0xff] %vm106_vm1, %v7767_v8 }
  0x37   :  { %213 = vst.msk [vmem:[#allocation2 + $0x348] sm:$0xff] %vm106_vm1, %v7767_v8  ;;  %214 = vst.msk [vmem:[#allocation2 + $0x350] sm:$0xff] %vm106_vm1, %v7767_v8 }
  0x38   :  { %215 = vst.msk [vmem:[#allocation2 + $0x358] sm:$0x3] %vm109_vm2, %v7767_v8  ;;  %15272 = vst [vmem:[#allocation11_spill] sm:$0xff] %v8106_v16 }
  0x39   :  { %217 = vst.msk [vmem:[#allocation2 + $0x19] sm:$0xff] %vm106_vm1, %v7834_v1  ;;  %218 = vst.msk [vmem:[#allocation2 + $0x21] sm:$0xff] %vm106_vm1, %v7839_v2 }
  0x3a   :  { %219 = vst.msk [vmem:[#allocation2 + $0x31] sm:$0xff] %vm106_vm1, %v7846_v5  ;;  %220 = vst.msk [vmem:[#allocation2 + $0x39] sm:$0xff] %vm106_vm1, %v7851_v6 }
  0x3b   :  { %221 = vst.msk [vmem:[#allocation2 + $0x49] sm:$0xff] %vm106_vm1, %v41_v10  ;;  %222 = vst.msk [vmem:[#allocation2 + $0x51] sm:$0xff] %vm106_vm1, %v42_v11 }
  0x3c   :  { %223 = vst.msk [vmem:[#allocation2 + $0x61] sm:$0xff] %vm106_vm1, %v43_v13  ;;  %224 = vst.msk [vmem:[#allocation2 + $0x69] sm:$0xff] %vm106_vm1, %v44_v14  ;;  %v805_v13 = vadd.f32 %v741_v56, %v609_v61 }
  0x3d   :  { %225 = vst.msk [vmem:[#allocation2 + $0x79] sm:$0xff] %vm106_vm1, %v45_v15  ;;  %226 = vst.msk [vmem:[#allocation2 + $0x81] sm:$0xff] %vm106_vm1, %v46_v20 }
  0x3e   :  { %227 = vst.msk [vmem:[#allocation2 + $0x91] sm:$0xff] %vm106_vm1, %v47_v21  ;;  %228 = vst.msk [vmem:[#allocation2 + $0x99] sm:$0xff] %vm106_vm1, %v48_v25 }
  0x3f   :  { %229 = vst.msk [vmem:[#allocation2 + $0xa9] sm:$0xff] %vm106_vm1, %v49_v26  ;;  %230 = vst.msk [vmem:[#allocation2 + $0xb1] sm:$0xff] %vm106_vm1, %v50_v30  ;;  %v806_v30 = vadd.f32 %v742_v57, %v610_v4 }
  0x40   :  { %231 = vst.msk [vmem:[#allocation2 + $0xc1] sm:$0xff] %vm106_vm1, %v51_v31  ;;  %232 = vst.msk [vmem:[#allocation2 + $0xc9] sm:$0xff] %vm106_vm1, %v52_v32  ;;  %v869_v58 = vld [vmem:[#allocation2 + $0x18] sm:$0xff]  ;;  %v870_v59 = vld [vmem:[#allocation2 + $0x20] sm:$0xff] }
  0x41   :  { %233 = vst.msk [vmem:[#allocation2 + $0xd9] sm:$0xff] %vm106_vm1, %v53_v34  ;;  %234 = vst.msk [vmem:[#allocation2 + $0xe1] sm:$0xff] %vm106_vm1, %v54_v35  ;;  %v1065_v60 = vld [vmem:[#allocation2 + $0x19] sm:$0xff]  ;;  %v937_v62 = vmul.f32 %v8172_v37, %v869_v58  ;;  %v938_v63 = vmul.f32 %v8172_v37, %v870_v59  ;;  %v1066_v0 = vld [vmem:[#allocation2 + $0x21] sm:$0xff] }
  0x42   :  { %235 = vst.msk [vmem:[#allocation2 + $0xf1] sm:$0xff] %vm106_vm1, %v55_v36  ;;  %236 = vst.msk [vmem:[#allocation2 + $0xf9] sm:$0xff] %vm106_vm1, %v56_v39  ;;  %v1133_v1 = vmul.f32 %v8177_v38, %v1065_v60  ;;  %v1261_v2 = vld [vmem:[#allocation2 + $0x1a] sm:$0xff]  ;;  %v1262_v3 = vld [vmem:[#allocation2 + $0x22] sm:$0xff]  ;;  %v1134_v5 = vmul.f32 %v8177_v38, %v1066_v0  ;;  %v351_v36 = vmul.f32 %v869_v58, %v8133_v27 }
  0x43   :  { %237 = vst.msk [vmem:[#allocation2 + $0x109] sm:$0xff] %vm106_vm1, %v57_v40  ;;  %238 = vst.msk [vmem:[#allocation2 + $0x111] sm:$0xff] %vm106_vm1, %v58_v41  ;;  %v1329_v6 = vmul.f32 %v8194_v45, %v1261_v2  ;;  %v1330_v7 = vmul.f32 %v8194_v45, %v1262_v3  ;;  %v1458_v10 = vld [vmem:[#allocation2 + $0x30] sm:$0xff]  ;;  %v1459_v11 = vld [vmem:[#allocation2 + $0x38] sm:$0xff]  ;;  %v1001_v35 = vadd.f32 %v937_v62, %v805_v13 }
  0x44   :  { %v1654_v12 = vld [vmem:[#allocation2 + $0x31] sm:$0xff]  ;;  %v1526_v14 = vmul.f32 %v8199_v46, %v1458_v10  ;;  %v1527_v15 = vmul.f32 %v8199_v46, %v1459_v11  ;;  %v1655_v20 = vld [vmem:[#allocation2 + $0x39] sm:$0xff]  ;;  %v352_v39 = vmul.f32 %v870_v59, %v8133_v27  ;;  %v547_v40 = vmul.f32 %v1065_v60, %v8138_v28  ;;  %v8244_v61 = vld [vmem:[#allocation2 + $0x48] sm:$0xff] }
  0x45   :  { %v1722_v21 = vmul.f32 %v8215_v54, %v1654_v12  ;;  %v1850_v25 = vld [vmem:[#allocation2 + $0x32] sm:$0xff]  ;;  %v1851_v26 = vld [vmem:[#allocation2 + $0x3a] sm:$0xff]  ;;  %v1723_v31 = vmul.f32 %v8215_v54, %v1655_v20  ;;  %v1002_v41 = vadd.f32 %v938_v63, %v806_v30  ;;  %v548_v42 = vmul.f32 %v1066_v0, %v8138_v28 }
  0x46   :  { %v1918_v32 = vmul.f32 %v8207_v47, %v1850_v25  ;;  %v1919_v34 = vmul.f32 %v8207_v47, %v1851_v26  ;;  %v743_v43 = vmul.f32 %v1261_v2, %v8155_v33  ;;  %v744_v44 = vmul.f32 %v1262_v3, %v8155_v33  ;;  %v8246_v62 = vld [vmem:[#allocation2 + $0x50] sm:$0xff] }
  0x47   :  { %v1197_v48 = vadd.f32 %v1133_v1, %v1001_v35  ;;  %v611_v49 = vadd.f32 %v547_v40, %v351_v36  ;;  %v939_v50 = vmul.f32 %v1458_v10, %v8172_v37  ;;  %v940_v51 = vmul.f32 %v1459_v11, %v8172_v37  ;;  %v8252_v3 = vld [vmem:[#allocation2 + $0x49] sm:$0xff]  ;;  %v8254_v4 = vld [vmem:[#allocation2 + $0x51] sm:$0xff] }
  0x48   :  { %v1198_v52 = vadd.f32 %v1134_v5, %v1002_v41  ;;  %v612_v53 = vadd.f32 %v548_v42, %v352_v39  ;;  %v1135_v55 = vmul.f32 %v1654_v12, %v8177_v38  ;;  %v1136_v56 = vmul.f32 %v1655_v20, %v8177_v38  ;;  %v8262_v35 = vld [vmem:[#allocation2 + $0x52] sm:$0xff] }
  0x49   :  { %v1393_v57 = vadd.f32 %v1329_v6, %v1197_v48  ;;  %v807_v58 = vadd.f32 %v743_v43, %v611_v49  ;;  %v1331_v59 = vmul.f32 %v1850_v25, %v8194_v45  ;;  %v1332_v60 = vmul.f32 %v1851_v26, %v8194_v45 }
  0x4a   :  { %v1394_v63 = vadd.f32 %v1330_v7, %v1198_v52  ;;  %v808_v0 = vadd.f32 %v744_v44, %v612_v53  ;;  %v1528_v1 = vmul.f32 %v8199_v46, %v8244_v61  ;;  %v1529_v2 = vmul.f32 %v8199_v46, %v8246_v62  ;;  %v8260_v7 = vld [vmem:[#allocation2 + $0x4a] sm:$0xff] }
  0x4b   :  { %v1590_v5 = vadd.f32 %v1526_v14, %v1393_v57  ;;  %v1003_v6 = vadd.f32 %v939_v50, %v807_v58  ;;  %v1724_v13 = vmul.f32 %v8215_v54, %v8252_v3  ;;  %v1725_v30 = vmul.f32 %v8215_v54, %v8254_v4 }
  0x4c   :  { %v1591_v36 = vadd.f32 %v1527_v15, %v1394_v63  ;;  %v1004_v39 = vadd.f32 %v940_v51, %v808_v0  ;;  %v1920_v40 = vmul.f32 %v8207_v47, %v8260_v7  ;;  %v1921_v41 = vmul.f32 %v8207_v47, %v8262_v35 }
  0x4d   :  { %v1786_v14 = vadd.f32 %v1722_v21, %v1590_v5  ;;  %v1199_v42 = vadd.f32 %v1135_v55, %v1003_v6  ;;  %v353_v43 = vmul.f32 %v1458_v10, %v8133_v27  ;;  %v354_v44 = vmul.f32 %v1459_v11, %v8133_v27 }
  0x4e   :  { %v1787_v48 = vadd.f32 %v1723_v31, %v1591_v36  ;;  %v1200_v49 = vadd.f32 %v1136_v56, %v1004_v39  ;;  %v549_v50 = vmul.f32 %v1654_v12, %v8138_v28  ;;  %v550_v52 = vmul.f32 %v1655_v20, %v8138_v28  ;;  %v8293_v36 = vld [vmem:[#allocation2 + $0x61] sm:$0xff]  ;;  %v8295_v39 = vld [vmem:[#allocation2 + $0x69] sm:$0xff] }
  0x4f   :  { %v1982_v15 = vadd.f32 %v1918_v32, %v1786_v14  ;;  %v1395_v51 = vadd.f32 %v1331_v59, %v1199_v42  ;;  %v745_v53 = vmul.f32 %v1850_v25, %v8155_v33  ;;  %v746_v57 = vmul.f32 %v1851_v26, %v8155_v33 }
  0x50   :  { %v1983_v58 = vadd.f32 %v1919_v34, %v1787_v48  ;;  %v1396_v63 = vadd.f32 %v1332_v60, %v1200_v49  ;;  %v613_v21 = vadd.f32 %v549_v50, %v353_v43  ;;  %v614_v55 = vadd.f32 %v550_v52, %v354_v44  ;;  %v8286_v60 = vld [vmem:[#allocation2 + $0x60] sm:$0xff]  ;;  %v8305_v48 = vld [vmem:[#allocation2 + $0x6a] sm:$0xff] }
  0x51   :  { %v1592_v0 = vadd.f32 %v1528_v1, %v1395_v51  ;;  %v941_v10 = vmul.f32 %v8244_v61, %v8172_v37  ;;  %v942_v11 = vmul.f32 %v8246_v62, %v8172_v37  ;;  %v1137_v12 = vmul.f32 %v8252_v3, %v8177_v38  ;;  %v8303_v44 = vld [vmem:[#allocation2 + $0x62] sm:$0xff]  ;;  %v60_v51 = vld [vmem:[%s15066_s0 + $0xb8] sm:$0xff] }
  0x52   :  { %v2046_v20 = vpack.c.bf16 %v1983_v58, %v1982_v15  ;;  %v1593_v31 = vadd.f32 %v1529_v2, %v1396_v63  ;;  %v809_v32 = vadd.f32 %v745_v53, %v613_v21  ;;  %v810_v25 = vadd.f32 %v746_v57, %v614_v55  ;;  %v8289_v2 = vld [vmem:[#allocation2 + $0x68] sm:$0xff]  ;;  %v61_v53 = vld [vmem:[%s15066_s0 + $0xc0] sm:$0xff]  ;;  %240 = vst.msk [vmem:[#allocation2 + $0x129] sm:$0xff] %vm106_vm1, %v60_v51  ;;  %v71_v51 = vld [vmem:[%s15066_s0 + $0x110] sm:$0xff] }
  0x53   :  { %v1788_v56 = vadd.f32 %v1724_v13, %v1592_v0  ;;  %v1138_v26 = vmul.f32 %v8254_v4, %v8177_v38  ;;  %v1333_v34 = vmul.f32 %v8260_v7, %v8194_v45  ;;  %v1334_v59 = vmul.f32 %v8262_v35, %v8194_v45  ;;  %v62_v21 = vld [vmem:[%s15066_s0 + $0xc8] sm:$0xff]  ;;  %241 = vst.msk [vmem:[#allocation2 + $0x139] sm:$0xff] %vm106_vm1, %v61_v53  ;;  %v72_v53 = vld [vmem:[%s15066_s0 + $0x118] sm:$0xff] }
  0x54   :  { %7575 = vmatprep.mubr.msk.bf16.mxu0 %vm106_vm1, %v2046_v20  ;;  %v1789_v1 = vadd.f32 %v1725_v30, %v1593_v31  ;;  %v1005_v5 = vadd.f32 %v941_v10, %v809_v32  ;;  %v1006_v6 = vadd.f32 %v942_v11, %v810_v25  ;;  %v1530_v13 = vmul.f32 %v8199_v46, %v8286_v60  ;;  %v65_v11 = vld [vmem:[%s15066_s0 + $0xe0] sm:$0xff]  ;;  %v67_v20 = vld [vmem:[%s15066_s0 + $0xf0] sm:$0xff] }
  0x55   :  { %v1984_v14 = vadd.f32 %v1920_v40, %v1788_v56  ;;  %v1531_v42 = vmul.f32 %v8199_v46, %v8289_v2  ;;  %v1726_v43 = vmul.f32 %v8215_v54, %v8293_v36  ;;  %v1727_v30 = vmul.f32 %v8215_v54, %v8295_v39  ;;  %v59_v40 = vld [vmem:[%s15066_s0 + $0xb0] sm:$0xff]  ;;  %242 = vst.msk [vmem:[#allocation2 + $0x141] sm:$0xff] %vm106_vm1, %v62_v21  ;;  %v68_v56 = vld [vmem:[%s15066_s0 + $0xf8] sm:$0xff] }
  0x56   :  { %v1985_v49 = vadd.f32 %v1921_v41, %v1789_v1  ;;  %v1201_v50 = vadd.f32 %v1137_v12, %v1005_v5  ;;  %v1202_v52 = vadd.f32 %v1138_v26, %v1006_v6  ;;  %v1922_v15 = vmul.f32 %v8207_v47, %v8303_v44  ;;  %239 = vst.msk [vmem:[#allocation2 + $0x121] sm:$0xff] %vm106_vm1, %v59_v40  ;;  %v66_v12 = vld [vmem:[%s15066_s0 + $0xe8] sm:$0xff]  ;;  %v8372_v6 = vld [vmem:[#allocation2 + $0x78] sm:$0xff]  ;;  %v8382_v40 = vld [vmem:[#allocation2 + $0x80] sm:$0xff] }
  0x57   :  { %v1923_v41 = vmul.f32 %v8207_v47, %v8305_v48  ;;  %v355_v57 = vmul.f32 %v8244_v61, %v8133_v27  ;;  %v356_v58 = vmul.f32 %v8246_v62, %v8133_v27  ;;  %v551_v63 = vmul.f32 %v8252_v3, %v8138_v28  ;;  %v63_v61 = vld [vmem:[%s15066_s0 + $0xd0] sm:$0xff]  ;;  %v64_v62 = vld [vmem:[%s15066_s0 + $0xd8] sm:$0xff]  ;;  %245 = vst.msk [vmem:[#allocation2 + $0x169] sm:$0xff] %vm106_vm1, %v65_v11 }
  0x58   :  { %v2047_v55 = vpack.c.bf16 %v1985_v49, %v1984_v14  ;;  %v1397_v3 = vadd.f32 %v1333_v34, %v1201_v50  ;;  %v1398_v0 = vadd.f32 %v1334_v59, %v1202_v52  ;;  %v552_v10 = vmul.f32 %v8254_v4, %v8138_v28  ;;  %243 = vst.msk [vmem:[#allocation2 + $0x151] sm:$0xff] %vm106_vm1, %v63_v61  ;;  %v70_v14 = vld [vmem:[%s15066_s0 + $0x108] sm:$0xff] }
  0x59   :  { %244 = vst.msk [vmem:[#allocation2 + $0x159] sm:$0xff] %vm106_vm1, %v64_v62  ;;  %v615_v31 = vadd.f32 %v551_v63, %v355_v57  ;;  %v747_v4 = vmul.f32 %v8260_v7, %v8155_v33  ;;  %v748_v32 = vmul.f32 %v8262_v35, %v8155_v33  ;;  %v943_v25 = vmul.f32 %v8286_v60, %v8172_v37  ;;  %v1660_v63 = vld [vmem:[#allocation2 + $0x79] sm:$0xff] }
  0x5a   :  { %246 = vst.msk [vmem:[#allocation2 + $0x171] sm:$0xff] %vm106_vm1, %v66_v12  ;;  %247 = vst.msk [vmem:[#allocation2 + $0x181] sm:$0xff] %vm106_vm1, %v67_v20  ;;  %7576 = vmatmul.mubr.msk.bf16.vlgmr.msra.gmra.mxu0 %vm106_vm1, %v2047_v55  ;;  %v1594_v26 = vadd.f32 %v1530_v13, %v1397_v3  ;;  %v1595_v7 = vadd.f32 %v1531_v42, %v1398_v0  ;;  %v616_v34 = vadd.f32 %v552_v10, %v356_v58  ;;  %v69_v13 = vld [vmem:[%s15066_s0 + $0x100] sm:$0xff] }
  0x5b   :  { %v944_v35 = vmul.f32 %v8289_v2, %v8172_v37  ;;  %248 = vst.msk [vmem:[#allocation2 + $0x189] sm:$0xff] %vm106_vm1, %v68_v56  ;;  %v811_v59 = vadd.f32 %v747_v4, %v615_v31  ;;  %v1139_v1 = vmul.f32 %v8293_v36, %v8177_v38  ;;  %v1140_v5 = vmul.f32 %v8295_v39, %v8177_v38  ;;  %v1661_v55 = vld [vmem:[#allocation2 + $0x81] sm:$0xff] }
  0x5c   :  { %v1790_v42 = vadd.f32 %v1726_v43, %v1594_v26  ;;  %v1791_v49 = vadd.f32 %v1727_v30, %v1595_v7  ;;  %v812_v50 = vadd.f32 %v748_v32, %v616_v34  ;;  %v1335_v52 = vmul.f32 %v8303_v44, %v8194_v45  ;;  %249 = vst.msk [vmem:[#allocation2 + $0x1c9] sm:$0xff] %vm106_vm1, %v69_v13  ;;  %v1856_v0 = vld [vmem:[#allocation2 + $0x7a] sm:$0xff] }
  0x5d   :  { %250 = vst.msk [vmem:[#allocation2 + $0x1d1] sm:$0xff] %vm106_vm1, %v70_v14  ;;  %v1007_v43 = vadd.f32 %v943_v25, %v811_v59  ;;  %v1336_v30 = vmul.f32 %v8305_v48, %v8194_v45  ;;  %v1532_v57 = vmul.f32 %v8199_v46, %v8372_v6  ;;  %v1533_v58 = vmul.f32 %v8199_v46, %v8382_v40  ;;  %v1857_v25 = vld [vmem:[#allocation2 + $0x82] sm:$0xff]  ;;  %v8424_v14 = vld [vmem:[#allocation2 + $0x90] sm:$0xff] }
  0x5e   :  { %251 = vst.msk [vmem:[#allocation2 + $0x1e1] sm:$0xff] %vm106_vm1, %v71_v51  ;;  %252 = vst.msk [vmem:[#allocation2 + $0x1e9] sm:$0xff] %vm106_vm1, %v72_v53  ;;  %v1986_v21 = vadd.f32 %v1922_v15, %v1790_v42  ;;  %v1987_v61 = vadd.f32 %v1923_v41, %v1791_v49  ;;  %v1008_v62 = vadd.f32 %v944_v35, %v812_v50  ;;  %v8431_v53 = vld [vmem:[#allocation2 + $0x91] sm:$0xff] }
  0x5f   :  { %v1728_v3 = vmul.f32 %v8215_v54, %v1660_v63  ;;  %v1203_v10 = vadd.f32 %v1139_v1, %v1007_v43  ;;  %v1729_v11 = vmul.f32 %v8215_v54, %v1661_v55  ;;  %v1924_v12 = vmul.f32 %v8207_v47, %v1856_v0 }
  0x60   :  { %v357_v20 = vmul.f32 %v8286_v60, %v8133_v27  ;;  %v2048_v31 = vpack.c.bf16 %v1987_v61, %v1986_v21  ;;  %v1204_v4 = vadd.f32 %v1140_v5, %v1008_v62  ;;  %v358_v32 = vmul.f32 %v8289_v2, %v8133_v27  ;;  %v8439_v61 = vld [vmem:[#allocation2 + $0x92] sm:$0xff] }
  0x61   :  { %v553_v15 = vmul.f32 %v8293_v36, %v8138_v28  ;;  %v1399_v41 = vadd.f32 %v1335_v52, %v1203_v10  ;;  %v554_v56 = vmul.f32 %v8295_v39, %v8138_v28  ;;  %v749_v26 = vmul.f32 %v8303_v44, %v8155_v33  ;;  %v8427_v52 = vld [vmem:[#allocation2 + $0x98] sm:$0xff] }
  0x62   :  { %v750_v7 = vmul.f32 %v8305_v48, %v8155_v33  ;;  %7579 = vmatprep.mubr.msk.bf16.mxu0 %vm106_vm1, %v2048_v31  ;;  %v1400_v60 = vadd.f32 %v1336_v30, %v1204_v4  ;;  %v1925_v34 = vmul.f32 %v8207_v47, %v1857_v25  ;;  %v945_v36 = vmul.f32 %v8372_v6, %v8172_v37 }
  0x63   :  { %v617_v2 = vadd.f32 %v553_v15, %v357_v20  ;;  %v1596_v35 = vadd.f32 %v1532_v57, %v1399_v41  ;;  %v618_v59 = vadd.f32 %v554_v56, %v358_v32  ;;  %v946_v39 = vmul.f32 %v8382_v40, %v8172_v37 }
  0x64   :  { %v1141_v1 = vmul.f32 %v1660_v63, %v8177_v38  ;;  %v1597_v44 = vadd.f32 %v1533_v58, %v1400_v60  ;;  %v1142_v48 = vmul.f32 %v1661_v55, %v8177_v38  ;;  %v1337_v13 = vmul.f32 %v1856_v0, %v8194_v45  ;;  %v8435_v58 = vld [vmem:[#allocation2 + $0x99] sm:$0xff] }
  0x65   :  { %v813_v5 = vadd.f32 %v749_v26, %v617_v2  ;;  %v1792_v42 = vadd.f32 %v1728_v3, %v1596_v35  ;;  %v814_v49 = vadd.f32 %v750_v7, %v618_v59  ;;  %v1338_v50 = vmul.f32 %v1857_v25, %v8194_v45  ;;  %v8457_v59 = vld [vmem:[#allocation2 + $0xa8] sm:$0xff] }
  0x66   :  { %v1534_v51 = vmul.f32 %v8199_v46, %v8424_v14  ;;  %v1793_v43 = vadd.f32 %v1729_v11, %v1597_v44  ;;  %v1535_v57 = vmul.f32 %v8199_v46, %v8427_v52  ;;  %v1730_v21 = vmul.f32 %v8215_v54, %v8431_v53  ;;  %v73_v44 = vld [vmem:[%s15066_s0 + $0x120] sm:$0xff] }
  0x67   :  { %v1009_v30 = vadd.f32 %v945_v36, %v813_v5  ;;  %v1988_v62 = vadd.f32 %v1924_v12, %v1792_v42  ;;  %v1010_v3 = vadd.f32 %v946_v39, %v814_v49  ;;  %v1731_v10 = vmul.f32 %v8215_v54, %v8435_v58  ;;  %v1859_v36 = vld [vmem:[#allocation2 + $0x9a] sm:$0xff]  ;;  %v8465_v39 = vld [vmem:[#allocation2 + $0xb0] sm:$0xff]  ;;  %253 = vst.msk [vmem:[#allocation2 + $0x1f9] sm:$0xff] %vm106_vm1, %v73_v44 }
  0x68   :  { %v1926_v20 = vmul.f32 %v8207_v47, %v8439_v61  ;;  %v1989_v11 = vadd.f32 %v1925_v34, %v1793_v43  ;;  %v359_v4 = vmul.f32 %v8372_v6, %v8133_v27  ;;  %v360_v32 = vmul.f32 %v8382_v40, %v8133_v27  ;;  %v8474_v49 = vld [vmem:[#allocation2 + $0xb1] sm:$0xff] }
  0x69   :  { %v1205_v31 = vadd.f32 %v1141_v1, %v1009_v30  ;;  %v1206_v15 = vadd.f32 %v1142_v48, %v1010_v3  ;;  %v555_v41 = vmul.f32 %v1660_v63, %v8138_v28  ;;  %v556_v12 = vmul.f32 %v1661_v55, %v8138_v28  ;;  %v8467_v1 = vld [vmem:[#allocation2 + $0xa9] sm:$0xff]  ;;  %v76_v30 = vld [vmem:[%s15066_s0 + $0x138] sm:$0xff] }
  0x6a   :  { %v751_v56 = vmul.f32 %v1856_v0, %v8155_v33  ;;  %v2049_v26 = vpack.c.bf16 %v1989_v11, %v1988_v62  ;;  %v752_v60 = vmul.f32 %v1857_v25, %v8155_v33  ;;  %v947_v34 = vmul.f32 %v8424_v14, %v8172_v37  ;;  %v75_v43 = vld [vmem:[%s15066_s0 + $0x130] sm:$0xff]  ;;  %256 = vst.msk [vmem:[#allocation2 + $0x219] sm:$0xff] %vm106_vm1, %v76_v30 }
  0x6b   :  { %v1401_v7 = vadd.f32 %v1337_v13, %v1205_v31  ;;  %v1402_v2 = vadd.f32 %v1338_v50, %v1206_v15  ;;  %v619_v6 = vadd.f32 %v555_v41, %v359_v4  ;;  %v620_v35 = vadd.f32 %v556_v12, %v360_v32  ;;  %v8476_v50 = vld [vmem:[#allocation2 + $0xaa] sm:$0xff]  ;;  %255 = vst.msk [vmem:[#allocation2 + $0x211] sm:$0xff] %vm106_vm1, %v75_v43  ;;  %v77_v31 = vld [vmem:[%s15066_s0 + $0x140] sm:$0xff] }
  0x6c   :  { %v948_v40 = vmul.f32 %v8427_v52, %v8172_v37  ;;  %7580 = vmatmul.mubr.msk.bf16.gmra.mxu0 %vm106_vm1, %v2049_v26  ;;  %v1927_v55 = vmul.f32 %v8207_v47, %v1859_v36  ;;  %v1143_v0 = vmul.f32 %v8431_v53, %v8177_v38  ;;  %v1144_v25 = vmul.f32 %v8435_v58, %v8177_v38  ;;  %v79_v4 = vld [vmem:[%s15066_s0 + $0x150] sm:$0xff]  ;;  %v81_v26 = vld [vmem:[%s15066_s0 + $0x160] sm:$0xff] }
  0x6d   :  { %v1598_v63 = vadd.f32 %v1534_v51, %v1401_v7  ;;  %v1599_v5 = vadd.f32 %v1535_v57, %v1402_v2  ;;  %v815_v48 = vadd.f32 %v751_v56, %v619_v6  ;;  %v816_v13 = vadd.f32 %v752_v60, %v620_v35  ;;  %v74_v51 = vld [vmem:[%s15066_s0 + $0x128] sm:$0xff]  ;;  %257 = vst.msk [vmem:[#allocation2 + $0x229] sm:$0xff] %vm106_vm1, %v77_v31  ;;  %v80_v56 = vld [vmem:[%s15066_s0 + $0x158] sm:$0xff] }
  0x6e   :  { %v1339_v42 = vmul.f32 %v8439_v61, %v8194_v45  ;;  %v1340_v62 = vmul.f32 %v1859_v36, %v8194_v45  ;;  %v1536_v3 = vmul.f32 %v8199_v46, %v8457_v59  ;;  %v1537_v11 = vmul.f32 %v8199_v46, %v8465_v39  ;;  %254 = vst.msk [vmem:[#allocation2 + $0x201] sm:$0xff] %vm106_vm1, %v74_v51 }
  0x6f   :  { %v1794_v57 = vadd.f32 %v1730_v21, %v1598_v63  ;;  %v78_v21 = vld [vmem:[%s15066_s0 + $0x148] sm:$0xff]  ;;  %v1795_v32 = vadd.f32 %v1731_v10, %v1599_v5  ;;  %v1011_v15 = vadd.f32 %v947_v34, %v815_v48  ;;  %v1012_v41 = vadd.f32 %v948_v40, %v816_v13  ;;  %259 = vst.msk [vmem:[#allocation2 + $0x241] sm:$0xff] %vm106_vm1, %v79_v4 }
  0x70   :  { %v1732_v12 = vmul.f32 %v8215_v54, %v8467_v1  ;;  %258 = vst.msk [vmem:[#allocation2 + $0x231] sm:$0xff] %vm106_vm1, %v78_v21  ;;  %v82_v10 = vld [vmem:[%s15066_s0 + $0x168] sm:$0xff]  ;;  %v1733_v60 = vmul.f32 %v8215_v54, %v8474_v49  ;;  %v1928_v34 = vmul.f32 %v8207_v47, %v8476_v50  ;;  %v361_v2 = vmul.f32 %v8424_v14, %v8133_v27 }
  0x71   :  { %v1990_v7 = vadd.f32 %v1926_v20, %v1794_v57  ;;  %260 = vst.msk [vmem:[#allocation2 + $0x249] sm:$0xff] %vm106_vm1, %v80_v56  ;;  %261 = vst.msk [vmem:[#allocation2 + $0x259] sm:$0xff] %vm106_vm1, %v81_v26 }
  0x72   :  { %262 = vst.msk [vmem:[#allocation2 + $0x261] sm:$0xff] %vm106_vm1, %v82_v10 }
  0x73   :  { %17 = vsyncpa [#allocation7], 0  ;;  %v1991_v6 = vadd.f32 %v1927_v55, %v1795_v32  ;;  %v1207_v35 = vadd.f32 %v1143_v0, %v1011_v15  ;;  %v1208_v40 = vadd.f32 %v1144_v25, %v1012_v41  ;;  %v362_v20 = vmul.f32 %v8427_v52, %v8133_v27  ;;  %v1861_v63 = vld [vmem:[#allocation2 + $0xb2] sm:$0xff]  ;;  %v8550_v21 = vld [vmem:[#allocation2 + $0xc0] sm:$0xff] }
  0x74   :  { %v557_v44 = vmul.f32 %v8431_v53, %v8138_v28  ;;  %v558_v14 = vmul.f32 %v8435_v58, %v8138_v28  ;;  %v753_v5 = vmul.f32 %v8439_v61, %v8155_v33  ;;  %v754_v48 = vmul.f32 %v1859_v36, %v8155_v33  ;;  %v8552_v4 = vld [vmem:[#allocation2 + $0xc8] sm:$0xff] }
  0x75   :  { %v2050_v13 = vpack.c.bf16 %v1991_v6, %v1990_v7  ;;  %v1403_v51 = vadd.f32 %v1339_v42, %v1207_v35  ;;  %v1404_v55 = vadd.f32 %v1340_v62, %v1208_v40  ;;  %v1929_v0 = vmul.f32 %v8207_v47, %v1861_v63  ;;  %v8558_v41 = vld [vmem:[#allocation2 + $0xc1] sm:$0xff]  ;;  %v8560_v56 = vld [vmem:[#allocation2 + $0xc9] sm:$0xff] }
  0x76   :  { %v621_v25 = vadd.f32 %v557_v44, %v361_v2  ;;  %v622_v43 = vadd.f32 %v558_v14, %v362_v20  ;;  %v949_v52 = vmul.f32 %v8457_v59, %v8172_v37  ;;  %v950_v53 = vmul.f32 %v8465_v39, %v8172_v37 }
  0x77   :  { %7583 = vmatprep.mubr.msk.bf16.mxu0 %vm106_vm1, %v2050_v13  ;;  %v1600_v58 = vadd.f32 %v1536_v3, %v1403_v51  ;;  %v1601_v30 = vadd.f32 %v1537_v11, %v1404_v55  ;;  %v1145_v61 = vmul.f32 %v8467_v1, %v8177_v38  ;;  %v1146_v36 = vmul.f32 %v8474_v49, %v8177_v38 }
  0x78   :  { %v817_v42 = vadd.f32 %v753_v5, %v621_v25  ;;  %v818_v57 = vadd.f32 %v754_v48, %v622_v43  ;;  %v1341_v62 = vmul.f32 %v8476_v50, %v8194_v45  ;;  %v1342_v31 = vmul.f32 %v1861_v63, %v8194_v45 }
  0x79   :  { %v1796_v32 = vadd.f32 %v1732_v12, %v1600_v58  ;;  %v1797_v3 = vadd.f32 %v1733_v60, %v1601_v30  ;;  %v1538_v11 = vmul.f32 %v8199_v46, %v8550_v21  ;;  %v1539_v15 = vmul.f32 %v8199_v46, %v8552_v4  ;;  %v1862_v12 = vld [vmem:[#allocation2 + $0xc2] sm:$0xff] }
  0x7a   :  { %v1013_v26 = vadd.f32 %v949_v52, %v817_v42  ;;  %v1014_v10 = vadd.f32 %v950_v53, %v818_v57  ;;  %v1734_v7 = vmul.f32 %v8215_v54, %v8558_v41  ;;  %v1735_v2 = vmul.f32 %v8215_v54, %v8560_v56 }
  0x7b   :  { %v1992_v60 = vadd.f32 %v1928_v34, %v1796_v32  ;;  %v1993_v6 = vadd.f32 %v1929_v0, %v1797_v3  ;;  %v1930_v35 = vmul.f32 %v8207_v47, %v1862_v12  ;;  %v363_v40 = vmul.f32 %v8457_v59, %v8133_v27  ;;  %v1863_v59 = vld [vmem:[#allocation2 + $0xca] sm:$0xff]  ;;  %v85_v3 = vld [vmem:[%s15066_s0 + $0x180] sm:$0xff] }
  0x7c   :  { %v1209_v20 = vadd.f32 %v1145_v61, %v1013_v26  ;;  %v1210_v44 = vadd.f32 %v1146_v36, %v1014_v10  ;;  %v364_v14 = vmul.f32 %v8465_v39, %v8133_v27  ;;  %v559_v5 = vmul.f32 %v8467_v1, %v8138_v28  ;;  %v8591_v61 = vld [vmem:[#allocation2 + $0xd8] sm:$0xff]  ;;  %265 = vst.msk [vmem:[#allocation2 + $0x289] sm:$0xff] %vm106_vm1, %v85_v3 }
  0x7d   :  { %v2051_v48 = vpack.c.bf16 %v1993_v6, %v1992_v60  ;;  %v560_v13 = vmul.f32 %v8474_v49, %v8138_v28  ;;  %v755_v34 = vmul.f32 %v8476_v50, %v8155_v33  ;;  %v756_v51 = vmul.f32 %v1861_v63, %v8155_v33  ;;  %v83_v63 = vld [vmem:[%s15066_s0 + $0x170] sm:$0xff]  ;;  %v84_v36 = vld [vmem:[%s15066_s0 + $0x178] sm:$0xff] }
  0x7e   :  { %v1405_v55 = vadd.f32 %v1341_v62, %v1209_v20  ;;  %v1406_v0 = vadd.f32 %v1342_v31, %v1210_v44  ;;  %v623_v25 = vadd.f32 %v559_v5, %v363_v40  ;;  %v951_v43 = vmul.f32 %v8550_v21, %v8172_v37  ;;  %263 = vst.msk [vmem:[#allocation2 + $0x271] sm:$0xff] %vm106_vm1, %v83_v63  ;;  %v8599_v31 = vld [vmem:[#allocation2 + $0xe0] sm:$0xff] }
  0x7f   :  { %7584 = vmatmul.mubr.msk.bf16.gmra.mxu0 %vm106_vm1, %v2051_v48  ;;  %v1931_v39 = vmul.f32 %v8207_v47, %v1863_v59  ;;  %v624_v1 = vadd.f32 %v560_v13, %v364_v14  ;;  %v952_v49 = vmul.f32 %v8552_v4, %v8172_v37  ;;  %v1147_v50 = vmul.f32 %v8558_v41, %v8177_v38  ;;  %v1668_v6 = vld [vmem:[#allocation2 + $0xd9] sm:$0xff]  ;;  %v1669_v40 = vld [vmem:[#allocation2 + $0xe1] sm:$0xff] }
  0x80   :  { %v1602_v52 = vadd.f32 %v1538_v11, %v1405_v55  ;;  %v1603_v53 = vadd.f32 %v1539_v15, %v1406_v0  ;;  %v819_v58 = vadd.f32 %v755_v34, %v623_v25  ;;  %v1148_v30 = vmul.f32 %v8560_v56, %v8177_v38  ;;  %264 = vst.msk [vmem:[#allocation2 + $0x279] sm:$0xff] %vm106_vm1, %v84_v36  ;;  %v86_v11 = vld [vmem:[%s15066_s0 + $0x188] sm:$0xff]  ;;  %v1864_v20 = vld [vmem:[#allocation2 + $0xda] sm:$0xff]  ;;  %v8635_v36 = vld [vmem:[#allocation2 + $0xf0] sm:$0xff] }
  0x81   :  { %v820_v42 = vadd.f32 %v756_v51, %v624_v1  ;;  %v1343_v57 = vmul.f32 %v1862_v12, %v8194_v45  ;;  %v1344_v62 = vmul.f32 %v1863_v59, %v8194_v45  ;;  %v1540_v32 = vmul.f32 %v8199_v46, %v8591_v61  ;;  %266 = vst.msk [vmem:[#allocation2 + $0x291] sm:$0xff] %vm106_vm1, %v86_v11 }
  0x82   :  { %v1798_v15 = vadd.f32 %v1734_v7, %v1602_v52  ;;  %v1799_v26 = vadd.f32 %v1735_v2, %v1603_v53  ;;  %v1015_v10 = vadd.f32 %v951_v43, %v819_v58  ;;  %v1541_v60 = vmul.f32 %v8199_v46, %v8599_v31 }
  0x83   :  { %v1016_v44 = vadd.f32 %v952_v49, %v820_v42  ;;  %v1736_v14 = vmul.f32 %v8215_v54, %v1668_v6  ;;  %v1737_v5 = vmul.f32 %v8215_v54, %v1669_v40  ;;  %v1932_v48 = vmul.f32 %v8207_v47, %v1864_v20 }
  0x84   :  { %v1994_v7 = vadd.f32 %v1930_v35, %v1798_v15  ;;  %v1995_v2 = vadd.f32 %v1931_v39, %v1799_v26  ;;  %v1211_v13 = vadd.f32 %v1147_v50, %v1015_v10  ;;  %v365_v34 = vmul.f32 %v8550_v21, %v8133_v27  ;;  %v1865_v50 = vld [vmem:[#allocation2 + $0xe2] sm:$0xff] }
  0x85   :  { %v1212_v51 = vadd.f32 %v1148_v30, %v1016_v44  ;;  %v366_v55 = vmul.f32 %v8552_v4, %v8133_v27  ;;  %v561_v0 = vmul.f32 %v8558_v41, %v8138_v28  ;;  %v562_v25 = vmul.f32 %v8560_v56, %v8138_v28  ;;  %v8647_v44 = vld [vmem:[#allocation2 + $0xf9] sm:$0xff] }
  0x86   :  { %v2052_v43 = vpack.c.bf16 %v1995_v2, %v1994_v7  ;;  %v1407_v1 = vadd.f32 %v1343_v57, %v1211_v13  ;;  %v757_v49 = vmul.f32 %v1862_v12, %v8155_v33  ;;  %v758_v35 = vmul.f32 %v1863_v59, %v8155_v33 }
  0x87   :  { %v1408_v39 = vadd.f32 %v1344_v62, %v1212_v51  ;;  %v625_v63 = vadd.f32 %v561_v0, %v365_v34  ;;  %v626_v21 = vadd.f32 %v562_v25, %v366_v55  ;;  %v953_v52 = vmul.f32 %v8591_v61, %v8172_v37  ;;  %v87_v34 = vld [vmem:[%s15066_s0 + $0x190] sm:$0xff]  ;;  %v88_v51 = vld [vmem:[%s15066_s0 + $0x198] sm:$0xff] }
  0x88   :  { %7587 = vmatprep.mubr.msk.bf16.mxu0 %vm106_vm1, %v2052_v43  ;;  %v1604_v4 = vadd.f32 %v1540_v32, %v1407_v1  ;;  %v1933_v41 = vmul.f32 %v8207_v47, %v1865_v50  ;;  %v954_v56 = vmul.f32 %v8599_v31, %v8172_v37  ;;  %v1149_v53 = vmul.f32 %v1668_v6, %v8177_v38  ;;  %v8639_v32 = vld [vmem:[#allocation2 + $0xf8] sm:$0xff] }
  0x89   :  { %v1605_v12 = vadd.f32 %v1541_v60, %v1408_v39  ;;  %v821_v58 = vadd.f32 %v757_v49, %v625_v63  ;;  %v822_v59 = vadd.f32 %v758_v35, %v626_v21  ;;  %v1150_v30 = vmul.f32 %v1669_v40, %v8177_v38  ;;  %v8645_v60 = vld [vmem:[#allocation2 + $0xf1] sm:$0xff]  ;;  %267 = vst.msk [vmem:[#allocation2 + $0x2a1] sm:$0xff] %vm106_vm1, %v87_v34 }
  0x8a   :  { %v1800_v42 = vadd.f32 %v1736_v14, %v1604_v4  ;;  %v1345_v57 = vmul.f32 %v1864_v20, %v8194_v45  ;;  %v1346_v62 = vmul.f32 %v1865_v50, %v8194_v45  ;;  %v1542_v3 = vmul.f32 %v8199_v46, %v8635_v36  ;;  %v8649_v14 = vld [vmem:[#allocation2 + $0xf2] sm:$0xff]  ;;  %268 = vst.msk [vmem:[#allocation2 + $0x2a9] sm:$0xff] %vm106_vm1, %v88_v51  ;;  %v1867_v4 = vld [vmem:[#allocation2 + $0xfa] sm:$0xff] }
  0x8b   :  { %v1801_v11 = vadd.f32 %v1737_v5, %v1605_v12  ;;  %v1017_v15 = vadd.f32 %v953_v52, %v821_v58  ;;  %v1018_v26 = vadd.f32 %v954_v56, %v822_v59  ;;  %v1543_v10 = vmul.f32 %v8199_v46, %v8639_v32  ;;  %v90_v12 = vld [vmem:[%s15066_s0 + $0x1a8] sm:$0xff] }
  0x8c   :  { %v1996_v7 = vadd.f32 %v1932_v48, %v1800_v42  ;;  %v1738_v2 = vmul.f32 %v8215_v54, %v8645_v60  ;;  %v1739_v13 = vmul.f32 %v8215_v54, %v8647_v44  ;;  %v1934_v5 = vmul.f32 %v8207_v47, %v8649_v14  ;;  %270 = vst.msk [vmem:[#allocation2 + $0x2c1] sm:$0xff] %vm106_vm1, %v90_v12 }
  0x8d   :  { %v1997_v55 = vadd.f32 %v1933_v41, %v1801_v11  ;;  %v1213_v0 = vadd.f32 %v1149_v53, %v1017_v15  ;;  %v1214_v48 = vadd.f32 %v1150_v30, %v1018_v26  ;;  %v367_v25 = vmul.f32 %v8591_v61, %v8133_v27  ;;  %v8696_v15 = vld [vmem:[#allocation2 + $0x110] sm:$0xff] }
  0x8e   :  { %v368_v43 = vmul.f32 %v8599_v31, %v8133_v27  ;;  %v563_v1 = vmul.f32 %v1668_v6, %v8138_v28  ;;  %v564_v49 = vmul.f32 %v1669_v40, %v8138_v28  ;;  %v759_v35 = vmul.f32 %v1864_v20, %v8155_v33 }
  0x8f   :  { %v2053_v39 = vpack.c.bf16 %v1997_v55, %v1996_v7  ;;  %v1409_v63 = vadd.f32 %v1345_v57, %v1213_v0  ;;  %v1410_v21 = vadd.f32 %v1346_v62, %v1214_v48  ;;  %v760_v52 = vmul.f32 %v1865_v50, %v8155_v33  ;;  %v89_v50 = vld [vmem:[%s15066_s0 + $0x1a0] sm:$0xff]  ;;  %v8691_v57 = vld [vmem:[#allocation2 + $0x108] sm:$0xff]  ;;  %v1673_v55 = vld [vmem:[#allocation2 + $0x111] sm:$0xff] }
  0x90   :  { %v627_v61 = vadd.f32 %v563_v1, %v367_v25  ;;  %v628_v41 = vadd.f32 %v564_v49, %v368_v43  ;;  %v955_v56 = vmul.f32 %v8635_v36, %v8172_v37  ;;  %v956_v31 = vmul.f32 %v8639_v32, %v8172_v37  ;;  %269 = vst.msk [vmem:[#allocation2 + $0x2b9] sm:$0xff] %vm106_vm1, %v89_v50  ;;  %v1868_v48 = vld [vmem:[#allocation2 + $0x10a] sm:$0xff] }
  0x91   :  { %7588 = vmatmul.mubr.msk.bf16.gmra.mxu0 %vm106_vm1, %v2053_v39  ;;  %v1606_v6 = vadd.f32 %v1542_v3, %v1409_v63  ;;  %v1607_v40 = vadd.f32 %v1543_v10, %v1410_v21  ;;  %v1935_v20 = vmul.f32 %v8207_v47, %v1867_v4  ;;  %v1151_v53 = vmul.f32 %v8645_v60, %v8177_v38  ;;  %v1672_v10 = vld [vmem:[#allocation2 + $0x109] sm:$0xff]  ;;  %v1869_v21 = vld [vmem:[#allocation2 + $0x112] sm:$0xff] }
  0x92   :  { %v823_v58 = vadd.f32 %v759_v35, %v627_v61  ;;  %v824_v59 = vadd.f32 %v760_v52, %v628_v41  ;;  %v1152_v30 = vmul.f32 %v8647_v44, %v8177_v38  ;;  %v1347_v42 = vmul.f32 %v8649_v14, %v8194_v45 }
  0x93   :  { %v1802_v62 = vadd.f32 %v1738_v2, %v1606_v6  ;;  %v1803_v3 = vadd.f32 %v1739_v13, %v1607_v40  ;;  %v1348_v11 = vmul.f32 %v1867_v4, %v8194_v45  ;;  %v1544_v26 = vmul.f32 %v8199_v46, %v8691_v57 }
  0x94   :  { %v1019_v7 = vadd.f32 %v955_v56, %v823_v58  ;;  %v1020_v34 = vadd.f32 %v956_v31, %v824_v59  ;;  %v1545_v51 = vmul.f32 %v8199_v46, %v8696_v15  ;;  %v1740_v0 = vmul.f32 %v8215_v54, %v1672_v10  ;;  %v8726_v58 = vld [vmem:[#allocation2 + $0x120] sm:$0xff]  ;;  %v8728_v59 = vld [vmem:[#allocation2 + $0x128] sm:$0xff] }
  0x95   :  { %v1998_v25 = vadd.f32 %v1934_v5, %v1802_v62  ;;  %v1999_v2 = vadd.f32 %v1935_v20, %v1803_v3  ;;  %v1741_v13 = vmul.f32 %v8215_v54, %v1673_v55  ;;  %v1936_v43 = vmul.f32 %v8207_v47, %v1868_v48 }
  0x96   :  { %v1215_v1 = vadd.f32 %v1151_v53, %v1019_v7  ;;  %v1216_v49 = vadd.f32 %v1152_v30, %v1020_v34  ;;  %v369_v35 = vmul.f32 %v8635_v36, %v8133_v27  ;;  %v370_v39 = vmul.f32 %v8639_v32, %v8133_v27 }
  0x97   :  { %v2054_v63 = vpack.c.bf16 %v1999_v2, %v1998_v25  ;;  %v565_v52 = vmul.f32 %v8645_v60, %v8138_v28  ;;  %v566_v5 = vmul.f32 %v8647_v44, %v8138_v28  ;;  %v761_v61 = vmul.f32 %v8649_v14, %v8155_v33  ;;  %v91_v2 = vld [vmem:[%s15066_s0 + $0x1b0] sm:$0xff] }
  0x98   :  { %v1411_v41 = vadd.f32 %v1347_v42, %v1215_v1  ;;  %v1412_v56 = vadd.f32 %v1348_v11, %v1216_v49  ;;  %v1937_v31 = vmul.f32 %v8207_v47, %v1869_v21  ;;  %v762_v36 = vmul.f32 %v1867_v4, %v8155_v33  ;;  %v8734_v11 = vld [vmem:[#allocation2 + $0x121] sm:$0xff]  ;;  %271 = vst.msk [vmem:[#allocation2 + $0x2d1] sm:$0xff] %vm106_vm1, %v91_v2 }
  0x99   :  { %7591 = vmatprep.mubr.msk.bf16.mxu0 %vm106_vm1, %v2054_v63  ;;  %v629_v32 = vadd.f32 %v565_v52, %v369_v35  ;;  %v630_v6 = vadd.f32 %v566_v5, %v370_v39  ;;  %v957_v40 = vmul.f32 %v8691_v57, %v8172_v37  ;;  %v958_v60 = vmul.f32 %v8696_v15, %v8172_v37  ;;  %v8753_v35 = vld [vmem:[%s15067_s1 + $0x8] ss:$0 sm:$0xff] }
  0x9a   :  { %v1608_v44 = vadd.f32 %v1544_v26, %v1411_v41  ;;  %v1609_v20 = vadd.f32 %v1545_v51, %v1412_v56  ;;  %v1153_v14 = vmul.f32 %v1672_v10, %v8177_v38  ;;  %v1154_v53 = vmul.f32 %v1673_v55, %v8177_v38  ;;  %v8736_v26 = vld [vmem:[#allocation2 + $0x129] sm:$0xff] }
  0x9b   :  { %v825_v50 = vadd.f32 %v761_v61, %v629_v32  ;;  %v826_v47 = vadd.f32 %v762_v36, %v630_v6  ;;  %v1349_v4 = vmul.f32 %v1868_v48, %v8194_v45  ;;  %v1350_v12 = vmul.f32 %v1869_v21, %v8194_v45  ;;  %v1871_v6 = vld [vmem:[#allocation2 + $0x12a] sm:$0xff] }
  0x9c   :  { %v1804_v30 = vadd.f32 %v1740_v0, %v1608_v44  ;;  %v1805_v42 = vadd.f32 %v1741_v13, %v1609_v20  ;;  %v1546_v62 = vmul.f32 %v8199_v46, %v8726_v58  ;;  %v1547_v3 = vmul.f32 %v8199_v46, %v8728_v59  ;;  %v8742_v0 = vld [vmem:[#allocation2 + $0x122] sm:$0xff]  ;;  %v92_v13 = vld [vmem:[%s15066_s0 + $0x1b8] sm:$0xff] }
  0x9d   :  { %v1021_v7 = vadd.f32 %v957_v40, %v825_v50  ;;  %v1022_v34 = vadd.f32 %v958_v60, %v826_v47  ;;  %v1742_v51 = vmul.f32 %v8215_v54, %v8734_v11  ;;  %v1743_v25 = vmul.f32 %v8215_v54, %v8736_v26  ;;  %272 = vst.msk [vmem:[#allocation2 + $0x2d9] sm:$0xff] %vm106_vm1, %v92_v13  ;;  %v93_v50 = vld [vmem:[%s15066_s0 + $0x1c0] sm:$0xff] }
  0x9e   :  { %v2000_v1 = vadd.f32 %v1936_v43, %v1804_v30  ;;  %v2001_v49 = vadd.f32 %v1937_v31, %v1805_v42  ;;  %v1938_v39 = vmul.f32 %v8753_v35, %v8742_v0  ;;  %v371_v63 = vmul.f32 %v8691_v57, %v8133_v27  ;;  %v8785_v30 = vld [vmem:[#allocation2 + $0x140] sm:$0xff]  ;;  %273 = vst.msk [vmem:[#allocation2 + $0x2e9] sm:$0xff] %vm106_vm1, %v93_v50 }
  0x9f   :  { %v1217_v52 = vadd.f32 %v1153_v14, %v1021_v7  ;;  %v1218_v5 = vadd.f32 %v1154_v53, %v1022_v34  ;;  %v372_v43 = vmul.f32 %v8696_v15, %v8133_v27  ;;  %v567_v61 = vmul.f32 %v1672_v10, %v8138_v28  ;;  %v8777_v53 = vld [vmem:[#allocation2 + $0x138] sm:$0xff] }
  0xa0   :  { %v2055_v41 = vpack.c.bf16 %v2001_v49, %v2000_v1  ;;  %v568_v56 = vmul.f32 %v1673_v55, %v8138_v28  ;;  %v763_v31 = vmul.f32 %v1868_v48, %v8155_v33  ;;  %v764_v36 = vmul.f32 %v1869_v21, %v8155_v33  ;;  %v1676_v13 = vld [vmem:[#allocation2 + $0x139] sm:$0xff]  ;;  %v1677_v1 = vld [vmem:[#allocation2 + $0x141] sm:$0xff] }
  0xa1   :  { %v1413_v32 = vadd.f32 %v1349_v4, %v1217_v52  ;;  %v1414_v57 = vadd.f32 %v1350_v12, %v1218_v5  ;;  %v631_v40 = vadd.f32 %v567_v61, %v371_v63  ;;  %v959_v60 = vmul.f32 %v8726_v58, %v8172_v37  ;;  %v1872_v49 = vld [vmem:[#allocation2 + $0x13a] sm:$0xff] }
  0xa2   :  { %7592 = vmatmul.mubr.msk.bf16.gmra.mxu0 %vm106_vm1, %v2055_v41  ;;  %v1939_v15 = vmul.f32 %v8753_v35, %v1871_v6  ;;  %v632_v44 = vadd.f32 %v568_v56, %v372_v43  ;;  %v960_v10 = vmul.f32 %v8728_v59, %v8172_v37  ;;  %v1155_v55 = vmul.f32 %v8734_v11, %v8177_v38 }
  0xa3   :  { %v1610_v48 = vadd.f32 %v1546_v62, %v1413_v32  ;;  %v1611_v21 = vadd.f32 %v1547_v3, %v1414_v57  ;;  %v827_v20 = vadd.f32 %v763_v31, %v631_v40  ;;  %v1156_v14 = vmul.f32 %v8736_v26, %v8177_v38  ;;  %v94_v62 = vld [vmem:[%s15066_s0 + $0x1c8] sm:$0xff] }
  0xa4   :  { %v828_v47 = vadd.f32 %v764_v36, %v632_v44  ;;  %v1351_v4 = vmul.f32 %v8742_v0, %v8194_v45  ;;  %v1352_v12 = vmul.f32 %v1871_v6, %v8194_v45  ;;  %v1548_v42 = vmul.f32 %v8199_v46, %v8777_v53  ;;  %274 = vst.msk [vmem:[#allocation2 + $0x2f1] sm:$0xff] %vm106_vm1, %v94_v62  ;;  %v1873_v44 = vld [vmem:[#allocation2 + $0x142] sm:$0xff] }
  0xa5   :  { %v1806_v3 = vadd.f32 %v1742_v51, %v1610_v48  ;;  %v1807_v7 = vadd.f32 %v1743_v25, %v1611_v21  ;;  %v1023_v34 = vadd.f32 %v959_v60, %v827_v20  ;;  %v1549_v2 = vmul.f32 %v8199_v46, %v8785_v30 }
  0xa6   :  { %v1024_v63 = vadd.f32 %v960_v10, %v828_v47  ;;  %v1744_v52 = vmul.f32 %v8215_v54, %v1676_v13  ;;  %v1745_v5 = vmul.f32 %v8215_v54, %v1677_v1  ;;  %v1940_v43 = vmul.f32 %v8753_v35, %v1872_v49 }
  0xa7   :  { %v2002_v61 = vadd.f32 %v1938_v39, %v1806_v3  ;;  %v2003_v41 = vadd.f32 %v1939_v15, %v1807_v7  ;;  %v1219_v51 = vadd.f32 %v1155_v55, %v1023_v34  ;;  %v373_v25 = vmul.f32 %v8726_v58, %v8133_v27 }
  0xa8   :  { %v1220_v56 = vadd.f32 %v1156_v14, %v1024_v63  ;;  %v374_v31 = vmul.f32 %v8728_v59, %v8133_v27  ;;  %v569_v36 = vmul.f32 %v8734_v11, %v8138_v28  ;;  %v570_v32 = vmul.f32 %v8736_v26, %v8138_v28  ;;  %v8818_v14 = vld [vmem:[#allocation2 + $0x150] sm:$0xff]  ;;  %v8830_v63 = vld [vmem:[#allocation2 + $0x159] sm:$0xff] }
  0xa9   :  { %v2056_v57 = vpack.c.bf16 %v2003_v41, %v2002_v61  ;;  %v1415_v40 = vadd.f32 %v1351_v4, %v1219_v51  ;;  %v765_v39 = vmul.f32 %v8742_v0, %v8155_v33  ;;  %v766_v60 = vmul.f32 %v1871_v6, %v8155_v33 }
  0xaa   :  { %v1416_v15 = vadd.f32 %v1352_v12, %v1220_v56  ;;  %v633_v58 = vadd.f32 %v569_v36, %v373_v25  ;;  %v634_v10 = vadd.f32 %v570_v32, %v374_v31  ;;  %v961_v59 = vmul.f32 %v8777_v53, %v8172_v37  ;;  %v8822_v12 = vld [vmem:[#allocation2 + $0x158] sm:$0xff]  ;;  %v95_v25 = vld [vmem:[%s15066_s0 + $0x1d0] sm:$0xff] }
  0xab   :  { %7595 = vmatprep.mubr.msk.bf16.mxu0 %vm106_vm1, %v2056_v57  ;;  %v1612_v11 = vadd.f32 %v1548_v42, %v1415_v40  ;;  %v1941_v55 = vmul.f32 %v8753_v35, %v1873_v44  ;;  %v962_v26 = vmul.f32 %v8785_v30, %v8172_v37  ;;  %v1157_v48 = vmul.f32 %v1676_v13, %v8177_v38  ;;  %v96_v56 = vld [vmem:[%s15066_s0 + $0x1d8] sm:$0xff] }
  0xac   :  { %v1613_v0 = vadd.f32 %v1549_v2, %v1416_v15  ;;  %v829_v21 = vadd.f32 %v765_v39, %v633_v58  ;;  %v830_v6 = vadd.f32 %v766_v60, %v634_v10  ;;  %v1158_v20 = vmul.f32 %v1677_v1, %v8177_v38  ;;  %v8828_v2 = vld [vmem:[#allocation2 + $0x151] sm:$0xff]  ;;  %275 = vst.msk [vmem:[#allocation2 + $0x301] sm:$0xff] %vm106_vm1, %v95_v25 }
  0xad   :  { %v1808_v50 = vadd.f32 %v1744_v52, %v1612_v11  ;;  %v1353_v47 = vmul.f32 %v1872_v49, %v8194_v45  ;;  %v1354_v4 = vmul.f32 %v1873_v44, %v8194_v45  ;;  %v1550_v42 = vmul.f32 %v8199_v46, %v8818_v14  ;;  %v8832_v52 = vld [vmem:[#allocation2 + $0x152] sm:$0xff]  ;;  %276 = vst.msk [vmem:[#allocation2 + $0x309] sm:$0xff] %vm106_vm1, %v96_v56  ;;  %v1875_v11 = vld [vmem:[#allocation2 + $0x15a] sm:$0xff] }
  0xae   :  { %v1809_v62 = vadd.f32 %v1745_v5, %v1613_v0  ;;  %v1025_v3 = vadd.f32 %v961_v59, %v829_v21  ;;  %v1026_v7 = vadd.f32 %v962_v26, %v830_v6  ;;  %v1551_v34 = vmul.f32 %v8199_v46, %v8822_v12  ;;  %v98_v0 = vld [vmem:[%s15066_s0 + $0x1e8] sm:$0xff] }
  0xaf   :  { %v2004_v61 = vadd.f32 %v1940_v43, %v1808_v50  ;;  %v1746_v41 = vmul.f32 %v8215_v54, %v8828_v2  ;;  %v1747_v51 = vmul.f32 %v8215_v54, %v8830_v63  ;;  %v1942_v5 = vmul.f32 %v8753_v35, %v8832_v52  ;;  %278 = vst.msk [vmem:[#allocation2 + $0x321] sm:$0xff] %vm106_vm1, %v98_v0 }
  0xb0   :  { %v2005_v31 = vadd.f32 %v1941_v55, %v1809_v62  ;;  %v1221_v36 = vadd.f32 %v1157_v48, %v1025_v3  ;;  %v1222_v43 = vadd.f32 %v1158_v20, %v1026_v7  ;;  %v375_v32 = vmul.f32 %v8777_v53, %v8133_v27  ;;  %v1485_v3 = vld [vmem:[#allocation2 + $0x170] sm:$0xff] }
  0xb1   :  { %v376_v57 = vmul.f32 %v8785_v30, %v8133_v27  ;;  %v571_v40 = vmul.f32 %v1676_v13, %v8138_v28  ;;  %v572_v39 = vmul.f32 %v1677_v1, %v8138_v28  ;;  %v767_v60 = vmul.f32 %v1872_v49, %v8155_v33 }
  0xb2   :  { %v2057_v15 = vpack.c.bf16 %v2005_v31, %v2004_v61  ;;  %v1417_v58 = vadd.f32 %v1353_v47, %v1221_v36  ;;  %v1418_v10 = vadd.f32 %v1354_v4, %v1222_v43  ;;  %v768_v59 = vmul.f32 %v1873_v44, %v8155_v33  ;;  %v97_v44 = vld [vmem:[%s15066_s0 + $0x1e0] sm:$0xff]  ;;  %v8874_v47 = vld [vmem:[#allocation2 + $0x168] sm:$0xff]  ;;  %v1681_v31 = vld [vmem:[#allocation2 + $0x171] sm:$0xff] }
  0xb3   :  { %v635_v53 = vadd.f32 %v571_v40, %v375_v32  ;;  %v636_v55 = vadd.f32 %v572_v39, %v376_v57  ;;  %v963_v26 = vmul.f32 %v8818_v14, %v8172_v37  ;;  %v964_v30 = vmul.f32 %v8822_v12, %v8172_v37  ;;  %277 = vst.msk [vmem:[#allocation2 + $0x319] sm:$0xff] %vm106_vm1, %v97_v44  ;;  %v1876_v43 = vld [vmem:[#allocation2 + $0x16a] sm:$0xff] }
  0xb4   :  { %7596 = vmatmul.mubr.msk.bf16.gmra.mxu0 %vm106_vm1, %v2057_v15  ;;  %v1614_v13 = vadd.f32 %v1550_v42, %v1417_v58  ;;  %v1615_v1 = vadd.f32 %v1551_v34, %v1418_v10  ;;  %v1943_v49 = vmul.f32 %v8753_v35, %v1875_v11  ;;  %v1159_v48 = vmul.f32 %v8828_v2, %v8177_v38  ;;  %v1680_v34 = vld [vmem:[#allocation2 + $0x169] sm:$0xff]  ;;  %v1877_v10 = vld [vmem:[#allocation2 + $0x172] sm:$0xff] }
  0xb5   :  { %v831_v21 = vadd.f32 %v767_v60, %v635_v53  ;;  %v832_v6 = vadd.f32 %v768_v59, %v636_v55  ;;  %v1160_v20 = vmul.f32 %v8830_v63, %v8177_v38  ;;  %v1355_v50 = vmul.f32 %v8832_v52, %v8194_v45 }
  0xb6   :  { %v1810_v4 = vadd.f32 %v1746_v41, %v1614_v13  ;;  %v1811_v42 = vadd.f32 %v1747_v51, %v1615_v1  ;;  %v1356_v62 = vmul.f32 %v1875_v11, %v8194_v45  ;;  %v1552_v7 = vmul.f32 %v8199_v46, %v8874_v47 }
  0xb7   :  { %v1027_v61 = vadd.f32 %v963_v26, %v831_v21  ;;  %v1028_v25 = vadd.f32 %v964_v30, %v832_v6  ;;  %v1553_v56 = vmul.f32 %v8199_v46, %v1485_v3  ;;  %v1748_v36 = vmul.f32 %v8215_v54, %v1680_v34  ;;  %v1486_v6 = vld [vmem:[#allocation2 + $0x180] sm:$0xff] }
  0xb8   :  { %v2006_v32 = vadd.f32 %v1942_v5, %v1810_v4  ;;  %v2007_v57 = vadd.f32 %v1943_v49, %v1811_v42  ;;  %v1749_v41 = vmul.f32 %v8215_v54, %v1681_v31  ;;  %v1944_v51 = vmul.f32 %v8753_v35, %v1876_v43 }
  0xb9   :  { %v1223_v40 = vadd.f32 %v1159_v48, %v1027_v61  ;;  %v1224_v39 = vadd.f32 %v1160_v20, %v1028_v25  ;;  %v377_v60 = vmul.f32 %v8818_v14, %v8133_v27  ;;  %v378_v15 = vmul.f32 %v8822_v12, %v8133_v27  ;;  %v1487_v20 = vld [vmem:[#allocation2 + $0x188] sm:$0xff] }
  0xba   :  { %v2058_v58 = vpack.c.bf16 %v2007_v57, %v2006_v32  ;;  %v573_v59 = vmul.f32 %v8828_v2, %v8138_v28  ;;  %v574_v5 = vmul.f32 %v8830_v63, %v8138_v28  ;;  %v769_v53 = vmul.f32 %v8832_v52, %v8155_v33  ;;  %v1683_v61 = vld [vmem:[#allocation2 + $0x189] sm:$0xff] }
  0xbb   :  { %v1419_v55 = vadd.f32 %v1355_v50, %v1223_v40  ;;  %v1420_v26 = vadd.f32 %v1356_v62, %v1224_v39  ;;  %v1945_v30 = vmul.f32 %v8753_v35, %v1877_v10  ;;  %v770_v14 = vmul.f32 %v1875_v11, %v8155_v33  ;;  %v1878_v40 = vld [vmem:[#allocation2 + $0x182] sm:$0xff]  ;;  %v99_v39 = vld [vmem:[%s15066_s0 + $0x1f0] sm:$0xff] }
  0xbc   :  { %7599 = vmatprep.mubr.msk.bf16.mxu0 %vm106_vm1, %v2058_v58  ;;  %v637_v12 = vadd.f32 %v573_v59, %v377_v60  ;;  %v638_v13 = vadd.f32 %v574_v5, %v378_v15  ;;  %v965_v1 = vmul.f32 %v8874_v47, %v8172_v37  ;;  %v966_v2 = vmul.f32 %v1485_v3, %v8172_v37 }
  0xbd   :  { %v1616_v49 = vadd.f32 %v1552_v7, %v1419_v55  ;;  %v1617_v63 = vadd.f32 %v1553_v56, %v1420_v26  ;;  %v1161_v48 = vmul.f32 %v1680_v34, %v8177_v38  ;;  %v1162_v52 = vmul.f32 %v1681_v31, %v8177_v38  ;;  %v1682_v7 = vld [vmem:[#allocation2 + $0x181] sm:$0xff]  ;;  %279 = vst.msk [vmem:[#allocation2 + $0x331] sm:$0xff] %vm106_vm1, %v99_v39 }
  0xbe   :  { %v833_v44 = vadd.f32 %v769_v53, %v637_v12  ;;  %v834_v0 = vadd.f32 %v770_v14, %v638_v13  ;;  %v1357_v21 = vmul.f32 %v1876_v43, %v8194_v45  ;;  %v1358_v11 = vmul.f32 %v1877_v10, %v8194_v45 }
  0xbf   :  { %v1812_v50 = vadd.f32 %v1748_v36, %v1616_v49  ;;  %v1813_v4 = vadd.f32 %v1749_v41, %v1617_v63  ;;  %v1554_v42 = vmul.f32 %v8199_v46, %v1486_v6  ;;  %v1555_v62 = vmul.f32 %v8199_v46, %v1487_v20  ;;  %v100_v36 = vld [vmem:[%s15066_s0 + $0x1f8] sm:$0xff] }
  0xc0   :  { %v1029_v25 = vadd.f32 %v965_v1, %v833_v44  ;;  %v1030_v56 = vadd.f32 %v966_v2, %v834_v0  ;;  %v1750_v32 = vmul.f32 %v8215_v54, %v1682_v7  ;;  %v1751_v57 = vmul.f32 %v8215_v54, %v1683_v61  ;;  %280 = vst.msk [vmem:[#allocation2 + $0x339] sm:$0xff] %vm106_vm1, %v100_v36  ;;  %v1488_v49 = vld [vmem:[#allocation2 + $0x198] sm:$0xff] }
  0xc1   :  { %v2008_v41 = vadd.f32 %v1944_v51, %v1812_v50  ;;  %v2009_v60 = vadd.f32 %v1945_v30, %v1813_v4  ;;  %v1946_v15 = vmul.f32 %v8753_v35, %v1878_v40  ;;  %v379_v58 = vmul.f32 %v8874_v47, %v8133_v27  ;;  %v1879_v47 = vld [vmem:[#allocation2 + $0x18a] sm:$0xff]  ;;  %v1684_v0 = vld [vmem:[#allocation2 + $0x199] sm:$0xff] }
  0xc2   :  { %v1225_v59 = vadd.f32 %v1161_v48, %v1029_v25  ;;  %v1226_v5 = vadd.f32 %v1162_v52, %v1030_v56  ;;  %v380_v53 = vmul.f32 %v1485_v3, %v8133_v27  ;;  %v575_v55 = vmul.f32 %v1680_v34, %v8138_v28  ;;  %v1489_v48 = vld [vmem:[#allocation2 + $0x1a0] sm:$0xff]  ;;  %v313_v56 = vld [vmem:[#allocation2 + $0x1b0] sm:$0xff] }
  0xc3   :  { %v2059_v26 = vpack.c.bf16 %v2009_v60, %v2008_v41  ;;  %v576_v14 = vmul.f32 %v1681_v31, %v8138_v28  ;;  %v771_v51 = vmul.f32 %v1876_v43, %v8155_v33  ;;  %v772_v30 = vmul.f32 %v1877_v10, %v8155_v33  ;;  %v509_v36 = vld [vmem:[#allocation2 + $0x1b1] sm:$0xff]  ;;  %v510_v41 = vld [vmem:[#allocation2 + $0x1b9] sm:$0xff] }
  0xc4   :  { %v1421_v12 = vadd.f32 %v1357_v21, %v1225_v59  ;;  %v1422_v13 = vadd.f32 %v1358_v11, %v1226_v5  ;;  %v639_v1 = vadd.f32 %v575_v55, %v379_v58  ;;  %v967_v2 = vmul.f32 %v1486_v6, %v8172_v37  ;;  %v1685_v21 = vld [vmem:[#allocation2 + $0x1a1] sm:$0xff]  ;;  %v705_v59 = vld [vmem:[#allocation2 + $0x1b2] sm:$0xff] }
  0xc5   :  { %7600 = vmatmul.mubr.msk.bf16.gmra.mxu0 %vm106_vm1, %v2059_v26  ;;  %v1947_v3 = vmul.f32 %v8753_v35, %v1879_v47  ;;  %v640_v63 = vadd.f32 %v576_v14, %v380_v53  ;;  %v968_v34 = vmul.f32 %v1487_v20, %v8172_v37  ;;  %v1163_v31 = vmul.f32 %v1682_v7, %v8177_v38  ;;  %v1880_v11 = vld [vmem:[#allocation2 + $0x19a] sm:$0xff]  ;;  %v1881_v14 = vld [vmem:[#allocation2 + $0x1a2] sm:$0xff] }
  0xc6   :  { %v1618_v43 = vadd.f32 %v1554_v42, %v1421_v12  ;;  %v1619_v52 = vadd.f32 %v1555_v62, %v1422_v13  ;;  %v835_v10 = vadd.f32 %v771_v51, %v639_v1  ;;  %v1164_v44 = vmul.f32 %v1683_v61, %v8177_v38  ;;  %v314_v62 = vld [vmem:[#allocation2 + $0x1b8] sm:$0xff] }
  0xc7   :  { %v836_v6 = vadd.f32 %v772_v30, %v640_v63  ;;  %v1359_v50 = vmul.f32 %v1878_v40, %v8194_v45  ;;  %v1360_v4 = vmul.f32 %v1879_v47, %v8194_v45  ;;  %v1556_v25 = vmul.f32 %v8199_v46, %v1488_v49  ;;  %v706_v5 = vld [vmem:[#allocation2 + $0x1ba] sm:$0xff]  ;;  %v901_v49 = vld [vmem:[#allocation2 + $0x1c8] sm:$0xff] }
  0xc8   :  { %v1814_v20 = vadd.f32 %v1750_v32, %v1618_v43  ;;  %v1815_v39 = vadd.f32 %v1751_v57, %v1619_v52  ;;  %v1031_v7 = vadd.f32 %v967_v2, %v835_v10  ;;  %v1557_v42 = vmul.f32 %v8199_v46, %v1489_v48  ;;  %v1097_v48 = vld [vmem:[#allocation2 + $0x1c9] sm:$0xff] }
  0xc9   :  { %v1032_v61 = vadd.f32 %v968_v34, %v836_v6  ;;  %v1752_v60 = vmul.f32 %v8215_v54, %v1684_v0  ;;  %v1753_v58 = vmul.f32 %v8215_v54, %v1685_v21  ;;  %v1948_v40 = vmul.f32 %v8753_v35, %v1880_v11  ;;  %v902_v34 = vld [vmem:[#allocation2 + $0x1d0] sm:$0xff] }
  0xca   :  { %v2010_v53 = vadd.f32 %v1946_v15, %v1814_v20  ;;  %v2011_v55 = vadd.f32 %v1947_v3, %v1815_v39  ;;  %v1227_v26 = vadd.f32 %v1163_v31, %v1031_v7  ;;  %v381_v32 = vmul.f32 %v8133_v27, %v313_v56  ;;  %v1294_v56 = vld [vmem:[#allocation2 + $0x1d2] sm:$0xff]  ;;  %v1490_v20 = vld [vmem:[#allocation2 + $0x1e0] sm:$0xff] }
  0xcb   :  { %v1228_v57 = vadd.f32 %v1164_v44, %v1032_v61  ;;  %v382_v51 = vmul.f32 %v8133_v27, %v314_v62  ;;  %v577_v30 = vmul.f32 %v8138_v28, %v509_v36  ;;  %v578_v12 = vmul.f32 %v8138_v28, %v510_v41  ;;  %v1098_v44 = vld [vmem:[#allocation2 + $0x1d1] sm:$0xff]  ;;  %v1491_v62 = vld [vmem:[#allocation2 + $0x1e8] sm:$0xff] }
  0xcc   :  { %v2060_v13 = vpack.c.bf16 %v2011_v55, %v2010_v53  ;;  %v1423_v47 = vadd.f32 %v1359_v50, %v1227_v26  ;;  %v773_v1 = vmul.f32 %v8155_v33, %v705_v59  ;;  %v774_v2 = vmul.f32 %v8155_v33, %v706_v5  ;;  %v1686_v5 = vld [vmem:[#allocation2 + $0x1e1] sm:$0xff]  ;;  %v1687_v53 = vld [vmem:[#allocation2 + $0x1e9] sm:$0xff] }
  0xcd   :  { %v1424_v15 = vadd.f32 %v1360_v4, %v1228_v57  ;;  %v641_v3 = vadd.f32 %v577_v30, %v381_v32  ;;  %v642_v63 = vadd.f32 %v578_v12, %v382_v51  ;;  %v969_v31 = vmul.f32 %v8172_v37, %v901_v49  ;;  %v1293_v4 = vld [vmem:[#allocation2 + $0x1ca] sm:$0xff]  ;;  %v1882_v55 = vld [vmem:[#allocation2 + $0x1e2] sm:$0xff] }
  0xce   :  { %7603 = vmatprep.mubr.msk.bf16.mxu0 %vm106_vm1, %v2060_v13  ;;  %v1620_v43 = vadd.f32 %v1556_v25, %v1423_v47  ;;  %v1949_v52 = vmul.f32 %v8753_v35, %v1881_v14  ;;  %v970_v10 = vmul.f32 %v8172_v37, %v902_v34  ;;  %v1165_v0 = vmul.f32 %v8177_v38, %v1097_v48 }
  0xcf   :  { %v1621_v21 = vadd.f32 %v1557_v42, %v1424_v15  ;;  %v837_v11 = vadd.f32 %v773_v1, %v641_v3  ;;  %v838_v6 = vadd.f32 %v774_v2, %v642_v63  ;;  %v1166_v50 = vmul.f32 %v8177_v38, %v1098_v44  ;;  %v1883_v63 = vld [vmem:[#allocation2 + $0x1ea] sm:$0xff] }
  0xd0   :  { %v1816_v39 = vadd.f32 %v1752_v60, %v1620_v43  ;;  %v1361_v7 = vmul.f32 %v8194_v45, %v1293_v4  ;;  %v1362_v25 = vmul.f32 %v8194_v45, %v1294_v56  ;;  %v1558_v36 = vmul.f32 %v8199_v46, %v1490_v20 }
  0xd1   :  { %v1817_v41 = vadd.f32 %v1753_v58, %v1621_v21  ;;  %v1033_v61 = vadd.f32 %v969_v31, %v837_v11  ;;  %v1034_v59 = vadd.f32 %v970_v10, %v838_v6  ;;  %v1559_v42 = vmul.f32 %v8199_v46, %v1491_v62 }
  0xd2   :  { %v2012_v26 = vadd.f32 %v1948_v40, %v1816_v39  ;;  %v1754_v32 = vmul.f32 %v8215_v54, %v1686_v5  ;;  %v1755_v60 = vmul.f32 %v8215_v54, %v1687_v53  ;;  %v1950_v57 = vmul.f32 %v8753_v35, %v1882_v55 }
  0xd3   :  { %v2013_v14 = vadd.f32 %v1949_v52, %v1817_v41  ;;  %v1229_v51 = vadd.f32 %v1165_v0, %v1033_v61  ;;  %v1230_v30 = vadd.f32 %v1166_v50, %v1034_v59  ;;  %v383_v12 = vmul.f32 %v901_v49, %v8133_v27  ;;  %v1492_v50 = vld [vmem:[#allocation2 + $0x1f8] sm:$0xff] }
  0xd4   :  { %v384_v58 = vmul.f32 %v902_v34, %v8133_v27  ;;  %v579_v13 = vmul.f32 %v1097_v48, %v8138_v28  ;;  %v580_v47 = vmul.f32 %v1098_v44, %v8138_v28  ;;  %v775_v1 = vmul.f32 %v1293_v4, %v8155_v33 }
  0xd5   :  { %v2061_v40 = vpack.c.bf16 %v2013_v14, %v2012_v26  ;;  %v1425_v2 = vadd.f32 %v1361_v7, %v1229_v51  ;;  %v1426_v15 = vadd.f32 %v1362_v25, %v1230_v30  ;;  %v776_v3 = vmul.f32 %v1294_v56, %v8155_v33  ;;  %v1493_v7 = vld [vmem:[#allocation2 + $0x200] sm:$0xff] }
  0xd6   :  { %v643_v31 = vadd.f32 %v579_v13, %v383_v12  ;;  %v644_v43 = vadd.f32 %v580_v47, %v384_v58  ;;  %v971_v52 = vmul.f32 %v1490_v20, %v8172_v37  ;;  %v972_v49 = vmul.f32 %v1491_v62, %v8172_v37  ;;  %v1884_v14 = vld [vmem:[#allocation2 + $0x1fa] sm:$0xff] }
  0xd7   :  { %7604 = vmatmul.mubr.msk.bf16.gmra.mxu0 %vm106_vm1, %v2061_v40  ;;  %v1622_v34 = vadd.f32 %v1558_v36, %v1425_v2  ;;  %v1623_v48 = vadd.f32 %v1559_v42, %v1426_v15  ;;  %v1951_v10 = vmul.f32 %v8753_v35, %v1883_v63  ;;  %v1167_v44 = vmul.f32 %v1686_v5, %v8177_v38  ;;  %v1688_v36 = vld [vmem:[#allocation2 + $0x1f9] sm:$0xff]  ;;  %v1689_v42 = vld [vmem:[#allocation2 + $0x201] sm:$0xff] }
  0xd8   :  { %v839_v0 = vadd.f32 %v775_v1, %v643_v31  ;;  %v840_v21 = vadd.f32 %v776_v3, %v644_v43  ;;  %v1168_v11 = vmul.f32 %v1687_v53, %v8177_v38  ;;  %v1363_v6 = vmul.f32 %v1882_v55, %v8194_v45  ;;  %v1885_v40 = vld [vmem:[#allocation2 + $0x202] sm:$0xff] }
  0xd9   :  { %v1818_v4 = vadd.f32 %v1754_v32, %v1622_v34  ;;  %v1819_v56 = vadd.f32 %v1755_v60, %v1623_v48  ;;  %v1364_v39 = vmul.f32 %v1883_v63, %v8194_v45  ;;  %v1560_v25 = vmul.f32 %v8199_v46, %v1492_v50 }
  0xda   :  { %v1035_v41 = vadd.f32 %v971_v52, %v839_v0  ;;  %v1036_v61 = vadd.f32 %v972_v49, %v840_v21  ;;  %v1561_v59 = vmul.f32 %v8199_v46, %v1493_v7  ;;  %v1756_v26 = vmul.f32 %v8215_v54, %v1688_v36  ;;  %v1494_v21 = vld [vmem:[#allocation2 + $0x210] sm:$0xff] }
  0xdb   :  { %v2014_v51 = vadd.f32 %v1950_v57, %v1818_v4  ;;  %v2015_v30 = vadd.f32 %v1951_v10, %v1819_v56  ;;  %v1757_v12 = vmul.f32 %v8215_v54, %v1689_v42  ;;  %v1952_v32 = vmul.f32 %v8753_v35, %v1884_v14 }
  0xdc   :  { %v1231_v60 = vadd.f32 %v1167_v44, %v1035_v41  ;;  %v1232_v58 = vadd.f32 %v1168_v11, %v1036_v61  ;;  %v385_v13 = vmul.f32 %v1490_v20, %v8133_v27  ;;  %v386_v47 = vmul.f32 %v1491_v62, %v8133_v27  ;;  %v1495_v11 = vld [vmem:[#allocation2 + $0x218] sm:$0xff] }
  0xdd   :  { %v2062_v1 = vpack.c.bf16 %v2015_v30, %v2014_v51  ;;  %v581_v2 = vmul.f32 %v1686_v5, %v8138_v28  ;;  %v582_v15 = vmul.f32 %v1687_v53, %v8138_v28  ;;  %v777_v3 = vmul.f32 %v1882_v55, %v8155_v33  ;;  %v1691_v41 = vld [vmem:[#allocation2 + $0x219] sm:$0xff] }
  0xde   :  { %v1427_v57 = vadd.f32 %v1363_v6, %v1231_v60  ;;  %v1428_v31 = vadd.f32 %v1364_v39, %v1232_v58  ;;  %v1953_v43 = vmul.f32 %v8753_v35, %v1885_v40  ;;  %v778_v52 = vmul.f32 %v1883_v63, %v8155_v33  ;;  %v1886_v60 = vld [vmem:[#allocation2 + $0x212] sm:$0xff] }
  0xdf   :  { %7607 = vmatprep.mubr.msk.bf16.mxu0 %vm106_vm1, %v2062_v1  ;;  %v645_v49 = vadd.f32 %v581_v2, %v385_v13  ;;  %v646_v20 = vadd.f32 %v582_v15, %v386_v47  ;;  %v973_v62 = vmul.f32 %v1492_v50, %v8172_v37  ;;  %v974_v34 = vmul.f32 %v1493_v7, %v8172_v37 }
  0xe0   :  { %v1624_v48 = vadd.f32 %v1560_v25, %v1427_v57  ;;  %v1625_v5 = vadd.f32 %v1561_v59, %v1428_v31  ;;  %v1169_v53 = vmul.f32 %v1688_v36, %v8177_v38  ;;  %v1170_v55 = vmul.f32 %v1689_v42, %v8177_v38  ;;  %v1690_v25 = vld [vmem:[#allocation2 + $0x211] sm:$0xff] }
  0xe1   :  { %v841_v10 = vadd.f32 %v777_v3, %v645_v49  ;;  %v842_v44 = vadd.f32 %v778_v52, %v646_v20  ;;  %v1365_v0 = vmul.f32 %v1884_v14, %v8194_v45  ;;  %v1366_v63 = vmul.f32 %v1885_v40, %v8194_v45 }
  0xe2   :  { %v1820_v6 = vadd.f32 %v1756_v26, %v1624_v48  ;;  %v1821_v4 = vadd.f32 %v1757_v12, %v1625_v5  ;;  %v1562_v56 = vmul.f32 %v8199_v46, %v1494_v21  ;;  %v1563_v39 = vmul.f32 %v8199_v46, %v1495_v11  ;;  %v9007_v5 = vld [vmem:[#allocation2 + $0x228] sm:$0xff] }
  0xe3   :  { %v1037_v61 = vadd.f32 %v973_v62, %v841_v10  ;;  %v1038_v59 = vadd.f32 %v974_v34, %v842_v44  ;;  %v1758_v51 = vmul.f32 %v8215_v54, %v1690_v25  ;;  %v1759_v30 = vmul.f32 %v8215_v54, %v1691_v41  ;;  %v1497_v44 = vld [vmem:[#allocation2 + $0x230] sm:$0xff] }
  0xe4   :  { %v2016_v58 = vadd.f32 %v1952_v32, %v1820_v6  ;;  %v2017_v13 = vadd.f32 %v1953_v43, %v1821_v4  ;;  %v1954_v47 = vmul.f32 %v8753_v35, %v1886_v60  ;;  %v387_v26 = vmul.f32 %v1492_v50, %v8133_v27  ;;  %v1887_v43 = vld [vmem:[#allocation2 + $0x21a] sm:$0xff] }
  0xe5   :  { %v1233_v12 = vadd.f32 %v1169_v53, %v1037_v61  ;;  %v1234_v1 = vadd.f32 %v1170_v55, %v1038_v59  ;;  %v388_v2 = vmul.f32 %v1493_v7, %v8133_v27  ;;  %v583_v15 = vmul.f32 %v1688_v36, %v8138_v28  ;;  %v1693_v61 = vld [vmem:[#allocation2 + $0x231] sm:$0xff] }
  0xe6   :  { %v2063_v3 = vpack.c.bf16 %v2017_v13, %v2016_v58  ;;  %v584_v57 = vmul.f32 %v1689_v42, %v8138_v28  ;;  %v779_v31 = vmul.f32 %v1884_v14, %v8155_v33  ;;  %v780_v52 = vmul.f32 %v1885_v40, %v8155_v33  ;;  %v1888_v59 = vld [vmem:[#allocation2 + $0x22a] sm:$0xff] }
  0xe7   :  { %v1429_v49 = vadd.f32 %v1365_v0, %v1233_v12  ;;  %v1430_v32 = vadd.f32 %v1366_v63, %v1234_v1  ;;  %v647_v20 = vadd.f32 %v583_v15, %v387_v26  ;;  %v975_v62 = vmul.f32 %v1494_v21, %v8172_v37 }
  0xe8   :  { %7608 = vmatmul.mubr.msk.bf16.gmra.mxu0 %vm106_vm1, %v2063_v3  ;;  %v1955_v50 = vmul.f32 %v8753_v35, %v1887_v43  ;;  %v648_v7 = vadd.f32 %v584_v57, %v388_v2  ;;  %v976_v36 = vmul.f32 %v1495_v11, %v8172_v37  ;;  %v1171_v34 = vmul.f32 %v1690_v25, %v8177_v38 }
  0xe9   :  { %v1626_v42 = vadd.f32 %v1562_v56, %v1429_v49  ;;  %v1627_v48 = vadd.f32 %v1563_v39, %v1430_v32  ;;  %v843_v14 = vadd.f32 %v779_v31, %v647_v20  ;;  %v1172_v40 = vmul.f32 %v1691_v41, %v8177_v38  ;;  %v1692_v39 = vld [vmem:[#allocation2 + $0x229] sm:$0xff] }
  0xea   :  { %v844_v53 = vadd.f32 %v780_v52, %v648_v7  ;;  %v1367_v55 = vmul.f32 %v1886_v60, %v8194_v45  ;;  %v1368_v10 = vmul.f32 %v1887_v43, %v8194_v45  ;;  %v1564_v0 = vmul.f32 %v8199_v46, %v9007_v5  ;;  %v1889_v7 = vld [vmem:[#allocation2 + $0x232] sm:$0xff] }
  0xeb   :  { %v1822_v63 = vadd.f32 %v1758_v51, %v1626_v42  ;;  %v1823_v6 = vadd.f32 %v1759_v30, %v1627_v48  ;;  %v1039_v4 = vadd.f32 %v975_v62, %v843_v14  ;;  %v1565_v56 = vmul.f32 %v8199_v46, %v1497_v44  ;;  %v1498_v48 = vld [vmem:[#allocation2 + $0x240] sm:$0xff] }
  0xec   :  { %v1040_v58 = vadd.f32 %v976_v36, %v844_v53  ;;  %v1760_v13 = vmul.f32 %v8215_v54, %v1692_v39  ;;  %v1761_v26 = vmul.f32 %v8215_v54, %v1693_v61  ;;  %v1956_v12 = vmul.f32 %v8753_v35, %v1888_v59 }
  0xed   :  { %v2018_v1 = vadd.f32 %v1954_v47, %v1822_v63  ;;  %v2019_v2 = vadd.f32 %v1955_v50, %v1823_v6  ;;  %v1235_v15 = vadd.f32 %v1171_v34, %v1039_v4  ;;  %v389_v3 = vmul.f32 %v1494_v21, %v8133_v27 }
  0xee   :  { %v1236_v51 = vadd.f32 %v1172_v40, %v1040_v58  ;;  %v390_v30 = vmul.f32 %v1495_v11, %v8133_v27  ;;  %v585_v57 = vmul.f32 %v1690_v25, %v8138_v28  ;;  %v586_v31 = vmul.f32 %v1691_v41, %v8138_v28  ;;  %v1694_v58 = vld [vmem:[#allocation2 + $0x241] sm:$0xff] }
  0xef   :  { %v2064_v52 = vpack.c.bf16 %v2019_v2, %v2018_v1  ;;  %v1431_v49 = vadd.f32 %v1367_v55, %v1235_v15  ;;  %v781_v32 = vmul.f32 %v1886_v60, %v8155_v33  ;;  %v782_v20 = vmul.f32 %v1887_v43, %v8155_v33  ;;  %v1499_v55 = vld [vmem:[#allocation2 + $0x248] sm:$0xff] }
  0xf0   :  { %v1432_v62 = vadd.f32 %v1368_v10, %v1236_v51  ;;  %v649_v47 = vadd.f32 %v585_v57, %v389_v3  ;;  %v650_v50 = vadd.f32 %v586_v31, %v390_v30  ;;  %v977_v21 = vmul.f32 %v9007_v5, %v8172_v37  ;;  %v1890_v1 = vld [vmem:[#allocation2 + $0x242] sm:$0xff] }
  0xf1   :  { %7611 = vmatprep.mubr.msk.bf16.mxu0 %vm106_vm1, %v2064_v52  ;;  %v1628_v11 = vadd.f32 %v1564_v0, %v1431_v49  ;;  %v1957_v25 = vmul.f32 %v8753_v35, %v1889_v7  ;;  %v978_v41 = vmul.f32 %v1497_v44, %v8172_v37  ;;  %v1173_v36 = vmul.f32 %v1692_v39, %v8177_v38 }
  0xf2   :  { %v1629_v34 = vadd.f32 %v1565_v56, %v1432_v62  ;;  %v845_v60 = vadd.f32 %v781_v32, %v649_v47  ;;  %v846_v42 = vadd.f32 %v782_v20, %v650_v50  ;;  %v1174_v43 = vmul.f32 %v1693_v61, %v8177_v38  ;;  %v1695_v56 = vld [vmem:[#allocation2 + $0x249] sm:$0xff] }
  0xf3   :  { %v1824_v14 = vadd.f32 %v1760_v13, %v1628_v11  ;;  %v1369_v40 = vmul.f32 %v1888_v59, %v8194_v45  ;;  %v1370_v53 = vmul.f32 %v1889_v7, %v8194_v45  ;;  %v1566_v10 = vmul.f32 %v8199_v46, %v1498_v48  ;;  %v1891_v50 = vld [vmem:[#allocation2 + $0x24a] sm:$0xff] }
  0xf4   :  { %v1825_v0 = vadd.f32 %v1761_v26, %v1629_v34  ;;  %v1041_v63 = vadd.f32 %v977_v21, %v845_v60  ;;  %v1042_v6 = vadd.f32 %v978_v41, %v846_v42  ;;  %v1567_v4 = vmul.f32 %v8199_v46, %v1499_v55  ;;  %v1500_v60 = vld [vmem:[#allocation2 + $0x258] sm:$0xff] }
  0xf5   :  { %v2020_v2 = vadd.f32 %v1956_v12, %v1824_v14  ;;  %v1762_v15 = vmul.f32 %v8215_v54, %v1694_v58  ;;  %v1763_v13 = vmul.f32 %v8215_v54, %v1695_v56  ;;  %v1958_v3 = vmul.f32 %v8753_v35, %v1890_v1 }
  0xf6   :  { %v2021_v51 = vadd.f32 %v1957_v25, %v1825_v0  ;;  %v1237_v30 = vadd.f32 %v1173_v36, %v1041_v63  ;;  %v1238_v57 = vadd.f32 %v1174_v43, %v1042_v6  ;;  %v391_v26 = vmul.f32 %v9007_v5, %v8133_v27 }
  0xf7   :  { %v392_v31 = vmul.f32 %v1497_v44, %v8133_v27  ;;  %v587_v52 = vmul.f32 %v1692_v39, %v8138_v28  ;;  %v588_v49 = vmul.f32 %v1693_v61, %v8138_v28  ;;  %v783_v12 = vmul.f32 %v1888_v59, %v8155_v33 }
  0xf8   :  { %v2065_v32 = vpack.c.bf16 %v2021_v51, %v2020_v2  ;;  %v1433_v20 = vadd.f32 %v1369_v40, %v1237_v30  ;;  %v1434_v62 = vadd.f32 %v1370_v53, %v1238_v57  ;;  %v784_v47 = vmul.f32 %v1889_v7, %v8155_v33  ;;  %v1501_v40 = vld [vmem:[#allocation2 + $0x260] sm:$0xff] }
  0xf9   :  { %v651_v21 = vadd.f32 %v587_v52, %v391_v26  ;;  %v652_v11 = vadd.f32 %v588_v49, %v392_v31  ;;  %v979_v25 = vmul.f32 %v1498_v48, %v8172_v37  ;;  %v980_v5 = vmul.f32 %v1499_v55, %v8172_v37  ;;  %v1892_v51 = vld [vmem:[#allocation2 + $0x25a] sm:$0xff] }
  0xfa   :  { %7612 = vmatmul.mubr.msk.bf16.gmra.mxu0 %vm106_vm1, %v2065_v32  ;;  %v1630_v44 = vadd.f32 %v1566_v10, %v1433_v20  ;;  %v1631_v39 = vadd.f32 %v1567_v4, %v1434_v62  ;;  %v1959_v61 = vmul.f32 %v8753_v35, %v1891_v50  ;;  %v1175_v59 = vmul.f32 %v1694_v58, %v8177_v38  ;;  %v1696_v10 = vld [vmem:[#allocation2 + $0x259] sm:$0xff]  ;;  %v1697_v4 = vld [vmem:[#allocation2 + $0x261] sm:$0xff] }
  0xfb   :  { %v847_v41 = vadd.f32 %v783_v12, %v651_v21  ;;  %v848_v36 = vadd.f32 %v784_v47, %v652_v11  ;;  %v1176_v34 = vmul.f32 %v1695_v56, %v8177_v38  ;;  %v1371_v7 = vmul.f32 %v1890_v1, %v8194_v45  ;;  %v1893_v32 = vld [vmem:[#allocation2 + $0x262] sm:$0xff] }
  0xfc   :  { %v1826_v42 = vadd.f32 %v1762_v15, %v1630_v44  ;;  %v1827_v43 = vadd.f32 %v1763_v13, %v1631_v39  ;;  %v1372_v14 = vmul.f32 %v1891_v50, %v8194_v45  ;;  %v1568_v53 = vmul.f32 %v8199_v46, %v1500_v60 }
  0xfd   :  { %v1043_v0 = vadd.f32 %v979_v25, %v847_v41  ;;  %v1044_v63 = vadd.f32 %v980_v5, %v848_v36  ;;  %v1569_v6 = vmul.f32 %v8199_v46, %v1501_v40  ;;  %v1764_v2 = vmul.f32 %v8215_v54, %v1696_v10  ;;  %v1502_v41 = vld [vmem:[#allocation2 + $0x270] sm:$0xff]  ;;  %v1503_v36 = vld [vmem:[#allocation2 + $0x278] sm:$0xff] }
  0xfe   :  { %v2022_v30 = vadd.f32 %v1958_v3, %v1826_v42  ;;  %v2023_v57 = vadd.f32 %v1959_v61, %v1827_v43  ;;  %v1765_v26 = vmul.f32 %v8215_v54, %v1697_v4  ;;  %v1960_v15 = vmul.f32 %v8753_v35, %v1892_v51 }
  0xff   :  { %v1239_v13 = vadd.f32 %v1175_v59, %v1043_v0  ;;  %v1240_v31 = vadd.f32 %v1176_v34, %v1044_v63  ;;  %v393_v52 = vmul.f32 %v1498_v48, %v8133_v27  ;;  %v394_v49 = vmul.f32 %v1499_v55, %v8133_v27 }
 0x100   :  { %v2066_v12 = vpack.c.bf16 %v2023_v57, %v2022_v30  ;;  %v589_v20 = vmul.f32 %v1694_v58, %v8138_v28  ;;  %v590_v62 = vmul.f32 %v1695_v56, %v8138_v28  ;;  %v785_v47 = vmul.f32 %v1890_v1, %v8155_v33  ;;  %v1894_v57 = vld [vmem:[#allocation2 + $0x272] sm:$0xff] }
 0x101   :  { %v1435_v3 = vadd.f32 %v1371_v7, %v1239_v13  ;;  %v1436_v21 = vadd.f32 %v1372_v14, %v1240_v31  ;;  %v1961_v11 = vmul.f32 %v8753_v35, %v1893_v32  ;;  %v786_v25 = vmul.f32 %v1891_v50, %v8155_v33  ;;  %v1698_v14 = vld [vmem:[#allocation2 + $0x271] sm:$0xff] }
 0x102   :  { %7615 = vmatprep.mubr.msk.bf16.mxu0 %vm106_vm1, %v2066_v12  ;;  %v653_v5 = vadd.f32 %v589_v20, %v393_v52  ;;  %v654_v48 = vadd.f32 %v590_v62, %v394_v49  ;;  %v981_v55 = vmul.f32 %v1500_v60, %v8172_v37  ;;  %v982_v44 = vmul.f32 %v1501_v40, %v8172_v37 }
 0x103   :  { %v1632_v39 = vadd.f32 %v1568_v53, %v1435_v3  ;;  %v1633_v58 = vadd.f32 %v1569_v6, %v1436_v21  ;;  %v1177_v56 = vmul.f32 %v1696_v10, %v8177_v38  ;;  %v1178_v1 = vmul.f32 %v1697_v4, %v8177_v38  ;;  %v1699_v53 = vld [vmem:[#allocation2 + $0x279] sm:$0xff] }
 0x104   :  { %v849_v61 = vadd.f32 %v785_v47, %v653_v5  ;;  %v850_v59 = vadd.f32 %v786_v25, %v654_v48  ;;  %v1373_v35 = vmul.f32 %v1892_v51, %v8194_v45  ;;  %v1374_v50 = vmul.f32 %v1893_v32, %v8194_v45  ;;  %v1895_v5 = vld [vmem:[#allocation2 + $0x27a] sm:$0xff] }
 0x105   :  { %v1828_v34 = vadd.f32 %v1764_v2, %v1632_v39  ;;  %v1829_v7 = vadd.f32 %v1765_v26, %v1633_v58  ;;  %v1570_v42 = vmul.f32 %v8199_v46, %v1502_v41  ;;  %v1571_v43 = vmul.f32 %v8199_v46, %v1503_v36  ;;  %v9078_v2 = vld [vmem:[%s15067_s1 + $0x8] ss:$0 sm:$0xff] }
 0x106   :  { %v1045_v0 = vadd.f32 %v981_v55, %v849_v61  ;;  %v1046_v63 = vadd.f32 %v982_v44, %v850_v59  ;;  %v1766_v6 = vmul.f32 %v8215_v54, %v1698_v14  ;;  %v1767_v30 = vmul.f32 %v8215_v54, %v1699_v53  ;;  %v9093_v58 = vld [vmem:[#allocation2 + $0x288] sm:$0xff]  ;;  %v1505_v59 = vld [vmem:[#allocation2 + $0x290] sm:$0xff] }
 0x107   :  { %v2024_v13 = vadd.f32 %v1960_v15, %v1828_v34  ;;  %v2025_v31 = vadd.f32 %v1961_v11, %v1829_v7  ;;  %v1962_v26 = vmul.f32 %v9078_v2, %v1894_v57  ;;  %v395_v52 = vmul.f32 %v1500_v60, %v8133_v27 }
 0x108   :  { %v1241_v49 = vadd.f32 %v1177_v56, %v1045_v0  ;;  %v1242_v12 = vadd.f32 %v1178_v1, %v1046_v63  ;;  %v396_v20 = vmul.f32 %v1501_v40, %v8133_v27  ;;  %v591_v62 = vmul.f32 %v1696_v10, %v8138_v28  ;;  %v1701_v0 = vld [vmem:[#allocation2 + $0x291] sm:$0xff] }
 0x109   :  { %v2067_v47 = vpack.c.bf16 %v2025_v31, %v2024_v13  ;;  %v592_v3 = vmul.f32 %v1697_v4, %v8138_v28  ;;  %v787_v15 = vmul.f32 %v1892_v51, %v8155_v33  ;;  %v788_v21 = vmul.f32 %v1893_v32, %v8155_v33  ;;  %v1896_v63 = vld [vmem:[#allocation2 + $0x28a] sm:$0xff] }
 0x10a   :  { %v1437_v11 = vadd.f32 %v1373_v35, %v1241_v49  ;;  %v1438_v25 = vadd.f32 %v1374_v50, %v1242_v12  ;;  %v655_v48 = vadd.f32 %v591_v62, %v395_v52  ;;  %v983_v55 = vmul.f32 %v1502_v41, %v8172_v37 }
 0x10b   :  { %7616 = vmatmul.mubr.msk.bf16.gmra.mxu0 %vm106_vm1, %v2067_v47  ;;  %v1963_v60 = vmul.f32 %v9078_v2, %v1895_v5  ;;  %v656_v40 = vadd.f32 %v592_v3, %v396_v20  ;;  %v984_v10 = vmul.f32 %v1503_v36, %v8172_v37  ;;  %v1179_v44 = vmul.f32 %v1698_v14, %v8177_v38 }
 0x10c   :  { %v1634_v4 = vadd.f32 %v1570_v42, %v1437_v11  ;;  %v1635_v39 = vadd.f32 %v1571_v43, %v1438_v25  ;;  %v851_v51 = vadd.f32 %v787_v15, %v655_v48  ;;  %v1180_v32 = vmul.f32 %v1699_v53, %v8177_v38  ;;  %v1700_v43 = vld [vmem:[#allocation2 + $0x289] sm:$0xff] }
 0x10d   :  { %v852_v56 = vadd.f32 %v788_v21, %v656_v40  ;;  %v1375_v1 = vmul.f32 %v1894_v57, %v8194_v45  ;;  %v1376_v61 = vmul.f32 %v1895_v5, %v8194_v45  ;;  %v1572_v35 = vmul.f32 %v8199_v46, %v9093_v58  ;;  %v1897_v40 = vld [vmem:[#allocation2 + $0x292] sm:$0xff] }
 0x10e   :  { %v1830_v50 = vadd.f32 %v1766_v6, %v1634_v4  ;;  %v1831_v34 = vadd.f32 %v1767_v30, %v1635_v39  ;;  %v1047_v7 = vadd.f32 %v983_v55, %v851_v51  ;;  %v1573_v42 = vmul.f32 %v8199_v46, %v1505_v59  ;;  %v1506_v39 = vld [vmem:[#allocation2 + $0x2a0] sm:$0xff] }
 0x10f   :  { %v1048_v13 = vadd.f32 %v984_v10, %v852_v56  ;;  %v1768_v31 = vmul.f32 %v8215_v54, %v1700_v43  ;;  %v1769_v52 = vmul.f32 %v8215_v54, %v1701_v0  ;;  %v1964_v49 = vmul.f32 %v9078_v2, %v1896_v63 }
 0x110   :  { %v2026_v12 = vadd.f32 %v1962_v26, %v1830_v50  ;;  %v2027_v20 = vadd.f32 %v1963_v60, %v1831_v34  ;;  %v1243_v62 = vadd.f32 %v1179_v44, %v1047_v7  ;;  %v397_v47 = vmul.f32 %v1502_v41, %v8133_v27 }
 0x111   :  { %v1244_v6 = vadd.f32 %v1180_v32, %v1048_v13  ;;  %v398_v30 = vmul.f32 %v1503_v36, %v8133_v27  ;;  %v593_v3 = vmul.f32 %v1698_v14, %v8138_v28  ;;  %v594_v15 = vmul.f32 %v1699_v53, %v8138_v28  ;;  %v1702_v13 = vld [vmem:[#allocation2 + $0x2a1] sm:$0xff] }
 0x112   :  { %v2068_v21 = vpack.c.bf16 %v2027_v20, %v2026_v12  ;;  %v1439_v11 = vadd.f32 %v1375_v1, %v1243_v62  ;;  %v789_v25 = vmul.f32 %v1894_v57, %v8155_v33  ;;  %v790_v48 = vmul.f32 %v1895_v5, %v8155_v33  ;;  %v1507_v1 = vld [vmem:[#allocation2 + $0x2a8] sm:$0xff] }
 0x113   :  { %v1440_v55 = vadd.f32 %v1376_v61, %v1244_v6  ;;  %v657_v26 = vadd.f32 %v593_v3, %v397_v47  ;;  %v658_v60 = vadd.f32 %v594_v15, %v398_v30  ;;  %v985_v41 = vmul.f32 %v9093_v58, %v8172_v37  ;;  %v1898_v12 = vld [vmem:[#allocation2 + $0x2a2] sm:$0xff] }
 0x114   :  { %7619 = vmatprep.mubr.msk.bf16.mxu0 %vm106_vm1, %v2068_v21  ;;  %v1636_v36 = vadd.f32 %v1572_v35, %v1439_v11  ;;  %v1965_v14 = vmul.f32 %v9078_v2, %v1897_v40  ;;  %v986_v53 = vmul.f32 %v1505_v59, %v8172_v37  ;;  %v1181_v10 = vmul.f32 %v1700_v43, %v8177_v38 }
 0x115   :  { %v1637_v44 = vadd.f32 %v1573_v42, %v1440_v55  ;;  %v853_v57 = vadd.f32 %v789_v25, %v657_v26  ;;  %v854_v4 = vadd.f32 %v790_v48, %v658_v60  ;;  %v1182_v5 = vmul.f32 %v1701_v0, %v8177_v38  ;;  %v1703_v42 = vld [vmem:[#allocation2 + $0x2a9] sm:$0xff] }
 0x116   :  { %v1832_v51 = vadd.f32 %v1768_v31, %v1636_v36  ;;  %v1377_v32 = vmul.f32 %v1896_v63, %v8194_v45  ;;  %v1378_v56 = vmul.f32 %v1897_v40, %v8194_v45  ;;  %v1574_v61 = vmul.f32 %v8199_v46, %v1506_v39  ;;  %v1899_v60 = vld [vmem:[#allocation2 + $0x2aa] sm:$0xff] }
 0x117   :  { %v1833_v35 = vadd.f32 %v1769_v52, %v1637_v44  ;;  %v1049_v50 = vadd.f32 %v985_v41, %v853_v57  ;;  %v1050_v34 = vadd.f32 %v986_v53, %v854_v4  ;;  %v1575_v7 = vmul.f32 %v8199_v46, %v1507_v1  ;;  %v1508_v57 = vld [vmem:[#allocation2 + $0x2b8] sm:$0xff] }
 0x118   :  { %v2028_v20 = vadd.f32 %v1964_v49, %v1832_v51  ;;  %v1770_v62 = vmul.f32 %v8215_v54, %v1702_v13  ;;  %v1771_v31 = vmul.f32 %v8215_v54, %v1703_v42  ;;  %v1966_v47 = vmul.f32 %v9078_v2, %v1898_v12 }
 0x119   :  { %v2029_v6 = vadd.f32 %v1965_v14, %v1833_v35  ;;  %v1245_v30 = vadd.f32 %v1181_v10, %v1049_v50  ;;  %v1246_v3 = vadd.f32 %v1182_v5, %v1050_v34  ;;  %v399_v52 = vmul.f32 %v9093_v58, %v8133_v27 }
 0x11a   :  { %v400_v15 = vmul.f32 %v1505_v59, %v8133_v27  ;;  %v595_v21 = vmul.f32 %v1700_v43, %v8138_v28  ;;  %v596_v11 = vmul.f32 %v1701_v0, %v8138_v28  ;;  %v791_v49 = vmul.f32 %v1896_v63, %v8155_v33 }
 0x11b   :  { %v2069_v25 = vpack.c.bf16 %v2029_v6, %v2028_v20  ;;  %v1441_v48 = vadd.f32 %v1377_v32, %v1245_v30  ;;  %v1442_v55 = vadd.f32 %v1378_v56, %v1246_v3  ;;  %v792_v26 = vmul.f32 %v1897_v40, %v8155_v33  ;;  %v1509_v32 = vld [vmem:[#allocation2 + $0x2c0] sm:$0xff] }
 0x11c   :  { %v659_v41 = vadd.f32 %v595_v21, %v399_v52  ;;  %v660_v36 = vadd.f32 %v596_v11, %v400_v15  ;;  %v987_v14 = vmul.f32 %v1506_v39, %v8172_v37  ;;  %v988_v58 = vmul.f32 %v1507_v1, %v8172_v37  ;;  %v1900_v6 = vld [vmem:[#allocation2 + $0x2ba] sm:$0xff] }
 0x11d   :  { %7620 = vmatmul.mubr.msk.bf16.gmra.mxu0 %vm106_vm1, %v2069_v25  ;;  %v1638_v59 = vadd.f32 %v1574_v61, %v1441_v48  ;;  %v1639_v43 = vadd.f32 %v1575_v7, %v1442_v55  ;;  %v1967_v0 = vmul.f32 %v9078_v2, %v1899_v60  ;;  %v1183_v63 = vmul.f32 %v1702_v13, %v8177_v38  ;;  %v1704_v61 = vld [vmem:[#allocation2 + $0x2b9] sm:$0xff]  ;;  %v1705_v7 = vld [vmem:[#allocation2 + $0x2c1] sm:$0xff] }
 0x11e   :  { %v855_v53 = vadd.f32 %v791_v49, %v659_v41  ;;  %v856_v10 = vadd.f32 %v792_v26, %v660_v36  ;;  %v1184_v44 = vmul.f32 %v1703_v42, %v8177_v38  ;;  %v1379_v40 = vmul.f32 %v1898_v12, %v8194_v45  ;;  %v1901_v25 = vld [vmem:[#allocation2 + $0x2c2] sm:$0xff] }
 0x11f   :  { %v1834_v4 = vadd.f32 %v1770_v62, %v1638_v59  ;;  %v1835_v5 = vadd.f32 %v1771_v31, %v1639_v43  ;;  %v1380_v51 = vmul.f32 %v1899_v60, %v8194_v45  ;;  %v1576_v56 = vmul.f32 %v8199_v46, %v1508_v57 }
 0x120   :  { %v1051_v35 = vadd.f32 %v987_v14, %v855_v53  ;;  %v1052_v50 = vadd.f32 %v988_v58, %v856_v10  ;;  %v1577_v34 = vmul.f32 %v8199_v46, %v1509_v32  ;;  %v1772_v20 = vmul.f32 %v8215_v54, %v1704_v61  ;;  %v1510_v10 = vld [vmem:[#allocation2 + $0x2d0] sm:$0xff] }
 0x121   :  { %v2030_v30 = vadd.f32 %v1966_v47, %v1834_v4  ;;  %v2031_v3 = vadd.f32 %v1967_v0, %v1835_v5  ;;  %v1773_v52 = vmul.f32 %v8215_v54, %v1705_v7  ;;  %v1968_v62 = vmul.f32 %v9078_v2, %v1900_v6 }
 0x122   :  { %v1247_v31 = vadd.f32 %v1183_v63, %v1051_v35  ;;  %v1248_v15 = vadd.f32 %v1184_v44, %v1052_v50  ;;  %v401_v21 = vmul.f32 %v1506_v39, %v8133_v27  ;;  %v402_v11 = vmul.f32 %v1507_v1, %v8133_v27  ;;  %v9157_v44 = vld [vmem:[#allocation2 + $0x2d8] sm:$0xff] }
 0x123   :  { %v2070_v49 = vpack.c.bf16 %v2031_v3, %v2030_v30  ;;  %v597_v48 = vmul.f32 %v1702_v13, %v8138_v28  ;;  %v598_v55 = vmul.f32 %v1703_v42, %v8138_v28  ;;  %v793_v26 = vmul.f32 %v1898_v12, %v8155_v33  ;;  %v1707_v35 = vld [vmem:[#allocation2 + $0x2d9] sm:$0xff] }
 0x124   :  { %v1443_v47 = vadd.f32 %v1379_v40, %v1247_v31  ;;  %v1444_v41 = vadd.f32 %v1380_v51, %v1248_v15  ;;  %v1969_v36 = vmul.f32 %v9078_v2, %v1901_v25  ;;  %v794_v14 = vmul.f32 %v1899_v60, %v8155_v33  ;;  %v1902_v31 = vld [vmem:[#allocation2 + $0x2d2] sm:$0xff]  ;;  %v9164_v15 = vpop.f32.mrf.mxu0 }
 0x125   :  { %7623 = vmatprep.mubr.msk.bf16.mxu0 %vm106_vm1, %v2070_v49  ;;  %v661_v58 = vadd.f32 %v597_v48, %v401_v21  ;;  %v662_v39 = vadd.f32 %v598_v55, %v402_v11  ;;  %v989_v1 = vmul.f32 %v1508_v57, %v8172_v37  ;;  %v990_v59 = vmul.f32 %v1509_v32, %v8172_v37 }
 0x126   :  { %v1640_v43 = vadd.f32 %v1576_v56, %v1443_v47  ;;  %v1641_v13 = vadd.f32 %v1577_v34, %v1444_v41  ;;  %v1185_v42 = vmul.f32 %v1704_v61, %v8177_v38  ;;  %v1186_v12 = vmul.f32 %v1705_v7, %v8177_v38  ;;  %v1706_v56 = vld [vmem:[#allocation2 + $0x2d1] sm:$0xff] }
 0x127   :  { %v857_v0 = vadd.f32 %v793_v26, %v661_v58  ;;  %v858_v63 = vadd.f32 %v794_v14, %v662_v39  ;;  %v1381_v53 = vmul.f32 %v1900_v6, %v8194_v45  ;;  %v1382_v60 = vmul.f32 %v1901_v25, %v8194_v45 }
 0x128   :  { %v1836_v40 = vadd.f32 %v1772_v20, %v1640_v43  ;;  %v1837_v4 = vadd.f32 %v1773_v52, %v1641_v13  ;;  %v1578_v5 = vmul.f32 %v8199_v46, %v1510_v10  ;;  %v1579_v51 = vmul.f32 %v8199_v46, %v9157_v44 }
 0x129   :  { %v1053_v50 = vadd.f32 %v989_v1, %v857_v0  ;;  %v1054_v34 = vadd.f32 %v990_v59, %v858_v63  ;;  %v1774_v30 = vmul.f32 %v8215_v54, %v1706_v56  ;;  %v1775_v3 = vmul.f32 %v8215_v54, %v1707_v35 }
 0x12a   :  { %v2032_v21 = vadd.f32 %v1968_v62, %v1836_v40  ;;  %v2033_v11 = vadd.f32 %v1969_v36, %v1837_v4  ;;  %v1970_v20 = vmul.f32 %v9078_v2, %v1902_v31  ;;  %v403_v52 = vmul.f32 %v1508_v57, %v8133_v27  ;;  %v1903_v36 = vld [vmem:[#allocation2 + $0x2da] sm:$0xff]  ;;  %v9174_v57 = vpop.f32.mrf.mxu0 }
 0x12b   :  { %v1249_v49 = vadd.f32 %v1185_v42, %v1053_v50  ;;  %v1250_v48 = vadd.f32 %v1186_v12, %v1054_v34  ;;  %v404_v55 = vmul.f32 %v1509_v32, %v8133_v27  ;;  %v599_v26 = vmul.f32 %v1704_v61, %v8138_v28  ;;  %v9182_v12 = vld [vmem:[#allocation2 + $0x2e8] sm:$0xff] }
 0x12c   :  { %v2071_v47 = vpack.c.bf16 %v2033_v11, %v2032_v21  ;;  %v600_v41 = vmul.f32 %v1705_v7, %v8138_v28  ;;  %v795_v14 = vmul.f32 %v1900_v6, %v8155_v33  ;;  %v796_v58 = vmul.f32 %v1901_v25, %v8155_v33  ;;  %v1709_v21 = vld [vmem:[#allocation2 + $0x2f1] sm:$0xff] }
 0x12d   :  { %v1445_v39 = vadd.f32 %v1381_v53, %v1249_v49  ;;  %v1446_v62 = vadd.f32 %v1382_v60, %v1250_v48  ;;  %v663_v1 = vadd.f32 %v599_v26, %v403_v52  ;;  %v991_v59 = vmul.f32 %v1510_v10, %v8172_v37  ;;  %v1513_v60 = vld [vmem:[#allocation2 + $0x2f0] sm:$0xff]  ;;  %v9189_v52 = vpop.f32.mrf.mxu0 }
 0x12e   :  { %7624 = vmatmul.mubr.msk.bf16.gmra.mxu0 %vm106_vm1, %v2071_v47  ;;  %v1971_v32 = vmul.f32 %v9078_v2, %v1903_v36  ;;  %v664_v61 = vadd.f32 %v600_v41, %v404_v55  ;;  %v992_v7 = vmul.f32 %v9157_v44, %v8172_v37  ;;  %v1187_v6 = vmul.f32 %v1706_v56, %v8177_v38  ;;  %v1904_v11 = vld [vmem:[#allocation2 + $0x2ea] sm:$0xff] }
 0x12f   :  { %v1642_v43 = vadd.f32 %v1578_v5, %v1445_v39  ;;  %v1643_v25 = vadd.f32 %v1579_v51, %v1446_v62  ;;  %v859_v13 = vadd.f32 %v795_v14, %v663_v1  ;;  %v1188_v42 = vmul.f32 %v1707_v35, %v8177_v38  ;;  %v1708_v51 = vld [vmem:[#allocation2 + $0x2e9] sm:$0xff] }
 0x130   :  { %v860_v0 = vadd.f32 %v796_v58, %v664_v61  ;;  %v1383_v63 = vmul.f32 %v1902_v31, %v8194_v45  ;;  %v1384_v53 = vmul.f32 %v1903_v36, %v8194_v45  ;;  %v1580_v40 = vmul.f32 %v8199_v46, %v9182_v12 }
 0x131   :  { %v1838_v4 = vadd.f32 %v1774_v30, %v1642_v43  ;;  %v1839_v50 = vadd.f32 %v1775_v3, %v1643_v25  ;;  %v1055_v34 = vadd.f32 %v991_v59, %v859_v13  ;;  %v1581_v5 = vmul.f32 %v8199_v46, %v1513_v60  ;;  %v9201_v43 = vpop.f32.mrf.mxu0 }
 0x132   :  { %v1056_v49 = vadd.f32 %v992_v7, %v860_v0  ;;  %v1776_v48 = vmul.f32 %v8215_v54, %v1708_v51  ;;  %v1777_v55 = vmul.f32 %v8215_v54, %v1709_v21  ;;  %v1972_v26 = vmul.f32 %v9078_v2, %v1904_v11 }
 0x133   :  { %v2034_v47 = vadd.f32 %v1970_v20, %v1838_v4  ;;  %v2035_v41 = vadd.f32 %v1971_v32, %v1839_v50  ;;  %v1251_v14 = vadd.f32 %v1187_v6, %v1055_v34  ;;  %v405_v30 = vmul.f32 %v1510_v10, %v8133_v27  ;;  %v1905_v32 = vld [vmem:[#allocation2 + $0x2f2] sm:$0xff]  ;;  %v1514_v50 = vld [vmem:[#allocation2 + $0x300] sm:$0xff]  ;;  %v9212_v34 = vpop.f32.mrf.mxu0 }
 0x134   :  { %v1252_v3 = vadd.f32 %v1188_v42, %v1056_v49  ;;  %v406_v58 = vmul.f32 %v9157_v44, %v8133_v27  ;;  %v601_v39 = vmul.f32 %v1706_v56, %v8138_v28  ;;  %v602_v62 = vmul.f32 %v1707_v35, %v8138_v28 }
 0x135   :  { %v2072_v1 = vpack.c.bf16 %v2035_v41, %v2034_v47  ;;  %v1447_v59 = vadd.f32 %v1383_v63, %v1251_v14  ;;  %v797_v61 = vmul.f32 %v1902_v31, %v8155_v33  ;;  %v798_v7 = vmul.f32 %v1903_v36, %v8155_v33  ;;  %v1515_v41 = vld [vmem:[#allocation2 + $0x308] sm:$0xff] }
 0x136   :  { %v1448_v20 = vadd.f32 %v1384_v53, %v1252_v3  ;;  %v665_v6 = vadd.f32 %v601_v39, %v405_v30  ;;  %v666_v10 = vadd.f32 %v602_v62, %v406_v58  ;;  %v993_v25 = vmul.f32 %v9182_v12, %v8172_v37  ;;  %v1710_v30 = vld [vmem:[#allocation2 + $0x301] sm:$0xff] }
 0x137   :  { %7627 = vmatprep.mubr.msk.bf16.mxu0 %vm106_vm1, %v2072_v1  ;;  %v1644_v44 = vadd.f32 %v1580_v40, %v1447_v59  ;;  %v1973_v56 = vmul.f32 %v9078_v2, %v1905_v32  ;;  %v994_v35 = vmul.f32 %v1513_v60, %v8172_v37  ;;  %v1189_v31 = vmul.f32 %v1708_v51, %v8177_v38 }
 0x138   :  { %v1645_v13 = vadd.f32 %v1581_v5, %v1448_v20  ;;  %v861_v36 = vadd.f32 %v797_v61, %v665_v6  ;;  %v862_v42 = vadd.f32 %v798_v7, %v666_v10  ;;  %v1190_v0 = vmul.f32 %v1709_v21, %v8177_v38  ;;  %v1711_v5 = vld [vmem:[#allocation2 + $0x309] sm:$0xff]  ;;  %v9224_v6 = vpop.f32.mrf.mxu0 }
 0x139   :  { %v1840_v63 = vadd.f32 %v1776_v48, %v1644_v44  ;;  %v1385_v53 = vmul.f32 %v1904_v11, %v8194_v45  ;;  %v1386_v4 = vmul.f32 %v1905_v32, %v8194_v45  ;;  %v1582_v14 = vmul.f32 %v8199_v46, %v1514_v50 }
 0x13a   :  { %v1841_v40 = vadd.f32 %v1777_v55, %v1645_v13  ;;  %v1057_v49 = vadd.f32 %v993_v25, %v861_v36  ;;  %v1058_v47 = vadd.f32 %v994_v35, %v862_v42  ;;  %v1583_v58 = vmul.f32 %v8199_v46, %v1515_v41  ;;  %v1906_v35 = vld [vmem:[#allocation2 + $0x302] sm:$0xff] }
 0x13b   :  { %v2036_v3 = vadd.f32 %v1972_v26, %v1840_v63  ;;  %v1778_v48 = vmul.f32 %v8215_v54, %v1710_v30  ;;  %v1779_v39 = vmul.f32 %v8215_v54, %v1711_v5  ;;  %v407_v55 = vmul.f32 %v9182_v12, %v8133_v27 }
 0x13c   :  { %v2037_v62 = vadd.f32 %v1973_v56, %v1841_v40  ;;  %v1253_v1 = vadd.f32 %v1189_v31, %v1057_v49  ;;  %v1254_v59 = vadd.f32 %v1190_v0, %v1058_v47  ;;  %v408_v61 = vmul.f32 %v1513_v60, %v8133_v27  ;;  %v1907_v31 = vld [vmem:[#allocation2 + $0x30a] sm:$0xff] }
 0x13d   :  { %v603_v7 = vmul.f32 %v1708_v51, %v8138_v28  ;;  %v604_v20 = vmul.f32 %v1709_v21, %v8138_v28  ;;  %v799_v26 = vmul.f32 %v1904_v11, %v8155_v33  ;;  %v800_v56 = vmul.f32 %v1905_v32, %v8155_v33 }
 0x13e   :  { %v2073_v10 = vpack.c.bf16 %v2037_v62, %v2036_v3  ;;  %v1449_v25 = vadd.f32 %v1385_v53, %v1253_v1  ;;  %v1450_v44 = vadd.f32 %v1386_v4, %v1254_v59  ;;  %v995_v12 = vmul.f32 %v1514_v50, %v8172_v37  ;;  %v9234_v4 = vpop.f32.mrf.mxu0 }
 0x13f   :  { %v667_v13 = vadd.f32 %v603_v7, %v407_v55  ;;  %v668_v36 = vadd.f32 %v604_v20, %v408_v61  ;;  %v996_v60 = vmul.f32 %v1515_v41, %v8172_v37  ;;  %v1974_v11 = vmul.f32 %v9078_v2, %v1906_v35  ;;  %v1712_v61 = vld [vmem:[#allocation2 + $0x319] sm:$0xff]  ;;  %v1713_v7 = vld [vmem:[#allocation2 + $0x321] sm:$0xff] }
 0x140   :  { %7628 = vmatmul.mubr.msk.bf16.gmra.mxu0 %vm106_vm1, %v2073_v10  ;;  %v1646_v51 = vadd.f32 %v1582_v14, %v1449_v25  ;;  %v1647_v21 = vadd.f32 %v1583_v58, %v1450_v44  ;;  %v1975_v42 = vmul.f32 %v9078_v2, %v1907_v31  ;;  %v1191_v32 = vmul.f32 %v1710_v30, %v8177_v38  ;;  %v1516_v14 = vld [vmem:[#allocation2 + $0x318] sm:$0xff]  ;;  %v1517_v58 = vld [vmem:[#allocation2 + $0x320] sm:$0xff] }
 0x141   :  { %v863_v0 = vadd.f32 %v799_v26, %v667_v13  ;;  %v864_v63 = vadd.f32 %v800_v56, %v668_v36  ;;  %v1192_v53 = vmul.f32 %v1711_v5, %v8177_v38  ;;  %v1387_v47 = vmul.f32 %v1906_v35, %v8194_v45  ;;  %v9244_v13 = vpop.f32.mrf.mxu0 }
 0x142   :  { %v1842_v40 = vadd.f32 %v1778_v48, %v1646_v51  ;;  %v1843_v49 = vadd.f32 %v1779_v39, %v1647_v21  ;;  %v1388_v3 = vmul.f32 %v1907_v31, %v8194_v45  ;;  %v1584_v59 = vmul.f32 %v8199_v46, %v1516_v14 }
 0x143   :  { %v1059_v62 = vadd.f32 %v995_v12, %v863_v0  ;;  %v1060_v1 = vadd.f32 %v996_v60, %v864_v63  ;;  %v1585_v55 = vmul.f32 %v8199_v46, %v1517_v58  ;;  %v1780_v10 = vmul.f32 %v8215_v54, %v1712_v61  ;;  %v1908_v12 = vld [vmem:[#allocation2 + $0x31a] sm:$0xff] }
 0x144   :  { %v2038_v20 = vadd.f32 %v1974_v11, %v1842_v40  ;;  %v2039_v26 = vadd.f32 %v1975_v42, %v1843_v49  ;;  %v1781_v48 = vmul.f32 %v8215_v54, %v1713_v7  ;;  %v409_v44 = vmul.f32 %v1514_v50, %v8133_v27  ;;  %v1909_v50 = vld [vmem:[#allocation2 + $0x322] sm:$0xff] }
 0x145   :  { %v1255_v39 = vadd.f32 %v1191_v32, %v1059_v62  ;;  %v1256_v25 = vadd.f32 %v1192_v53, %v1060_v1  ;;  %v410_v56 = vmul.f32 %v1515_v41, %v8133_v27  ;;  %v605_v60 = vmul.f32 %v1710_v30, %v8138_v28 }
 0x146   :  { %v2074_v36 = vpack.c.bf16 %v2039_v26, %v2038_v20  ;;  %v606_v51 = vmul.f32 %v1711_v5, %v8138_v28  ;;  %v801_v21 = vmul.f32 %v1906_v35, %v8155_v33  ;;  %v1976_v0 = vmul.f32 %v9078_v2, %v1908_v12  ;;  %v1518_v20 = vld [vmem:[#allocation2 + $0x330] sm:$0xff] }
 0x147   :  { %v1451_v11 = vadd.f32 %v1387_v47, %v1255_v39  ;;  %v1452_v42 = vadd.f32 %v1388_v3, %v1256_v25  ;;  %v802_v63 = vmul.f32 %v1907_v31, %v8155_v33  ;;  %v669_v41 = vadd.f32 %v605_v60, %v409_v44  ;;  %v9256_v47 = vpop.f32.mrf.mxu0  ;;  %v1519_v44 = vld [vmem:[#allocation2 + $0x338] sm:$0xff] }
 0x148   :  { %7631 = vmatprep.mubr.msk.bf16.mxu0 %vm106_vm1, %v2074_v36  ;;  %v670_v32 = vadd.f32 %v606_v51, %v410_v56  ;;  %v997_v53 = vmul.f32 %v1516_v14, %v8172_v37  ;;  %v998_v40 = vmul.f32 %v1517_v58, %v8172_v37  ;;  %v1977_v5 = vmul.f32 %v9078_v2, %v1909_v50  ;;  %v1715_v51 = vld [vmem:[#allocation2 + $0x339] sm:$0xff] }
 0x149   :  { %v1648_v30 = vadd.f32 %v1584_v59, %v1451_v11  ;;  %v1649_v49 = vadd.f32 %v1585_v55, %v1452_v42  ;;  %v1193_v35 = vmul.f32 %v1712_v61, %v8177_v38  ;;  %v865_v3 = vadd.f32 %v801_v21, %v669_v41  ;;  %v1714_v55 = vld [vmem:[#allocation2 + $0x331] sm:$0xff] }
 0x14a   :  { %v866_v62 = vadd.f32 %v802_v63, %v670_v32  ;;  %v1194_v31 = vmul.f32 %v1713_v7, %v8177_v38  ;;  %v1389_v1 = vmul.f32 %v1908_v12, %v8194_v45  ;;  %v1390_v25 = vmul.f32 %v1909_v50, %v8194_v45 }
 0x14b   :  { %v1844_v26 = vadd.f32 %v1780_v10, %v1648_v30  ;;  %v1845_v39 = vadd.f32 %v1781_v48, %v1649_v49  ;;  %v1586_v59 = vmul.f32 %v8199_v46, %v1518_v20  ;;  %v1061_v56 = vadd.f32 %v997_v53, %v865_v3  ;;  %v9266_v48 = vpop.f32.mrf.mxu0 }
 0x14c   :  { %v1062_v36 = vadd.f32 %v998_v40, %v866_v62  ;;  %v1587_v60 = vmul.f32 %v8199_v46, %v1519_v44  ;;  %v1782_v21 = vmul.f32 %v8215_v54, %v1714_v55  ;;  %v1783_v63 = vmul.f32 %v8215_v54, %v1715_v51 }
 0x14d   :  { %v2040_v11 = vadd.f32 %v1976_v0, %v1844_v26  ;;  %v2041_v42 = vadd.f32 %v1977_v5, %v1845_v39  ;;  %v411_v10 = vmul.f32 %v1516_v14, %v8133_v27  ;;  %v1257_v41 = vadd.f32 %v1193_v35, %v1061_v56  ;;  %v1910_v26 = vld [vmem:[#allocation2 + $0x332] sm:$0xff]  ;;  %v1911_v39 = vld [vmem:[#allocation2 + $0x33a] sm:$0xff] }
 0x14e   :  { %v1258_v32 = vadd.f32 %v1194_v31, %v1062_v36  ;;  %v412_v30 = vmul.f32 %v1517_v58, %v8133_v27  ;;  %v607_v53 = vmul.f32 %v1712_v61, %v8138_v28  ;;  %v608_v49 = vmul.f32 %v1713_v7, %v8138_v28  ;;  %v9278_v7 = vpop.f32.mrf.mxu0  ;;  %v1520_v31 = vld [vmem:[#allocation2 + $0x348] sm:$0xff] }
 0x14f   :  { %v2075_v40 = vpack.c.bf16 %v2041_v42, %v2040_v11  ;;  %v803_v3 = vmul.f32 %v1908_v12, %v8155_v33  ;;  %v804_v0 = vmul.f32 %v1909_v50, %v8155_v33  ;;  %v1453_v5 = vadd.f32 %v1389_v1, %v1257_v41  ;;  %v1716_v42 = vld [vmem:[#allocation2 + $0x349] sm:$0xff] }
 0x150   :  { %v1454_v62 = vadd.f32 %v1390_v25, %v1258_v32  ;;  %v671_v14 = vadd.f32 %v607_v53, %v411_v10  ;;  %v999_v29 = vmul.f32 %v1518_v20, %v8172_v37  ;;  %v1978_v27 = vmul.f32 %v9078_v2, %v1910_v26  ;;  %v9309_v10 = vld [vmem:[#allocation2 + $0x34a] sm:$0xff] }
 0x151   :  { %7632 = vmatmul.mubr.msk.bf16.gmra.mxu0 %vm106_vm1, %v2075_v40  ;;  %v1979_v58 = vmul.f32 %v9078_v2, %v1911_v39  ;;  %v672_v61 = vadd.f32 %v608_v49, %v412_v30  ;;  %v1000_v28 = vmul.f32 %v1519_v44, %v8172_v37  ;;  %v1650_v12 = vadd.f32 %v1586_v59, %v1453_v5  ;;  %v1521_v2 = vld [vmem:[#allocation2 + $0x350] sm:$0xff]  ;;  %v7720_v5 = vld [vmem:[%s15067_s1 + $0x8] ss:$0 sm:$0xff] }
 0x152   :  { %v1651_v33 = vadd.f32 %v1587_v60, %v1454_v62  ;;  %v867_v50 = vadd.f32 %v803_v3, %v671_v14  ;;  %v1195_v35 = vmul.f32 %v1714_v55, %v8177_v38  ;;  %v1196_v20 = vmul.f32 %v1715_v51, %v8177_v38  ;;  %v9291_v55 = vpop.f32.mrf.mxu0  ;;  %v1913_v30 = vld [vmem:[#allocation2 + $0x352] sm:$0xff] }
 0x153   :  { %v868_v1 = vadd.f32 %v804_v0, %v672_v61  ;;  %v1846_v25 = vadd.f32 %v1782_v21, %v1650_v12  ;;  %v9283_v11 = vmul.f32 %v1910_v26, %v8194_v45  ;;  %v9286_v44 = vmul.f32 %v1911_v39, %v8194_v45 }
 0x154   :  { %v1847_v56 = vadd.f32 %v1783_v63, %v1651_v33  ;;  %v1063_v36 = vadd.f32 %v999_v29, %v867_v50  ;;  %v9289_v59 = vmul.f32 %v8199_v46, %v1520_v31  ;;  %v9299_v29 = vld [vmem:[#allocation2 + $0x351] sm:$0xff]  ;;  %vm2468_vm3 = vcmask 261120   ;;  %v9539_v3 = vpop.f32.mrf.mxu0 }
 0x155   :  { %v1064_v37 = vadd.f32 %v1000_v28, %v868_v1  ;;  %v9293_v60 = vadd.f32 %v1978_v27, %v1846_v25  ;;  %v9304_v63 = vmul.f32 %v8199_v46, %v1521_v2  ;;  %v9307_v45 = vmul.f32 %v8215_v54, %v1716_v42  ;;  %3088 = vst.msk [vmem:[#allocation3 + $0x30] sm:$0xff] %vm2468_vm3, %v7767_v8 }
 0x156   :  { %v9295_v38 = vadd.f32 %v1979_v58, %v1847_v56  ;;  %v9297_v51 = vadd.f32 %v1195_v35, %v1063_v36  ;;  %3089 = vst.msk [vmem:[#allocation3 + $0x38] sm:$0xff] %vm2468_vm3, %v7767_v8  ;;  %3081 = vst.msk [vmem:[#allocation3] sm:$0xff] %vm2468_vm3, %v7767_v8  ;;  %v2469_v46 = vsel %vm2468_vm3, %v9174_v57, 0.0  ;;  %vm3083_vm4 = vcmask 254976   ;;  %v9553_v12 = vpop.f32.mrf.mxu0 }
 0x157   :  { %v9301_v21 = vadd.f32 %v1196_v20, %v1064_v37  ;;  %3082 = vst.msk [vmem:[#allocation3 + $0x8] sm:$0xff] %vm2468_vm3, %v7767_v8  ;;  %3085 = vst.msk [vmem:[#allocation3 + $0x18] sm:$0xff] %vm2468_vm3, %v7767_v8  ;;  %v2470_v53 = vsel %vm2468_vm3, %v9201_v43, 0.0  ;;  %v1785_v49 = vmul.f32 %v8215_v54, %v9299_v29  ;;  %v1980_v62 = vmul.f32 %v7720_v5, %v9309_v10 }
 0x158   :  { %3086 = vst.msk [vmem:[#allocation3 + $0x20] sm:$0xff] %vm2468_vm3, %v7767_v8  ;;  %3091 = vst.msk [vmem:[#allocation3 + $0x48] sm:$0xff] %vm2468_vm3, %v7767_v8  ;;  %v2076_v41 = vpack.c.bf16 %v9295_v38, %v9293_v60  ;;  %v1455_v32 = vadd.f32 %v9283_v11, %v9297_v51  ;;  %v2471_v54 = vadd.f32 %v2470_v53, %v2469_v46  ;;  %v2472_v26 = vsel %vm2468_vm3, %v9164_v15, 0.0  ;;  %v9559_v56 = vpop.f32.mrf.mxu0 }
 0x159   :  { %3092 = vst.msk [vmem:[#allocation3 + $0x50] sm:$0xff] %vm2468_vm3, %v7767_v8  ;;  %3094 = vst.msk [vmem:[#allocation3 + $0x60] sm:$0xff] %vm2468_vm3, %v7767_v8  ;;  %v1456_v40 = vadd.f32 %v9286_v44, %v9301_v21  ;;  %v1981_v14 = vmul.f32 %v7720_v5, %v1913_v30  ;;  %v2474_v58 = vsel %vm2468_vm3, %v9189_v52, 0.0  ;;  %v2476_v50 = vsel %vm2468_vm3, %v9224_v6, 0.0 }
 0x15a   :  { %3095 = vst.msk [vmem:[#allocation3 + $0x68] sm:$0xff] %vm2468_vm3, %v7767_v8  ;;  %3097 = vst.msk [vmem:[#allocation3 + $0x78] sm:$0xff] %vm2468_vm3, %v7767_v8  ;;  %7635 = vmatprep.mubr.msk.bf16.mxu0 %vm106_vm1, %v2076_v41  ;;  %v1652_v0 = vadd.f32 %v9289_v59, %v1455_v32  ;;  %v2478_v35 = vsel %vm2468_vm3, %v9244_v13, 0.0  ;;  %v2480_v36 = vsel %vm2468_vm3, %v9212_v34, 0.0  ;;  %v2482_v2 = vsel %vm2468_vm3, %v9234_v4, 0.0  ;;  %v9566_v37 = vpop.f32.mrf.mxu0 }
 0x15b   :  { %3098 = vst.msk [vmem:[#allocation3 + $0x80] sm:$0xff] %vm2468_vm3, %v7767_v8  ;;  %3100 = vst.msk [vmem:[#allocation3 + $0x90] sm:$0xff] %vm2468_vm3, %v7767_v8  ;;  %v1653_v39 = vadd.f32 %v9304_v63, %v1456_v40  ;;  %v2484_v44 = vsel %vm2468_vm3, %v9266_v48, 0.0  ;;  %v2486_v59 = vsel %vm2468_vm3, %v9291_v55, 0.0  ;;  %v2488_v29 = vsel %vm2468_vm3, %v9256_v47, 0.0 }
 0x15c   :  { %3101 = vst.msk [vmem:[#allocation3 + $0x98] sm:$0xff] %vm2468_vm3, %v7767_v8  ;;  %3103 = vst.msk [vmem:[#allocation3 + $0xa8] sm:$0xff] %vm2468_vm3, %v7767_v8  ;;  %v1848_v27 = vadd.f32 %v9307_v45, %v1652_v0  ;;  %v2490_v63 = vsel %vm2468_vm3, %v9278_v7, 0.0  ;;  %v2492_v46 = vsel %vm2468_vm3, %v9553_v12, 0.0  ;;  %v2494_v41 = vsel %vm2468_vm3, %v9566_v37, 0.0 }
 0x15d   :  { %3104 = vst.msk [vmem:[#allocation3 + $0xb0] sm:$0xff] %vm2468_vm3, %v7767_v8  ;;  %3106 = vst.msk [vmem:[#allocation3 + $0xc0] sm:$0xff] %vm2468_vm3, %v7767_v8  ;;  %v1849_v61 = vadd.f32 %v1785_v49, %v1653_v39  ;;  %v2496_v40 = vsel %vm2468_vm3, %v9539_v3, 0.0  ;;  %vm15203_vm5 = vcmask 253952   ;;  %vm15202_vm6 = vcmask 256002  }
 0x15e   :  { %3107 = vst.msk [vmem:[#allocation3 + $0xc8] sm:$0xff] %vm2468_vm3, %v7767_v8  ;;  %3109 = vst.msk [vmem:[#allocation3 + $0xd8] sm:$0xff] %vm2468_vm3, %v7767_v8  ;;  %v2044_v33 = vadd.f32 %v1980_v62, %v1848_v27  ;;  %vm15201_vm7 = vcmask 258052   ;;  %vm15200_vm8 = vcmask 260102   ;;  %vm15199_vm12 = vcmask 254977  }
 0x15f   :  { %3110 = vst.msk [vmem:[#allocation3 + $0xe0] sm:$0xff] %vm2468_vm3, %v7767_v8  ;;  %3112 = vst.msk [vmem:[#allocation3 + $0xf0] sm:$0xff] %vm2468_vm3, %v7767_v8  ;;  %v2045_v31 = vadd.f32 %v1981_v14, %v1849_v61  ;;  %vm15198_vm13 = vcmask 257027   ;;  %vm15197_vm14 = vcmask 259077   ;;  %vm15196_vm15 = vcmask 261127  }
 0x160   :  { %3113 = vst.msk [vmem:[#allocation3 + $0xf8] sm:$0xff] %vm2468_vm3, %v7767_v8  ;;  %3115 = vst.msk [vmem:[#allocation3 + $0x108] sm:$0xff] %vm2468_vm3, %v7767_v8 }
 0x161   :  { %3116 = vst.msk [vmem:[#allocation3 + $0x110] sm:$0xff] %vm2468_vm3, %v7767_v8  ;;  %3118 = vst.msk [vmem:[#allocation3 + $0x120] sm:$0xff] %vm2468_vm3, %v7767_v8  ;;  %v2077_v20 = vpack.c.bf16 %v2045_v31, %v2044_v33 }
 0x162   :  { %3119 = vst.msk [vmem:[#allocation3 + $0x128] sm:$0xff] %vm2468_vm3, %v7767_v8  ;;  %3121 = vst.msk [vmem:[#allocation3 + $0x138] sm:$0xff] %vm2468_vm3, %v7767_v8  ;;  %v9572_v51 = vpop.f32.mrf.mxu0 }
 0x163   :  { %3122 = vst.msk [vmem:[#allocation3 + $0x140] sm:$0xff] %vm2468_vm3, %v7767_v8  ;;  %3124 = vst.msk [vmem:[#allocation3 + $0x150] sm:$0xff] %vm2468_vm3, %v7767_v8  ;;  %7636 = vmatmul.mubr.msk.bf16.gmra.mxu0 %vm106_vm1, %v2077_v20 }
 0x164   :  { %3125 = vst.msk [vmem:[#allocation3 + $0x158] sm:$0xff] %vm2468_vm3, %v7767_v8  ;;  %3127 = vst.msk [vmem:[#allocation3 + $0x168] sm:$0xff] %vm2468_vm3, %v7767_v8  ;;  %v9578_v10 = vpop.f32.mrf.mxu0 }
 0x165   :  { %3128 = vst.msk [vmem:[#allocation3 + $0x170] sm:$0xff] %vm2468_vm3, %v7767_v8  ;;  %3130 = vst.msk [vmem:[#allocation3 + $0x180] sm:$0xff] %vm2468_vm3, %v7767_v8  ;;  %v2500_v62 = vsel %vm2468_vm3, %v9578_v10, 0.0 }
 0x166   :  { %3131 = vst.msk [vmem:[#allocation3 + $0x188] sm:$0xff] %vm2468_vm3, %v7767_v8  ;;  %3133 = vst.msk [vmem:[#allocation3 + $0x198] sm:$0xff] %vm2468_vm3, %v7767_v8  ;;  %v9584_v53 = vpop.f32.mrf.mxu0 }
 0x167   :  { %3134 = vst.msk [vmem:[#allocation3 + $0x1a0] sm:$0xff] %vm2468_vm3, %v7767_v8  ;;  %3136 = vst.msk [vmem:[#allocation3 + $0x1b0] sm:$0xff] %vm2468_vm3, %v7767_v8  ;;  %v2506_v33 = vsel %vm2468_vm3, %v9584_v53, 0.0 }
 0x168   :  { %3137 = vst.msk [vmem:[#allocation3 + $0x1b8] sm:$0xff] %vm2468_vm3, %v7767_v8  ;;  %3139 = vst.msk [vmem:[#allocation3 + $0x1c8] sm:$0xff] %vm2468_vm3, %v7767_v8  ;;  %v9590_v5 = vpop.f32.mrf.mxu0 }
 0x169   :  { %3140 = vst.msk [vmem:[#allocation3 + $0x1d0] sm:$0xff] %vm2468_vm3, %v7767_v8  ;;  %3142 = vst.msk [vmem:[#allocation3 + $0x1e0] sm:$0xff] %vm2468_vm3, %v7767_v8  ;;  %v2502_v39 = vsel %vm2468_vm3, %v9590_v5, 0.0 }
 0x16a   :  { %3143 = vst.msk [vmem:[#allocation3 + $0x1e8] sm:$0xff] %vm2468_vm3, %v7767_v8  ;;  %3145 = vst.msk [vmem:[#allocation3 + $0x1f8] sm:$0xff] %vm2468_vm3, %v7767_v8 }
 0x16b   :  { %3146 = vst.msk [vmem:[#allocation3 + $0x200] sm:$0xff] %vm2468_vm3, %v7767_v8  ;;  %3148 = vst.msk [vmem:[#allocation3 + $0x210] sm:$0xff] %vm2468_vm3, %v7767_v8 }
 0x16c   :  { %3149 = vst.msk [vmem:[#allocation3 + $0x218] sm:$0xff] %vm2468_vm3, %v7767_v8  ;;  %3151 = vst.msk [vmem:[#allocation3 + $0x228] sm:$0xff] %vm2468_vm3, %v7767_v8 }
 0x16d   :  { %3152 = vst.msk [vmem:[#allocation3 + $0x230] sm:$0xff] %vm2468_vm3, %v7767_v8  ;;  %3154 = vst.msk [vmem:[#allocation3 + $0x240] sm:$0xff] %vm2468_vm3, %v7767_v8 }
 0x16e   :  { %3155 = vst.msk [vmem:[#allocation3 + $0x248] sm:$0xff] %vm2468_vm3, %v7767_v8  ;;  %3157 = vst.msk [vmem:[#allocation3 + $0x258] sm:$0xff] %vm2468_vm3, %v7767_v8 }
 0x16f   :  { %3158 = vst.msk [vmem:[#allocation3 + $0x260] sm:$0xff] %vm2468_vm3, %v7767_v8  ;;  %3160 = vst.msk [vmem:[#allocation3 + $0x270] sm:$0xff] %vm2468_vm3, %v7767_v8 }
 0x170   :  { %3161 = vst.msk [vmem:[#allocation3 + $0x278] sm:$0xff] %vm2468_vm3, %v7767_v8  ;;  %3163 = vst.msk [vmem:[#allocation3 + $0x288] sm:$0xff] %vm2468_vm3, %v7767_v8 }
 0x171   :  { %3164 = vst.msk [vmem:[#allocation3 + $0x290] sm:$0xff] %vm2468_vm3, %v7767_v8  ;;  %3166 = vst.msk [vmem:[#allocation3 + $0x2a0] sm:$0xff] %vm2468_vm3, %v7767_v8 }
 0x172   :  { %3167 = vst.msk [vmem:[#allocation3 + $0x2a8] sm:$0xff] %vm2468_vm3, %v7767_v8  ;;  %3169 = vst.msk [vmem:[#allocation3 + $0x2b8] sm:$0xff] %vm2468_vm3, %v7767_v8 }
 0x173   :  { %3170 = vst.msk [vmem:[#allocation3 + $0x2c0] sm:$0xff] %vm2468_vm3, %v7767_v8  ;;  %3172 = vst.msk [vmem:[#allocation3 + $0x2d0] sm:$0xff] %vm2468_vm3, %v7767_v8 }
 0x174   :  { %3173 = vst.msk [vmem:[#allocation3 + $0x2d8] sm:$0xff] %vm2468_vm3, %v7767_v8  ;;  %3175 = vst.msk [vmem:[#allocation3 + $0x2e8] sm:$0xff] %vm2468_vm3, %v7767_v8  ;;  %v9596_v14 = vpop.f32.mrf.mxu0 }
 0x175   :  { %3176 = vst.msk [vmem:[#allocation3 + $0x2f0] sm:$0xff] %vm2468_vm3, %v7767_v8  ;;  %3178 = vst.msk [vmem:[#allocation3 + $0x300] sm:$0xff] %vm2468_vm3, %v7767_v8 }
 0x176   :  { %3179 = vst.msk [vmem:[#allocation3 + $0x308] sm:$0xff] %vm2468_vm3, %v7767_v8  ;;  %3181 = vst.msk [vmem:[#allocation3 + $0x318] sm:$0xff] %vm2468_vm3, %v7767_v8  ;;  %v9598_v27 = vpop.f32.mrf.mxu0 }
 0x177   :  { %3182 = vst.msk [vmem:[#allocation3 + $0x320] sm:$0xff] %vm2468_vm3, %v7767_v8  ;;  %3184 = vst.msk [vmem:[#allocation3 + $0x330] sm:$0xff] %vm2468_vm3, %v7767_v8  ;;  %v2508_v31 = vsel %vm2468_vm3, %v9598_v27, 0.0 }
 0x178   :  { %3185 = vst.msk [vmem:[#allocation3 + $0x338] sm:$0xff] %vm2468_vm3, %v7767_v8  ;;  %3187 = vst.msk [vmem:[#allocation3 + $0x348] sm:$0xff] %vm2468_vm3, %v7767_v8 }
 0x179   :  { %3188 = vst.msk [vmem:[#allocation3 + $0x350] sm:$0xff] %vm2468_vm3, %v7767_v8 }
 0x17a   :  { %3090 = vst.msk [vmem:[#allocation3 + $0x40] sm:$0x3] %vm3083_vm4, %v7767_v8  ;;  %3084 = vst.msk [vmem:[#allocation3 + $0x10] sm:$0x3] %vm3083_vm4, %v7767_v8 }
 0x17b   :  { %3087 = vst.msk [vmem:[#allocation3 + $0x28] sm:$0x3] %vm3083_vm4, %v7767_v8  ;;  %3093 = vst.msk [vmem:[#allocation3 + $0x58] sm:$0x3] %vm3083_vm4, %v7767_v8 }
 0x17c   :  { %3096 = vst.msk [vmem:[#allocation3 + $0x70] sm:$0x3] %vm3083_vm4, %v7767_v8  ;;  %3099 = vst.msk [vmem:[#allocation3 + $0x88] sm:$0x3] %vm3083_vm4, %v7767_v8 }
 0x17d   :  { %3102 = vst.msk [vmem:[#allocation3 + $0xa0] sm:$0x3] %vm3083_vm4, %v7767_v8  ;;  %3105 = vst.msk [vmem:[#allocation3 + $0xb8] sm:$0x3] %vm3083_vm4, %v7767_v8 }
 0x17e   :  { %3108 = vst.msk [vmem:[#allocation3 + $0xd0] sm:$0x3] %vm3083_vm4, %v7767_v8  ;;  %3111 = vst.msk [vmem:[#allocation3 + $0xe8] sm:$0x3] %vm3083_vm4, %v7767_v8 }
 0x17f   :  { %3114 = vst.msk [vmem:[#allocation3 + $0x100] sm:$0x3] %vm3083_vm4, %v7767_v8  ;;  %3117 = vst.msk [vmem:[#allocation3 + $0x118] sm:$0x3] %vm3083_vm4, %v7767_v8 }
 0x180   :  { %3120 = vst.msk [vmem:[#allocation3 + $0x130] sm:$0x3] %vm3083_vm4, %v7767_v8  ;;  %3123 = vst.msk [vmem:[#allocation3 + $0x148] sm:$0x3] %vm3083_vm4, %v7767_v8 }
 0x181   :  { %3126 = vst.msk [vmem:[#allocation3 + $0x160] sm:$0x3] %vm3083_vm4, %v7767_v8  ;;  %3129 = vst.msk [vmem:[#allocation3 + $0x178] sm:$0x3] %vm3083_vm4, %v7767_v8 }
 0x182   :  { %3132 = vst.msk [vmem:[#allocation3 + $0x190] sm:$0x3] %vm3083_vm4, %v7767_v8  ;;  %3135 = vst.msk [vmem:[#allocation3 + $0x1a8] sm:$0x3] %vm3083_vm4, %v7767_v8 }
 0x183   :  { %3138 = vst.msk [vmem:[#allocation3 + $0x1c0] sm:$0x3] %vm3083_vm4, %v7767_v8  ;;  %3141 = vst.msk [vmem:[#allocation3 + $0x1d8] sm:$0x3] %vm3083_vm4, %v7767_v8 }
 0x184   :  { %3144 = vst.msk [vmem:[#allocation3 + $0x1f0] sm:$0x3] %vm3083_vm4, %v7767_v8  ;;  %3147 = vst.msk [vmem:[#allocation3 + $0x208] sm:$0x3] %vm3083_vm4, %v7767_v8 }
 0x185   :  { %3150 = vst.msk [vmem:[#allocation3 + $0x220] sm:$0x3] %vm3083_vm4, %v7767_v8  ;;  %3153 = vst.msk [vmem:[#allocation3 + $0x238] sm:$0x3] %vm3083_vm4, %v7767_v8 }
 0x186   :  { %3156 = vst.msk [vmem:[#allocation3 + $0x250] sm:$0x3] %vm3083_vm4, %v7767_v8  ;;  %3159 = vst.msk [vmem:[#allocation3 + $0x268] sm:$0x3] %vm3083_vm4, %v7767_v8 }
 0x187   :  { %3162 = vst.msk [vmem:[#allocation3 + $0x280] sm:$0x3] %vm3083_vm4, %v7767_v8  ;;  %3165 = vst.msk [vmem:[#allocation3 + $0x298] sm:$0x3] %vm3083_vm4, %v7767_v8 }
 0x188   :  { %3168 = vst.msk [vmem:[#allocation3 + $0x2b0] sm:$0x3] %vm3083_vm4, %v7767_v8  ;;  %3171 = vst.msk [vmem:[#allocation3 + $0x2c8] sm:$0x3] %vm3083_vm4, %v7767_v8 }
 0x189   :  { %3174 = vst.msk [vmem:[#allocation3 + $0x2e0] sm:$0x3] %vm3083_vm4, %v7767_v8  ;;  %3177 = vst.msk [vmem:[#allocation3 + $0x2f8] sm:$0x3] %vm3083_vm4, %v7767_v8 }
 0x18a   :  { %3180 = vst.msk [vmem:[#allocation3 + $0x310] sm:$0x3] %vm3083_vm4, %v7767_v8  ;;  %3183 = vst.msk [vmem:[#allocation3 + $0x328] sm:$0x3] %vm3083_vm4, %v7767_v8 }
 0x18b   :  { %3186 = vst.msk [vmem:[#allocation3 + $0x340] sm:$0x3] %vm3083_vm4, %v7767_v8  ;;  %3189 = vst.msk [vmem:[#allocation3 + $0x358] sm:$0x3] %vm3083_vm4, %v7767_v8  ;;  %v2473_v8 = vadd.f32 %v2472_v26, %v2471_v54  ;;  %v2498_v54 = vsel %vm2468_vm3, %v9559_v56, 0.0 }
 0x18d   :  { %v2475_v28 = vadd.f32 %v2474_v58, %v2473_v8  ;;  %v2504_v58 = vsel %vm2468_vm3, %v9572_v51, 0.0 }
 0x18f   :  { %v2477_v1 = vadd.f32 %v2476_v50, %v2475_v28  ;;  %v9602_v28 = vpop.f32.mrf.mxu0 }
 0x191   :  { %v2479_v25 = vadd.f32 %v2478_v35, %v2477_v1  ;;  %v9606_v35 = vpop.f32.mrf.mxu0 }
 0x192   :  { %v2510_v20 = vsel %vm2468_vm3, %v9606_v35, 0.0 }
 0x193   :  { %v2481_v11 = vadd.f32 %v2480_v36, %v2479_v25  ;;  %v9612_v25 = vpop.f32.mrf.mxu0 }
 0x195   :  { %v2483_v42 = vadd.f32 %v2482_v2, %v2481_v11  ;;  %v9614_v11 = vpop.f32.mrf.mxu0  ;;  %v2512_v2 = vsel %vm2468_vm3, %v9596_v14, 0.0 }
 0x197   :  { %v2485_v60 = vadd.f32 %v2484_v44, %v2483_v42  ;;  %v9618_v44 = vpop.f32.mrf.mxu0 }
 0x199   :  { %v2487_v38 = vadd.f32 %v2486_v59, %v2485_v60  ;;  %v2514_v59 = vsel %vm2468_vm3, %v9602_v28, 0.0 }
 0x19b   :  { %v2489_v21 = vadd.f32 %v2488_v29, %v2487_v38  ;;  %v9622_v38 = vpop.f32.mrf.mxu0  ;;  %v2516_v29 = vsel %vm2468_vm3, %v9614_v11, 0.0 }
 0x19d   :  { %v2491_v45 = vadd.f32 %v2490_v63, %v2489_v21  ;;  %v2518_v63 = vsel %vm2468_vm3, %v9622_v38, 0.0 }
 0x19f   :  { %v2493_v32 = vadd.f32 %v2492_v46, %v2491_v45  ;;  %v9628_v45 = vpop.f32.mrf.mxu0 }
 0x1a1   :  { %v2495_v30 = vadd.f32 %v2494_v41, %v2493_v32  ;;  %v9630_v41 = vpop.f32.mrf.mxu0  ;;  %v2520_v32 = vsel %vm2468_vm3, %v9612_v25, 0.0 }
 0x1a3   :  { %v2497_v49 = vadd.f32 %v2496_v40, %v2495_v30  ;;  %v9634_v40 = vpop.f32.mrf.mxu0 }
 0x1a5   :  { %v2499_v0 = vadd.f32 %v2498_v54, %v2497_v49  ;;  %v2522_v49 = vsel %vm2468_vm3, %v9618_v44, 0.0 }
 0x1a7   :  { %v2501_v26 = vadd.f32 %v2500_v62, %v2499_v0  ;;  %v9638_v0 = vpop.f32.mrf.mxu0  ;;  %v2524_v62 = vsel %vm2468_vm3, %v9630_v41, 0.0 }
 0x1a9   :  { %v2503_v8 = vadd.f32 %v2502_v39, %v2501_v26  ;;  %v2526_v39 = vsel %vm2468_vm3, %v9638_v0, 0.0 }
 0x1ab   :  { %v2505_v61 = vadd.f32 %v2504_v58, %v2503_v8  ;;  %v9644_v8 = vpop.f32.mrf.mxu0 }
 0x1ad   :  { %v2507_v50 = vadd.f32 %v2506_v33, %v2505_v61  ;;  %v9646_v61 = vpop.f32.mrf.mxu0  ;;  %v2528_v33 = vsel %vm2468_vm3, %v9628_v45, 0.0 }
 0x1af   :  { %v2509_v1 = vadd.f32 %v2508_v31, %v2507_v50  ;;  %v9650_v31 = vpop.f32.mrf.mxu0 }
 0x1b1   :  { %v2511_v36 = vadd.f32 %v2510_v20, %v2509_v1  ;;  %v2530_v1 = vsel %vm2468_vm3, %v9634_v40, 0.0 }
 0x1b3   :  { %v2513_v42 = vadd.f32 %v2512_v2, %v2511_v36  ;;  %v9654_v36 = vpop.f32.mrf.mxu0  ;;  %v2532_v2 = vsel %vm2468_vm3, %v9646_v61, 0.0 }
 0x1b5   :  { %v2515_v60 = vadd.f32 %v2514_v59, %v2513_v42  ;;  %v2534_v59 = vsel %vm2468_vm3, %v9654_v36, 0.0 }
 0x1b7   :  { %v2517_v21 = vadd.f32 %v2516_v29, %v2515_v60 }
 0x1b9   :  { %v2519_v46 = vadd.f32 %v2518_v63, %v2517_v21  ;;  %v2536_v63 = vsel %vm2468_vm3, %v9644_v8, 0.0 }
 0x1ba   :  { %v9660_v60 = vpop.f32.mrf.mxu0 }
 0x1bb   :  { %v2521_v30 = vadd.f32 %v2520_v32, %v2519_v46 }
 0x1bc   :  { %v9662_v21 = vpop.f32.mrf.mxu0 }
 0x1bd   :  { %v2523_v54 = vadd.f32 %v2522_v49, %v2521_v30  ;;  %v2538_v30 = vsel %vm2468_vm3, %v9650_v31, 0.0 }
 0x1be   :  { %v9666_v32 = vpop.f32.mrf.mxu0 }
 0x1bf   :  { %v2525_v26 = vadd.f32 %v2524_v62, %v2523_v54  ;;  %v2540_v62 = vsel %vm2468_vm3, %v9662_v21, 0.0 }
 0x1c0   :  { %v9670_v54 = vpop.f32.mrf.mxu0 }
 0x1c1   :  { %v2527_v58 = vadd.f32 %v2526_v39, %v2525_v26  ;;  %v2542_v39 = vsel %vm2468_vm3, %v9670_v54, 0.0 }
 0x1c3   :  { %v2529_v50 = vadd.f32 %v2528_v33, %v2527_v58 }
 0x1c5   :  { %v2531_v20 = vadd.f32 %v2530_v1, %v2529_v50  ;;  %v2544_v1 = vsel %vm2468_vm3, %v9660_v60, 0.0 }
 0x1c7   :  { %v2533_v42 = vadd.f32 %v2532_v2, %v2531_v20 }
 0x1c9   :  { %v2535_v29 = vadd.f32 %v2534_v59, %v2533_v42  ;;  %v2546_v42 = vsel %vm2468_vm3, %v9666_v32, 0.0 }
 0x1cb   :  { %v2537_v46 = vadd.f32 %v2536_v63, %v2535_v29  ;;  %v9676_v33 = vpop.f32.mrf.mxu0 }
 0x1cc   :  { %15273 = vst [vmem:[#allocation12_spill] sm:$0xff] %v9676_v33 }
 0x1cd   :  { %v2539_v49 = vadd.f32 %v2538_v30, %v2537_v46  ;;  %v9678_v50 = vpop.f32.mrf.mxu0 }
 0x1ce   :  { %15274 = vst [vmem:[#allocation13_spill] sm:$0xff] %v9678_v50  ;;  %v2548_v63 = vsel %vm2468_vm3, %v9678_v50, 0.0 }
 0x1cf   :  { %v2541_v26 = vadd.f32 %v2540_v62, %v2539_v49  ;;  %v9682_v2 = vpop.f32.mrf.mxu0 }
 0x1d0   :  { %15275 = vst [vmem:[#allocation14_spill] sm:$0xff] %v9682_v2 }
 0x1d1   :  { %v2543_v58 = vadd.f32 %v2542_v39, %v2541_v26  ;;  %v9686_v29 = vpop.f32.mrf.mxu0  ;;  %v2552_v26 = vsel %vm2468_vm3, %v9676_v33, 0.0 }
 0x1d2   :  { %15276 = vst [vmem:[#allocation15_spill] sm:$0xff] %v9686_v29  ;;  %v2550_v30 = vsel %vm2468_vm3, %v9686_v29, 0.0 }
 0x1d3   :  { %v2545_v20 = vadd.f32 %v2544_v1, %v2543_v58 }
 0x1d5   :  { %v2547_v59 = vadd.f32 %v2546_v42, %v2545_v20  ;;  %v2554_v20 = vsel %vm2468_vm3, %v9682_v2, 0.0 }
 0x1d7   :  { %v2549_v46 = vadd.f32 %v2548_v63, %v2547_v59 }
 0x1d9   :  { %v2551_v49 = vadd.f32 %v2550_v30, %v2549_v46 }
 0x1db   :  { %v2553_v39 = vadd.f32 %v2552_v26, %v2551_v49 }
 0x1dd   :  { %v9692_v62 = vpop.f32.mrf.mxu0  ;;  %v2555_v42 = vadd.f32 %v2554_v20, %v2553_v39 }
 0x1de   :  { %15277 = vst [vmem:[#allocation16_spill] sm:$0xff] %v9692_v62  ;;  %v2560_v49 = vsel %vm2468_vm3, %v9692_v62, 0.0 }
 0x1df   :  { %v9696_v58 = vpop.f32.mrf.mxu0 }
 0x1e0   :  { %15278 = vst [vmem:[#allocation17_spill] sm:$0xff] %v9696_v58  ;;  %v2556_v59 = vsel %vm2468_vm3, %v9696_v58, 0.0 }
 0x1e1   :  { %v9698_v1 = vpop.f32.mrf.mxu0  ;;  %v2557_v63 = vadd.f32 %v2556_v59, %v2555_v42 }
 0x1e2   :  { %15279 = vst [vmem:[#allocation18_spill] sm:$0xff] %v9698_v1  ;;  %v2562_v39 = vsel %vm2468_vm3, %v9698_v1, 0.0 }
 0x1e3   :  { %v9702_v24 = vpop.f32.mrf.mxu0 }
 0x1e4   :  { %15280 = vst [vmem:[#allocation19_spill] sm:$0xff] %v9702_v24  ;;  %v2558_v46 = vsel %vm2468_vm3, %v9702_v24, 0.0 }
 0x1e5   :  { %v2559_v30 = vadd.f32 %v2558_v46, %v2557_v63 }
 0x1e7   :  { %v2561_v23 = vadd.f32 %v2560_v49, %v2559_v30 }
 0x1e9   :  { %v2563_v19 = vadd.f32 %v2562_v39, %v2561_v23 }
 0x1ee   :  { %v9710_v26 = vpop.f32.mrf.mxu0 }
 0x1ef   :  { %15281 = vst [vmem:[#allocation20_spill] sm:$0xff] %v9710_v26  ;;  %v2568_v30 = vsel %vm2468_vm3, %v9710_v26, 0.0 }
 0x1f0   :  { %v9712_v22 = vpop.f32.mrf.mxu0 }
 0x1f1   :  { %15282 = vst [vmem:[#allocation21_spill] sm:$0xff] %v9712_v22  ;;  %v2564_v42 = vsel %vm2468_vm3, %v9712_v22, 0.0 }
 0x1f2   :  { %v9716_v20 = vpop.f32.mrf.mxu0  ;;  %v2565_v59 = vadd.f32 %v2564_v42, %v2563_v19 }
 0x1f3   :  { %15283 = vst [vmem:[#allocation22_spill] sm:$0xff] %v9716_v20  ;;  %v2570_v9 = vsel %vm2468_vm3, %v9716_v20, 0.0 }
 0x1f4   :  { %v9718_v18 = vpop.f32.mrf.mxu0 }
 0x1f5   :  { %15284 = vst [vmem:[#allocation23_spill] sm:$0xff] %v9718_v18  ;;  %v2566_v63 = vsel %vm2468_vm3, %v9718_v18, 0.0 }
 0x1f6   :  { %v2567_v46 = vadd.f32 %v2566_v63, %v2565_v59 }
 0x1f8   :  { %v2569_v49 = vadd.f32 %v2568_v30, %v2567_v46 }
 0x1fa   :  { %v2571_v39 = vadd.f32 %v2570_v9, %v2569_v49 }
 0x200   :  { %v9726_v17 = vpop.f32.mrf.mxu0 }
 0x201   :  { %15285 = vst [vmem:[#allocation24_spill] sm:$0xff] %v9726_v17  ;;  %v2576_v30 = vsel %vm2468_vm3, %v9726_v17, 0.0 }
 0x202   :  { %v9730_v23 = vpop.f32.mrf.mxu0 }
 0x203   :  { %15286 = vst [vmem:[#allocation25_spill] sm:$0xff] %v9730_v23  ;;  %v2572_v19 = vsel %vm2468_vm3, %v9730_v23, 0.0 }
 0x204   :  { %v9732_v16 = vpop.f32.mrf.mxu0  ;;  %v2573_v59 = vadd.f32 %v2572_v19, %v2571_v39 }
 0x205   :  { %15287 = vst [vmem:[#allocation26_spill] sm:$0xff] %v9732_v16  ;;  %v2578_v9 = vsel %vm2468_vm3, %v9732_v16, 0.0 }
 0x206   :  { %v9736_v42 = vpop.f32.mrf.mxu0 }
 0x207   :  { %15288 = vst [vmem:[#allocation27_spill] sm:$0xff] %v9736_v42  ;;  %v2574_v63 = vsel %vm2468_vm3, %v9736_v42, 0.0 }
 0x208   :  { %v2575_v46 = vadd.f32 %v2574_v63, %v2573_v59 }
 0x20a   :  { %v2577_v26 = vadd.f32 %v2576_v30, %v2575_v46 }
 0x20c   :  { %v2579_v18 = vadd.f32 %v2578_v9, %v2577_v26 }
 0x211   :  { %v7633_v20 = vpop.f32.mrf.mxu0 }
 0x212   :  { %v2584_v59 = vsel %vm2468_vm3, %v7633_v20, 0.0 }
 0x213   :  { %v2437_v49 = vpop.f32.mrf.mxu0 }
 0x214   :  { %v2580_v23 = vsel %vm2468_vm3, %v2437_v49, 0.0 }
 0x215   :  { %v7634_v22 = vpop.f32.mrf.mxu0  ;;  %v2581_v1 = vadd.f32 %v2580_v23, %v2579_v18 }
 0x216   :  { %v2586_v17 = vsel %vm2468_vm3, %v7634_v22, 0.0 }
 0x217   :  { %v2440_v62 = vpop.f32.mrf.mxu0 }
 0x218   :  { %v2582_v39 = vsel %vm2468_vm3, %v2440_v62, 0.0 }
 0x219   :  { %v2583_v19 = vadd.f32 %v2582_v39, %v2581_v1 }
 0x21b   :  { %v2585_v63 = vadd.f32 %v2584_v59, %v2583_v19 }
 0x21d   :  { %v2587_v30 = vadd.f32 %v2586_v17, %v2585_v63 }
 0x223   :  { %v7637_v46 = vpop.f32.mrf.mxu0 }
 0x224   :  { %v2592_v23 = vsel %vm2468_vm3, %v7637_v46, 0.0 }
 0x225   :  { %v2453_v42 = vpop.f32.mrf.mxu0 }
 0x226   :  { %v2588_v16 = vsel %vm2468_vm3, %v2453_v42, 0.0 }
 0x227   :  { %v2589_v24 = vadd.f32 %v2588_v16, %v2587_v30  ;;  %v7638_v26 = vpop.f32.mrf.mxu0 }
 0x228   :  { %v2594_v1 = vsel %vm2468_vm3, %v7638_v26, 0.0 }
 0x229   :  { %v2456_v9 = vpop.f32.mrf.mxu0 }
 0x22a   :  { %v2590_v58 = vsel %vm2468_vm3, %v2456_v9, 0.0 }
 0x22b   :  { %v2591_v18 = vadd.f32 %v2590_v58, %v2589_v24 }
 0x22d   :  { %v2593_v2 = vadd.f32 %v2592_v23, %v2591_v18 }
 0x22f   :  { %v2595_v39 = vadd.f32 %v2594_v1, %v2593_v2 }
 0x231   :  { %v2596_v19 = vrot.slane %v2595_v39, 4 }
 0x233   :  { %v2597_v59 = vadd.f32 %v2596_v19, %v2595_v39 }
 0x235   :  { %v2598_v33 = vrot.slane %v2597_v59, 2 }
 0x237   :  { %v2599_v29 = vadd.f32 %v2598_v33, %v2597_v59 }
 0x239   :  { %v2600_v17 = vrot.slane %v2599_v29, 1 }
 0x23b   :  { %v2601_v63 = vadd.f32 %v2600_v17, %v2599_v29 }
 0x23d   :  { %v9752_v50 = vmul.f32 0.001953125, %v2601_v63 }
 0x23f   :  { %v9755_v16 = vsub.f32 %v2437_v49, %v9752_v50  ;;  %v9758_v30 = vsub.f32 %v2440_v62, %v9752_v50  ;;  %v9761_v24 = vsub.f32 %v7633_v20, %v9752_v50  ;;  %v9764_v58 = vsub.f32 %v7634_v22, %v9752_v50 }
 0x240   :  { %v9767_v2 = vsub.f32 %v2453_v42, %v9752_v50  ;;  %v9770_v33 = vsub.f32 %v2456_v9, %v9752_v50  ;;  %v9773_v29 = vsub.f32 %v7637_v46, %v9752_v50  ;;  %v9776_v49 = vsub.f32 %v7638_v26, %v9752_v50 }
 0x241   :  { %15289 = vst [vmem:[#allocation28_spill] sm:$0xff] %v9755_v16  ;;  %15290 = vst [vmem:[#allocation29_spill] sm:$0xff] %v9758_v30  ;;  %v9780_v62 = vsub.f32 %v9174_v57, %v9752_v50  ;;  %v9784_v22 = vsub.f32 %v9201_v43, %v9752_v50  ;;  %v9788_v20 = vsub.f32 %v9164_v15, %v9752_v50 }
 0x242   :  { %15291 = vst [vmem:[#allocation30_spill] sm:$0xff] %v9761_v24  ;;  %15292 = vst [vmem:[#allocation31_spill] sm:$0xff] %v9764_v58  ;;  %v9792_v42 = vsub.f32 %v9189_v52, %v9752_v50  ;;  %v9800_v57 = vsub.f32 %v9224_v6, %v9752_v50  ;;  %v9806_v15 = vsub.f32 %v9244_v13, %v9752_v50 }
 0x243   :  { %15293 = vst [vmem:[#allocation32_spill] sm:$0xff] %v9767_v2  ;;  %15294 = vst [vmem:[#allocation33_spill] sm:$0xff] %v9773_v29  ;;  %v2668_v46 = vmul.f32 %v9780_v62, %v9780_v62  ;;  %v2669_v26 = vmul.f32 %v9784_v22, %v9784_v22  ;;  %v2670_v43 = vmul.f32 %v9788_v20, %v9788_v20 }
 0x244   :  { %15295 = vst [vmem:[#allocation34_spill] sm:$0xff] %v9776_v49  ;;  %v2671_v52 = vmul.f32 %v9792_v42, %v9792_v42  ;;  %v9814_v1 = vsub.f32 %v9212_v34, %v9752_v50  ;;  %v2672_v6 = vmul.f32 %v9800_v57, %v9800_v57  ;;  %v9821_v13 = vsub.f32 %v9234_v4, %v9752_v50 }
 0x245   :  { %v2732_v9 = vsel %vm2468_vm3, %v2668_v46, 0.0  ;;  %v2733_v18 = vsel %vm2468_vm3, %v2669_v26, 0.0  ;;  %v2735_v39 = vsel %vm2468_vm3, %v2670_v43, 0.0  ;;  %v2673_v59 = vmul.f32 %v9806_v15, %v9806_v15 }
 0x246   :  { %v2734_v23 = vadd.f32 %v2733_v18, %v2732_v9  ;;  %v2737_v17 = vsel %vm2468_vm3, %v2671_v52, 0.0  ;;  %v9828_v34 = vsub.f32 %v9266_v48, %v9752_v50  ;;  %v2674_v46 = vmul.f32 %v9814_v1, %v9814_v1 }
 0x247   :  { %v2739_v26 = vsel %vm2468_vm3, %v2672_v6, 0.0  ;;  %v9835_v4 = vsub.f32 %v9291_v55, %v9752_v50  ;;  %v2675_v9 = vmul.f32 %v9821_v13, %v9821_v13  ;;  %v2741_v52 = vsel %vm2468_vm3, %v2673_v59, 0.0 }
 0x248   :  { %v2736_v19 = vadd.f32 %v2735_v39, %v2734_v23  ;;  %v9842_v48 = vsub.f32 %v9256_v47, %v9752_v50  ;;  %v2676_v23 = vmul.f32 %v9828_v34, %v9828_v34  ;;  %v2743_v6 = vsel %vm2468_vm3, %v2674_v46, 0.0 }
 0x249   :  { %v9849_v55 = vsub.f32 %v9278_v7, %v9752_v50  ;;  %v2745_v59 = vsel %vm2468_vm3, %v2675_v9, 0.0  ;;  %v9856_v47 = vsub.f32 %v9553_v12, %v9752_v50  ;;  %v9863_v7 = vsub.f32 %v9566_v37, %v9752_v50 }
 0x24a   :  { %v2738_v63 = vadd.f32 %v2737_v17, %v2736_v19  ;;  %v2677_v19 = vmul.f32 %v9835_v4, %v9835_v4  ;;  %v2747_v46 = vsel %vm2468_vm3, %v2676_v23, 0.0  ;;  %v9870_v12 = vsub.f32 %v9539_v3, %v9752_v50 }
 0x24b   :  { %v9877_v37 = vsub.f32 %v9559_v56, %v9752_v50  ;;  %v9884_v3 = vsub.f32 %v9578_v10, %v9752_v50  ;;  %v9891_v56 = vsub.f32 %v9590_v5, %v9752_v50  ;;  %v9898_v10 = vsub.f32 %v9572_v51, %v9752_v50 }
 0x24c   :  { %v2740_v43 = vadd.f32 %v2739_v26, %v2738_v63  ;;  %v2678_v63 = vmul.f32 %v9842_v48, %v9842_v48  ;;  %v2749_v9 = vsel %vm2468_vm3, %v2677_v19, 0.0  ;;  %v9905_v5 = vsub.f32 %v9584_v53, %v9752_v50 }
 0x24d   :  { %v9912_v51 = vsub.f32 %v9598_v27, %v9752_v50  ;;  %v9919_v53 = vsub.f32 %v9606_v35, %v9752_v50  ;;  %v9926_v27 = vsub.f32 %v9596_v14, %v9752_v50  ;;  %v9933_v35 = vsub.f32 %v9602_v28, %v9752_v50 }
 0x24e   :  { %v2742_v18 = vadd.f32 %v2741_v52, %v2740_v43  ;;  %v2679_v43 = vmul.f32 %v9849_v55, %v9849_v55  ;;  %v2751_v23 = vsel %vm2468_vm3, %v2678_v63, 0.0  ;;  %v9940_v14 = vsub.f32 %v9614_v11, %v9752_v50 }
 0x24f   :  { %v9947_v28 = vsub.f32 %v9622_v38, %v9752_v50  ;;  %v9954_v11 = vsub.f32 %v9612_v25, %v9752_v50  ;;  %v9961_v38 = vsub.f32 %v9618_v44, %v9752_v50  ;;  %v9968_v25 = vsub.f32 %v9630_v41, %v9752_v50 }
 0x250   :  { %v2744_v39 = vadd.f32 %v2743_v6, %v2742_v18  ;;  %v2680_v18 = vmul.f32 %v9856_v47, %v9856_v47  ;;  %v2753_v19 = vsel %vm2468_vm3, %v2679_v43, 0.0  ;;  %v9975_v44 = vsub.f32 %v9638_v0, %v9752_v50 }
 0x251   :  { %v9982_v41 = vsub.f32 %v9628_v45, %v9752_v50  ;;  %v9989_v0 = vsub.f32 %v9634_v40, %v9752_v50  ;;  %v9996_v45 = vsub.f32 %v9646_v61, %v9752_v50  ;;  %v10003_v40 = vsub.f32 %v9654_v36, %v9752_v50 }
 0x252   :  { %v2746_v17 = vadd.f32 %v2745_v59, %v2744_v39  ;;  %v2681_v39 = vmul.f32 %v9863_v7, %v9863_v7  ;;  %v2755_v63 = vsel %vm2468_vm3, %v2680_v18, 0.0  ;;  %v10010_v61 = vsub.f32 %v9644_v8, %v9752_v50 }
 0x253   :  { %v10017_v36 = vsub.f32 %v9650_v31, %v9752_v50  ;;  %v10024_v8 = vsub.f32 %v9662_v21, %v9752_v50  ;;  %v10031_v31 = vsub.f32 %v9670_v54, %v9752_v50  ;;  %v10038_v21 = vsub.f32 %v9660_v60, %v9752_v50 }
 0x254   :  { %v2748_v26 = vadd.f32 %v2747_v46, %v2746_v17  ;;  %v2682_v17 = vmul.f32 %v9870_v12, %v9870_v12  ;;  %v2757_v43 = vsel %vm2468_vm3, %v2681_v39, 0.0  ;;  %v10045_v54 = vsub.f32 %v9666_v32, %v9752_v50 }
 0x255   :  { %15296 = vst [vmem:[#allocation35_spill] sm:$0xff] %v10031_v31  ;;  %15297 = vst [vmem:[#allocation36_spill] sm:$0xff] %v10038_v21 }
 0x256   :  { %v2750_v52 = vadd.f32 %v2749_v9, %v2748_v26  ;;  %v2683_v26 = vmul.f32 %v9877_v37, %v9877_v37  ;;  %v2759_v18 = vsel %vm2468_vm3, %v2682_v17, 0.0  ;;  %15298 = vst [vmem:[#allocation37_spill] sm:$0xff] %v10045_v54 }
 0x258   :  { %v2752_v6 = vadd.f32 %v2751_v23, %v2750_v52  ;;  %v2684_v52 = vmul.f32 %v9884_v3, %v9884_v3  ;;  %v2761_v39 = vsel %vm2468_vm3, %v2683_v26, 0.0 }
 0x25a   :  { %v2754_v59 = vadd.f32 %v2753_v19, %v2752_v6  ;;  %v2685_v6 = vmul.f32 %v9891_v56, %v9891_v56  ;;  %v2763_v17 = vsel %vm2468_vm3, %v2684_v52, 0.0 }
 0x25c   :  { %v2756_v46 = vadd.f32 %v2755_v63, %v2754_v59  ;;  %v2686_v59 = vmul.f32 %v9898_v10, %v9898_v10  ;;  %v2765_v26 = vsel %vm2468_vm3, %v2685_v6, 0.0 }
 0x25e   :  { %v2758_v9 = vadd.f32 %v2757_v43, %v2756_v46  ;;  %v2687_v46 = vmul.f32 %v9905_v5, %v9905_v5  ;;  %v2767_v52 = vsel %vm2468_vm3, %v2686_v59, 0.0 }
 0x260   :  { %v2760_v23 = vadd.f32 %v2759_v18, %v2758_v9  ;;  %v2688_v9 = vmul.f32 %v9912_v51, %v9912_v51  ;;  %v2769_v6 = vsel %vm2468_vm3, %v2687_v46, 0.0 }
 0x262   :  { %v2762_v19 = vadd.f32 %v2761_v39, %v2760_v23  ;;  %v2689_v23 = vmul.f32 %v9919_v53, %v9919_v53  ;;  %v2771_v59 = vsel %vm2468_vm3, %v2688_v9, 0.0 }
 0x264   :  { %v2764_v63 = vadd.f32 %v2763_v17, %v2762_v19  ;;  %v2690_v19 = vmul.f32 %v9926_v27, %v9926_v27  ;;  %v2773_v46 = vsel %vm2468_vm3, %v2689_v23, 0.0 }
 0x266   :  { %v2766_v43 = vadd.f32 %v2765_v26, %v2764_v63  ;;  %v2691_v63 = vmul.f32 %v9933_v35, %v9933_v35  ;;  %v2775_v9 = vsel %vm2468_vm3, %v2690_v19, 0.0 }
 0x268   :  { %v2768_v18 = vadd.f32 %v2767_v52, %v2766_v43  ;;  %v2692_v43 = vmul.f32 %v9940_v14, %v9940_v14  ;;  %v2777_v23 = vsel %vm2468_vm3, %v2691_v63, 0.0 }
 0x26a   :  { %v2770_v39 = vadd.f32 %v2769_v6, %v2768_v18  ;;  %v2693_v18 = vmul.f32 %v9947_v28, %v9947_v28  ;;  %v2779_v19 = vsel %vm2468_vm3, %v2692_v43, 0.0 }
 0x26c   :  { %v2772_v17 = vadd.f32 %v2771_v59, %v2770_v39  ;;  %v2694_v39 = vmul.f32 %v9954_v11, %v9954_v11  ;;  %v2781_v63 = vsel %vm2468_vm3, %v2693_v18, 0.0 }
 0x26e   :  { %v2774_v26 = vadd.f32 %v2773_v46, %v2772_v17  ;;  %v2695_v17 = vmul.f32 %v9961_v38, %v9961_v38  ;;  %v2783_v43 = vsel %vm2468_vm3, %v2694_v39, 0.0 }
 0x270   :  { %v2776_v52 = vadd.f32 %v2775_v9, %v2774_v26  ;;  %v2696_v26 = vmul.f32 %v9968_v25, %v9968_v25  ;;  %v2785_v18 = vsel %vm2468_vm3, %v2695_v17, 0.0 }
 0x272   :  { %v2778_v6 = vadd.f32 %v2777_v23, %v2776_v52  ;;  %v2697_v52 = vmul.f32 %v9975_v44, %v9975_v44  ;;  %v2787_v39 = vsel %vm2468_vm3, %v2696_v26, 0.0 }
 0x274   :  { %v2780_v59 = vadd.f32 %v2779_v19, %v2778_v6  ;;  %v2698_v6 = vmul.f32 %v9982_v41, %v9982_v41  ;;  %v2789_v17 = vsel %vm2468_vm3, %v2697_v52, 0.0 }
 0x276   :  { %v2782_v46 = vadd.f32 %v2781_v63, %v2780_v59  ;;  %v2699_v59 = vmul.f32 %v9989_v0, %v9989_v0  ;;  %v2791_v26 = vsel %vm2468_vm3, %v2698_v6, 0.0 }
 0x278   :  { %v2784_v9 = vadd.f32 %v2783_v43, %v2782_v46  ;;  %v2700_v46 = vmul.f32 %v9996_v45, %v9996_v45  ;;  %v2793_v52 = vsel %vm2468_vm3, %v2699_v59, 0.0 }
 0x27a   :  { %v2786_v23 = vadd.f32 %v2785_v18, %v2784_v9  ;;  %v2701_v9 = vmul.f32 %v10003_v40, %v10003_v40  ;;  %v2795_v6 = vsel %vm2468_vm3, %v2700_v46, 0.0 }
 0x27c   :  { %v2788_v19 = vadd.f32 %v2787_v39, %v2786_v23  ;;  %v2702_v23 = vmul.f32 %v10010_v61, %v10010_v61  ;;  %v2797_v59 = vsel %vm2468_vm3, %v2701_v9, 0.0 }
 0x27e   :  { %v2790_v63 = vadd.f32 %v2789_v17, %v2788_v19  ;;  %v2703_v19 = vmul.f32 %v10017_v36, %v10017_v36  ;;  %v2799_v46 = vsel %vm2468_vm3, %v2702_v23, 0.0 }
 0x280   :  { %v2792_v43 = vadd.f32 %v2791_v26, %v2790_v63  ;;  %v2704_v63 = vmul.f32 %v10024_v8, %v10024_v8  ;;  %v2801_v9 = vsel %vm2468_vm3, %v2703_v19, 0.0 }
 0x282   :  { %v2794_v18 = vadd.f32 %v2793_v52, %v2792_v43  ;;  %v2705_v43 = vmul.f32 %v10031_v31, %v10031_v31  ;;  %v2803_v23 = vsel %vm2468_vm3, %v2704_v63, 0.0 }
 0x284   :  { %v2796_v39 = vadd.f32 %v2795_v6, %v2794_v18  ;;  %v15299_v18 = vld [vmem:[#allocation13_spill] sm:$0xff]  ;;  %v2706_v6 = vmul.f32 %v10038_v21, %v10038_v21  ;;  %v2805_v19 = vsel %vm2468_vm3, %v2705_v43, 0.0 }
 0x285   :  { %v10052_v60 = vsub.f32 %v15299_v18, %v9752_v50 }
 0x286   :  { %v2798_v17 = vadd.f32 %v2797_v59, %v2796_v39  ;;  %v15301_v59 = vld [vmem:[#allocation15_spill] sm:$0xff]  ;;  %v2807_v63 = vsel %vm2468_vm3, %v2706_v6, 0.0 }
 0x287   :  { %15300 = vst [vmem:[#allocation13_spill] sm:$0xff] %v10052_v60  ;;  %v10059_v32 = vsub.f32 %v15301_v59, %v9752_v50  ;;  %v2708_v18 = vmul.f32 %v10052_v60, %v10052_v60 }
 0x288   :  { %v2800_v26 = vadd.f32 %v2799_v46, %v2798_v17  ;;  %v2707_v17 = vmul.f32 %v10045_v54, %v10045_v54 }
 0x289   :  { %15302 = vst [vmem:[#allocation15_spill] sm:$0xff] %v10059_v32  ;;  %v2709_v54 = vmul.f32 %v10059_v32, %v10059_v32  ;;  %v2811_v6 = vsel %vm2468_vm3, %v2708_v18, 0.0  ;;  %v15310_v18 = vld [vmem:[#allocation16_spill] sm:$0xff] }
 0x28a   :  { %v2802_v52 = vadd.f32 %v2801_v9, %v2800_v26  ;;  %v15303_v26 = vld [vmem:[#allocation12_spill] sm:$0xff]  ;;  %v2809_v43 = vsel %vm2468_vm3, %v2707_v17, 0.0 }
 0x28b   :  { %v10066_v9 = vsub.f32 %v15303_v26, %v9752_v50  ;;  %v2813_v17 = vsel %vm2468_vm3, %v2709_v54, 0.0  ;;  %v3075_v54 = vld [vmem:[%s15072_s6] sm:$0xff] }
 0x28c   :  { %v2804_v39 = vadd.f32 %v2803_v23, %v2802_v52  ;;  %v15305_v23 = vld [vmem:[#allocation14_spill] sm:$0xff] }
 0x28d   :  { %15304 = vst [vmem:[#allocation12_spill] sm:$0xff] %v10066_v9  ;;  %v10073_v59 = vsub.f32 %v15305_v23, %v9752_v50  ;;  %v2710_v60 = vmul.f32 %v10066_v9, %v10066_v9  ;;  %v3076_v9 = vld [vmem:[%s15072_s6 + $0x8] sm:$0xff] }
 0x28e   :  { %v2806_v46 = vadd.f32 %v2805_v19, %v2804_v39  ;;  %v15307_v19 = vld [vmem:[#allocation17_spill] sm:$0xff] }
 0x28f   :  { %15306 = vst [vmem:[#allocation14_spill] sm:$0xff] %v10073_v59  ;;  %v10080_v26 = vsub.f32 %v15307_v19, %v9752_v50  ;;  %v2711_v32 = vmul.f32 %v10073_v59, %v10073_v59 }
 0x290   :  { %v2808_v52 = vadd.f32 %v2807_v63, %v2806_v46  ;;  %v15309_v63 = vld [vmem:[#allocation19_spill] sm:$0xff] }
 0x291   :  { %15308 = vst [vmem:[#allocation17_spill] sm:$0xff] %v10080_v26  ;;  %v10087_v23 = vsub.f32 %v15309_v63, %v9752_v50  ;;  %v2815_v63 = vsel %vm2468_vm3, %v2710_v60, 0.0  ;;  %v2817_v60 = vsel %vm2468_vm3, %v2711_v32, 0.0 }
 0x292   :  { %v2810_v39 = vadd.f32 %v2809_v43, %v2808_v52  ;;  %v3077_v52 = vld [vmem:[%s15072_s6 + $0x10] sm:$0xff]  ;;  %v3078_v43 = vld [vmem:[%s15072_s6 + $0x18] sm:$0xff] }
 0x293   :  { %v5053_v59 = vpack.c.bf16 %v3078_v43, %v3077_v52  ;;  %v15314_v43 = vld [vmem:[#allocation21_spill] sm:$0xff] }
 0x294   :  { %v2812_v46 = vadd.f32 %v2811_v6, %v2810_v39  ;;  %v10100_v39 = vsub.f32 %v15310_v18, %v9752_v50  ;;  %v2712_v6 = vmul.f32 %v10080_v26, %v10080_v26  ;;  %v2713_v26 = vmul.f32 %v10087_v23, %v10087_v23 }
 0x295   :  { %7639 = vmatprep.subr.bf16.mxu1 %v5053_v59  ;;  %v10120_v31 = vsub.f32 %v15314_v43, %v9752_v50 }
 0x296   :  { %v2814_v19 = vadd.f32 %v2813_v17, %v2812_v46  ;;  %15311 = vst [vmem:[#allocation19_spill] sm:$0xff] %v10100_v39  ;;  %v5052_v46 = vpack.c.bf16 %v3076_v9, %v3075_v54  ;;  %v15312_v17 = vld [vmem:[#allocation18_spill] sm:$0xff]  ;;  %7640 = vmatpush3.bf16.msra.mxu1 %v5053_v59  ;;  %v2819_v9 = vsel %vm2468_vm3, %v2712_v6, 0.0  ;;  %v15316_v54 = vld [vmem:[#allocation23_spill] sm:$0xff] }
 0x297   :  { %v10113_v18 = vsub.f32 %v15312_v17, %v9752_v50  ;;  %15315 = vst [vmem:[#allocation18_spill] sm:$0xff] %v10120_v31  ;;  %v10127_v17 = vsub.f32 %v15316_v54, %v9752_v50  ;;  %v2716_v6 = vmul.f32 %v10120_v31, %v10120_v31  ;;  %v15320_v54 = vld [vmem:[#allocation22_spill] sm:$0xff] }
 0x298   :  { %v2816_v21 = vadd.f32 %v2815_v63, %v2814_v19  ;;  %v2714_v19 = vmul.f32 %v10100_v39, %v10100_v39  ;;  %7641 = vmatprep.subr.bf16.mxu1 %v5052_v46  ;;  %v10141_v39 = vsub.f32 %v15320_v54, %v9752_v50 }
 0x299   :  { %15313 = vst [vmem:[#allocation16_spill] sm:$0xff] %v10113_v18  ;;  %15317 = vst [vmem:[#allocation21_spill] sm:$0xff] %v10127_v17  ;;  %v2715_v32 = vmul.f32 %v10113_v18, %v10113_v18  ;;  %v2717_v18 = vmul.f32 %v10127_v17, %v10127_v17 }
 0x29a   :  { %v2818_v52 = vadd.f32 %v2817_v60, %v2816_v21  ;;  %v2821_v21 = vsel %vm2468_vm3, %v2713_v26, 0.0  ;;  %7642 = vmatpush3.bf16.msra.mxu1 %v5052_v46  ;;  %v15318_v60 = vld [vmem:[#allocation20_spill] sm:$0xff]  ;;  %v2719_v17 = vmul.f32 %v10141_v39, %v10141_v39 }
 0x29b   :  { %v10134_v43 = vsub.f32 %v15318_v60, %v9752_v50  ;;  %15321 = vst [vmem:[#allocation20_spill] sm:$0xff] %v10141_v39  ;;  %v2825_v26 = vsel %vm2468_vm3, %v2715_v32, 0.0  ;;  %v2829_v32 = vsel %vm2468_vm3, %v2717_v18, 0.0 }
 0x29c   :  { %v2820_v63 = vadd.f32 %v2819_v9, %v2818_v52  ;;  %v2823_v52 = vsel %vm2468_vm3, %v2714_v19, 0.0  ;;  %v2827_v19 = vsel %vm2468_vm3, %v2716_v6, 0.0  ;;  %v2833_v18 = vsel %vm2468_vm3, %v2719_v17, 0.0 }
 0x29d   :  { %15319 = vst [vmem:[#allocation23_spill] sm:$0xff] %v10134_v43  ;;  %v2718_v60 = vmul.f32 %v10134_v43, %v10134_v43  ;;  %v2725_v17 = vmul.f32 %v9758_v30, %v9758_v30 }
 0x29e   :  { %v2822_v59 = vadd.f32 %v2821_v21, %v2820_v63  ;;  %v15322_v63 = vld [vmem:[#allocation25_spill] sm:$0xff] }
 0x29f   :  { %v10148_v21 = vsub.f32 %v15322_v63, %v9752_v50  ;;  %v2831_v6 = vsel %vm2468_vm3, %v2718_v60, 0.0 }
 0x2a0   :  { %v2824_v9 = vadd.f32 %v2823_v52, %v2822_v59  ;;  %v15323_v52 = vld [vmem:[#allocation27_spill] sm:$0xff] }
 0x2a1   :  { %v10155_v54 = vsub.f32 %v15323_v52, %v9752_v50  ;;  %v2720_v43 = vmul.f32 %v10148_v21, %v10148_v21 }
 0x2a2   :  { %v2826_v46 = vadd.f32 %v2825_v26, %v2824_v9  ;;  %v15325_v26 = vld [vmem:[#allocation24_spill] sm:$0xff] }
 0x2a3   :  { %15324 = vst [vmem:[#allocation22_spill] sm:$0xff] %v10155_v54  ;;  %v10162_v63 = vsub.f32 %v15325_v26, %v9752_v50  ;;  %v2721_v39 = vmul.f32 %v10155_v54, %v10155_v54  ;;  %v2835_v26 = vsel %vm2468_vm3, %v2720_v43, 0.0  ;;  %v2726_v43 = vmul.f32 %v9761_v24, %v9761_v24 }
 0x2a4   :  { %v2828_v59 = vadd.f32 %v2827_v19, %v2826_v46  ;;  %v15326_v19 = vld [vmem:[#allocation26_spill] sm:$0xff] }
 0x2a5   :  { %v10169_v52 = vsub.f32 %v15326_v19, %v9752_v50  ;;  %v2724_v50 = vmul.f32 %v9755_v16, %v9755_v16 }
 0x2a6   :  { %v2830_v9 = vadd.f32 %v2829_v32, %v2828_v59  ;;  %v2722_v32 = vmul.f32 %v10162_v63, %v10162_v63 }
 0x2a7   :  { %15327 = vst [vmem:[#allocation25_spill] sm:$0xff] %v10169_v52  ;;  %v2723_v60 = vmul.f32 %v10169_v52, %v10169_v52 }
 0x2a8   :  { %v2832_v46 = vadd.f32 %v2831_v6, %v2830_v9  ;;  %v2837_v9 = vsel %vm2468_vm3, %v2721_v39, 0.0  ;;  %v2839_v19 = vsel %vm2468_vm3, %v2722_v32, 0.0  ;;  %v2845_v39 = vsel %vm2468_vm3, %v2725_v17, 0.0 }
 0x2a9   :  { %v2728_v32 = vmul.f32 %v9767_v2, %v9767_v2  ;;  %v2731_v17 = vmul.f32 %v9776_v49, %v9776_v49 }
 0x2aa   :  { %v2834_v59 = vadd.f32 %v2833_v18, %v2832_v46  ;;  %v2841_v46 = vsel %vm2468_vm3, %v2723_v60, 0.0 }
 0x2ac   :  { %v2836_v31 = vadd.f32 %v2835_v26, %v2834_v59  ;;  %v2843_v59 = vsel %vm2468_vm3, %v2724_v50, 0.0  ;;  %v2730_v50 = vmul.f32 %v9773_v29, %v9773_v29 }
 0x2ae   :  { %v2838_v6 = vadd.f32 %v2837_v9, %v2836_v31  ;;  %v2727_v31 = vmul.f32 %v9764_v58, %v9764_v58 }
 0x2b0   :  { %v2840_v54 = vadd.f32 %v2839_v19, %v2838_v6  ;;  %v2847_v6 = vsel %vm2468_vm3, %v2726_v43, 0.0  ;;  %v2849_v60 = vsel %vm2468_vm3, %v2727_v31, 0.0  ;;  %v2855_v43 = vsel %vm2468_vm3, %v2730_v50, 0.0 }
 0x2b2   :  { %v2842_v18 = vadd.f32 %v2841_v46, %v2840_v54  ;;  %v2729_v54 = vmul.f32 %v9770_v33, %v9770_v33 }
 0x2b4   :  { %v2844_v26 = vadd.f32 %v2843_v59, %v2842_v18  ;;  %v2851_v18 = vsel %vm2468_vm3, %v2728_v32, 0.0 }
 0x2b6   :  { %v2846_v9 = vadd.f32 %v2845_v39, %v2844_v26  ;;  %v2853_v26 = vsel %vm2468_vm3, %v2729_v54, 0.0  ;;  %v3073_v54 = vld [vmem:[%s15071_s5] sm:$0xff] }
 0x2b8   :  { %v2848_v19 = vadd.f32 %v2847_v6, %v2846_v9  ;;  %v2857_v6 = vsel %vm2468_vm3, %v2731_v17, 0.0 }
 0x2ba   :  { %v2850_v46 = vadd.f32 %v2849_v60, %v2848_v19 }
 0x2bc   :  { %v2852_v59 = vadd.f32 %v2851_v18, %v2850_v46  ;;  %v3255_v18 = vld [vmem:[#allocation3] sm:$0xff] }
 0x2be   :  { %v2854_v39 = vadd.f32 %v2853_v26, %v2852_v59  ;;  %v15328_v59 = vld [vmem:[#allocation11_spill] sm:$0xff]  ;;  %v15330_v26 = vld [vmem:[#allocation10_spill] sm:$0xff] }
 0x2bf   :  { %v10210_v50 = vrot.slane %v3073_v54, %v15328_v59  ;;  %v15331_v17 = vsub.s32 1, %v15330_v26  ;;  %v15339_v52 = vsub.s32 5, %v15330_v26 }
 0x2c0   :  { %v2856_v9 = vadd.f32 %v2855_v43, %v2854_v39  ;;  %v3451_v43 = vld [vmem:[#allocation3 + $0x1] sm:$0xff] }
 0x2c1   :  { %15329 = vst [vmem:[#allocation27_spill] sm:$0xff] %v10210_v50  ;;  %v10214_v39 = vrot.slane %v3073_v54, %v15331_v17 }
 0x2c2   :  { %v2858_v2 = vadd.f32 %v2857_v6, %v2856_v9  ;;  %v3452_v9 = vld [vmem:[#allocation3 + $0x9] sm:$0xff] }
 0x2c3   :  { %15332 = vst [vmem:[#allocation24_spill] sm:$0xff] %v10214_v39 }
 0x2c4   :  { %v2859_v31 = vrot.slane %v2858_v2, 4 }
 0x2c6   :  { %v2860_v19 = vadd.f32 %v2859_v31, %v2858_v2  ;;  %v3256_v2 = vld [vmem:[#allocation3 + $0x8] sm:$0xff]  ;;  %v3519_v31 = vmul.f32 %v10214_v39, %v3451_v43  ;;  %v15335_v43 = vsub.s32 3, %v15330_v26 }
 0x2c7   :  { %v3324_v6 = vmul.f32 %v10210_v50, %v3256_v2 }
 0x2c8   :  { %v2861_v60 = vrot.slane %v2860_v19, 2 }
 0x2ca   :  { %v2862_v58 = vadd.f32 %v2861_v60, %v2860_v19  ;;  %v3520_v19 = vmul.f32 %v10214_v39, %v3452_v9  ;;  %v3647_v60 = vld [vmem:[#allocation3 + $0x2] sm:$0xff]  ;;  %v10234_v9 = vrot.slane %v3073_v54, %v15335_v43  ;;  %v15337_v39 = vsub.s32 4, %v15330_v26  ;;  %v15349_v43 = vld [vmem:[#allocation37_spill] sm:$0xff] }
 0x2cc   :  { %v2863_v29 = vrot.slane %v2862_v58, 1  ;;  %v3584_v30 = vadd.f32 %v3520_v19, %v3324_v6  ;;  %15336 = vst [vmem:[#allocation10_spill] sm:$0xff] %v10234_v9  ;;  %v10247_v6 = vld [vmem:[%s15070_s4] ss:$0 sm:$0xff]  ;;  %v15368_v9 = vld [vmem:[#allocation28_spill] sm:$0xff] }
 0x2ce   :  { %v2864_v24 = vadd.f32 %v2863_v29, %v2862_v58  ;;  %v15333_v58 = vsub.s32 2, %v15330_v26  ;;  %v3323_v29 = vmul.f32 %v10210_v50, %v3255_v18  ;;  %v10238_v50 = vrot.slane %v3073_v54, %v15337_v39 }
 0x2cf   :  { %v15345_v39 = vsub.s32 7, %v15330_v26 }
 0x2d0   :  { %v2865_v32 = vmul.f32 0.001953125, %v2864_v24  ;;  %v10218_v24 = vrot.slane %v3073_v54, %v15333_v58  ;;  %v3583_v49 = vadd.f32 %v3519_v31, %v3323_v29  ;;  %15338 = vst [vmem:[#allocation38_spill] sm:$0xff] %v10238_v50  ;;  %v10242_v29 = vrot.slane %v3073_v54, %v15339_v52  ;;  %v15366_v50 = vld [vmem:[#allocation25_spill] sm:$0xff] }
 0x2d2   :  { %v2866_v46 = vadd.f32 1e-05, %v2865_v32  ;;  %15334 = vst [vmem:[#allocation26_spill] sm:$0xff] %v10218_v24  ;;  %v3648_v32 = vld [vmem:[#allocation3 + $0xa] sm:$0xff]  ;;  %v3715_v58 = vmul.f32 %v10218_v24, %v3647_v60  ;;  %15340 = vst [vmem:[#allocation39_spill] sm:$0xff] %v10242_v29  ;;  %v15343_v60 = vsub.s32 6, %v15330_v26 }
 0x2d3   :  { %v3716_v16 = vmul.f32 %v10218_v24, %v3648_v32  ;;  %v15356_v24 = vld [vmem:[#allocation16_spill] sm:$0xff]  ;;  %v15363_v29 = vld [vmem:[#allocation22_spill] sm:$0xff] }
 0x2d4   :  { %7714 = vrsqrt.f32 %v2866_v46  ;;  %v104_v46 = vld [vmem:[%s15069_s3] sm:$0x1]  ;;  %v10249_v31 = vadd.f32 %v3715_v58, %v3583_v49  ;;  %v10255_v32 = vrot.slane %v3073_v54, %v15343_v60  ;;  %v15347_v58 = vld [vmem:[#allocation35_spill] sm:$0xff]  ;;  %v15350_v60 = vld [vmem:[#allocation13_spill] sm:$0xff] }
 0x2d5   :  { %v10251_v19 = vadd.f32 %v3716_v16, %v3584_v30 }
 0x2d6   :  { %15341 = vst [vmem:[#allocation40_spill] sm:$0xff] %v10249_v31  ;;  %15344 = vst [vmem:[#allocation42_spill] sm:$0xff] %v10255_v32  ;;  %v15358_v32 = vld [vmem:[#allocation21_spill] sm:$0xff]  ;;  %v15360_v31 = vld [vmem:[#allocation20_spill] sm:$0xff] }
 0x2d7   :  { %15342 = vst [vmem:[#allocation41_spill] sm:$0xff] %v10251_v19  ;;  %v15359_v19 = vld [vmem:[#allocation23_spill] sm:$0xff] }
 0x2e1   :  { %v7715_v17 = vpop.eup %7714 }
 0x2e2   :  { %v2868_v18 = vmul.f32 %v7715_v17, %v104_v46  ;;  %v10259_v46 = vrot.slane %v3073_v54, %v15345_v39  ;;  %v15351_v39 = vld [vmem:[#allocation15_spill] sm:$0xff] }
 0x2e4   :  { %v10230_v2 = vrot.slane %v2868_v18, %v15328_v59  ;;  %15346 = vst [vmem:[#allocation43_spill] sm:$0xff] %v10259_v46  ;;  %v15348_v18 = vld [vmem:[#allocation36_spill] sm:$0xff]  ;;  %v15355_v59 = vld [vmem:[#allocation19_spill] sm:$0xff]  ;;  %v15357_v46 = vld [vmem:[#allocation18_spill] sm:$0xff] }
 0x2e6   :  { %v2936_v52 = vmul.f32 %v10230_v2, %v9770_v33  ;;  %v10265_v17 = vmul.f32 %v10230_v2, %v9780_v62  ;;  %v10269_v49 = vmul.f32 %v10230_v2, %v9784_v22  ;;  %v10273_v16 = vmul.f32 %v10230_v2, %v9788_v20 }
 0x2e7   :  { %v10277_v30 = vmul.f32 %v10230_v2, %v9792_v42  ;;  %v10281_v54 = vmul.f32 %v10230_v2, %v9800_v57  ;;  %v10285_v33 = vmul.f32 %v10230_v2, %v9806_v15  ;;  %v10289_v62 = vmul.f32 %v10230_v2, %v9814_v1 }
 0x2e8   :  { %v3006_v22 = vadd.f32 %v10247_v6, %v2936_v52  ;;  %v10294_v20 = vmul.f32 %v10230_v2, %v9821_v13  ;;  %v10298_v42 = vmul.f32 %v10230_v2, %v9828_v34  ;;  %v10302_v57 = vmul.f32 %v10230_v2, %v9835_v4  ;;  %v15352_v52 = vld [vmem:[#allocation12_spill] sm:$0xff] }
 0x2e9   :  { %v10306_v15 = vmul.f32 %v10230_v2, %v9842_v48  ;;  %v10310_v1 = vmul.f32 %v10230_v2, %v9849_v55  ;;  %v10314_v13 = vmul.f32 %v10230_v2, %v9856_v47  ;;  %v10318_v34 = vmul.f32 %v10230_v2, %v9863_v7 }
 0x2ea   :  { %v3070_v26 = vmax.f32 %v3006_v22, 0.0  ;;  %v10322_v4 = vmul.f32 %v10230_v2, %v9870_v12  ;;  %v10326_v48 = vmul.f32 %v10230_v2, %v9877_v37  ;;  %v10330_v55 = vmul.f32 %v10230_v2, %v9884_v3 }
 0x2eb   :  { %v10334_v47 = vmul.f32 %v10230_v2, %v9891_v56  ;;  %v10338_v7 = vmul.f32 %v10230_v2, %v9898_v10  ;;  %v10342_v12 = vmul.f32 %v10230_v2, %v9905_v5  ;;  %v10346_v37 = vmul.f32 %v10230_v2, %v9912_v51 }
 0x2ec   :  { %3252 = vst.msk [vmem:[#allocation3 + $0x321] sm:$0xff] %vm2468_vm3, %v3070_v26  ;;  %v10351_v3 = vmul.f32 %v10230_v2, %v9919_v53  ;;  %v10355_v56 = vmul.f32 %v10230_v2, %v9926_v27  ;;  %v10359_v10 = vmul.f32 %v10230_v2, %v9933_v35  ;;  %v10363_v5 = vmul.f32 %v10230_v2, %v9940_v14  ;;  %v15353_v26 = vld [vmem:[#allocation14_spill] sm:$0xff] }
 0x2ed   :  { %v10367_v51 = vmul.f32 %v10230_v2, %v9947_v28  ;;  %v10371_v53 = vmul.f32 %v10230_v2, %v9954_v11  ;;  %v10375_v27 = vmul.f32 %v10230_v2, %v9961_v38  ;;  %v10379_v35 = vmul.f32 %v10230_v2, %v9968_v25 }
 0x2ee   :  { %v10383_v14 = vmul.f32 %v10230_v2, %v9975_v44  ;;  %v10387_v28 = vmul.f32 %v10230_v2, %v9982_v41  ;;  %v10391_v11 = vmul.f32 %v10230_v2, %v9989_v0  ;;  %v10395_v38 = vmul.f32 %v10230_v2, %v9996_v45 }
 0x2ef   :  { %v10399_v25 = vmul.f32 %v10230_v2, %v10003_v40  ;;  %v10403_v44 = vmul.f32 %v10230_v2, %v10010_v61  ;;  %v10407_v41 = vmul.f32 %v10230_v2, %v10017_v36  ;;  %v10411_v0 = vmul.f32 %v10230_v2, %v10024_v8 }
 0x2f0   :  { %v10415_v45 = vmul.f32 %v10230_v2, %v15347_v58  ;;  %v10419_v40 = vmul.f32 %v10230_v2, %v15348_v18  ;;  %v10423_v61 = vmul.f32 %v10230_v2, %v15349_v43  ;;  %v10427_v36 = vmul.f32 %v10230_v2, %v15350_v60  ;;  %v15354_v18 = vld [vmem:[#allocation17_spill] sm:$0xff] }
 0x2f1   :  { %v10431_v8 = vmul.f32 %v10230_v2, %v15351_v39  ;;  %v10435_v22 = vmul.f32 %v10230_v2, %v15352_v52  ;;  %v10439_v58 = vmul.f32 %v10230_v2, %v15353_v26  ;;  %v10443_v43 = vmul.f32 %v10230_v2, %v15354_v18 }
 0x2f2   :  { %v10447_v60 = vmul.f32 %v10230_v2, %v10087_v23  ;;  %v10451_v39 = vmul.f32 %v10230_v2, %v15355_v59  ;;  %v10455_v52 = vmul.f32 %v10230_v2, %v15356_v24  ;;  %v10459_v26 = vmul.f32 %v10230_v2, %v15357_v46 }
 0x2f3   :  { %v10463_v18 = vmul.f32 %v10230_v2, %v15358_v32  ;;  %v10467_v23 = vmul.f32 %v10230_v2, %v15359_v19  ;;  %v10471_v59 = vmul.f32 %v10230_v2, %v15360_v31  ;;  %v10475_v24 = vmul.f32 %v10230_v2, %v10148_v21 }
 0x2f4   :  { %v10479_v46 = vmul.f32 %v10230_v2, %v15363_v29  ;;  %v10483_v32 = vmul.f32 %v10230_v2, %v10162_v63  ;;  %v10487_v19 = vmul.f32 %v10230_v2, %v15366_v50  ;;  %v10491_v31 = vmul.f32 %v10230_v2, %v15368_v9 }
 0x2f5   :  { %15361 = vst [vmem:[#allocation35_spill] sm:$0xff] %v10471_v59  ;;  %15362 = vst [vmem:[#allocation36_spill] sm:$0xff] %v10475_v24  ;;  %v15370_v59 = vld [vmem:[#allocation29_spill] sm:$0xff]  ;;  %v15371_v24 = vld [vmem:[#allocation30_spill] sm:$0xff] }
 0x2f6   :  { %15364 = vst [vmem:[#allocation37_spill] sm:$0xff] %v10479_v46  ;;  %15365 = vst [vmem:[#allocation13_spill] sm:$0xff] %v10483_v32  ;;  %v10495_v21 = vmul.f32 %v10230_v2, %v15370_v59  ;;  %v10499_v29 = vmul.f32 %v10230_v2, %v15371_v24  ;;  %v15372_v46 = vld [vmem:[#allocation31_spill] sm:$0xff]  ;;  %v15373_v32 = vld [vmem:[#allocation32_spill] sm:$0xff]  ;;  %v10519_v24 = vadd.f32 %v10247_v6, %v10265_v17 }
 0x2f7   :  { %15367 = vst [vmem:[#allocation15_spill] sm:$0xff] %v10487_v19  ;;  %15369 = vst [vmem:[#allocation12_spill] sm:$0xff] %v10491_v31  ;;  %v10503_v63 = vmul.f32 %v10230_v2, %v15372_v46  ;;  %v10507_v50 = vmul.f32 %v10230_v2, %v15373_v32  ;;  %v15374_v19 = vld [vmem:[#allocation33_spill] sm:$0xff]  ;;  %v15375_v31 = vld [vmem:[#allocation34_spill] sm:$0xff]  ;;  %v10523_v46 = vadd.f32 %v10247_v6, %v10269_v49 }
 0x2f8   :  { %v10511_v9 = vmul.f32 %v10230_v2, %v15374_v19  ;;  %v10515_v59 = vmul.f32 %v10230_v2, %v15375_v31  ;;  %v10527_v32 = vadd.f32 %v10247_v6, %v10273_v16  ;;  %v10531_v19 = vadd.f32 %v10247_v6, %v10277_v30 }
 0x2f9   :  { %v10535_v2 = vadd.f32 %v10247_v6, %v10281_v54  ;;  %v10539_v17 = vadd.f32 %v10247_v6, %v10285_v33  ;;  %v10543_v49 = vadd.f32 %v10247_v6, %v10289_v62  ;;  %v10547_v16 = vadd.f32 %v10247_v6, %v10294_v20 }
 0x2fa   :  { %v10551_v30 = vadd.f32 %v10247_v6, %v10298_v42  ;;  %v10555_v54 = vadd.f32 %v10247_v6, %v10302_v57  ;;  %v10559_v33 = vadd.f32 %v10247_v6, %v10306_v15  ;;  %v10563_v62 = vadd.f32 %v10247_v6, %v10310_v1 }
 0x2fb   :  { %v10567_v20 = vadd.f32 %v10247_v6, %v10314_v13  ;;  %v10571_v42 = vadd.f32 %v10247_v6, %v10318_v34  ;;  %v10575_v57 = vadd.f32 %v10247_v6, %v10322_v4  ;;  %v10579_v15 = vadd.f32 %v10247_v6, %v10326_v48 }
 0x2fc   :  { %v10583_v1 = vadd.f32 %v10247_v6, %v10330_v55  ;;  %v10587_v13 = vadd.f32 %v10247_v6, %v10334_v47  ;;  %v10591_v34 = vadd.f32 %v10247_v6, %v10338_v7  ;;  %v10595_v4 = vadd.f32 %v10247_v6, %v10342_v12  ;;  %v15381_v31 = vld [vmem:[#allocation35_spill] sm:$0xff] }
 0x2fd   :  { %v10599_v48 = vadd.f32 %v10247_v6, %v10346_v37  ;;  %v10603_v55 = vadd.f32 %v10247_v6, %v10351_v3  ;;  %v10607_v47 = vadd.f32 %v10247_v6, %v10355_v56  ;;  %v10611_v7 = vadd.f32 %v10247_v6, %v10359_v10 }
 0x2fe   :  { %v10615_v12 = vadd.f32 %v10247_v6, %v10363_v5  ;;  %v10619_v37 = vadd.f32 %v10247_v6, %v10367_v51  ;;  %v10623_v3 = vadd.f32 %v10247_v6, %v10371_v53  ;;  %v10627_v56 = vadd.f32 %v10247_v6, %v10375_v27 }
 0x2ff   :  { %v10631_v10 = vadd.f32 %v10247_v6, %v10379_v35  ;;  %v10635_v5 = vadd.f32 %v10247_v6, %v10383_v14  ;;  %v10639_v51 = vadd.f32 %v10247_v6, %v10387_v28  ;;  %v10643_v53 = vadd.f32 %v10247_v6, %v10391_v11 }
 0x300   :  { %v10647_v27 = vadd.f32 %v10247_v6, %v10395_v38  ;;  %v10651_v35 = vadd.f32 %v10247_v6, %v10399_v25  ;;  %v10655_v14 = vadd.f32 %v10247_v6, %v10403_v44  ;;  %v10659_v28 = vadd.f32 %v10247_v6, %v10407_v41 }
 0x301   :  { %v10663_v11 = vadd.f32 %v10247_v6, %v10411_v0  ;;  %v10667_v38 = vadd.f32 %v10247_v6, %v10415_v45  ;;  %v10671_v25 = vadd.f32 %v10247_v6, %v10419_v40  ;;  %v10675_v44 = vadd.f32 %v10247_v6, %v10423_v61 }
 0x302   :  { %v10679_v41 = vadd.f32 %v10247_v6, %v10427_v36  ;;  %v10683_v0 = vadd.f32 %v10247_v6, %v10431_v8  ;;  %v10687_v45 = vadd.f32 %v10247_v6, %v10435_v22  ;;  %v10691_v40 = vadd.f32 %v10247_v6, %v10439_v58 }
 0x303   :  { %v10695_v61 = vadd.f32 %v10247_v6, %v10443_v43  ;;  %v10699_v36 = vadd.f32 %v10247_v6, %v10447_v60  ;;  %v10703_v8 = vadd.f32 %v10247_v6, %v10451_v39  ;;  %v10707_v22 = vadd.f32 %v10247_v6, %v10455_v52 }
 0x304   :  { %v10711_v58 = vadd.f32 %v10247_v6, %v10459_v26  ;;  %v10715_v43 = vadd.f32 %v10247_v6, %v10463_v18  ;;  %v10719_v60 = vadd.f32 %v10247_v6, %v10467_v23  ;;  %v10723_v39 = vadd.f32 %v10247_v6, %v15381_v31 }
 0x305   :  { %15376 = vst [vmem:[#allocation14_spill] sm:$0xff] %v10703_v8  ;;  %15377 = vst [vmem:[#allocation17_spill] sm:$0xff] %v10707_v22  ;;  %v15382_v8 = vld [vmem:[#allocation36_spill] sm:$0xff]  ;;  %v15383_v22 = vld [vmem:[#allocation37_spill] sm:$0xff] }
 0x306   :  { %15378 = vst [vmem:[#allocation19_spill] sm:$0xff] %v10711_v58  ;;  %15379 = vst [vmem:[#allocation16_spill] sm:$0xff] %v10715_v43  ;;  %v10727_v52 = vadd.f32 %v10247_v6, %v15382_v8  ;;  %v10731_v26 = vadd.f32 %v10247_v6, %v15383_v22  ;;  %v15384_v58 = vld [vmem:[#allocation13_spill] sm:$0xff]  ;;  %v15385_v43 = vld [vmem:[#allocation15_spill] sm:$0xff]  ;;  %v10747_v8 = vadd.f32 %v10247_v6, %v10495_v21 }
 0x307   :  { %15380 = vst [vmem:[#allocation18_spill] sm:$0xff] %v10719_v60  ;;  %v10735_v18 = vadd.f32 %v10247_v6, %v15384_v58  ;;  %v10739_v23 = vadd.f32 %v10247_v6, %v15385_v43  ;;  %v15386_v60 = vld [vmem:[#allocation12_spill] sm:$0xff]  ;;  %v10751_v22 = vadd.f32 %v10247_v6, %v10499_v29  ;;  %v10755_v58 = vadd.f32 %v10247_v6, %v10503_v63 }
 0x308   :  { %v10743_v31 = vadd.f32 %v10247_v6, %v15386_v60  ;;  %15387 = vst [vmem:[#allocation21_spill] sm:$0xff] %v10747_v8  ;;  %v10759_v43 = vadd.f32 %v10247_v6, %v10507_v50  ;;  %v10763_v60 = vadd.f32 %v10247_v6, %v10511_v9  ;;  %v10767_v21 = vadd.f32 %v10247_v6, %v10515_v59 }
 0x309   :  { %15388 = vst [vmem:[#allocation23_spill] sm:$0xff] %v10751_v22  ;;  %15389 = vst [vmem:[#allocation20_spill] sm:$0xff] %v10755_v58  ;;  %v3009_v8 = vmax.f32 %v10519_v24, 0.0  ;;  %v3010_v29 = vmax.f32 %v10523_v46, 0.0  ;;  %v3011_v22 = vmax.f32 %v10527_v32, 0.0  ;;  %v3012_v63 = vmax.f32 %v10531_v19, 0.0 }
 0x30a   :  { %15390 = vst [vmem:[#allocation22_spill] sm:$0xff] %v10759_v43  ;;  %15391 = vst [vmem:[#allocation25_spill] sm:$0xff] %v10763_v60  ;;  %v3013_v58 = vmax.f32 %v10535_v2, 0.0  ;;  %v3014_v50 = vmax.f32 %v10539_v17, 0.0  ;;  %v3015_v43 = vmax.f32 %v10543_v49, 0.0  ;;  %v3016_v9 = vmax.f32 %v10547_v16, 0.0 }
 0x30b   :  { %v3017_v60 = vmax.f32 %v10551_v30, 0.0  ;;  %v3018_v6 = vmax.f32 %v10555_v54, 0.0  ;;  %v3019_v59 = vmax.f32 %v10559_v33, 0.0  ;;  %3191 = vst.msk [vmem:[#allocation3 + $0x19] sm:$0xff] %vm2468_vm3, %v3009_v8  ;;  %3192 = vst.msk [vmem:[#allocation3 + $0x21] sm:$0xff] %vm2468_vm3, %v3010_v29  ;;  %v3020_v24 = vmax.f32 %v10563_v62, 0.0 }
 0x30c   :  { %3193 = vst.msk [vmem:[#allocation3 + $0x31] sm:$0xff] %vm2468_vm3, %v3011_v22  ;;  %v3021_v46 = vmax.f32 %v10567_v20, 0.0  ;;  %v3022_v32 = vmax.f32 %v10571_v42, 0.0  ;;  %v3023_v19 = vmax.f32 %v10575_v57, 0.0  ;;  %3194 = vst.msk [vmem:[#allocation3 + $0x39] sm:$0xff] %vm2468_vm3, %v3012_v63  ;;  %v3024_v2 = vmax.f32 %v10579_v15, 0.0 }
 0x30d   :  { %3195 = vst.msk [vmem:[#allocation3 + $0x49] sm:$0xff] %vm2468_vm3, %v3013_v58  ;;  %3196 = vst.msk [vmem:[#allocation3 + $0x51] sm:$0xff] %vm2468_vm3, %v3014_v50  ;;  %v3025_v17 = vmax.f32 %v10583_v1, 0.0  ;;  %v3026_v49 = vmax.f32 %v10587_v13, 0.0  ;;  %v3027_v16 = vmax.f32 %v10591_v34, 0.0  ;;  %v3028_v30 = vmax.f32 %v10595_v4, 0.0 }
 0x30e   :  { %3197 = vst.msk [vmem:[#allocation3 + $0x61] sm:$0xff] %vm2468_vm3, %v3015_v43  ;;  %3198 = vst.msk [vmem:[#allocation3 + $0x69] sm:$0xff] %vm2468_vm3, %v3016_v9  ;;  %v3029_v54 = vmax.f32 %v10599_v48, 0.0  ;;  %v3030_v33 = vmax.f32 %v10603_v55, 0.0  ;;  %v3031_v62 = vmax.f32 %v10607_v47, 0.0  ;;  %v3032_v20 = vmax.f32 %v10611_v7, 0.0 }
 0x30f   :  { %3199 = vst.msk [vmem:[#allocation3 + $0x79] sm:$0xff] %vm2468_vm3, %v3017_v60  ;;  %3200 = vst.msk [vmem:[#allocation3 + $0x81] sm:$0xff] %vm2468_vm3, %v3018_v6  ;;  %v3033_v42 = vmax.f32 %v10615_v12, 0.0  ;;  %v3034_v57 = vmax.f32 %v10619_v37, 0.0  ;;  %v3035_v15 = vmax.f32 %v10623_v3, 0.0  ;;  %v3036_v1 = vmax.f32 %v10627_v56, 0.0 }
 0x310   :  { %3201 = vst.msk [vmem:[#allocation3 + $0x91] sm:$0xff] %vm2468_vm3, %v3019_v59  ;;  %3202 = vst.msk [vmem:[#allocation3 + $0x99] sm:$0xff] %vm2468_vm3, %v3020_v24  ;;  %v3037_v13 = vmax.f32 %v10631_v10, 0.0  ;;  %v3038_v34 = vmax.f32 %v10635_v5, 0.0  ;;  %v3039_v4 = vmax.f32 %v10639_v51, 0.0  ;;  %v3040_v48 = vmax.f32 %v10643_v53, 0.0 }
 0x311   :  { %3203 = vst.msk [vmem:[#allocation3 + $0xa9] sm:$0xff] %vm2468_vm3, %v3021_v46  ;;  %3204 = vst.msk [vmem:[#allocation3 + $0xb1] sm:$0xff] %vm2468_vm3, %v3022_v32  ;;  %v3041_v55 = vmax.f32 %v10647_v27, 0.0  ;;  %v3042_v47 = vmax.f32 %v10651_v35, 0.0  ;;  %v3043_v7 = vmax.f32 %v10655_v14, 0.0  ;;  %v3044_v12 = vmax.f32 %v10659_v28, 0.0 }
 0x312   :  { %3205 = vst.msk [vmem:[#allocation3 + $0xc1] sm:$0xff] %vm2468_vm3, %v3023_v19  ;;  %3206 = vst.msk [vmem:[#allocation3 + $0xc9] sm:$0xff] %vm2468_vm3, %v3024_v2  ;;  %v3045_v37 = vmax.f32 %v10663_v11, 0.0  ;;  %v3046_v3 = vmax.f32 %v10667_v38, 0.0  ;;  %v3047_v56 = vmax.f32 %v10671_v25, 0.0  ;;  %v3048_v10 = vmax.f32 %v10675_v44, 0.0 }
 0x313   :  { %3207 = vst.msk [vmem:[#allocation3 + $0xd9] sm:$0xff] %vm2468_vm3, %v3025_v17  ;;  %3208 = vst.msk [vmem:[#allocation3 + $0xe1] sm:$0xff] %vm2468_vm3, %v3026_v49  ;;  %v3049_v5 = vmax.f32 %v10679_v41, 0.0  ;;  %v3050_v51 = vmax.f32 %v10683_v0, 0.0  ;;  %v3051_v53 = vmax.f32 %v10687_v45, 0.0  ;;  %v3052_v27 = vmax.f32 %v10691_v40, 0.0 }
 0x314   :  { %3209 = vst.msk [vmem:[#allocation3 + $0xf1] sm:$0xff] %vm2468_vm3, %v3027_v16  ;;  %3210 = vst.msk [vmem:[#allocation3 + $0xf9] sm:$0xff] %vm2468_vm3, %v3028_v30  ;;  %v3053_v35 = vmax.f32 %v10695_v61, 0.0  ;;  %v3054_v14 = vmax.f32 %v10699_v36, 0.0  ;;  %v15392_v28 = vld [vmem:[#allocation14_spill] sm:$0xff]  ;;  %v15393_v38 = vld [vmem:[#allocation17_spill] sm:$0xff] }
 0x315   :  { %3211 = vst.msk [vmem:[#allocation3 + $0x109] sm:$0xff] %vm2468_vm3, %v3029_v54  ;;  %3212 = vst.msk [vmem:[#allocation3 + $0x111] sm:$0xff] %vm2468_vm3, %v3030_v33  ;;  %v3055_v11 = vmax.f32 %v15392_v28, 0.0  ;;  %v3056_v25 = vmax.f32 %v15393_v38, 0.0  ;;  %v15394_v44 = vld [vmem:[#allocation19_spill] sm:$0xff]  ;;  %v15395_v0 = vld [vmem:[#allocation16_spill] sm:$0xff] }
 0x316   :  { %3213 = vst.msk [vmem:[#allocation3 + $0x121] sm:$0xff] %vm2468_vm3, %v3031_v62  ;;  %3214 = vst.msk [vmem:[#allocation3 + $0x129] sm:$0xff] %vm2468_vm3, %v3032_v20  ;;  %v3057_v41 = vmax.f32 %v15394_v44, 0.0  ;;  %v3058_v45 = vmax.f32 %v15395_v0, 0.0  ;;  %v15396_v40 = vld [vmem:[#allocation18_spill] sm:$0xff]  ;;  %v3843_v36 = vld [vmem:[#allocation3 + $0x18] sm:$0xff] }
 0x317   :  { %3215 = vst.msk [vmem:[#allocation3 + $0x139] sm:$0xff] %vm2468_vm3, %v3033_v42  ;;  %3216 = vst.msk [vmem:[#allocation3 + $0x141] sm:$0xff] %vm2468_vm3, %v3034_v57  ;;  %v3059_v61 = vmax.f32 %v15396_v40, 0.0  ;;  %v3844_v8 = vld [vmem:[#allocation3 + $0x20] sm:$0xff]  ;;  %v3060_v22 = vmax.f32 %v10723_v39, 0.0  ;;  %v3061_v58 = vmax.f32 %v10727_v52, 0.0 }
 0x318   :  { %3217 = vst.msk [vmem:[#allocation3 + $0x151] sm:$0xff] %vm2468_vm3, %v3035_v15  ;;  %3218 = vst.msk [vmem:[#allocation3 + $0x159] sm:$0xff] %vm2468_vm3, %v3036_v1  ;;  %v3062_v43 = vmax.f32 %v10731_v26, 0.0  ;;  %v3063_v60 = vmax.f32 %v10735_v18, 0.0  ;;  %v4039_v29 = vld [vmem:[#allocation3 + $0x19] sm:$0xff]  ;;  %v4040_v63 = vld [vmem:[#allocation3 + $0x21] sm:$0xff] }
 0x319   :  { %3219 = vst.msk [vmem:[#allocation3 + $0x169] sm:$0xff] %vm2468_vm3, %v3037_v13  ;;  %3220 = vst.msk [vmem:[#allocation3 + $0x171] sm:$0xff] %vm2468_vm3, %v3038_v34  ;;  %v3064_v50 = vmax.f32 %v10739_v23, 0.0  ;;  %v3065_v39 = vmax.f32 %v10743_v31, 0.0  ;;  %v15397_v9 = vld [vmem:[#allocation21_spill] sm:$0xff]  ;;  %v15398_v6 = vld [vmem:[#allocation23_spill] sm:$0xff] }
 0x31a   :  { %3221 = vst.msk [vmem:[#allocation3 + $0x181] sm:$0xff] %vm2468_vm3, %v3039_v4  ;;  %3222 = vst.msk [vmem:[#allocation3 + $0x189] sm:$0xff] %vm2468_vm3, %v3040_v48  ;;  %v3066_v52 = vmax.f32 %v15397_v9, 0.0  ;;  %v3067_v26 = vmax.f32 %v15398_v6, 0.0  ;;  %v4235_v18 = vld [vmem:[#allocation3 + $0x1a] sm:$0xff]  ;;  %v4236_v59 = vld [vmem:[#allocation3 + $0x22] sm:$0xff] }
 0x31b   :  { %3223 = vst.msk [vmem:[#allocation3 + $0x1c9] sm:$0xff] %vm2468_vm3, %v3041_v55  ;;  %3224 = vst.msk [vmem:[#allocation3 + $0x1d1] sm:$0xff] %vm2468_vm3, %v3042_v47  ;;  %v15399_v24 = vld [vmem:[#allocation20_spill] sm:$0xff]  ;;  %v15400_v32 = vld [vmem:[#allocation22_spill] sm:$0xff]  ;;  %v3072_v2 = vmax.f32 %v10767_v21, 0.0 }
 0x31c   :  { %3225 = vst.msk [vmem:[#allocation3 + $0x1e1] sm:$0xff] %vm2468_vm3, %v3043_v7  ;;  %3226 = vst.msk [vmem:[#allocation3 + $0x1e9] sm:$0xff] %vm2468_vm3, %v3044_v12  ;;  %v3068_v46 = vmax.f32 %v15399_v24, 0.0  ;;  %v3069_v23 = vmax.f32 %v15400_v32, 0.0  ;;  %v15401_v19 = vld [vmem:[#allocation25_spill] sm:$0xff]  ;;  %v10887_v17 = vld [vmem:[#allocation3 + $0x30] sm:$0xff] }
 0x31d   :  { %3227 = vst.msk [vmem:[#allocation3 + $0x1f9] sm:$0xff] %vm2468_vm3, %v3045_v37  ;;  %3228 = vst.msk [vmem:[#allocation3 + $0x201] sm:$0xff] %vm2468_vm3, %v3046_v3  ;;  %v3071_v31 = vmax.f32 %v15401_v19, 0.0  ;;  %v10889_v49 = vld [vmem:[#allocation3 + $0x38] sm:$0xff]  ;;  %v15402_v21 = vld [vmem:[#allocation10_spill] sm:$0xff] }
 0x31e   :  { %3229 = vst.msk [vmem:[#allocation3 + $0x211] sm:$0xff] %vm2468_vm3, %v3047_v56  ;;  %3230 = vst.msk [vmem:[#allocation3 + $0x219] sm:$0xff] %vm2468_vm3, %v3048_v10  ;;  %v3911_v16 = vmul.f32 %v15402_v21, %v3843_v36  ;;  %v3912_v30 = vmul.f32 %v15402_v21, %v3844_v8  ;;  %v10897_v54 = vld [vmem:[#allocation3 + $0x31] sm:$0xff]  ;;  %v10899_v33 = vld [vmem:[#allocation3 + $0x39] sm:$0xff] }
 0x31f   :  { %3231 = vst.msk [vmem:[#allocation3 + $0x229] sm:$0xff] %vm2468_vm3, %v3049_v5  ;;  %3232 = vst.msk [vmem:[#allocation3 + $0x231] sm:$0xff] %vm2468_vm3, %v3050_v51  ;;  %v15403_v62 = vld [vmem:[#allocation38_spill] sm:$0xff]  ;;  %v15404_v57 = vld [vmem:[#allocation39_spill] sm:$0xff] }
 0x320   :  { %3233 = vst.msk [vmem:[#allocation3 + $0x241] sm:$0xff] %vm2468_vm3, %v3051_v53  ;;  %3234 = vst.msk [vmem:[#allocation3 + $0x249] sm:$0xff] %vm2468_vm3, %v3052_v27  ;;  %v4107_v20 = vmul.f32 %v15403_v62, %v4039_v29  ;;  %v4108_v42 = vmul.f32 %v15403_v62, %v4040_v63  ;;  %v4303_v15 = vmul.f32 %v15404_v57, %v4235_v18  ;;  %v10912_v13 = vld [vmem:[%s15071_s5 + $0x8] ss:$0 sm:$0xff]  ;;  %v15405_v34 = vld [vmem:[#allocation40_spill] sm:$0xff] }
 0x321   :  { %3235 = vst.msk [vmem:[#allocation3 + $0x259] sm:$0xff] %vm2468_vm3, %v3053_v35  ;;  %3236 = vst.msk [vmem:[#allocation3 + $0x261] sm:$0xff] %vm2468_vm3, %v3054_v14  ;;  %v4304_v1 = vmul.f32 %v15404_v57, %v4236_v59  ;;  %v3975_v4 = vadd.f32 %v3911_v16, %v15405_v34  ;;  %v15406_v48 = vld [vmem:[#allocation41_spill] sm:$0xff]  ;;  %v15407_v47 = vld [vmem:[#allocation42_spill] sm:$0xff] }
 0x322   :  { %3237 = vst.msk [vmem:[#allocation3 + $0x271] sm:$0xff] %vm2468_vm3, %v3055_v11  ;;  %3238 = vst.msk [vmem:[#allocation3 + $0x279] sm:$0xff] %vm2468_vm3, %v3056_v25  ;;  %v3976_v55 = vadd.f32 %v3912_v30, %v15406_v48  ;;  %v4500_v7 = vmul.f32 %v15407_v47, %v10887_v17  ;;  %v4501_v12 = vmul.f32 %v15407_v47, %v10889_v49  ;;  %v4824_v37 = vld [vmem:[#allocation3 + $0x32] sm:$0xff]  ;;  %v4825_v3 = vld [vmem:[#allocation3 + $0x3a] sm:$0xff] }
 0x323   :  { %3239 = vst.msk [vmem:[#allocation3 + $0x289] sm:$0xff] %vm2468_vm3, %v3057_v41  ;;  %3240 = vst.msk [vmem:[#allocation3 + $0x291] sm:$0xff] %vm2468_vm3, %v3058_v45  ;;  %v15408_v56 = vld [vmem:[#allocation43_spill] sm:$0xff]  ;;  %v4171_v35 = vadd.f32 %v4107_v20, %v3975_v4  ;;  %v15410_v28 = vld [vmem:[#allocation24_spill] sm:$0xff]  ;;  %v4892_v25 = vmul.f32 %v10912_v13, %v4824_v37  ;;  %v4893_v44 = vmul.f32 %v10912_v13, %v4825_v3 }
 0x324   :  { %3241 = vst.msk [vmem:[#allocation3 + $0x2a1] sm:$0xff] %vm2468_vm3, %v3059_v61  ;;  %3242 = vst.msk [vmem:[#allocation3 + $0x2a9] sm:$0xff] %vm2468_vm3, %v3060_v22  ;;  %v4696_v10 = vmul.f32 %v15408_v56, %v10897_v54  ;;  %v4697_v5 = vmul.f32 %v15408_v56, %v10899_v33  ;;  %v15409_v51 = vld [vmem:[#allocation27_spill] sm:$0xff]  ;;  %v4172_v14 = vadd.f32 %v4108_v42, %v3976_v55  ;;  %v15411_v41 = vld [vmem:[#allocation26_spill] sm:$0xff] }
 0x325   :  { %3243 = vst.msk [vmem:[#allocation3 + $0x2b9] sm:$0xff] %vm2468_vm3, %v3061_v58  ;;  %3244 = vst.msk [vmem:[#allocation3 + $0x2c1] sm:$0xff] %vm2468_vm3, %v3062_v43  ;;  %v3325_v53 = vmul.f32 %v3843_v36, %v15409_v51  ;;  %v3326_v27 = vmul.f32 %v3844_v8, %v15409_v51  ;;  %v3521_v11 = vmul.f32 %v4039_v29, %v15410_v28  ;;  %v10932_v58 = vld [vmem:[#allocation3 + $0x48] sm:$0xff]  ;;  %v10934_v8 = vld [vmem:[#allocation3 + $0x50] sm:$0xff] }
 0x326   :  { %3245 = vst.msk [vmem:[#allocation3 + $0x2d1] sm:$0xff] %vm2468_vm3, %v3063_v60  ;;  %3246 = vst.msk [vmem:[#allocation3 + $0x2d9] sm:$0xff] %vm2468_vm3, %v3064_v50  ;;  %v3522_v38 = vmul.f32 %v4040_v63, %v15410_v28  ;;  %v3717_v0 = vmul.f32 %v4235_v18, %v15411_v41  ;;  %v3718_v45 = vmul.f32 %v4236_v59, %v15411_v41  ;;  %v4630_v6 = vld [vmem:[#allocation3 + $0x49] sm:$0xff]  ;;  %v4827_v16 = vld [vmem:[#allocation3 + $0x52] sm:$0xff] }
 0x327   :  { %3247 = vst.msk [vmem:[#allocation3 + $0x2e9] sm:$0xff] %vm2468_vm3, %v3065_v39  ;;  %3248 = vst.msk [vmem:[#allocation3 + $0x2f1] sm:$0xff] %vm2468_vm3, %v3066_v52  ;;  %v4367_v40 = vadd.f32 %v4303_v15, %v4171_v35  ;;  %v4368_v61 = vadd.f32 %v4304_v1, %v4172_v14  ;;  %v3585_v22 = vadd.f32 %v3521_v11, %v3325_v53 }
 0x328   :  { %3249 = vst.msk [vmem:[#allocation3 + $0x301] sm:$0xff] %vm2468_vm3, %v3067_v26  ;;  %3250 = vst.msk [vmem:[#allocation3 + $0x309] sm:$0xff] %vm2468_vm3, %v3068_v46  ;;  %v3586_v36 = vadd.f32 %v3522_v38, %v3326_v27  ;;  %v3913_v43 = vmul.f32 %v10887_v17, %v15402_v21  ;;  %v3914_v60 = vmul.f32 %v10889_v49, %v15402_v21  ;;  %v10944_v26 = vld [vmem:[#allocation3 + $0x51] sm:$0xff]  ;;  %v10969_v38 = vld [vmem:[#allocation3 + $0x60] sm:$0xff] }
 0x329   :  { %3251 = vst.msk [vmem:[#allocation3 + $0x319] sm:$0xff] %vm2468_vm3, %v3069_v23  ;;  %3253 = vst.msk [vmem:[#allocation3 + $0x331] sm:$0xff] %vm2468_vm3, %v3071_v31  ;;  %v4109_v29 = vmul.f32 %v10897_v54, %v15403_v62  ;;  %v4110_v63 = vmul.f32 %v10899_v33, %v15403_v62  ;;  %v4564_v50 = vadd.f32 %v4500_v7, %v4367_v40 }
 0x32a   :  { %3254 = vst.msk [vmem:[#allocation3 + $0x339] sm:$0xff] %vm2468_vm3, %v3072_v2  ;;  %v4565_v39 = vadd.f32 %v4501_v12, %v4368_v61  ;;  %v3781_v9 = vadd.f32 %v3717_v0, %v3585_v22  ;;  %v3782_v52 = vadd.f32 %v3718_v45, %v3586_v36  ;;  %v4305_v18 = vmul.f32 %v4824_v37, %v15404_v57  ;;  %v4826_v2 = vld [vmem:[#allocation3 + $0x4a] sm:$0xff] }
 0x32b   :  { %v4306_v59 = vmul.f32 %v4825_v3, %v15404_v57  ;;  %v4502_v24 = vmul.f32 %v15407_v47, %v10932_v58  ;;  %v4503_v46 = vmul.f32 %v15407_v47, %v10934_v8  ;;  %v4760_v32 = vadd.f32 %v4696_v10, %v4564_v50  ;;  %v10975_v0 = vld [vmem:[#allocation3 + $0x68] sm:$0xff] }
 0x32c   :  { %v4761_v23 = vadd.f32 %v4697_v5, %v4565_v39  ;;  %v3977_v19 = vadd.f32 %v3913_v43, %v3781_v9  ;;  %v3978_v31 = vadd.f32 %v3914_v60, %v3782_v52  ;;  %v4698_v30 = vmul.f32 %v15408_v56, %v4630_v6  ;;  %v4633_v22 = vld [vmem:[#allocation3 + $0x69] sm:$0xff] }
 0x32d   :  { %v4699_v20 = vmul.f32 %v15408_v56, %v10944_v26  ;;  %v3327_v42 = vmul.f32 %v10887_v17, %v15409_v51  ;;  %v3328_v15 = vmul.f32 %v10889_v49, %v15409_v51  ;;  %v4956_v1 = vadd.f32 %v4892_v25, %v4760_v32  ;;  %v4828_v52 = vld [vmem:[#allocation3 + $0x62] sm:$0xff] }
 0x32e   :  { %v4957_v34 = vadd.f32 %v4893_v44, %v4761_v23  ;;  %v4173_v4 = vadd.f32 %v4109_v29, %v3977_v19  ;;  %v4174_v48 = vadd.f32 %v4110_v63, %v3978_v31  ;;  %v4894_v55 = vmul.f32 %v10912_v13, %v4826_v2 }
 0x32f   :  { %v4895_v7 = vmul.f32 %v10912_v13, %v4827_v16  ;;  %v3523_v12 = vmul.f32 %v10897_v54, %v15410_v28  ;;  %v3524_v10 = vmul.f32 %v10899_v33, %v15410_v28  ;;  %v3719_v27 = vmul.f32 %v4824_v37, %v15411_v41  ;;  %v10977_v37 = vld [vmem:[#allocation3 + $0x61] sm:$0xff] }
 0x330   :  { %v5020_v5 = vpack.c.bf16 %v4957_v34, %v4956_v1  ;;  %v4369_v53 = vadd.f32 %v4305_v18, %v4173_v4  ;;  %v4370_v17 = vadd.f32 %v4306_v59, %v4174_v48  ;;  %v3720_v14 = vmul.f32 %v4825_v3, %v15411_v41  ;;  %v4829_v18 = vld [vmem:[#allocation3 + $0x6a] sm:$0xff] }
 0x331   :  { %v3587_v49 = vadd.f32 %v3523_v12, %v3327_v42  ;;  %v3588_v35 = vadd.f32 %v3524_v10, %v3328_v15  ;;  %v3915_v11 = vmul.f32 %v10932_v58, %v15402_v21  ;;  %v3916_v33 = vmul.f32 %v10934_v8, %v15402_v21  ;;  %v11006_v12 = vld [vmem:[#allocation3 + $0x78] sm:$0xff] }
 0x332   :  { %7643 = vmatprep.mubr.msk.bf16.mxu1 %vm2468_vm3, %v5020_v5  ;;  %v4566_v54 = vadd.f32 %v4502_v24, %v4369_v53  ;;  %v4567_v25 = vadd.f32 %v4503_v46, %v4370_v17  ;;  %v4111_v44 = vmul.f32 %v4630_v6, %v15403_v62  ;;  %v4112_v40 = vmul.f32 %v10944_v26, %v15403_v62  ;;  %v11012_v17 = vld [vmem:[#allocation3 + $0x79] sm:$0xff] }
 0x333   :  { %v3783_v45 = vadd.f32 %v3719_v27, %v3587_v49  ;;  %v3784_v3 = vadd.f32 %v3720_v14, %v3588_v35  ;;  %v4307_v61 = vmul.f32 %v4826_v2, %v15404_v57  ;;  %v4308_v60 = vmul.f32 %v4827_v16, %v15404_v57  ;;  %v11014_v27 = vld [vmem:[#allocation3 + $0x81] sm:$0xff] }
 0x334   :  { %v4762_v36 = vadd.f32 %v4698_v30, %v4566_v54  ;;  %v4763_v43 = vadd.f32 %v4699_v20, %v4567_v25  ;;  %v4504_v29 = vmul.f32 %v15407_v47, %v10969_v38  ;;  %v4505_v39 = vmul.f32 %v15407_v47, %v10975_v0 }
 0x335   :  { %v3979_v63 = vadd.f32 %v3915_v11, %v3783_v45  ;;  %v3980_v50 = vadd.f32 %v3916_v33, %v3784_v3  ;;  %v4700_v9 = vmul.f32 %v15408_v56, %v10977_v37  ;;  %v4701_v46 = vmul.f32 %v15408_v56, %v4633_v22 }
 0x336   :  { %v4958_v59 = vadd.f32 %v4894_v55, %v4762_v36  ;;  %v4959_v24 = vadd.f32 %v4895_v7, %v4763_v43  ;;  %v3329_v32 = vmul.f32 %v10932_v58, %v15409_v51  ;;  %v3330_v31 = vmul.f32 %v10934_v8, %v15409_v51 }
 0x337   :  { %v4175_v23 = vadd.f32 %v4111_v44, %v3979_v63  ;;  %v4176_v19 = vadd.f32 %v4112_v40, %v3980_v50  ;;  %v3525_v30 = vmul.f32 %v4630_v6, %v15410_v28  ;;  %v4896_v42 = vmul.f32 %v10912_v13, %v4828_v52  ;;  %v4831_v50 = vld [vmem:[#allocation3 + $0x82] sm:$0xff] }
 0x338   :  { %v5021_v20 = vpack.c.bf16 %v4959_v24, %v4958_v59  ;;  %v4897_v15 = vmul.f32 %v10912_v13, %v4829_v18  ;;  %v3526_v1 = vmul.f32 %v10944_v26, %v15410_v28  ;;  %v3721_v58 = vmul.f32 %v4826_v2, %v15411_v41  ;;  %v11010_v2 = vld [vmem:[#allocation3 + $0x80] sm:$0xff] }
 0x339   :  { %v4371_v34 = vadd.f32 %v4307_v61, %v4175_v23  ;;  %v4372_v4 = vadd.f32 %v4308_v60, %v4176_v19  ;;  %v3589_v48 = vadd.f32 %v3525_v30, %v3329_v32  ;;  %v3722_v8 = vmul.f32 %v4827_v16, %v15411_v41  ;;  %v4830_v61 = vld [vmem:[#allocation3 + $0x7a] sm:$0xff] }
 0x33a   :  { %7644 = vmatmul.mubr.msk.bf16.vlgmr.msra.gmra.mxu1 %vm2468_vm3, %v5021_v20  ;;  %v3590_v55 = vadd.f32 %v3526_v1, %v3330_v31  ;;  %v3917_v6 = vmul.f32 %v10969_v38, %v15402_v21  ;;  %v3918_v7 = vmul.f32 %v10975_v0, %v15402_v21  ;;  %v4113_v53 = vmul.f32 %v10977_v37, %v15403_v62 }
 0x33b   :  { %v4568_v10 = vadd.f32 %v4504_v29, %v4371_v34  ;;  %v4569_v26 = vadd.f32 %v4505_v39, %v4372_v4  ;;  %v3785_v5 = vadd.f32 %v3721_v58, %v3589_v48  ;;  %v4114_v49 = vmul.f32 %v4633_v22, %v15403_v62  ;;  %v11049_v4 = vld [vmem:[#allocation3 + $0x91] sm:$0xff]  ;;  %v11051_v48 = vld [vmem:[#allocation3 + $0x99] sm:$0xff] }
 0x33c   :  { %v3786_v16 = vadd.f32 %v3722_v8, %v3590_v55  ;;  %v4309_v35 = vmul.f32 %v4828_v52, %v15404_v57  ;;  %v4310_v14 = vmul.f32 %v4829_v18, %v15404_v57  ;;  %v4506_v33 = vmul.f32 %v15407_v47, %v11006_v12 }
 0x33d   :  { %v4764_v11 = vadd.f32 %v4700_v9, %v4568_v10  ;;  %v4765_v54 = vadd.f32 %v4701_v46, %v4569_v26  ;;  %v3981_v25 = vadd.f32 %v3917_v6, %v3785_v5  ;;  %v4507_v45 = vmul.f32 %v15407_v47, %v11010_v2 }
 0x33e   :  { %v3982_v44 = vadd.f32 %v3918_v7, %v3786_v16  ;;  %v4702_v3 = vmul.f32 %v15408_v56, %v11012_v17  ;;  %v4703_v40 = vmul.f32 %v15408_v56, %v11014_v27  ;;  %v3331_v29 = vmul.f32 %v10969_v38, %v15409_v51 }
 0x33f   :  { %v4960_v36 = vadd.f32 %v4896_v42, %v4764_v11  ;;  %v4961_v43 = vadd.f32 %v4897_v15, %v4765_v54  ;;  %v4177_v60 = vadd.f32 %v4113_v53, %v3981_v25  ;;  %v3332_v39 = vmul.f32 %v10975_v0, %v15409_v51  ;;  %v11043_v42 = vld [vmem:[#allocation3 + $0x90] sm:$0xff]  ;;  %v4833_v11 = vld [vmem:[#allocation3 + $0x9a] sm:$0xff] }
 0x340   :  { %v4178_v63 = vadd.f32 %v4114_v49, %v3982_v44  ;;  %v3527_v9 = vmul.f32 %v10977_v37, %v15410_v28  ;;  %v3528_v59 = vmul.f32 %v4633_v22, %v15410_v28  ;;  %v4898_v32 = vmul.f32 %v10912_v13, %v4830_v61  ;;  %v4832_v53 = vld [vmem:[#allocation3 + $0x92] sm:$0xff] }
 0x341   :  { %v5022_v24 = vpack.c.bf16 %v4961_v43, %v4960_v36  ;;  %v4373_v46 = vadd.f32 %v4309_v35, %v4177_v60  ;;  %v3723_v23 = vmul.f32 %v4828_v52, %v15411_v41  ;;  %v3724_v38 = vmul.f32 %v4829_v18, %v15411_v41  ;;  %v11047_v18 = vld [vmem:[#allocation3 + $0x98] sm:$0xff] }
 0x342   :  { %v4374_v19 = vadd.f32 %v4310_v14, %v4178_v63  ;;  %v3591_v31 = vadd.f32 %v3527_v9, %v3331_v29  ;;  %v3592_v30 = vadd.f32 %v3528_v59, %v3332_v39  ;;  %v4899_v0 = vmul.f32 %v10912_v13, %v4831_v50 }
 0x343   :  { %7647 = vmatprep.mubr.msk.bf16.mxu1 %vm2468_vm3, %v5022_v24  ;;  %v4570_v20 = vadd.f32 %v4506_v33, %v4373_v46  ;;  %v3919_v37 = vmul.f32 %v11006_v12, %v15402_v21  ;;  %v3920_v22 = vmul.f32 %v11010_v2, %v15402_v21  ;;  %v4115_v34 = vmul.f32 %v11012_v17, %v15403_v62  ;;  %v11082_v46 = vld [vmem:[#allocation3 + $0xa8] sm:$0xff] }
 0x344   :  { %v4571_v15 = vadd.f32 %v4507_v45, %v4374_v19  ;;  %v3787_v52 = vadd.f32 %v3723_v23, %v3591_v31  ;;  %v3788_v1 = vadd.f32 %v3724_v38, %v3592_v30  ;;  %v4116_v55 = vmul.f32 %v11014_v27, %v15403_v62  ;;  %v4638_v31 = vld [vmem:[#allocation3 + $0xa9] sm:$0xff]  ;;  %v11090_v30 = vld [vmem:[#allocation3 + $0xb1] sm:$0xff] }
 0x345   :  { %v4766_v58 = vadd.f32 %v4702_v3, %v4570_v20  ;;  %v4311_v8 = vmul.f32 %v4830_v61, %v15404_v57  ;;  %v4312_v6 = vmul.f32 %v4831_v50, %v15404_v57  ;;  %v4508_v5 = vmul.f32 %v15407_v47, %v11043_v42 }
 0x346   :  { %v4767_v7 = vadd.f32 %v4703_v40, %v4571_v15  ;;  %v3983_v10 = vadd.f32 %v3919_v37, %v3787_v52  ;;  %v3984_v26 = vadd.f32 %v3920_v22, %v3788_v1  ;;  %v4509_v49 = vmul.f32 %v15407_v47, %v11047_v18 }
 0x347   :  { %v4962_v16 = vadd.f32 %v4898_v32, %v4766_v58  ;;  %v4704_v35 = vmul.f32 %v15408_v56, %v11049_v4  ;;  %v4705_v14 = vmul.f32 %v15408_v56, %v11051_v48  ;;  %v3333_v44 = vmul.f32 %v11006_v12, %v15409_v51  ;;  %v11084_v32 = vld [vmem:[#allocation3 + $0xb0] sm:$0xff] }
 0x348   :  { %v4963_v54 = vadd.f32 %v4899_v0, %v4767_v7  ;;  %v4179_v25 = vadd.f32 %v4115_v34, %v3983_v10  ;;  %v4180_v33 = vadd.f32 %v4116_v55, %v3984_v26  ;;  %v4900_v45 = vmul.f32 %v10912_v13, %v4832_v53  ;;  %v4834_v34 = vld [vmem:[#allocation3 + $0xaa] sm:$0xff]  ;;  %v4835_v7 = vld [vmem:[#allocation3 + $0xb2] sm:$0xff] }
 0x349   :  { %v3334_v3 = vmul.f32 %v11010_v2, %v15409_v51  ;;  %v3529_v40 = vmul.f32 %v11012_v17, %v15410_v28  ;;  %v3530_v36 = vmul.f32 %v11014_v27, %v15410_v28  ;;  %v4901_v63 = vmul.f32 %v10912_v13, %v4833_v11 }
 0x34a   :  { %v5023_v43 = vpack.c.bf16 %v4963_v54, %v4962_v16  ;;  %v4375_v60 = vadd.f32 %v4311_v8, %v4179_v25  ;;  %v4376_v29 = vadd.f32 %v4312_v6, %v4180_v33  ;;  %v3725_v12 = vmul.f32 %v4830_v61, %v15411_v41 }
 0x34b   :  { %v3593_v39 = vadd.f32 %v3529_v40, %v3333_v44  ;;  %v3594_v9 = vadd.f32 %v3530_v36, %v3334_v3  ;;  %v3726_v59 = vmul.f32 %v4831_v50, %v15411_v41  ;;  %v3921_v17 = vmul.f32 %v11043_v42, %v15402_v21  ;;  %v11116_v36 = vld [vmem:[#allocation3 + $0xc0] sm:$0xff] }
 0x34c   :  { %7648 = vmatmul.mubr.msk.bf16.gmra.mxu1 %vm2468_vm3, %v5023_v43  ;;  %v4572_v2 = vadd.f32 %v4508_v5, %v4375_v60  ;;  %v4573_v24 = vadd.f32 %v4509_v49, %v4376_v29  ;;  %v3922_v27 = vmul.f32 %v11047_v18, %v15402_v21  ;;  %v4117_v61 = vmul.f32 %v11049_v4, %v15403_v62  ;;  %v11121_v29 = vld [vmem:[#allocation3 + $0xc8] sm:$0xff] }
 0x34d   :  { %v3789_v23 = vadd.f32 %v3725_v12, %v3593_v39  ;;  %v3790_v19 = vadd.f32 %v3726_v59, %v3594_v9  ;;  %v4118_v50 = vmul.f32 %v11051_v48, %v15403_v62  ;;  %v4313_v0 = vmul.f32 %v4832_v53, %v15404_v57  ;;  %v4641_v12 = vld [vmem:[#allocation3 + $0xc9] sm:$0xff] }
 0x34e   :  { %v4768_v38 = vadd.f32 %v4704_v35, %v4572_v2  ;;  %v4769_v20 = vadd.f32 %v4705_v14, %v4573_v24  ;;  %v4314_v37 = vmul.f32 %v4833_v11, %v15404_v57  ;;  %v4510_v52 = vmul.f32 %v15407_v47, %v11082_v46 }
 0x34f   :  { %v3985_v22 = vadd.f32 %v3921_v17, %v3789_v23  ;;  %v3986_v15 = vadd.f32 %v3922_v27, %v3790_v19  ;;  %v4511_v1 = vmul.f32 %v15407_v47, %v11084_v32  ;;  %v4706_v8 = vmul.f32 %v15408_v56, %v4638_v31 }
 0x350   :  { %v4964_v58 = vadd.f32 %v4900_v45, %v4768_v38  ;;  %v4965_v55 = vadd.f32 %v4901_v63, %v4769_v20  ;;  %v4707_v6 = vmul.f32 %v15408_v56, %v11090_v30  ;;  %v3335_v5 = vmul.f32 %v11043_v42, %v15409_v51  ;;  %v4837_v38 = vld [vmem:[#allocation3 + $0xca] sm:$0xff] }
 0x351   :  { %v4181_v10 = vadd.f32 %v4117_v61, %v3985_v22  ;;  %v4182_v26 = vadd.f32 %v4118_v50, %v3986_v15  ;;  %v3336_v16 = vmul.f32 %v11047_v18, %v15409_v51  ;;  %v4902_v35 = vmul.f32 %v10912_v13, %v4834_v34  ;;  %v4836_v50 = vld [vmem:[#allocation3 + $0xc2] sm:$0xff] }
 0x352   :  { %v5024_v49 = vpack.c.bf16 %v4965_v55, %v4964_v58  ;;  %v3531_v14 = vmul.f32 %v11049_v4, %v15410_v28  ;;  %v3532_v54 = vmul.f32 %v11051_v48, %v15410_v28  ;;  %v4903_v44 = vmul.f32 %v10912_v13, %v4835_v7 }
 0x353   :  { %v4377_v25 = vadd.f32 %v4313_v0, %v4181_v10  ;;  %v4378_v33 = vadd.f32 %v4314_v37, %v4182_v26  ;;  %v3727_v45 = vmul.f32 %v4832_v53, %v15411_v41  ;;  %v3728_v18 = vmul.f32 %v4833_v11, %v15411_v41  ;;  %v11123_v53 = vld [vmem:[#allocation3 + $0xc1] sm:$0xff] }
 0x354   :  { %7651 = vmatprep.mubr.msk.bf16.mxu1 %vm2468_vm3, %v5024_v49  ;;  %v3595_v42 = vadd.f32 %v3531_v14, %v3335_v5  ;;  %v3596_v3 = vadd.f32 %v3532_v54, %v3336_v16  ;;  %v3923_v40 = vmul.f32 %v11082_v46, %v15402_v21  ;;  %v3924_v48 = vmul.f32 %v11084_v32, %v15402_v21  ;;  %v11152_v14 = vld [vmem:[#allocation3 + $0xd8] sm:$0xff] }
 0x355   :  { %v4574_v4 = vadd.f32 %v4510_v52, %v4377_v25  ;;  %v4575_v43 = vadd.f32 %v4511_v1, %v4378_v33  ;;  %v4119_v60 = vmul.f32 %v4638_v31, %v15403_v62  ;;  %v4120_v11 = vmul.f32 %v11090_v30, %v15403_v62 }
 0x356   :  { %v3791_v63 = vadd.f32 %v3727_v45, %v3595_v42  ;;  %v3792_v39 = vadd.f32 %v3728_v18, %v3596_v3  ;;  %v4315_v9 = vmul.f32 %v4834_v34, %v15404_v57  ;;  %v4316_v24 = vmul.f32 %v4835_v7, %v15404_v57  ;;  %v11160_v45 = vld [vmem:[#allocation3 + $0xe1] sm:$0xff] }
 0x357   :  { %v4770_v59 = vadd.f32 %v4706_v8, %v4574_v4  ;;  %v4771_v2 = vadd.f32 %v4707_v6, %v4575_v43  ;;  %v4512_v17 = vmul.f32 %v15407_v47, %v11116_v36  ;;  %v4513_v19 = vmul.f32 %v15407_v47, %v11121_v29 }
 0x358   :  { %v3987_v27 = vadd.f32 %v3923_v40, %v3791_v63  ;;  %v3988_v23 = vadd.f32 %v3924_v48, %v3792_v39  ;;  %v4708_v61 = vmul.f32 %v15408_v56, %v11123_v53  ;;  %v4709_v37 = vmul.f32 %v15408_v56, %v4641_v12 }
 0x359   :  { %v4966_v20 = vadd.f32 %v4902_v35, %v4770_v59  ;;  %v4967_v0 = vadd.f32 %v4903_v44, %v4771_v2  ;;  %v3337_v22 = vmul.f32 %v11082_v46, %v15409_v51  ;;  %v3338_v1 = vmul.f32 %v11084_v32, %v15409_v51  ;;  %v11158_v44 = vld [vmem:[#allocation3 + $0xd9] sm:$0xff] }
 0x35a   :  { %v4183_v15 = vadd.f32 %v4119_v60, %v3987_v27  ;;  %v4184_v52 = vadd.f32 %v4120_v11, %v3988_v23  ;;  %v3533_v58 = vmul.f32 %v4638_v31, %v15410_v28  ;;  %v4904_v8 = vmul.f32 %v10912_v13, %v4836_v50  ;;  %v4839_v23 = vld [vmem:[#allocation3 + $0xe2] sm:$0xff] }
 0x35b   :  { %v5025_v55 = vpack.c.bf16 %v4967_v0, %v4966_v20  ;;  %v4905_v6 = vmul.f32 %v10912_v13, %v4837_v38  ;;  %v3534_v10 = vmul.f32 %v11090_v30, %v15410_v28  ;;  %v3729_v46 = vmul.f32 %v4834_v34, %v15411_v41  ;;  %v11156_v34 = vld [vmem:[#allocation3 + $0xe0] sm:$0xff] }
 0x35c   :  { %v4379_v26 = vadd.f32 %v4315_v9, %v4183_v15  ;;  %v4380_v5 = vadd.f32 %v4316_v24, %v4184_v52  ;;  %v3597_v16 = vadd.f32 %v3533_v58, %v3337_v22  ;;  %v3730_v32 = vmul.f32 %v4835_v7, %v15411_v41  ;;  %v4838_v9 = vld [vmem:[#allocation3 + $0xda] sm:$0xff] }
 0x35d   :  { %7652 = vmatmul.mubr.msk.bf16.gmra.mxu1 %vm2468_vm3, %v5025_v55  ;;  %v3598_v49 = vadd.f32 %v3534_v10, %v3338_v1  ;;  %v3925_v31 = vmul.f32 %v11116_v36, %v15402_v21  ;;  %v3926_v35 = vmul.f32 %v11121_v29, %v15402_v21  ;;  %v4121_v33 = vmul.f32 %v11123_v53, %v15403_v62 }
 0x35e   :  { %v4576_v54 = vadd.f32 %v4512_v17, %v4379_v26  ;;  %v4577_v30 = vadd.f32 %v4513_v19, %v4380_v5  ;;  %v3793_v25 = vadd.f32 %v3729_v46, %v3597_v16  ;;  %v4122_v42 = vmul.f32 %v4641_v12, %v15403_v62  ;;  %v11195_v5 = vld [vmem:[#allocation3 + $0xf1] sm:$0xff]  ;;  %v11197_v16 = vld [vmem:[#allocation3 + $0xf9] sm:$0xff] }
 0x35f   :  { %v3794_v7 = vadd.f32 %v3730_v32, %v3598_v49  ;;  %v4317_v3 = vmul.f32 %v4836_v50, %v15404_v57  ;;  %v4318_v18 = vmul.f32 %v4837_v38, %v15404_v57  ;;  %v4514_v48 = vmul.f32 %v15407_v47, %v11152_v14 }
 0x360   :  { %v4772_v40 = vadd.f32 %v4708_v61, %v4576_v54  ;;  %v4773_v4 = vadd.f32 %v4709_v37, %v4577_v30  ;;  %v3989_v43 = vadd.f32 %v3925_v31, %v3793_v25  ;;  %v4515_v63 = vmul.f32 %v15407_v47, %v11156_v34 }
 0x361   :  { %v3990_v60 = vadd.f32 %v3926_v35, %v3794_v7  ;;  %v4710_v39 = vmul.f32 %v15408_v56, %v11158_v44  ;;  %v4711_v11 = vmul.f32 %v15408_v56, %v11160_v45  ;;  %v3339_v17 = vmul.f32 %v11116_v36, %v15409_v51 }
 0x362   :  { %v4968_v59 = vadd.f32 %v4904_v8, %v4772_v40  ;;  %v4969_v2 = vadd.f32 %v4905_v6, %v4773_v4  ;;  %v4185_v24 = vadd.f32 %v4121_v33, %v3989_v43  ;;  %v3340_v19 = vmul.f32 %v11121_v29, %v15409_v51  ;;  %v11189_v8 = vld [vmem:[#allocation3 + $0xf0] sm:$0xff]  ;;  %v4841_v40 = vld [vmem:[#allocation3 + $0xfa] sm:$0xff] }
 0x363   :  { %v4186_v27 = vadd.f32 %v4122_v42, %v3990_v60  ;;  %v3535_v61 = vmul.f32 %v11123_v53, %v15410_v28  ;;  %v3536_v20 = vmul.f32 %v4641_v12, %v15410_v28  ;;  %v4906_v22 = vmul.f32 %v10912_v13, %v4838_v9  ;;  %v4840_v33 = vld [vmem:[#allocation3 + $0xf2] sm:$0xff] }
 0x364   :  { %v5026_v0 = vpack.c.bf16 %v4969_v2, %v4968_v59  ;;  %v4381_v37 = vadd.f32 %v4317_v3, %v4185_v24  ;;  %v3731_v15 = vmul.f32 %v4836_v50, %v15411_v41  ;;  %v3732_v36 = vmul.f32 %v4837_v38, %v15411_v41  ;;  %v11193_v38 = vld [vmem:[#allocation3 + $0xf8] sm:$0xff] }
 0x365   :  { %v4382_v52 = vadd.f32 %v4318_v18, %v4186_v27  ;;  %v3599_v1 = vadd.f32 %v3535_v61, %v3339_v17  ;;  %v3600_v58 = vadd.f32 %v3536_v20, %v3340_v19  ;;  %v4907_v29 = vmul.f32 %v10912_v13, %v4839_v23 }
 0x366   :  { %7655 = vmatprep.mubr.msk.bf16.mxu1 %vm2468_vm3, %v5026_v0  ;;  %v4578_v55 = vadd.f32 %v4514_v48, %v4381_v37  ;;  %v3927_v53 = vmul.f32 %v11152_v14, %v15402_v21  ;;  %v3928_v12 = vmul.f32 %v11156_v34, %v15402_v21  ;;  %v4123_v26 = vmul.f32 %v11158_v44, %v15403_v62  ;;  %v11228_v37 = vld [vmem:[#allocation3 + $0x108] sm:$0xff] }
 0x367   :  { %v4579_v6 = vadd.f32 %v4515_v63, %v4382_v52  ;;  %v3795_v50 = vadd.f32 %v3731_v15, %v3599_v1  ;;  %v3796_v10 = vadd.f32 %v3732_v36, %v3600_v58  ;;  %v4124_v49 = vmul.f32 %v11160_v45, %v15403_v62  ;;  %v4646_v1 = vld [vmem:[#allocation3 + $0x109] sm:$0xff]  ;;  %v11236_v58 = vld [vmem:[#allocation3 + $0x111] sm:$0xff] }
 0x368   :  { %v4774_v46 = vadd.f32 %v4710_v39, %v4578_v55  ;;  %v4319_v32 = vmul.f32 %v4838_v9, %v15404_v57  ;;  %v4320_v31 = vmul.f32 %v4839_v23, %v15404_v57  ;;  %v4516_v25 = vmul.f32 %v15407_v47, %v11189_v8 }
 0x369   :  { %v4775_v35 = vadd.f32 %v4711_v11, %v4579_v6  ;;  %v3991_v54 = vadd.f32 %v3927_v53, %v3795_v50  ;;  %v3992_v30 = vadd.f32 %v3928_v12, %v3796_v10  ;;  %v4517_v42 = vmul.f32 %v15407_v47, %v11193_v38 }
 0x36a   :  { %v4970_v7 = vadd.f32 %v4906_v22, %v4774_v46  ;;  %v4712_v3 = vmul.f32 %v15408_v56, %v11195_v5  ;;  %v4713_v18 = vmul.f32 %v15408_v56, %v11197_v16  ;;  %v3341_v60 = vmul.f32 %v11152_v14, %v15409_v51  ;;  %v11230_v22 = vld [vmem:[#allocation3 + $0x110] sm:$0xff] }
 0x36b   :  { %v4971_v4 = vadd.f32 %v4907_v29, %v4775_v35  ;;  %v4187_v43 = vadd.f32 %v4123_v26, %v3991_v54  ;;  %v4188_v48 = vadd.f32 %v4124_v49, %v3992_v30  ;;  %v4908_v63 = vmul.f32 %v10912_v13, %v4840_v33  ;;  %v4842_v26 = vld [vmem:[#allocation3 + $0x10a] sm:$0xff]  ;;  %v4843_v35 = vld [vmem:[#allocation3 + $0x112] sm:$0xff] }
 0x36c   :  { %v3342_v39 = vmul.f32 %v11156_v34, %v15409_v51  ;;  %v3537_v11 = vmul.f32 %v11158_v44, %v15410_v28  ;;  %v3538_v59 = vmul.f32 %v11160_v45, %v15410_v28  ;;  %v4909_v27 = vmul.f32 %v10912_v13, %v4841_v40 }
 0x36d   :  { %v5027_v2 = vpack.c.bf16 %v4971_v4, %v4970_v7  ;;  %v4383_v24 = vadd.f32 %v4319_v32, %v4187_v43  ;;  %v4384_v17 = vadd.f32 %v4320_v31, %v4188_v48  ;;  %v3733_v14 = vmul.f32 %v4838_v9, %v15411_v41 }
 0x36e   :  { %v3601_v19 = vadd.f32 %v3537_v11, %v3341_v60  ;;  %v3602_v61 = vadd.f32 %v3538_v59, %v3342_v39  ;;  %v3734_v20 = vmul.f32 %v4839_v23, %v15411_v41  ;;  %v3929_v44 = vmul.f32 %v11189_v8, %v15402_v21  ;;  %v11262_v59 = vld [vmem:[#allocation3 + $0x120] sm:$0xff] }
 0x36f   :  { %7656 = vmatmul.mubr.msk.bf16.gmra.mxu1 %vm2468_vm3, %v5027_v2  ;;  %v4580_v34 = vadd.f32 %v4516_v25, %v4383_v24  ;;  %v4581_v0 = vadd.f32 %v4517_v42, %v4384_v17  ;;  %v3930_v45 = vmul.f32 %v11193_v38, %v15402_v21  ;;  %v4125_v9 = vmul.f32 %v11195_v5, %v15403_v62  ;;  %v11267_v17 = vld [vmem:[#allocation3 + $0x128] sm:$0xff] }
 0x370   :  { %v3797_v15 = vadd.f32 %v3733_v14, %v3601_v19  ;;  %v3798_v52 = vadd.f32 %v3734_v20, %v3602_v61  ;;  %v4126_v23 = vmul.f32 %v11197_v16, %v15403_v62  ;;  %v4321_v29 = vmul.f32 %v4840_v33, %v15404_v57  ;;  %v4649_v14 = vld [vmem:[#allocation3 + $0x129] sm:$0xff] }
 0x371   :  { %v4776_v36 = vadd.f32 %v4712_v3, %v4580_v34  ;;  %v4777_v55 = vadd.f32 %v4713_v18, %v4581_v0  ;;  %v4322_v53 = vmul.f32 %v4841_v40, %v15404_v57  ;;  %v4518_v50 = vmul.f32 %v15407_v47, %v11228_v37 }
 0x372   :  { %v3993_v12 = vadd.f32 %v3929_v44, %v3797_v15  ;;  %v3994_v6 = vadd.f32 %v3930_v45, %v3798_v52  ;;  %v4519_v10 = vmul.f32 %v15407_v47, %v11230_v22  ;;  %v4714_v32 = vmul.f32 %v15408_v56, %v4646_v1 }
 0x373   :  { %v4972_v46 = vadd.f32 %v4908_v63, %v4776_v36  ;;  %v4973_v49 = vadd.f32 %v4909_v27, %v4777_v55  ;;  %v4715_v31 = vmul.f32 %v15408_v56, %v11236_v58  ;;  %v3343_v25 = vmul.f32 %v11189_v8, %v15409_v51  ;;  %v4845_v36 = vld [vmem:[#allocation3 + $0x12a] sm:$0xff] }
 0x374   :  { %v4189_v54 = vadd.f32 %v4125_v9, %v3993_v12  ;;  %v4190_v30 = vadd.f32 %v4126_v23, %v3994_v6  ;;  %v3344_v7 = vmul.f32 %v11193_v38, %v15409_v51  ;;  %v4910_v3 = vmul.f32 %v10912_v13, %v4842_v26  ;;  %v4844_v23 = vld [vmem:[#allocation3 + $0x122] sm:$0xff] }
 0x375   :  { %v5028_v42 = vpack.c.bf16 %v4973_v49, %v4972_v46  ;;  %v3539_v18 = vmul.f32 %v11195_v5, %v15410_v28  ;;  %v3540_v4 = vmul.f32 %v11197_v16, %v15410_v28  ;;  %v4911_v60 = vmul.f32 %v10912_v13, %v4843_v35 }
 0x376   :  { %v4385_v43 = vadd.f32 %v4321_v29, %v4189_v54  ;;  %v4386_v48 = vadd.f32 %v4322_v53, %v4190_v30  ;;  %v3735_v63 = vmul.f32 %v4840_v33, %v15411_v41  ;;  %v3736_v38 = vmul.f32 %v4841_v40, %v15411_v41  ;;  %v11269_v33 = vld [vmem:[#allocation3 + $0x121] sm:$0xff] }
 0x377   :  { %7659 = vmatprep.mubr.msk.bf16.mxu1 %vm2468_vm3, %v5028_v42  ;;  %v3603_v8 = vadd.f32 %v3539_v18, %v3343_v25  ;;  %v3604_v39 = vadd.f32 %v3540_v4, %v3344_v7  ;;  %v3931_v11 = vmul.f32 %v11228_v37, %v15402_v21  ;;  %v3932_v16 = vmul.f32 %v11230_v22, %v15402_v21  ;;  %v11298_v18 = vld [vmem:[#allocation3 + $0x138] sm:$0xff] }
 0x378   :  { %v4582_v5 = vadd.f32 %v4518_v50, %v4385_v43  ;;  %v4583_v2 = vadd.f32 %v4519_v10, %v4386_v48  ;;  %v4127_v24 = vmul.f32 %v4646_v1, %v15403_v62  ;;  %v4128_v40 = vmul.f32 %v11236_v58, %v15403_v62 }
 0x379   :  { %v3799_v27 = vadd.f32 %v3735_v63, %v3603_v8  ;;  %v3800_v19 = vadd.f32 %v3736_v38, %v3604_v39  ;;  %v4323_v61 = vmul.f32 %v4842_v26, %v15404_v57  ;;  %v4324_v0 = vmul.f32 %v4843_v35, %v15404_v57  ;;  %v11306_v63 = vld [vmem:[#allocation3 + $0x141] sm:$0xff] }
 0x37a   :  { %v4778_v20 = vadd.f32 %v4714_v32, %v4582_v5  ;;  %v4779_v34 = vadd.f32 %v4715_v31, %v4583_v2  ;;  %v4520_v44 = vmul.f32 %v15407_v47, %v11262_v59  ;;  %v4521_v52 = vmul.f32 %v15407_v47, %v11267_v17 }
 0x37b   :  { %v3995_v45 = vadd.f32 %v3931_v11, %v3799_v27  ;;  %v3996_v15 = vadd.f32 %v3932_v16, %v3800_v19  ;;  %v4716_v9 = vmul.f32 %v15408_v56, %v11269_v33  ;;  %v4717_v53 = vmul.f32 %v15408_v56, %v4649_v14 }
 0x37c   :  { %v4974_v55 = vadd.f32 %v4910_v3, %v4778_v20  ;;  %v4975_v29 = vadd.f32 %v4911_v60, %v4779_v34  ;;  %v3345_v12 = vmul.f32 %v11228_v37, %v15409_v51  ;;  %v3346_v10 = vmul.f32 %v11230_v22, %v15409_v51  ;;  %v11304_v60 = vld [vmem:[#allocation3 + $0x139] sm:$0xff] }
 0x37d   :  { %v4191_v6 = vadd.f32 %v4127_v24, %v3995_v45  ;;  %v4192_v50 = vadd.f32 %v4128_v40, %v3996_v15  ;;  %v3541_v46 = vmul.f32 %v4646_v1, %v15410_v28  ;;  %v4912_v32 = vmul.f32 %v10912_v13, %v4844_v23  ;;  %v4847_v15 = vld [vmem:[#allocation3 + $0x142] sm:$0xff] }
 0x37e   :  { %v5029_v49 = vpack.c.bf16 %v4975_v29, %v4974_v55  ;;  %v4913_v31 = vmul.f32 %v10912_v13, %v4845_v36  ;;  %v3542_v54 = vmul.f32 %v11236_v58, %v15410_v28  ;;  %v3737_v37 = vmul.f32 %v4842_v26, %v15411_v41  ;;  %v11302_v26 = vld [vmem:[#allocation3 + $0x140] sm:$0xff] }
 0x37f   :  { %v4387_v30 = vadd.f32 %v4323_v61, %v4191_v6  ;;  %v4388_v25 = vadd.f32 %v4324_v0, %v4192_v50  ;;  %v3605_v7 = vadd.f32 %v3541_v46, %v3345_v12  ;;  %v3738_v22 = vmul.f32 %v4843_v35, %v15411_v41  ;;  %v4846_v61 = vld [vmem:[#allocation3 + $0x13a] sm:$0xff] }
 0x380   :  { %7660 = vmatmul.mubr.msk.bf16.gmra.mxu1 %vm2468_vm3, %v5029_v49  ;;  %v3606_v42 = vadd.f32 %v3542_v54, %v3346_v10  ;;  %v3933_v1 = vmul.f32 %v11262_v59, %v15402_v21  ;;  %v3934_v3 = vmul.f32 %v11267_v17, %v15402_v21  ;;  %v4129_v48 = vmul.f32 %v11269_v33, %v15403_v62 }
 0x381   :  { %v4584_v4 = vadd.f32 %v4520_v44, %v4387_v30  ;;  %v4585_v58 = vadd.f32 %v4521_v52, %v4388_v25  ;;  %v3801_v43 = vadd.f32 %v3737_v37, %v3605_v7  ;;  %v4130_v8 = vmul.f32 %v4649_v14, %v15403_v62  ;;  %v11341_v25 = vld [vmem:[#allocation3 + $0x151] sm:$0xff]  ;;  %v11343_v7 = vld [vmem:[#allocation3 + $0x159] sm:$0xff] }
 0x382   :  { %v3802_v35 = vadd.f32 %v3738_v22, %v3606_v42  ;;  %v4325_v39 = vmul.f32 %v4844_v23, %v15404_v57  ;;  %v4326_v38 = vmul.f32 %v4845_v36, %v15404_v57  ;;  %v4522_v16 = vmul.f32 %v15407_v47, %v11298_v18 }
 0x383   :  { %v4780_v11 = vadd.f32 %v4716_v9, %v4584_v4  ;;  %v4781_v5 = vadd.f32 %v4717_v53, %v4585_v58  ;;  %v3997_v2 = vadd.f32 %v3933_v1, %v3801_v43  ;;  %v4523_v27 = vmul.f32 %v15407_v47, %v11302_v26  ;;  %v4848_v43 = vld [vmem:[#allocation3 + $0x152] sm:$0xff] }
 0x384   :  { %v3998_v24 = vadd.f32 %v3934_v3, %v3802_v35  ;;  %v4718_v19 = vmul.f32 %v15408_v56, %v11304_v60  ;;  %v4719_v40 = vmul.f32 %v15408_v56, %v11306_v63  ;;  %v3347_v44 = vmul.f32 %v11262_v59, %v15409_v51 }
 0x385   :  { %v4976_v20 = vadd.f32 %v4912_v32, %v4780_v11  ;;  %v4977_v34 = vadd.f32 %v4913_v31, %v4781_v5  ;;  %v4193_v0 = vadd.f32 %v4129_v48, %v3997_v2  ;;  %v3348_v52 = vmul.f32 %v11267_v17, %v15409_v51  ;;  %v11335_v32 = vld [vmem:[#allocation3 + $0x150] sm:$0xff] }
 0x386   :  { %v4194_v45 = vadd.f32 %v4130_v8, %v3998_v24  ;;  %v3543_v9 = vmul.f32 %v11269_v33, %v15410_v28  ;;  %v3544_v55 = vmul.f32 %v4649_v14, %v15410_v28  ;;  %v4914_v12 = vmul.f32 %v10912_v13, %v4846_v61  ;;  %v11362_v24 = vld [vmem:[%s15071_s5 + $0x8] ss:$0 sm:$0xff] }
 0x387   :  { %v5030_v29 = vpack.c.bf16 %v4977_v34, %v4976_v20  ;;  %v4389_v53 = vadd.f32 %v4325_v39, %v4193_v0  ;;  %v3739_v6 = vmul.f32 %v4844_v23, %v15411_v41  ;;  %v3740_v59 = vmul.f32 %v4845_v36, %v15411_v41  ;;  %v11339_v36 = vld [vmem:[#allocation3 + $0x158] sm:$0xff] }
 0x388   :  { %v4390_v50 = vadd.f32 %v4326_v38, %v4194_v45  ;;  %v3607_v10 = vadd.f32 %v3543_v9, %v3347_v44  ;;  %v3608_v46 = vadd.f32 %v3544_v55, %v3348_v52  ;;  %v4915_v17 = vmul.f32 %v10912_v13, %v4847_v15  ;;  %v4849_v38 = vld [vmem:[#allocation3 + $0x15a] sm:$0xff] }
 0x389   :  { %7663 = vmatprep.mubr.msk.bf16.mxu1 %vm2468_vm3, %v5030_v29  ;;  %v4586_v49 = vadd.f32 %v4522_v16, %v4389_v53  ;;  %v3935_v33 = vmul.f32 %v11298_v18, %v15402_v21  ;;  %v3936_v14 = vmul.f32 %v11302_v26, %v15402_v21  ;;  %v4131_v30 = vmul.f32 %v11304_v60, %v15403_v62  ;;  %v11379_v53 = vld [vmem:[#allocation3 + $0x168] sm:$0xff] }
 0x38a   :  { %v4587_v31 = vadd.f32 %v4523_v27, %v4390_v50  ;;  %v3803_v23 = vadd.f32 %v3739_v6, %v3607_v10  ;;  %v3804_v54 = vadd.f32 %v3740_v59, %v3608_v46  ;;  %v4132_v37 = vmul.f32 %v11306_v63, %v15403_v62  ;;  %v4654_v10 = vld [vmem:[#allocation3 + $0x169] sm:$0xff]  ;;  %v11387_v46 = vld [vmem:[#allocation3 + $0x171] sm:$0xff] }
 0x38b   :  { %v4782_v13 = vadd.f32 %v4718_v19, %v4586_v49  ;;  %v4327_v42 = vmul.f32 %v4846_v61, %v15404_v57  ;;  %v4328_v22 = vmul.f32 %v4847_v15, %v15404_v57  ;;  %v4524_v58 = vmul.f32 %v15407_v47, %v11335_v32 }
 0x38c   :  { %v4783_v1 = vadd.f32 %v4719_v40, %v4587_v31  ;;  %v3999_v3 = vadd.f32 %v3935_v33, %v3803_v23  ;;  %v4000_v4 = vadd.f32 %v3936_v14, %v3804_v54  ;;  %v4525_v35 = vmul.f32 %v15407_v47, %v11339_v36 }
 0x38d   :  { %v4978_v48 = vadd.f32 %v4914_v12, %v4782_v13  ;;  %v4720_v8 = vmul.f32 %v15408_v56, %v11341_v25  ;;  %v4721_v39 = vmul.f32 %v15408_v56, %v11343_v7  ;;  %v3349_v16 = vmul.f32 %v11298_v18, %v15409_v51  ;;  %v11381_v12 = vld [vmem:[#allocation3 + $0x170] sm:$0xff] }
 0x38e   :  { %v4979_v11 = vadd.f32 %v4915_v17, %v4783_v1  ;;  %v4195_v5 = vadd.f32 %v4131_v30, %v3999_v3  ;;  %v4196_v2 = vadd.f32 %v4132_v37, %v4000_v4  ;;  %v4916_v27 = vmul.f32 %v11362_v24, %v4848_v43  ;;  %v4850_v30 = vld [vmem:[#allocation3 + $0x16a] sm:$0xff]  ;;  %v4851_v1 = vld [vmem:[#allocation3 + $0x172] sm:$0xff] }
 0x38f   :  { %v3350_v19 = vmul.f32 %v11302_v26, %v15409_v51  ;;  %v3545_v40 = vmul.f32 %v11304_v60, %v15410_v28  ;;  %v3546_v20 = vmul.f32 %v11306_v63, %v15410_v28  ;;  %v4917_v18 = vmul.f32 %v11362_v24, %v4849_v38 }
 0x390   :  { %v5031_v34 = vpack.c.bf16 %v4979_v11, %v4978_v48  ;;  %v4391_v0 = vadd.f32 %v4327_v42, %v4195_v5  ;;  %v4392_v44 = vadd.f32 %v4328_v22, %v4196_v2  ;;  %v3741_v9 = vmul.f32 %v4846_v61, %v15411_v41 }
 0x391   :  { %v3609_v45 = vadd.f32 %v3545_v40, %v3349_v16  ;;  %v3610_v52 = vadd.f32 %v3546_v20, %v3350_v19  ;;  %v3742_v55 = vmul.f32 %v4847_v15, %v15411_v41  ;;  %v3937_v60 = vmul.f32 %v11335_v32, %v15402_v21  ;;  %v4460_v20 = vld [vmem:[#allocation3 + $0x180] sm:$0xff] }
 0x392   :  { %7664 = vmatmul.mubr.msk.bf16.gmra.mxu1 %vm2468_vm3, %v5031_v34  ;;  %v4588_v26 = vadd.f32 %v4524_v58, %v4391_v0  ;;  %v4589_v29 = vadd.f32 %v4525_v35, %v4392_v44  ;;  %v3938_v63 = vmul.f32 %v11339_v36, %v15402_v21  ;;  %v4133_v61 = vmul.f32 %v11341_v25, %v15403_v62  ;;  %v4461_v44 = vld [vmem:[#allocation3 + $0x188] sm:$0xff] }
 0x393   :  { %v3805_v6 = vadd.f32 %v3741_v9, %v3609_v45  ;;  %v3806_v50 = vadd.f32 %v3742_v55, %v3610_v52  ;;  %v4134_v15 = vmul.f32 %v11343_v7, %v15403_v62  ;;  %v4329_v17 = vmul.f32 %v4848_v43, %v15404_v57  ;;  %v4657_v9 = vld [vmem:[#allocation3 + $0x189] sm:$0xff] }
 0x394   :  { %v4784_v59 = vadd.f32 %v4720_v8, %v4588_v26  ;;  %v4785_v49 = vadd.f32 %v4721_v39, %v4589_v29  ;;  %v4330_v33 = vmul.f32 %v4849_v38, %v15404_v57  ;;  %v4526_v23 = vmul.f32 %v15407_v47, %v11379_v53 }
 0x395   :  { %v4001_v14 = vadd.f32 %v3937_v60, %v3805_v6  ;;  %v4002_v31 = vadd.f32 %v3938_v63, %v3806_v50  ;;  %v4527_v54 = vmul.f32 %v15407_v47, %v11381_v12  ;;  %v4722_v42 = vmul.f32 %v15408_v56, %v4654_v10 }
 0x396   :  { %v4980_v13 = vadd.f32 %v4916_v27, %v4784_v59  ;;  %v4981_v37 = vadd.f32 %v4917_v18, %v4785_v49  ;;  %v4723_v22 = vmul.f32 %v15408_v56, %v11387_v46  ;;  %v3351_v58 = vmul.f32 %v11335_v32, %v15409_v51  ;;  %v4656_v18 = vld [vmem:[#allocation3 + $0x181] sm:$0xff]  ;;  %v4853_v59 = vld [vmem:[#allocation3 + $0x18a] sm:$0xff] }
 0x397   :  { %v4197_v3 = vadd.f32 %v4133_v61, %v4001_v14  ;;  %v4198_v4 = vadd.f32 %v4134_v15, %v4002_v31  ;;  %v3352_v48 = vmul.f32 %v11339_v36, %v15409_v51  ;;  %v4918_v8 = vmul.f32 %v11362_v24, %v4850_v30  ;;  %v4852_v15 = vld [vmem:[#allocation3 + $0x182] sm:$0xff] }
 0x398   :  { %v5032_v35 = vpack.c.bf16 %v4981_v37, %v4980_v13  ;;  %v3547_v39 = vmul.f32 %v11341_v25, %v15410_v28  ;;  %v3548_v11 = vmul.f32 %v11343_v7, %v15410_v28  ;;  %v4919_v16 = vmul.f32 %v11362_v24, %v4851_v1 }
 0x399   :  { %v4393_v5 = vadd.f32 %v4329_v17, %v4197_v3  ;;  %v4394_v2 = vadd.f32 %v4330_v33, %v4198_v4  ;;  %v3743_v27 = vmul.f32 %v4848_v43, %v15411_v41  ;;  %v3744_v36 = vmul.f32 %v4849_v38, %v15411_v41 }
 0x39a   :  { %7667 = vmatprep.mubr.msk.bf16.mxu1 %vm2468_vm3, %v5032_v35  ;;  %v3611_v32 = vadd.f32 %v3547_v39, %v3351_v58  ;;  %v3612_v19 = vadd.f32 %v3548_v11, %v3352_v48  ;;  %v3939_v40 = vmul.f32 %v11379_v53, %v15402_v21  ;;  %v3940_v7 = vmul.f32 %v11381_v12, %v15402_v21  ;;  %v4462_v39 = vld [vmem:[#allocation3 + $0x198] sm:$0xff] }
 0x39b   :  { %v4590_v25 = vadd.f32 %v4526_v23, %v4393_v5  ;;  %v4591_v34 = vadd.f32 %v4527_v54, %v4394_v2  ;;  %v4135_v0 = vmul.f32 %v4654_v10, %v15403_v62  ;;  %v4136_v52 = vmul.f32 %v11387_v46, %v15403_v62 }
 0x39c   :  { %v3807_v43 = vadd.f32 %v3743_v27, %v3611_v32  ;;  %v3808_v45 = vadd.f32 %v3744_v36, %v3612_v19  ;;  %v4331_v38 = vmul.f32 %v4850_v30, %v15404_v57  ;;  %v4332_v29 = vmul.f32 %v4851_v1, %v15404_v57  ;;  %v4658_v27 = vld [vmem:[#allocation3 + $0x199] sm:$0xff]  ;;  %v4659_v32 = vld [vmem:[#allocation3 + $0x1a1] sm:$0xff] }
 0x39d   :  { %v4786_v55 = vadd.f32 %v4722_v42, %v4590_v25  ;;  %v4787_v26 = vadd.f32 %v4723_v22, %v4591_v34  ;;  %v4528_v60 = vmul.f32 %v15407_v47, %v4460_v20  ;;  %v4529_v50 = vmul.f32 %v15407_v47, %v4461_v44 }
 0x39e   :  { %v4003_v63 = vadd.f32 %v3939_v40, %v3807_v43  ;;  %v4004_v6 = vadd.f32 %v3940_v7, %v3808_v45  ;;  %v4724_v61 = vmul.f32 %v15408_v56, %v4656_v18  ;;  %v4725_v33 = vmul.f32 %v15408_v56, %v4657_v9  ;;  %v3287_v40 = vld [vmem:[#allocation3 + $0x1b0] sm:$0xff]  ;;  %v3484_v43 = vld [vmem:[#allocation3 + $0x1b9] sm:$0xff] }
 0x39f   :  { %v4982_v49 = vadd.f32 %v4918_v8, %v4786_v55  ;;  %v4983_v17 = vadd.f32 %v4919_v16, %v4787_v26  ;;  %v3353_v14 = vmul.f32 %v11379_v53, %v15409_v51  ;;  %v3354_v54 = vmul.f32 %v11381_v12, %v15409_v51  ;;  %v4463_v16 = vld [vmem:[#allocation3 + $0x1a0] sm:$0xff] }
 0x3a0   :  { %v4199_v31 = vadd.f32 %v4135_v0, %v4003_v63  ;;  %v4200_v23 = vadd.f32 %v4136_v52, %v4004_v6  ;;  %v3549_v13 = vmul.f32 %v4654_v10, %v15410_v28  ;;  %v4920_v42 = vmul.f32 %v11362_v24, %v4852_v15  ;;  %v3288_v0 = vld [vmem:[#allocation3 + $0x1b8] sm:$0xff]  ;;  %v3875_v6 = vld [vmem:[#allocation3 + $0x1c8] sm:$0xff] }
 0x3a1   :  { %v5033_v37 = vpack.c.bf16 %v4983_v17, %v4982_v49  ;;  %v4921_v22 = vmul.f32 %v11362_v24, %v4853_v59  ;;  %v3550_v3 = vmul.f32 %v11387_v46, %v15410_v28  ;;  %v3745_v53 = vmul.f32 %v4850_v30, %v15411_v41  ;;  %v3680_v55 = vld [vmem:[#allocation3 + $0x1ba] sm:$0xff]  ;;  %v3876_v17 = vld [vmem:[#allocation3 + $0x1d0] sm:$0xff] }
 0x3a2   :  { %v4395_v4 = vadd.f32 %v4331_v38, %v4199_v31  ;;  %v4396_v58 = vadd.f32 %v4332_v29, %v4200_v23  ;;  %v3613_v48 = vadd.f32 %v3549_v13, %v3353_v14  ;;  %v3746_v12 = vmul.f32 %v4851_v1, %v15411_v41  ;;  %v4855_v31 = vld [vmem:[#allocation3 + $0x1a2] sm:$0xff] }
 0x3a3   :  { %7668 = vmatmul.mubr.msk.bf16.gmra.mxu1 %vm2468_vm3, %v5033_v37  ;;  %v3614_v35 = vadd.f32 %v3550_v3, %v3354_v54  ;;  %v3941_v10 = vmul.f32 %v4460_v20, %v15402_v21  ;;  %v3942_v8 = vmul.f32 %v4461_v44, %v15402_v21  ;;  %v4137_v46 = vmul.f32 %v4656_v18, %v15403_v62  ;;  %v3483_v44 = vld [vmem:[#allocation3 + $0x1b1] sm:$0xff]  ;;  %v4071_v3 = vld [vmem:[#allocation3 + $0x1c9] sm:$0xff] }
 0x3a4   :  { %v4592_v11 = vadd.f32 %v4528_v60, %v4395_v4  ;;  %v4593_v5 = vadd.f32 %v4529_v50, %v4396_v58  ;;  %v3809_v2 = vadd.f32 %v3745_v53, %v3613_v48  ;;  %v4138_v30 = vmul.f32 %v4657_v9, %v15403_v62  ;;  %v3679_v9 = vld [vmem:[#allocation3 + $0x1b2] sm:$0xff] }
 0x3a5   :  { %v3810_v19 = vadd.f32 %v3746_v12, %v3614_v35  ;;  %v4333_v36 = vmul.f32 %v4852_v15, %v15404_v57  ;;  %v4334_v1 = vmul.f32 %v4853_v59, %v15404_v57  ;;  %v4530_v7 = vmul.f32 %v15407_v47, %v4462_v39  ;;  %v4072_v53 = vld [vmem:[#allocation3 + $0x1d1] sm:$0xff] }
 0x3a6   :  { %v4788_v20 = vadd.f32 %v4724_v61, %v4592_v11  ;;  %v4789_v25 = vadd.f32 %v4725_v33, %v4593_v5  ;;  %v4005_v34 = vadd.f32 %v3941_v10, %v3809_v2  ;;  %v4531_v45 = vmul.f32 %v15407_v47, %v4463_v16  ;;  %v4854_v61 = vld [vmem:[#allocation3 + $0x19a] sm:$0xff]  ;;  %v4267_v39 = vld [vmem:[#allocation3 + $0x1ca] sm:$0xff]  ;;  %v4268_v11 = vld [vmem:[#allocation3 + $0x1d2] sm:$0xff] }
 0x3a7   :  { %v4006_v18 = vadd.f32 %v3942_v8, %v3810_v19  ;;  %v4726_v52 = vmul.f32 %v15408_v56, %v4658_v27  ;;  %v4727_v38 = vmul.f32 %v15408_v56, %v4659_v32  ;;  %v3355_v63 = vmul.f32 %v15409_v51, %v3287_v40  ;;  %v4464_v5 = vld [vmem:[#allocation3 + $0x1e0] sm:$0xff] }
 0x3a8   :  { %v4984_v26 = vadd.f32 %v4920_v42, %v4788_v20  ;;  %v4985_v29 = vadd.f32 %v4921_v22, %v4789_v25  ;;  %v4201_v60 = vadd.f32 %v4137_v46, %v4005_v34  ;;  %v3356_v15 = vmul.f32 %v15409_v51, %v3288_v0  ;;  %v4660_v25 = vld [vmem:[#allocation3 + $0x1e1] sm:$0xff] }
 0x3a9   :  { %v4202_v50 = vadd.f32 %v4138_v30, %v4006_v18  ;;  %v3551_v59 = vmul.f32 %v15410_v28, %v3483_v44  ;;  %v3552_v49 = vmul.f32 %v15410_v28, %v3484_v43  ;;  %v3747_v23 = vmul.f32 %v15411_v41, %v3679_v9  ;;  %v4465_v30 = vld [vmem:[#allocation3 + $0x1e8] sm:$0xff] }
 0x3aa   :  { %v5034_v33 = vpack.c.bf16 %v4985_v29, %v4984_v26  ;;  %v4397_v14 = vadd.f32 %v4333_v36, %v4201_v60  ;;  %v3748_v54 = vmul.f32 %v15411_v41, %v3680_v55  ;;  %v3943_v22 = vmul.f32 %v15402_v21, %v3875_v6  ;;  %v4661_v18 = vld [vmem:[#allocation3 + $0x1e9] sm:$0xff] }
 0x3ab   :  { %v4398_v13 = vadd.f32 %v4334_v1, %v4202_v50  ;;  %v3615_v37 = vadd.f32 %v3551_v59, %v3355_v63  ;;  %v3616_v42 = vadd.f32 %v3552_v49, %v3356_v15  ;;  %v4922_v58 = vmul.f32 %v11362_v24, %v4854_v61  ;;  %v4857_v63 = vld [vmem:[#allocation3 + $0x1ea] sm:$0xff] }
 0x3ac   :  { %7671 = vmatprep.mubr.msk.bf16.mxu1 %vm2468_vm3, %v5034_v33  ;;  %v4594_v4 = vadd.f32 %v4530_v7, %v4397_v14  ;;  %v3944_v48 = vmul.f32 %v15402_v21, %v3876_v17  ;;  %v4923_v12 = vmul.f32 %v11362_v24, %v4855_v31  ;;  %v4139_v46 = vmul.f32 %v15403_v62, %v4071_v3 }
 0x3ad   :  { %v4595_v35 = vadd.f32 %v4531_v45, %v4398_v13  ;;  %v3811_v10 = vadd.f32 %v3747_v23, %v3615_v37  ;;  %v3812_v8 = vadd.f32 %v3748_v54, %v3616_v42  ;;  %v4140_v19 = vmul.f32 %v15403_v62, %v4072_v53  ;;  %v4856_v45 = vld [vmem:[#allocation3 + $0x1e2] sm:$0xff]  ;;  %v4466_v13 = vld [vmem:[#allocation3 + $0x1f8] sm:$0xff] }
 0x3ae   :  { %v4790_v2 = vadd.f32 %v4726_v52, %v4594_v4  ;;  %v4335_v1 = vmul.f32 %v15404_v57, %v4267_v39  ;;  %v4336_v40 = vmul.f32 %v15404_v57, %v4268_v11  ;;  %v4532_v20 = vmul.f32 %v15407_v47, %v4464_v5 }
 0x3af   :  { %v4791_v16 = vadd.f32 %v4727_v38, %v4595_v35  ;;  %v4007_v27 = vadd.f32 %v3943_v22, %v3811_v10  ;;  %v4008_v32 = vadd.f32 %v3944_v48, %v3812_v8  ;;  %v3357_v44 = vmul.f32 %v3875_v6, %v15409_v51  ;;  %v4467_v35 = vld [vmem:[#allocation3 + $0x200] sm:$0xff] }
 0x3b0   :  { %v4986_v36 = vadd.f32 %v4922_v58, %v4790_v2  ;;  %v4533_v43 = vmul.f32 %v15407_v47, %v4465_v30  ;;  %v3358_v52 = vmul.f32 %v3876_v17, %v15409_v51  ;;  %v3553_v38 = vmul.f32 %v4071_v3, %v15410_v28  ;;  %v4663_v2 = vld [vmem:[#allocation3 + $0x201] sm:$0xff] }
 0x3b1   :  { %v4987_v34 = vadd.f32 %v4923_v12, %v4791_v16  ;;  %v4203_v7 = vadd.f32 %v4139_v46, %v4007_v27  ;;  %v4204_v0 = vadd.f32 %v4140_v19, %v4008_v32  ;;  %v3554_v9 = vmul.f32 %v4072_v53, %v15410_v28 }
 0x3b2   :  { %v4728_v60 = vmul.f32 %v15408_v56, %v4660_v25  ;;  %v3617_v50 = vadd.f32 %v3553_v38, %v3357_v44  ;;  %v3749_v6 = vmul.f32 %v4267_v39, %v15411_v41  ;;  %v3750_v15 = vmul.f32 %v4268_v11, %v15411_v41  ;;  %v4662_v11 = vld [vmem:[#allocation3 + $0x1f9] sm:$0xff] }
 0x3b3   :  { %v5035_v55 = vpack.c.bf16 %v4987_v34, %v4986_v36  ;;  %v4399_v26 = vadd.f32 %v4335_v1, %v4203_v7  ;;  %v4400_v29 = vadd.f32 %v4336_v40, %v4204_v0  ;;  %v3618_v61 = vadd.f32 %v3554_v9, %v3358_v52  ;;  %v4858_v1 = vld [vmem:[#allocation3 + $0x1fa] sm:$0xff]  ;;  %v4859_v40 = vld [vmem:[#allocation3 + $0x202] sm:$0xff] }
 0x3b4   :  { %v4729_v17 = vmul.f32 %v15408_v56, %v4661_v18  ;;  %v4924_v33 = vmul.f32 %v11362_v24, %v4856_v45  ;;  %v3813_v14 = vadd.f32 %v3749_v6, %v3617_v50  ;;  %v3945_v23 = vmul.f32 %v4464_v5, %v15402_v21 }
 0x3b5   :  { %7672 = vmatmul.mubr.msk.bf16.gmra.mxu1 %vm2468_vm3, %v5035_v55  ;;  %v4596_v59 = vadd.f32 %v4532_v20, %v4399_v26  ;;  %v4597_v49 = vadd.f32 %v4533_v43, %v4400_v29  ;;  %v3814_v31 = vadd.f32 %v3750_v15, %v3618_v61  ;;  %v3946_v54 = vmul.f32 %v4465_v30, %v15402_v21  ;;  %v4468_v61 = vld [vmem:[#allocation3 + $0x210] sm:$0xff] }
 0x3b6   :  { %v4925_v22 = vmul.f32 %v11362_v24, %v4857_v63  ;;  %v4141_v3 = vmul.f32 %v4660_v25, %v15403_v62  ;;  %v4009_v4 = vadd.f32 %v3945_v23, %v3813_v14  ;;  %v4142_v48 = vmul.f32 %v4661_v18, %v15403_v62  ;;  %v4469_v14 = vld [vmem:[#allocation3 + $0x218] sm:$0xff] }
 0x3b7   :  { %v4792_v37 = vadd.f32 %v4728_v60, %v4596_v59  ;;  %v4793_v42 = vadd.f32 %v4729_v17, %v4597_v49  ;;  %v4010_v58 = vadd.f32 %v3946_v54, %v3814_v31  ;;  %v4337_v53 = vmul.f32 %v4856_v45, %v15404_v57  ;;  %v4664_v31 = vld [vmem:[#allocation3 + $0x211] sm:$0xff] }
 0x3b8   :  { %v4338_v8 = vmul.f32 %v4857_v63, %v15404_v57  ;;  %v4534_v39 = vmul.f32 %v15407_v47, %v4466_v13  ;;  %v4205_v46 = vadd.f32 %v4141_v3, %v4009_v4  ;;  %v3359_v27 = vmul.f32 %v4464_v5, %v15409_v51  ;;  %v4665_v4 = vld [vmem:[#allocation3 + $0x219] sm:$0xff] }
 0x3b9   :  { %v4988_v12 = vadd.f32 %v4924_v33, %v4792_v37  ;;  %v4989_v10 = vadd.f32 %v4925_v22, %v4793_v42  ;;  %v4206_v16 = vadd.f32 %v4142_v48, %v4010_v58  ;;  %v3360_v32 = vmul.f32 %v4465_v30, %v15409_v51  ;;  %v4860_v58 = vld [vmem:[#allocation3 + $0x212] sm:$0xff] }
 0x3ba   :  { %v4535_v36 = vmul.f32 %v15407_v47, %v4467_v35  ;;  %v3555_v20 = vmul.f32 %v4660_v25, %v15410_v28  ;;  %v3556_v34 = vmul.f32 %v4661_v18, %v15410_v28  ;;  %v4401_v7 = vadd.f32 %v4337_v53, %v4205_v46 }
 0x3bb   :  { %v5036_v19 = vpack.c.bf16 %v4989_v10, %v4988_v12  ;;  %v4402_v0 = vadd.f32 %v4338_v8, %v4206_v16  ;;  %v4730_v44 = vmul.f32 %v15408_v56, %v4662_v11  ;;  %v4731_v43 = vmul.f32 %v15408_v56, %v4663_v2 }
 0x3bc   :  { %v3619_v5 = vadd.f32 %v3555_v20, %v3359_v27  ;;  %v3620_v52 = vadd.f32 %v3556_v34, %v3360_v32  ;;  %v3751_v30 = vmul.f32 %v4856_v45, %v15411_v41  ;;  %v3752_v38 = vmul.f32 %v4857_v63, %v15411_v41  ;;  %v4861_v27 = vld [vmem:[#allocation3 + $0x21a] sm:$0xff] }
 0x3bd   :  { %7675 = vmatprep.mubr.msk.bf16.mxu1 %vm2468_vm3, %v5036_v19  ;;  %v4598_v9 = vadd.f32 %v4534_v39, %v4401_v7  ;;  %v4599_v55 = vadd.f32 %v4535_v36, %v4402_v0  ;;  %v4926_v25 = vmul.f32 %v11362_v24, %v4858_v1  ;;  %v4927_v18 = vmul.f32 %v11362_v24, %v4859_v40  ;;  %v4470_v0 = vld [vmem:[#allocation3 + $0x228] sm:$0xff] }
 0x3be   :  { %v3815_v26 = vadd.f32 %v3751_v30, %v3619_v5  ;;  %v3816_v29 = vadd.f32 %v3752_v38, %v3620_v52  ;;  %v3947_v60 = vmul.f32 %v4466_v13, %v15402_v21  ;;  %v3948_v50 = vmul.f32 %v4467_v35, %v15402_v21 }
 0x3bf   :  { %v4794_v6 = vadd.f32 %v4730_v44, %v4598_v9  ;;  %v4795_v15 = vadd.f32 %v4731_v43, %v4599_v55  ;;  %v4143_v59 = vmul.f32 %v4662_v11, %v15403_v62  ;;  %v4144_v45 = vmul.f32 %v4663_v2, %v15403_v62 }
 0x3c0   :  { %v4011_v63 = vadd.f32 %v3947_v60, %v3815_v26  ;;  %v4012_v49 = vadd.f32 %v3948_v50, %v3816_v29  ;;  %v4339_v17 = vmul.f32 %v4858_v1, %v15404_v57  ;;  %v4340_v33 = vmul.f32 %v4859_v40, %v15404_v57 }
 0x3c1   :  { %v4990_v23 = vadd.f32 %v4926_v25, %v4794_v6  ;;  %v4991_v54 = vadd.f32 %v4927_v18, %v4795_v15  ;;  %v4536_v37 = vmul.f32 %v15407_v47, %v4468_v61  ;;  %v3361_v42 = vmul.f32 %v4466_v13, %v15409_v51  ;;  %v4471_v18 = vld [vmem:[#allocation3 + $0x230] sm:$0xff] }
 0x3c2   :  { %v4207_v22 = vadd.f32 %v4143_v59, %v4011_v63  ;;  %v4208_v3 = vadd.f32 %v4144_v45, %v4012_v49  ;;  %v3362_v48 = vmul.f32 %v4467_v35, %v15409_v51  ;;  %v3557_v53 = vmul.f32 %v4662_v11, %v15410_v28  ;;  %v4666_v59 = vld [vmem:[#allocation3 + $0x229] sm:$0xff]  ;;  %v4667_v45 = vld [vmem:[#allocation3 + $0x231] sm:$0xff] }
 0x3c3   :  { %v5037_v12 = vpack.c.bf16 %v4991_v54, %v4990_v23  ;;  %v4537_v10 = vmul.f32 %v15407_v47, %v4469_v14  ;;  %v4732_v8 = vmul.f32 %v15408_v56, %v4664_v31  ;;  %v3558_v39 = vmul.f32 %v4663_v2, %v15410_v28 }
 0x3c4   :  { %v4403_v46 = vadd.f32 %v4339_v17, %v4207_v22  ;;  %v4404_v16 = vadd.f32 %v4340_v33, %v4208_v3  ;;  %v3621_v32 = vadd.f32 %v3557_v53, %v3361_v42  ;;  %v3753_v13 = vmul.f32 %v4858_v1, %v15411_v41  ;;  %v4862_v22 = vld [vmem:[#allocation3 + $0x22a] sm:$0xff]  ;;  %v4863_v3 = vld [vmem:[#allocation3 + $0x232] sm:$0xff] }
 0x3c5   :  { %7676 = vmatmul.mubr.msk.bf16.gmra.mxu1 %vm2468_vm3, %v5037_v12  ;;  %v4733_v19 = vmul.f32 %v15408_v56, %v4665_v4  ;;  %v4928_v35 = vmul.f32 %v11362_v24, %v4860_v58  ;;  %v3622_v11 = vadd.f32 %v3558_v39, %v3362_v48  ;;  %v3754_v36 = vmul.f32 %v4859_v40, %v15411_v41 }
 0x3c6   :  { %v4600_v20 = vadd.f32 %v4536_v37, %v4403_v46  ;;  %v4601_v34 = vadd.f32 %v4537_v10, %v4404_v16  ;;  %v3817_v7 = vadd.f32 %v3753_v13, %v3621_v32  ;;  %v3949_v2 = vmul.f32 %v4468_v61, %v15402_v21  ;;  %v4472_v46 = vld [vmem:[#allocation3 + $0x240] sm:$0xff] }
 0x3c7   :  { %v4929_v44 = vmul.f32 %v11362_v24, %v4861_v27  ;;  %v3818_v43 = vadd.f32 %v3754_v36, %v3622_v11  ;;  %v3950_v1 = vmul.f32 %v4469_v14, %v15402_v21  ;;  %v4145_v5 = vmul.f32 %v4664_v31, %v15403_v62 }
 0x3c8   :  { %v4796_v52 = vadd.f32 %v4732_v8, %v4600_v20  ;;  %v4797_v30 = vadd.f32 %v4733_v19, %v4601_v34  ;;  %v4013_v38 = vadd.f32 %v3949_v2, %v3817_v7  ;;  %v4146_v9 = vmul.f32 %v4665_v4, %v15403_v62  ;;  %v4473_v20 = vld [vmem:[#allocation3 + $0x248] sm:$0xff] }
 0x3c9   :  { %v4014_v55 = vadd.f32 %v3950_v1, %v3818_v43  ;;  %v4341_v40 = vmul.f32 %v4860_v58, %v15404_v57  ;;  %v4342_v25 = vmul.f32 %v4861_v27, %v15404_v57  ;;  %v4538_v26 = vmul.f32 %v15407_v47, %v4470_v0  ;;  %v4668_v43 = vld [vmem:[#allocation3 + $0x241] sm:$0xff] }
 0x3ca   :  { %v4992_v29 = vadd.f32 %v4928_v35, %v4796_v52  ;;  %v4993_v60 = vadd.f32 %v4929_v44, %v4797_v30  ;;  %v4209_v50 = vadd.f32 %v4145_v5, %v4013_v38  ;;  %v3363_v6 = vmul.f32 %v4468_v61, %v15409_v51 }
 0x3cb   :  { %v4210_v15 = vadd.f32 %v4146_v9, %v4014_v55  ;;  %v3364_v63 = vmul.f32 %v4469_v14, %v15409_v51  ;;  %v3559_v49 = vmul.f32 %v4664_v31, %v15410_v28  ;;  %v3560_v17 = vmul.f32 %v4665_v4, %v15410_v28  ;;  %v4669_v9 = vld [vmem:[#allocation3 + $0x249] sm:$0xff] }
 0x3cc   :  { %v5038_v33 = vpack.c.bf16 %v4993_v60, %v4992_v29  ;;  %v4405_v23 = vadd.f32 %v4341_v40, %v4209_v50  ;;  %v4539_v54 = vmul.f32 %v15407_v47, %v4471_v18  ;;  %v3755_v37 = vmul.f32 %v4860_v58, %v15411_v41  ;;  %v4864_v55 = vld [vmem:[#allocation3 + $0x242] sm:$0xff] }
 0x3cd   :  { %v4406_v42 = vadd.f32 %v4342_v25, %v4210_v15  ;;  %v3623_v48 = vadd.f32 %v3559_v49, %v3363_v6  ;;  %v3624_v61 = vadd.f32 %v3560_v17, %v3364_v63  ;;  %v3756_v53 = vmul.f32 %v4861_v27, %v15411_v41  ;;  %v4865_v15 = vld [vmem:[#allocation3 + $0x24a] sm:$0xff] }
 0x3ce   :  { %7679 = vmatprep.mubr.msk.bf16.mxu1 %vm2468_vm3, %v5038_v33  ;;  %v4602_v14 = vadd.f32 %v4538_v26, %v4405_v23  ;;  %v4734_v31 = vmul.f32 %v15408_v56, %v4666_v59  ;;  %v4735_v4 = vmul.f32 %v15408_v56, %v4667_v45  ;;  %v3951_v12 = vmul.f32 %v4470_v0, %v15402_v21 }
 0x3cf   :  { %v4603_v10 = vadd.f32 %v4539_v54, %v4406_v42  ;;  %v3819_v8 = vadd.f32 %v3755_v37, %v3623_v48  ;;  %v3820_v39 = vadd.f32 %v3756_v53, %v3624_v61  ;;  %v3952_v58 = vmul.f32 %v4471_v18, %v15402_v21  ;;  %v4474_v48 = vld [vmem:[#allocation3 + $0x258] sm:$0xff] }
 0x3d0   :  { %v4798_v16 = vadd.f32 %v4734_v31, %v4602_v14  ;;  %v4930_v32 = vmul.f32 %v11362_v24, %v4862_v22  ;;  %v4931_v27 = vmul.f32 %v11362_v24, %v4863_v3  ;;  %v4147_v13 = vmul.f32 %v4666_v59, %v15403_v62 }
 0x3d1   :  { %v4799_v19 = vadd.f32 %v4735_v4, %v4603_v10  ;;  %v4015_v35 = vadd.f32 %v3951_v12, %v3819_v8  ;;  %v4016_v11 = vadd.f32 %v3952_v58, %v3820_v39  ;;  %v4148_v36 = vmul.f32 %v4667_v45, %v15403_v62  ;;  %v4475_v10 = vld [vmem:[#allocation3 + $0x260] sm:$0xff] }
 0x3d2   :  { %v4994_v34 = vadd.f32 %v4930_v32, %v4798_v16  ;;  %v4343_v7 = vmul.f32 %v4862_v22, %v15404_v57  ;;  %v4344_v2 = vmul.f32 %v4863_v3, %v15404_v57  ;;  %v4540_v44 = vmul.f32 %v15407_v47, %v4472_v46  ;;  %v4670_v32 = vld [vmem:[#allocation3 + $0x259] sm:$0xff] }
 0x3d3   :  { %v4995_v1 = vadd.f32 %v4931_v27, %v4799_v19  ;;  %v4211_v5 = vadd.f32 %v4147_v13, %v4015_v35  ;;  %v4212_v52 = vadd.f32 %v4148_v36, %v4016_v11  ;;  %v3365_v30 = vmul.f32 %v4470_v0, %v15409_v51  ;;  %v4671_v27 = vld [vmem:[#allocation3 + $0x261] sm:$0xff] }
 0x3d4   :  { %v4541_v38 = vmul.f32 %v15407_v47, %v4473_v20  ;;  %v3366_v40 = vmul.f32 %v4471_v18, %v15409_v51  ;;  %v3561_v25 = vmul.f32 %v4666_v59, %v15410_v28  ;;  %v3562_v26 = vmul.f32 %v4667_v45, %v15410_v28 }
 0x3d5   :  { %v5039_v29 = vpack.c.bf16 %v4995_v1, %v4994_v34  ;;  %v4407_v60 = vadd.f32 %v4343_v7, %v4211_v5  ;;  %v4408_v50 = vadd.f32 %v4344_v2, %v4212_v52  ;;  %v4736_v6 = vmul.f32 %v15408_v56, %v4668_v43  ;;  %v4866_v7 = vld [vmem:[#allocation3 + $0x25a] sm:$0xff]  ;;  %v4867_v2 = vld [vmem:[#allocation3 + $0x262] sm:$0xff] }
 0x3d6   :  { %v3625_v63 = vadd.f32 %v3561_v25, %v3365_v30  ;;  %v3626_v49 = vadd.f32 %v3562_v26, %v3366_v40  ;;  %v3757_v0 = vmul.f32 %v4862_v22, %v15411_v41  ;;  %v3758_v17 = vmul.f32 %v4863_v3, %v15411_v41 }
 0x3d7   :  { %7680 = vmatmul.mubr.msk.bf16.gmra.mxu1 %vm2468_vm3, %v5039_v29  ;;  %v4604_v33 = vadd.f32 %v4540_v44, %v4407_v60  ;;  %v4605_v18 = vadd.f32 %v4541_v38, %v4408_v50  ;;  %v4737_v59 = vmul.f32 %v15408_v56, %v4669_v9  ;;  %v4932_v45 = vmul.f32 %v11362_v24, %v4864_v55 }
 0x3d8   :  { %v3821_v23 = vadd.f32 %v3757_v0, %v3625_v63  ;;  %v3822_v54 = vadd.f32 %v3758_v17, %v3626_v49  ;;  %v3953_v37 = vmul.f32 %v4472_v46, %v15402_v21  ;;  %v3954_v42 = vmul.f32 %v4473_v20, %v15402_v21  ;;  %v4476_v49 = vld [vmem:[#allocation3 + $0x270] sm:$0xff] }
 0x3d9   :  { %v4800_v61 = vadd.f32 %v4736_v6, %v4604_v33  ;;  %v4801_v53 = vadd.f32 %v4737_v59, %v4605_v18  ;;  %v4933_v22 = vmul.f32 %v11362_v24, %v4865_v15  ;;  %v4149_v3 = vmul.f32 %v4668_v43, %v15403_v62 }
 0x3da   :  { %v4017_v14 = vadd.f32 %v3953_v37, %v3821_v23  ;;  %v4018_v31 = vadd.f32 %v3954_v42, %v3822_v54  ;;  %v4150_v4 = vmul.f32 %v4669_v9, %v15403_v62  ;;  %v4345_v12 = vmul.f32 %v4864_v55, %v15404_v57  ;;  %v4477_v23 = vld [vmem:[#allocation3 + $0x278] sm:$0xff] }
 0x3db   :  { %v4996_v8 = vadd.f32 %v4932_v45, %v4800_v61  ;;  %v4997_v39 = vadd.f32 %v4933_v22, %v4801_v53  ;;  %v4346_v58 = vmul.f32 %v4865_v15, %v15404_v57  ;;  %v4542_v16 = vmul.f32 %v15407_v47, %v4474_v48  ;;  %v4672_v54 = vld [vmem:[#allocation3 + $0x271] sm:$0xff] }
 0x3dc   :  { %v4213_v13 = vadd.f32 %v4149_v3, %v4017_v14  ;;  %v4214_v19 = vadd.f32 %v4150_v4, %v4018_v31  ;;  %v3367_v35 = vmul.f32 %v4472_v46, %v15409_v51  ;;  %v3368_v11 = vmul.f32 %v4473_v20, %v15409_v51  ;;  %v4673_v14 = vld [vmem:[#allocation3 + $0x279] sm:$0xff] }
 0x3dd   :  { %v5040_v36 = vpack.c.bf16 %v4997_v39, %v4996_v8  ;;  %v4543_v34 = vmul.f32 %v15407_v47, %v4475_v10  ;;  %v3563_v44 = vmul.f32 %v4668_v43, %v15410_v28  ;;  %v3564_v1 = vmul.f32 %v4669_v9, %v15410_v28  ;;  %v4868_v31 = vld [vmem:[#allocation3 + $0x272] sm:$0xff] }
 0x3de   :  { %v4409_v5 = vadd.f32 %v4345_v12, %v4213_v13  ;;  %v4410_v52 = vadd.f32 %v4346_v58, %v4214_v19  ;;  %v4738_v30 = vmul.f32 %v15408_v56, %v4670_v32  ;;  %v4739_v38 = vmul.f32 %v15408_v56, %v4671_v27 }
 0x3df   :  { %7683 = vmatprep.mubr.msk.bf16.mxu1 %vm2468_vm3, %v5040_v36  ;;  %v3627_v46 = vadd.f32 %v3563_v44, %v3367_v35  ;;  %v3628_v40 = vadd.f32 %v3564_v1, %v3368_v11  ;;  %v3759_v20 = vmul.f32 %v4864_v55, %v15411_v41  ;;  %v3760_v25 = vmul.f32 %v4865_v15, %v15411_v41  ;;  %v4869_v35 = vld [vmem:[#allocation3 + $0x27a] sm:$0xff] }
 0x3e0   :  { %v4606_v26 = vadd.f32 %v4542_v16, %v4409_v5  ;;  %v4607_v29 = vadd.f32 %v4543_v34, %v4410_v52  ;;  %v4934_v43 = vmul.f32 %v11362_v24, %v4866_v7  ;;  %v4935_v9 = vmul.f32 %v11362_v24, %v4867_v2  ;;  %v4478_v52 = vld [vmem:[#allocation3 + $0x288] sm:$0xff] }
 0x3e1   :  { %v3823_v60 = vadd.f32 %v3759_v20, %v3627_v46  ;;  %v3824_v50 = vadd.f32 %v3760_v25, %v3628_v40  ;;  %v3955_v6 = vmul.f32 %v4474_v48, %v15402_v21  ;;  %v3956_v63 = vmul.f32 %v4475_v10, %v15402_v21 }
 0x3e2   :  { %v4802_v0 = vadd.f32 %v4738_v30, %v4606_v26  ;;  %v4803_v17 = vadd.f32 %v4739_v38, %v4607_v29  ;;  %v4151_v33 = vmul.f32 %v4670_v32, %v15403_v62  ;;  %v4152_v55 = vmul.f32 %v4671_v27, %v15403_v62 }
 0x3e3   :  { %v4019_v15 = vadd.f32 %v3955_v6, %v3823_v60  ;;  %v4020_v18 = vadd.f32 %v3956_v63, %v3824_v50  ;;  %v4347_v59 = vmul.f32 %v4866_v7, %v15404_v57  ;;  %v4348_v45 = vmul.f32 %v4867_v2, %v15404_v57 }
 0x3e4   :  { %v4998_v37 = vadd.f32 %v4934_v43, %v4802_v0  ;;  %v4999_v42 = vadd.f32 %v4935_v9, %v4803_v17  ;;  %v4544_v61 = vmul.f32 %v15407_v47, %v4476_v49  ;;  %v3369_v53 = vmul.f32 %v4474_v48, %v15409_v51  ;;  %v4479_v9 = vld [vmem:[#allocation3 + $0x290] sm:$0xff] }
 0x3e5   :  { %v4215_v22 = vadd.f32 %v4151_v33, %v4019_v15  ;;  %v4216_v3 = vadd.f32 %v4152_v55, %v4020_v18  ;;  %v3370_v4 = vmul.f32 %v4475_v10, %v15409_v51  ;;  %v3565_v12 = vmul.f32 %v4670_v32, %v15410_v28  ;;  %v4674_v33 = vld [vmem:[#allocation3 + $0x289] sm:$0xff]  ;;  %v4675_v55 = vld [vmem:[#allocation3 + $0x291] sm:$0xff] }
 0x3e6   :  { %v5041_v8 = vpack.c.bf16 %v4999_v42, %v4998_v37  ;;  %v4545_v39 = vmul.f32 %v15407_v47, %v4477_v23  ;;  %v4740_v58 = vmul.f32 %v15408_v56, %v4672_v54  ;;  %v3566_v16 = vmul.f32 %v4671_v27, %v15410_v28 }
 0x3e7   :  { %v4411_v13 = vadd.f32 %v4347_v59, %v4215_v22  ;;  %v4412_v19 = vadd.f32 %v4348_v45, %v4216_v3  ;;  %v3629_v11 = vadd.f32 %v3565_v12, %v3369_v53  ;;  %v3761_v48 = vmul.f32 %v4866_v7, %v15411_v41  ;;  %v4870_v22 = vld [vmem:[#allocation3 + $0x28a] sm:$0xff]  ;;  %v4871_v3 = vld [vmem:[#allocation3 + $0x292] sm:$0xff] }
 0x3e8   :  { %7684 = vmatmul.mubr.msk.bf16.gmra.mxu1 %vm2468_vm3, %v5041_v8  ;;  %v4741_v36 = vmul.f32 %v15408_v56, %v4673_v14  ;;  %v4936_v10 = vmul.f32 %v11362_v24, %v4868_v31  ;;  %v3630_v32 = vadd.f32 %v3566_v16, %v3370_v4  ;;  %v3762_v34 = vmul.f32 %v4867_v2, %v15411_v41 }
 0x3e9   :  { %v4608_v44 = vadd.f32 %v4544_v61, %v4411_v13  ;;  %v4609_v1 = vadd.f32 %v4545_v39, %v4412_v19  ;;  %v3825_v5 = vadd.f32 %v3761_v48, %v3629_v11  ;;  %v3957_v27 = vmul.f32 %v4476_v49, %v15402_v21  ;;  %v4480_v13 = vld [vmem:[#allocation3 + $0x2a0] sm:$0xff] }
 0x3ea   :  { %v4937_v30 = vmul.f32 %v11362_v24, %v4869_v35  ;;  %v3826_v38 = vadd.f32 %v3762_v34, %v3630_v32  ;;  %v3958_v7 = vmul.f32 %v4477_v23, %v15402_v21  ;;  %v4153_v46 = vmul.f32 %v4672_v54, %v15403_v62 }
 0x3eb   :  { %v4804_v40 = vadd.f32 %v4740_v58, %v4608_v44  ;;  %v4805_v20 = vadd.f32 %v4741_v36, %v4609_v1  ;;  %v4021_v25 = vadd.f32 %v3957_v27, %v3825_v5  ;;  %v4154_v26 = vmul.f32 %v4673_v14, %v15403_v62  ;;  %v4481_v44 = vld [vmem:[#allocation3 + $0x2a8] sm:$0xff] }
 0x3ec   :  { %v4022_v29 = vadd.f32 %v3958_v7, %v3826_v38  ;;  %v4349_v2 = vmul.f32 %v4868_v31, %v15404_v57  ;;  %v4350_v43 = vmul.f32 %v4869_v35, %v15404_v57  ;;  %v4546_v60 = vmul.f32 %v15407_v47, %v4478_v52  ;;  %v4676_v38 = vld [vmem:[#allocation3 + $0x2a1] sm:$0xff] }
 0x3ed   :  { %v5000_v50 = vadd.f32 %v4936_v10, %v4804_v40  ;;  %v5001_v6 = vadd.f32 %v4937_v30, %v4805_v20  ;;  %v4217_v63 = vadd.f32 %v4153_v46, %v4021_v25  ;;  %v3371_v0 = vmul.f32 %v4476_v49, %v15409_v51  ;;  %v4677_v25 = vld [vmem:[#allocation3 + $0x2a9] sm:$0xff] }
 0x3ee   :  { %v4218_v17 = vadd.f32 %v4154_v26, %v4022_v29  ;;  %v3372_v15 = vmul.f32 %v4477_v23, %v15409_v51  ;;  %v3567_v18 = vmul.f32 %v4672_v54, %v15410_v28  ;;  %v3568_v59 = vmul.f32 %v4673_v14, %v15410_v28  ;;  %v4872_v26 = vld [vmem:[#allocation3 + $0x2a2] sm:$0xff] }
 0x3ef   :  { %v5042_v45 = vpack.c.bf16 %v5001_v6, %v5000_v50  ;;  %v4413_v37 = vadd.f32 %v4349_v2, %v4217_v63  ;;  %v4547_v42 = vmul.f32 %v15407_v47, %v4479_v9  ;;  %v3763_v61 = vmul.f32 %v4868_v31, %v15411_v41 }
 0x3f0   :  { %v4414_v53 = vadd.f32 %v4350_v43, %v4218_v17  ;;  %v3631_v4 = vadd.f32 %v3567_v18, %v3371_v0  ;;  %v3632_v49 = vadd.f32 %v3568_v59, %v3372_v15  ;;  %v3764_v12 = vmul.f32 %v4869_v35, %v15411_v41  ;;  %v4873_v0 = vld [vmem:[#allocation3 + $0x2aa] sm:$0xff] }
 0x3f1   :  { %7687 = vmatprep.mubr.msk.bf16.mxu1 %vm2468_vm3, %v5042_v45  ;;  %v4610_v23 = vadd.f32 %v4546_v60, %v4413_v37  ;;  %v4742_v54 = vmul.f32 %v15408_v56, %v4674_v33  ;;  %v4743_v14 = vmul.f32 %v15408_v56, %v4675_v55  ;;  %v3959_v8 = vmul.f32 %v4478_v52, %v15402_v21 }
 0x3f2   :  { %v4611_v39 = vadd.f32 %v4547_v42, %v4414_v53  ;;  %v3827_v58 = vadd.f32 %v3763_v61, %v3631_v4  ;;  %v3828_v16 = vadd.f32 %v3764_v12, %v3632_v49  ;;  %v3960_v31 = vmul.f32 %v4479_v9, %v15402_v21 }
 0x3f3   :  { %v4806_v19 = vadd.f32 %v4742_v54, %v4610_v23  ;;  %v4938_v11 = vmul.f32 %v11362_v24, %v4870_v22  ;;  %v4939_v35 = vmul.f32 %v11362_v24, %v4871_v3  ;;  %v4155_v48 = vmul.f32 %v4674_v33, %v15403_v62 }
 0x3f4   :  { %v4807_v36 = vadd.f32 %v4743_v14, %v4611_v39  ;;  %v4023_v10 = vadd.f32 %v3959_v8, %v3827_v58  ;;  %v4024_v32 = vadd.f32 %v3960_v31, %v3828_v16  ;;  %v4156_v34 = vmul.f32 %v4675_v55, %v15403_v62  ;;  %v4483_v39 = vld [vmem:[#allocation3 + $0x2c0] sm:$0xff] }
 0x3f5   :  { %v5002_v1 = vadd.f32 %v4938_v11, %v4806_v19  ;;  %v4351_v5 = vmul.f32 %v4870_v22, %v15404_v57  ;;  %v4352_v27 = vmul.f32 %v4871_v3, %v15404_v57  ;;  %v4548_v30 = vmul.f32 %v15407_v47, %v4480_v13  ;;  %v4678_v11 = vld [vmem:[#allocation3 + $0x2b9] sm:$0xff] }
 0x3f6   :  { %v5003_v7 = vadd.f32 %v4939_v35, %v4807_v36  ;;  %v4219_v46 = vadd.f32 %v4155_v48, %v4023_v10  ;;  %v4220_v40 = vadd.f32 %v4156_v34, %v4024_v32  ;;  %v3373_v24 = vmul.f32 %v4478_v52, %v15409_v51  ;;  %v4679_v35 = vld [vmem:[#allocation3 + $0x2c1] sm:$0xff] }
 0x3f7   :  { %v4549_v20 = vmul.f32 %v15407_v47, %v4481_v44  ;;  %v3374_v29 = vmul.f32 %v4479_v9, %v15409_v51  ;;  %v3569_v2 = vmul.f32 %v4674_v33, %v15410_v28  ;;  %v3570_v43 = vmul.f32 %v4675_v55, %v15410_v28  ;;  %v11627_v55 = vld [vmem:[%s15071_s5 + $0x8] ss:$0 sm:$0xff] }
 0x3f8   :  { %v5043_v60 = vpack.c.bf16 %v5003_v7, %v5002_v1  ;;  %v4415_v50 = vadd.f32 %v4351_v5, %v4219_v46  ;;  %v4416_v6 = vadd.f32 %v4352_v27, %v4220_v40  ;;  %v4744_v63 = vmul.f32 %v15408_v56, %v4676_v38  ;;  %v4874_v5 = vld [vmem:[#allocation3 + $0x2ba] sm:$0xff]  ;;  %v4875_v27 = vld [vmem:[#allocation3 + $0x2c2] sm:$0xff] }
 0x3f9   :  { %v3633_v17 = vadd.f32 %v3569_v2, %v3373_v24  ;;  %v3634_v15 = vadd.f32 %v3570_v43, %v3374_v29  ;;  %v3765_v52 = vmul.f32 %v4870_v22, %v15411_v41  ;;  %v3766_v18 = vmul.f32 %v4871_v3, %v15411_v41  ;;  %v4482_v22 = vld [vmem:[#allocation3 + $0x2b8] sm:$0xff] }
 0x3fa   :  { %7688 = vmatmul.mubr.msk.bf16.gmra.mxu1 %vm2468_vm3, %v5043_v60  ;;  %v4612_v59 = vadd.f32 %v4548_v30, %v4415_v50  ;;  %v4613_v9 = vadd.f32 %v4549_v20, %v4416_v6  ;;  %v4745_v33 = vmul.f32 %v15408_v56, %v4677_v25  ;;  %v4940_v45 = vmul.f32 %v11627_v55, %v4872_v26 }
 0x3fb   :  { %v3829_v37 = vadd.f32 %v3765_v52, %v3633_v17  ;;  %v3830_v42 = vadd.f32 %v3766_v18, %v3634_v15  ;;  %v3961_v61 = vmul.f32 %v4480_v13, %v15402_v21  ;;  %v3962_v53 = vmul.f32 %v4481_v44, %v15402_v21  ;;  %v4484_v15 = vld [vmem:[#allocation3 + $0x2d0] sm:$0xff] }
 0x3fc   :  { %v4808_v3 = vadd.f32 %v4744_v63, %v4612_v59  ;;  %v4809_v4 = vadd.f32 %v4745_v33, %v4613_v9  ;;  %v4941_v49 = vmul.f32 %v11627_v55, %v4873_v0  ;;  %v4157_v12 = vmul.f32 %v4676_v38, %v15403_v62 }
 0x3fd   :  { %v4025_v23 = vadd.f32 %v3961_v61, %v3829_v37  ;;  %v4026_v54 = vadd.f32 %v3962_v53, %v3830_v42  ;;  %v4158_v14 = vmul.f32 %v4677_v25, %v15403_v62  ;;  %v4353_v8 = vmul.f32 %v4872_v26, %v15404_v57  ;;  %v4485_v37 = vld [vmem:[#allocation3 + $0x2d8] sm:$0xff]  ;;  %v11656_v61 = vpop.f32.mrf.mxu1 }
 0x3fe   :  { %v5004_v58 = vadd.f32 %v4940_v45, %v4808_v3  ;;  %v5005_v16 = vadd.f32 %v4941_v49, %v4809_v4  ;;  %v4354_v31 = vmul.f32 %v4873_v0, %v15404_v57  ;;  %v4550_v19 = vmul.f32 %v15407_v47, %v4482_v22  ;;  %v4680_v42 = vld [vmem:[#allocation3 + $0x2d1] sm:$0xff] }
 0x3ff   :  { %v4221_v48 = vadd.f32 %v4157_v12, %v4025_v23  ;;  %v4222_v36 = vadd.f32 %v4158_v14, %v4026_v54  ;;  %v3375_v10 = vmul.f32 %v4480_v13, %v15409_v51  ;;  %v3376_v32 = vmul.f32 %v4481_v44, %v15409_v51  ;;  %v4681_v54 = vld [vmem:[#allocation3 + $0x2d9] sm:$0xff] }
 0x400   :  { %v5044_v34 = vpack.c.bf16 %v5005_v16, %v5004_v58  ;;  %v4551_v1 = vmul.f32 %v15407_v47, %v4483_v39  ;;  %v3571_v30 = vmul.f32 %v4676_v38, %v15410_v28  ;;  %v3572_v7 = vmul.f32 %v4677_v25, %v15410_v28  ;;  %v4876_v14 = vld [vmem:[#allocation3 + $0x2d2] sm:$0xff] }
 0x401   :  { %v4417_v46 = vadd.f32 %v4353_v8, %v4221_v48  ;;  %v4418_v40 = vadd.f32 %v4354_v31, %v4222_v36  ;;  %v4746_v24 = vmul.f32 %v15408_v56, %v4678_v11  ;;  %v4747_v20 = vmul.f32 %v15408_v56, %v4679_v35 }
 0x402   :  { %7691 = vmatprep.mubr.msk.bf16.mxu1 %vm2468_vm3, %v5044_v34  ;;  %v3635_v13 = vadd.f32 %v3571_v30, %v3375_v10  ;;  %v3636_v29 = vadd.f32 %v3572_v7, %v3376_v32  ;;  %v3767_v44 = vmul.f32 %v4872_v26, %v15411_v41  ;;  %v3768_v2 = vmul.f32 %v4873_v0, %v15411_v41  ;;  %v4877_v32 = vld [vmem:[#allocation3 + $0x2da] sm:$0xff] }
 0x403   :  { %v4614_v43 = vadd.f32 %v4550_v19, %v4417_v46  ;;  %v4615_v60 = vadd.f32 %v4551_v1, %v4418_v40  ;;  %v4942_v38 = vmul.f32 %v11627_v55, %v4874_v5  ;;  %v4943_v25 = vmul.f32 %v11627_v55, %v4875_v27  ;;  %v11666_v1 = vpop.f32.mrf.mxu1 }
 0x404   :  { %v3831_v50 = vadd.f32 %v3767_v44, %v3635_v13  ;;  %v3832_v6 = vadd.f32 %v3768_v2, %v3636_v29  ;;  %v3963_v63 = vmul.f32 %v4482_v22, %v15402_v21  ;;  %v3964_v17 = vmul.f32 %v4483_v39, %v15402_v21 }
 0x405   :  { %v4810_v52 = vadd.f32 %v4746_v24, %v4614_v43  ;;  %v4811_v18 = vadd.f32 %v4747_v20, %v4615_v60  ;;  %v4159_v59 = vmul.f32 %v4678_v11, %v15403_v62  ;;  %v4160_v26 = vmul.f32 %v4679_v35, %v15403_v62  ;;  %v4486_v20 = vld [vmem:[#allocation3 + $0x2e8] sm:$0xff] }
 0x406   :  { %v4027_v0 = vadd.f32 %v3963_v63, %v3831_v50  ;;  %v4028_v9 = vadd.f32 %v3964_v17, %v3832_v6  ;;  %v4355_v33 = vmul.f32 %v4874_v5, %v15404_v57  ;;  %v4356_v45 = vmul.f32 %v4875_v27, %v15404_v57  ;;  %v4487_v63 = vld [vmem:[#allocation3 + $0x2f0] sm:$0xff] }
 0x407   :  { %v5006_v53 = vadd.f32 %v4942_v38, %v4810_v52  ;;  %v5007_v3 = vadd.f32 %v4943_v25, %v4811_v18  ;;  %v4552_v4 = vmul.f32 %v15407_v47, %v4484_v15  ;;  %v3377_v49 = vmul.f32 %v4482_v22, %v15409_v51  ;;  %v11677_v25 = vpop.f32.mrf.mxu1 }
 0x408   :  { %v4223_v12 = vadd.f32 %v4159_v59, %v4027_v0  ;;  %v4224_v23 = vadd.f32 %v4160_v26, %v4028_v9  ;;  %v3378_v8 = vmul.f32 %v4483_v39, %v15409_v51  ;;  %v3573_v58 = vmul.f32 %v4678_v11, %v15410_v28  ;;  %v4682_v9 = vld [vmem:[#allocation3 + $0x2e9] sm:$0xff] }
 0x409   :  { %v5045_v16 = vpack.c.bf16 %v5007_v3, %v5006_v53  ;;  %v4553_v31 = vmul.f32 %v15407_v47, %v4485_v37  ;;  %v4748_v19 = vmul.f32 %v15408_v56, %v4680_v42  ;;  %v3574_v48 = vmul.f32 %v4679_v35, %v15410_v28 }
 0x40a   :  { %v4419_v36 = vadd.f32 %v4355_v33, %v4223_v12  ;;  %v4420_v10 = vadd.f32 %v4356_v45, %v4224_v23  ;;  %v3637_v34 = vadd.f32 %v3573_v58, %v3377_v49  ;;  %v3769_v22 = vmul.f32 %v4874_v5, %v15411_v41  ;;  %v4683_v33 = vld [vmem:[#allocation3 + $0x2f1] sm:$0xff] }
 0x40b   :  { %7692 = vmatmul.mubr.msk.bf16.gmra.mxu1 %vm2468_vm3, %v5045_v16  ;;  %v4749_v39 = vmul.f32 %v15408_v56, %v4681_v54  ;;  %v4944_v11 = vmul.f32 %v11627_v55, %v4876_v14  ;;  %v3638_v30 = vadd.f32 %v3574_v48, %v3378_v8  ;;  %v3770_v7 = vmul.f32 %v4875_v27, %v15411_v41  ;;  %v11688_v8 = vpop.f32.mrf.mxu1  ;;  %v4878_v16 = vld [vmem:[#allocation3 + $0x2ea] sm:$0xff] }
 0x40c   :  { %v4616_v46 = vadd.f32 %v4552_v4, %v4419_v36  ;;  %v4617_v40 = vadd.f32 %v4553_v31, %v4420_v10  ;;  %v3833_v35 = vadd.f32 %v3769_v22, %v3637_v34  ;;  %v3965_v24 = vmul.f32 %v4484_v15, %v15402_v21 }
 0x40d   :  { %v4945_v13 = vmul.f32 %v11627_v55, %v4877_v32  ;;  %v3834_v5 = vadd.f32 %v3770_v7, %v3638_v30  ;;  %v3966_v29 = vmul.f32 %v4485_v37, %v15402_v21  ;;  %v4161_v44 = vmul.f32 %v4680_v42, %v15403_v62  ;;  %v11699_v7 = vpop.f32.mrf.mxu1 }
 0x40e   :  { %v4812_v2 = vadd.f32 %v4748_v19, %v4616_v46  ;;  %v4813_v43 = vadd.f32 %v4749_v39, %v4617_v40  ;;  %v4029_v60 = vadd.f32 %v3965_v24, %v3833_v35  ;;  %v4162_v38 = vmul.f32 %v4681_v54, %v15403_v62 }
 0x40f   :  { %v4030_v27 = vadd.f32 %v3966_v29, %v3834_v5  ;;  %v4357_v50 = vmul.f32 %v4876_v14, %v15404_v57  ;;  %v4358_v6 = vmul.f32 %v4877_v32, %v15404_v57  ;;  %v4554_v17 = vmul.f32 %v15407_v47, %v4486_v20 }
 0x410   :  { %v5008_v52 = vadd.f32 %v4944_v11, %v4812_v2  ;;  %v5009_v18 = vadd.f32 %v4945_v13, %v4813_v43  ;;  %v4225_v59 = vadd.f32 %v4161_v44, %v4029_v60  ;;  %v3379_v26 = vmul.f32 %v4484_v15, %v15409_v51  ;;  %v4879_v15 = vld [vmem:[#allocation3 + $0x2f2] sm:$0xff]  ;;  %v4488_v13 = vld [vmem:[#allocation3 + $0x300] sm:$0xff]  ;;  %v4489_v2 = vld [vmem:[#allocation3 + $0x308] sm:$0xff] }
 0x411   :  { %v4226_v0 = vadd.f32 %v4162_v38, %v4030_v27  ;;  %v3380_v45 = vmul.f32 %v4485_v37, %v15409_v51  ;;  %v3575_v53 = vmul.f32 %v4680_v42, %v15410_v28  ;;  %v3576_v3 = vmul.f32 %v4681_v54, %v15410_v28 }
 0x412   :  { %v5046_v4 = vpack.c.bf16 %v5009_v18, %v5008_v52  ;;  %v4421_v49 = vadd.f32 %v4357_v50, %v4225_v59  ;;  %v4555_v12 = vmul.f32 %v15407_v47, %v4487_v63  ;;  %v3771_v23 = vmul.f32 %v4876_v14, %v15411_v41 }
 0x413   :  { %v4422_v58 = vadd.f32 %v4358_v6, %v4226_v0  ;;  %v3639_v31 = vadd.f32 %v3575_v53, %v3379_v26  ;;  %v3640_v19 = vadd.f32 %v3576_v3, %v3380_v45  ;;  %v3772_v48 = vmul.f32 %v4877_v32, %v15411_v41  ;;  %v4684_v6 = vld [vmem:[#allocation3 + $0x301] sm:$0xff]  ;;  %v11709_v26 = vpop.f32.mrf.mxu1 }
 0x414   :  { %7695 = vmatprep.mubr.msk.bf16.mxu1 %vm2468_vm3, %v5046_v4  ;;  %v4618_v37 = vadd.f32 %v4554_v17, %v4421_v49  ;;  %v4750_v42 = vmul.f32 %v15408_v56, %v4682_v9  ;;  %v4751_v54 = vmul.f32 %v15408_v56, %v4683_v33  ;;  %v3967_v36 = vmul.f32 %v4486_v20, %v15402_v21  ;;  %v4685_v17 = vld [vmem:[#allocation3 + $0x309] sm:$0xff] }
 0x415   :  { %v4619_v10 = vadd.f32 %v4555_v12, %v4422_v58  ;;  %v3835_v14 = vadd.f32 %v3771_v23, %v3639_v31  ;;  %v3836_v34 = vadd.f32 %v3772_v48, %v3640_v19  ;;  %v3968_v22 = vmul.f32 %v4487_v63, %v15402_v21  ;;  %v4880_v4 = vld [vmem:[#allocation3 + $0x302] sm:$0xff]  ;;  %v4881_v49 = vld [vmem:[#allocation3 + $0x30a] sm:$0xff] }
 0x416   :  { %v4814_v39 = vadd.f32 %v4750_v42, %v4618_v37  ;;  %v4946_v11 = vmul.f32 %v11627_v55, %v4878_v16  ;;  %v4947_v30 = vmul.f32 %v11627_v55, %v4879_v15  ;;  %v4163_v32 = vmul.f32 %v4682_v9, %v15403_v62 }
 0x417   :  { %v4815_v46 = vadd.f32 %v4751_v54, %v4619_v10  ;;  %v4031_v40 = vadd.f32 %v3967_v36, %v3835_v14  ;;  %v4032_v35 = vadd.f32 %v3968_v22, %v3836_v34  ;;  %v4164_v24 = vmul.f32 %v4683_v33, %v15403_v62  ;;  %v11719_v54 = vpop.f32.mrf.mxu1 }
 0x418   :  { %v5010_v5 = vadd.f32 %v4946_v11, %v4814_v39  ;;  %v4359_v29 = vmul.f32 %v4878_v16, %v15404_v57  ;;  %v4360_v44 = vmul.f32 %v4879_v15, %v15404_v57  ;;  %v3381_v27 = vmul.f32 %v4486_v20, %v15409_v51  ;;  %v4490_v11 = vld [vmem:[#allocation3 + $0x318] sm:$0xff] }
 0x419   :  { %v5011_v43 = vadd.f32 %v4947_v30, %v4815_v46  ;;  %v4227_v60 = vadd.f32 %v4163_v32, %v4031_v40  ;;  %v4228_v38 = vadd.f32 %v4164_v24, %v4032_v35  ;;  %v4556_v50 = vmul.f32 %v15407_v47, %v4488_v13  ;;  %v4491_v35 = vld [vmem:[#allocation3 + $0x320] sm:$0xff] }
 0x41a   :  { %v3382_v52 = vmul.f32 %v4487_v63, %v15409_v51  ;;  %v3577_v18 = vmul.f32 %v4682_v9, %v15410_v28  ;;  %v3578_v59 = vmul.f32 %v4683_v33, %v15410_v28  ;;  %v4557_v3 = vmul.f32 %v15407_v47, %v4489_v2  ;;  %v4686_v24 = vld [vmem:[#allocation3 + $0x319] sm:$0xff] }
 0x41b   :  { %v5047_v0 = vpack.c.bf16 %v5011_v43, %v5010_v5  ;;  %v4423_v45 = vadd.f32 %v4359_v29, %v4227_v60  ;;  %v4424_v53 = vadd.f32 %v4360_v44, %v4228_v38  ;;  %v3773_v23 = vmul.f32 %v4878_v16, %v15411_v41  ;;  %v11729_v60 = vpop.f32.mrf.mxu1 }
 0x41c   :  { %v3641_v20 = vadd.f32 %v3577_v18, %v3381_v27  ;;  %v3642_v12 = vadd.f32 %v3578_v59, %v3382_v52  ;;  %v3774_v58 = vmul.f32 %v4879_v15, %v15411_v41  ;;  %v4752_v33 = vmul.f32 %v15408_v56, %v4684_v6  ;;  %v4882_v52 = vld [vmem:[#allocation3 + $0x31a] sm:$0xff] }
 0x41d   :  { %7696 = vmatmul.mubr.msk.bf16.gmra.mxu1 %vm2468_vm3, %v5047_v0  ;;  %v4620_v63 = vadd.f32 %v4556_v50, %v4423_v45  ;;  %v4621_v9 = vadd.f32 %v4557_v3, %v4424_v53  ;;  %v4753_v31 = vmul.f32 %v15408_v56, %v4685_v17  ;;  %v3969_v37 = vmul.f32 %v4488_v13, %v15402_v21  ;;  %v4687_v50 = vld [vmem:[#allocation3 + $0x321] sm:$0xff] }
 0x41e   :  { %v3837_v19 = vadd.f32 %v3773_v23, %v3641_v20  ;;  %v3838_v48 = vadd.f32 %v3774_v58, %v3642_v12  ;;  %v3970_v42 = vmul.f32 %v4489_v2, %v15402_v21  ;;  %v4948_v15 = vmul.f32 %v11627_v55, %v4880_v4 }
 0x41f   :  { %v4816_v36 = vadd.f32 %v4752_v33, %v4620_v63  ;;  %v4817_v16 = vadd.f32 %v4753_v31, %v4621_v9  ;;  %v4949_v10 = vmul.f32 %v11627_v55, %v4881_v49  ;;  %v4165_v22 = vmul.f32 %v4684_v6, %v15403_v62  ;;  %v11741_v9 = vpop.f32.mrf.mxu1 }
 0x420   :  { %v4033_v14 = vadd.f32 %v3969_v37, %v3837_v19  ;;  %v4034_v34 = vadd.f32 %v3970_v42, %v3838_v48  ;;  %v4166_v39 = vmul.f32 %v4685_v17, %v15403_v62  ;;  %v4361_v46 = vmul.f32 %v4880_v4, %v15404_v57 }
 0x421   :  { %v5012_v30 = vadd.f32 %v4948_v15, %v4816_v36  ;;  %v5013_v32 = vadd.f32 %v4949_v10, %v4817_v16  ;;  %v4362_v40 = vmul.f32 %v4881_v49, %v15404_v57  ;;  %v3383_v44 = vmul.f32 %v4488_v13, %v15409_v51  ;;  %v4883_v13 = vld [vmem:[#allocation3 + $0x322] sm:$0xff] }
 0x422   :  { %v4229_v5 = vadd.f32 %v4165_v22, %v4033_v14  ;;  %v4230_v29 = vadd.f32 %v4166_v39, %v4034_v34  ;;  %v3384_v43 = vmul.f32 %v4489_v2, %v15409_v51  ;;  %v4558_v27 = vmul.f32 %v15407_v47, %v4490_v11  ;;  %v4492_v14 = vld [vmem:[#allocation3 + $0x330] sm:$0xff]  ;;  %v4493_v34 = vld [vmem:[#allocation3 + $0x338] sm:$0xff] }
 0x423   :  { %v5048_v38 = vpack.c.bf16 %v5013_v32, %v5012_v30  ;;  %v3579_v18 = vmul.f32 %v4684_v6, %v15410_v28  ;;  %v3580_v59 = vmul.f32 %v4685_v17, %v15410_v28  ;;  %v4559_v53 = vmul.f32 %v15407_v47, %v4491_v35 }
 0x424   :  { %v4425_v0 = vadd.f32 %v4361_v46, %v4229_v5  ;;  %v4426_v45 = vadd.f32 %v4362_v40, %v4230_v29  ;;  %v4754_v3 = vmul.f32 %v15408_v56, %v4686_v24  ;;  %v3775_v12 = vmul.f32 %v4880_v4, %v15411_v41  ;;  %v11751_v46 = vpop.f32.mrf.mxu1  ;;  %v4688_v29 = vld [vmem:[#allocation3 + $0x331] sm:$0xff] }
 0x425   :  { %7699 = vmatprep.mubr.msk.bf16.mxu1 %vm2468_vm3, %v5048_v38  ;;  %v3643_v2 = vadd.f32 %v3579_v18, %v3383_v44  ;;  %v3644_v20 = vadd.f32 %v3580_v59, %v3384_v43  ;;  %v3776_v23 = vmul.f32 %v4881_v49, %v15411_v41  ;;  %v4755_v6 = vmul.f32 %v15408_v56, %v4687_v50  ;;  %v4689_v44 = vld [vmem:[#allocation3 + $0x339] sm:$0xff] }
 0x426   :  { %v4622_v58 = vadd.f32 %v4558_v27, %v4425_v0  ;;  %v4623_v63 = vadd.f32 %v4559_v53, %v4426_v45  ;;  %v4950_v17 = vmul.f32 %v11627_v55, %v4882_v52  ;;  %v3971_v19 = vmul.f32 %v4490_v11, %v15402_v21 }
 0x427   :  { %v3839_v33 = vadd.f32 %v3775_v12, %v3643_v2  ;;  %v3840_v31 = vadd.f32 %v3776_v23, %v3644_v20  ;;  %v3972_v48 = vmul.f32 %v4491_v35, %v15402_v21  ;;  %v4951_v4 = vmul.f32 %v11627_v55, %v4883_v13  ;;  %v11763_v23 = vpop.f32.mrf.mxu1 }
 0x428   :  { %v4818_v37 = vadd.f32 %v4754_v3, %v4622_v58  ;;  %v4819_v42 = vadd.f32 %v4755_v6, %v4623_v63  ;;  %v4167_v49 = vmul.f32 %v4686_v24, %v15403_v62  ;;  %v4168_v15 = vmul.f32 %v4687_v50, %v15403_v62  ;;  %v4885_v3 = vld [vmem:[#allocation3 + $0x33a] sm:$0xff] }
 0x429   :  { %v4035_v36 = vadd.f32 %v3971_v19, %v3839_v33  ;;  %v4036_v16 = vadd.f32 %v3972_v48, %v3840_v31  ;;  %v4363_v10 = vmul.f32 %v4882_v52, %v15404_v57  ;;  %v4364_v30 = vmul.f32 %v4883_v13, %v15404_v57  ;;  %v4494_v31 = vld [vmem:[#allocation3 + $0x348] sm:$0xff] }
 0x42a   :  { %v5014_v22 = vadd.f32 %v4950_v17, %v4818_v37  ;;  %v5015_v39 = vadd.f32 %v4951_v4, %v4819_v42  ;;  %v3385_v32 = vmul.f32 %v4490_v11, %v15409_v51  ;;  %v3386_v43 = vmul.f32 %v4491_v35, %v15409_v51  ;;  %v4884_v11 = vld [vmem:[#allocation3 + $0x332] sm:$0xff] }
 0x42b   :  { %v4231_v40 = vadd.f32 %v4167_v49, %v4035_v36  ;;  %v4232_v5 = vadd.f32 %v4168_v15, %v4036_v16  ;;  %v3581_v38 = vmul.f32 %v4686_v24, %v15410_v28  ;;  %v4560_v18 = vmul.f32 %v15407_v47, %v4492_v14  ;;  %v4690_v36 = vld [vmem:[#allocation3 + $0x349] sm:$0xff]  ;;  %v11772_v16 = vpop.f32.mrf.mxu1 }
 0x42c   :  { %v5049_v27 = vpack.c.bf16 %v5015_v39, %v5014_v22  ;;  %v4561_v59 = vmul.f32 %v15407_v47, %v4493_v34  ;;  %v3582_v0 = vmul.f32 %v4687_v50, %v15410_v28  ;;  %v3777_v20 = vmul.f32 %v4882_v52, %v15411_v41 }
 0x42d   :  { %v4427_v45 = vadd.f32 %v4363_v10, %v4231_v40  ;;  %v4428_v53 = vadd.f32 %v4364_v30, %v4232_v5  ;;  %v3645_v2 = vadd.f32 %v3581_v38, %v3385_v32  ;;  %v4756_v51 = vmul.f32 %v15408_v56, %v4688_v29  ;;  %v4886_v32 = vld [vmem:[#allocation3 + $0x34a] sm:$0xff] }
 0x42e   :  { %7700 = vmatmul.mubr.msk.bf16.gmra.mxu1 %vm2468_vm3, %v5049_v27  ;;  %v4757_v35 = vmul.f32 %v15408_v56, %v4689_v44  ;;  %v3646_v24 = vadd.f32 %v3582_v0, %v3386_v43  ;;  %v3778_v12 = vmul.f32 %v4883_v13, %v15411_v41  ;;  %v3973_v63 = vmul.f32 %v4492_v14, %v15402_v21  ;;  %v4495_v13 = vld [vmem:[#allocation3 + $0x350] sm:$0xff] }
 0x42f   :  { %v4624_v58 = vadd.f32 %v4560_v18, %v4427_v45  ;;  %v4625_v28 = vadd.f32 %v4561_v59, %v4428_v53  ;;  %v3841_v50 = vadd.f32 %v3777_v20, %v3645_v2  ;;  %v4952_v6 = vmul.f32 %v11627_v55, %v4884_v11  ;;  %v11779_v38 = vpop.f32.mrf.mxu1 }
 0x430   :  { %v4953_v52 = vmul.f32 %v11627_v55, %v4885_v3  ;;  %v3842_v17 = vadd.f32 %v3778_v12, %v3646_v24  ;;  %v3974_v33 = vmul.f32 %v4493_v34, %v15402_v21  ;;  %v4169_v41 = vmul.f32 %v4688_v29, %v15403_v62  ;;  %v4691_v34 = vld [vmem:[#allocation3 + $0x351] sm:$0xff] }
 0x431   :  { %v4820_v19 = vadd.f32 %v4756_v51, %v4624_v58  ;;  %v4821_v48 = vadd.f32 %v4757_v35, %v4625_v28  ;;  %v4037_v37 = vadd.f32 %v3973_v63, %v3841_v50  ;;  %v4170_v4 = vmul.f32 %v4689_v44, %v15403_v62  ;;  %v4887_v29 = vld [vmem:[#allocation3 + $0x352] sm:$0xff] }
 0x432   :  { %v4038_v42 = vadd.f32 %v3974_v33, %v3842_v17  ;;  %v4365_v49 = vmul.f32 %v4884_v11, %v15404_v57  ;;  %v4562_v21 = vmul.f32 %v15407_v47, %v4494_v31  ;;  %v4366_v39 = vmul.f32 %v4885_v3, %v15404_v57  ;;  %v11790_v3 = vpop.f32.mrf.mxu1 }
 0x433   :  { %v5016_v15 = vadd.f32 %v4952_v6, %v4820_v19  ;;  %v5017_v10 = vadd.f32 %v4953_v52, %v4821_v48  ;;  %v4233_v14 = vadd.f32 %v4169_v41, %v4037_v37  ;;  %v4563_v30 = vmul.f32 %v15407_v47, %v4495_v13 }
 0x434   :  { %v4234_v22 = vadd.f32 %v4170_v4, %v4038_v42  ;;  %v4758_v62 = vmul.f32 %v15408_v56, %v4690_v36  ;;  %v4759_v43 = vmul.f32 %v15408_v56, %v4691_v34  ;;  %v4954_v18 = vmul.f32 %v11627_v55, %v4886_v32  ;;  %v11798_v28 = vpop.f32.mrf.mxu1 }
 0x435   :  { %v5050_v40 = vpack.c.bf16 %v5017_v10, %v5016_v15  ;;  %v4429_v5 = vadd.f32 %v4365_v49, %v4233_v14  ;;  %v4955_v57 = vmul.f32 %v11627_v55, %v4887_v29  ;;  %v5439_v47 = vsel %vm2468_vm3, %v11666_v1, 0.0 }
 0x436   :  { %v4430_v44 = vadd.f32 %v4366_v39, %v4234_v22  ;;  %v5440_v0 = vsel %vm2468_vm3, %v11688_v8, 0.0  ;;  %v5442_v56 = vsel %vm2468_vm3, %v11656_v61, 0.0  ;;  %v5444_v55 = vsel %vm2468_vm3, %v11677_v25, 0.0  ;;  %v11803_v52 = vpop.f32.mrf.mxu1 }
 0x437   :  { %7703 = vmatprep.mubr.msk.bf16.mxu1 %vm2468_vm3, %v5050_v40  ;;  %v4626_v27 = vadd.f32 %v4562_v21, %v4429_v5  ;;  %v5441_v53 = vadd.f32 %v5440_v0, %v5439_v47  ;;  %v5446_v12 = vsel %vm2468_vm3, %v11709_v26, 0.0  ;;  %v5448_v58 = vsel %vm2468_vm3, %v11729_v60, 0.0 }
 0x438   :  { %v4627_v59 = vadd.f32 %v4563_v30, %v4430_v44  ;;  %v5450_v6 = vsel %vm2468_vm3, %v11699_v7, 0.0  ;;  %v5452_v33 = vsel %vm2468_vm3, %v11719_v54, 0.0  ;;  %v5454_v19 = vsel %vm2468_vm3, %v11751_v46, 0.0 }
 0x439   :  { %v4822_v45 = vadd.f32 %v4758_v62, %v4626_v27  ;;  %v5443_v20 = vadd.f32 %v5442_v56, %v5441_v53  ;;  %v5456_v48 = vsel %vm2468_vm3, %v11772_v16, 0.0  ;;  %v5458_v42 = vsel %vm2468_vm3, %v11741_v9, 0.0 }
 0x43a   :  { %v4823_v11 = vadd.f32 %v4759_v43, %v4627_v59  ;;  %v5460_v36 = vsel %vm2468_vm3, %v11763_v23, 0.0  ;;  %v5462_v10 = vsel %vm2468_vm3, %v11790_v3, 0.0  ;;  %v5464_v14 = vsel %vm2468_vm3, %v11803_v52, 0.0 }
 0x43b   :  { %v5018_v2 = vadd.f32 %v4954_v18, %v4822_v45  ;;  %v5445_v35 = vadd.f32 %v5444_v55, %v5443_v20  ;;  %v5466_v39 = vsel %vm2468_vm3, %v11779_v38, 0.0  ;;  %v5468_v40 = vsel %vm2468_vm3, %v11798_v28, 0.0 }
 0x43c   :  { %v5019_v51 = vadd.f32 %v4955_v57, %v4823_v11 }
 0x43d   :  { %v5447_v50 = vadd.f32 %v5446_v12, %v5445_v35 }
 0x43e   :  { %v5051_v24 = vpack.c.bf16 %v5019_v51, %v5018_v2 }
 0x43f   :  { %v5449_v63 = vadd.f32 %v5448_v58, %v5447_v50 }
 0x440   :  { %7704 = vmatmul.mubr.msk.bf16.gmra.mxu1 %vm2468_vm3, %v5051_v24  ;;  %v11811_v37 = vpop.f32.mrf.mxu1 }
 0x441   :  { %v5451_v17 = vadd.f32 %v5450_v6, %v5449_v63  ;;  %v5474_v59 = vsel %vm2468_vm3, %v11811_v37, 0.0 }
 0x442   :  { %v11815_v4 = vpop.f32.mrf.mxu1 }
 0x443   :  { %v5453_v31 = vadd.f32 %v5452_v33, %v5451_v17  ;;  %v5470_v62 = vsel %vm2468_vm3, %v11815_v4, 0.0 }
 0x444   :  { %v11823_v21 = vpop.f32.mrf.mxu1 }
 0x445   :  { %v5455_v41 = vadd.f32 %v5454_v19, %v5453_v31  ;;  %v5476_v0 = vsel %vm2468_vm3, %v11823_v21, 0.0 }
 0x446   :  { %v11827_v30 = vpop.f32.mrf.mxu1 }
 0x447   :  { %v5457_v13 = vadd.f32 %v5456_v48, %v5455_v41  ;;  %v5472_v29 = vsel %vm2468_vm3, %v11827_v30, 0.0 }
 0x449   :  { %v5459_v49 = vadd.f32 %v5458_v42, %v5457_v13 }
 0x44b   :  { %v5461_v15 = vadd.f32 %v5460_v36, %v5459_v49 }
 0x44d   :  { %v5463_v34 = vadd.f32 %v5462_v10, %v5461_v15 }
 0x44f   :  { %v5465_v22 = vadd.f32 %v5464_v14, %v5463_v34 }
 0x451   :  { %v5467_v32 = vadd.f32 %v5466_v39, %v5465_v22 }
 0x452   :  { %v11835_v44 = vpop.f32.mrf.mxu1 }
 0x453   :  { %v5469_v5 = vadd.f32 %v5468_v40, %v5467_v32  ;;  %v5482_v35 = vsel %vm2468_vm3, %v11835_v44, 0.0 }
 0x454   :  { %v11837_v18 = vpop.f32.mrf.mxu1 }
 0x455   :  { %v5471_v43 = vadd.f32 %v5470_v62, %v5469_v5  ;;  %v5478_v11 = vsel %vm2468_vm3, %v11837_v18, 0.0 }
 0x456   :  { %v11841_v47 = vpop.f32.mrf.mxu1 }
 0x457   :  { %v5473_v27 = vadd.f32 %v5472_v29, %v5471_v43  ;;  %v5484_v58 = vsel %vm2468_vm3, %v11841_v47, 0.0 }
 0x458   :  { %v11845_v53 = vpop.f32.mrf.mxu1 }
 0x459   :  { %v5475_v57 = vadd.f32 %v5474_v59, %v5473_v27  ;;  %v5480_v2 = vsel %vm2468_vm3, %v11845_v53, 0.0 }
 0x45b   :  { %v5477_v45 = vadd.f32 %v5476_v0, %v5475_v57 }
 0x45d   :  { %v5479_v56 = vadd.f32 %v5478_v11, %v5477_v45 }
 0x45f   :  { %v5481_v51 = vadd.f32 %v5480_v2, %v5479_v56 }
 0x461   :  { %v5483_v24 = vadd.f32 %v5482_v35, %v5481_v51 }
 0x463   :  { %v11851_v20 = vpop.f32.mrf.mxu1  ;;  %v5485_v50 = vadd.f32 %v5484_v58, %v5483_v24 }
 0x464   :  { %v5490_v41 = vsel %vm2468_vm3, %v11851_v20, 0.0 }
 0x465   :  { %v11853_v55 = vpop.f32.mrf.mxu1 }
 0x466   :  { %v5486_v6 = vsel %vm2468_vm3, %v11853_v55, 0.0 }
 0x467   :  { %v11857_v12 = vpop.f32.mrf.mxu1  ;;  %v5487_v17 = vadd.f32 %v5486_v6, %v5485_v50 }
 0x468   :  { %v5492_v49 = vsel %vm2468_vm3, %v11857_v12, 0.0 }
 0x469   :  { %v11861_v63 = vpop.f32.mrf.mxu1 }
 0x46a   :  { %v5488_v33 = vsel %vm2468_vm3, %v11861_v63, 0.0 }
 0x46b   :  { %v5489_v19 = vadd.f32 %v5488_v33, %v5487_v17 }
 0x46d   :  { %v5491_v13 = vadd.f32 %v5490_v41, %v5489_v19 }
 0x46f   :  { %v5493_v36 = vadd.f32 %v5492_v49, %v5491_v13 }
 0x475   :  { %v11867_v31 = vpop.f32.mrf.mxu1 }
 0x476   :  { %v5498_v40 = vsel %vm2468_vm3, %v11867_v31, 0.0 }
 0x477   :  { %v11869_v48 = vpop.f32.mrf.mxu1 }
 0x478   :  { %v5494_v10 = vsel %vm2468_vm3, %v11869_v48, 0.0 }
 0x479   :  { %v11873_v42 = vpop.f32.mrf.mxu1  ;;  %v5495_v14 = vadd.f32 %v5494_v10, %v5493_v36 }
 0x47a   :  { %v5500_v29 = vsel %vm2468_vm3, %v11873_v42, 0.0 }
 0x47b   :  { %v11877_v15 = vpop.f32.mrf.mxu1 }
 0x47c   :  { %v5496_v34 = vsel %vm2468_vm3, %v11877_v15, 0.0 }
 0x47d   :  { %v5497_v39 = vadd.f32 %v5496_v34, %v5495_v14 }
 0x47f   :  { %v5499_v5 = vadd.f32 %v5498_v40, %v5497_v39 }
 0x481   :  { %v5501_v43 = vadd.f32 %v5500_v29, %v5499_v5 }
 0x485   :  { %v11883_v22 = vpop.f32.mrf.mxu1 }
 0x486   :  { %v5506_v2 = vsel %vm2468_vm3, %v11883_v22, 0.0 }
 0x487   :  { %v11885_v32 = vpop.f32.mrf.mxu1 }
 0x488   :  { %v5502_v59 = vsel %vm2468_vm3, %v11885_v32, 0.0 }
 0x489   :  { %v11889_v62 = vpop.f32.mrf.mxu1  ;;  %v5503_v57 = vadd.f32 %v5502_v59, %v5501_v43 }
 0x48a   :  { %v5508_v24 = vsel %vm2468_vm3, %v11889_v62, 0.0 }
 0x48b   :  { %v11893_v27 = vpop.f32.mrf.mxu1 }
 0x48c   :  { %v5504_v0 = vsel %vm2468_vm3, %v11893_v27, 0.0 }
 0x48d   :  { %v5505_v11 = vadd.f32 %v5504_v0, %v5503_v57 }
 0x48f   :  { %v5507_v51 = vadd.f32 %v5506_v2, %v5505_v11 }
 0x491   :  { %v5509_v58 = vadd.f32 %v5508_v24, %v5507_v51 }
 0x497   :  { %v11899_v45 = vpop.f32.mrf.mxu1 }
 0x498   :  { %v5514_v49 = vsel %vm2468_vm3, %v11899_v45, 0.0 }
 0x499   :  { %v11901_v56 = vpop.f32.mrf.mxu1 }
 0x49a   :  { %v5510_v6 = vsel %vm2468_vm3, %v11901_v56, 0.0 }
 0x49b   :  { %v11905_v35 = vpop.f32.mrf.mxu1  ;;  %v5511_v17 = vadd.f32 %v5510_v6, %v5509_v58 }
 0x49c   :  { %v5516_v14 = vsel %vm2468_vm3, %v11905_v35, 0.0 }
 0x49d   :  { %v11909_v50 = vpop.f32.mrf.mxu1 }
 0x49e   :  { %v5512_v33 = vsel %vm2468_vm3, %v11909_v50, 0.0 }
 0x49f   :  { %v5513_v19 = vadd.f32 %v5512_v33, %v5511_v17 }
 0x4a1   :  { %v5515_v36 = vadd.f32 %v5514_v49, %v5513_v19 }
 0x4a3   :  { %v5517_v34 = vadd.f32 %v5516_v14, %v5515_v36 }
 0x4a8   :  { %v11915_v41 = vpop.f32.mrf.mxu1 }
 0x4a9   :  { %15412 = vst [vmem:[#allocation28_spill] sm:$0xff] %v11915_v41  ;;  %v5522_v57 = vsel %vm2468_vm3, %v11915_v41, 0.0 }
 0x4aa   :  { %v11917_v13 = vpop.f32.mrf.mxu1 }
 0x4ab   :  { %15413 = vst [vmem:[#allocation29_spill] sm:$0xff] %v11917_v13  ;;  %v5518_v40 = vsel %vm2468_vm3, %v11917_v13, 0.0 }
 0x4ac   :  { %v11921_v10 = vpop.f32.mrf.mxu1  ;;  %v5519_v5 = vadd.f32 %v5518_v40, %v5517_v34 }
 0x4ad   :  { %15414 = vst [vmem:[#allocation30_spill] sm:$0xff] %v11921_v10  ;;  %v5524_v51 = vsel %vm2468_vm3, %v11921_v10, 0.0 }
 0x4ae   :  { %v11925_v39 = vpop.f32.mrf.mxu1 }
 0x4af   :  { %15415 = vst [vmem:[#allocation31_spill] sm:$0xff] %v11925_v39  ;;  %v5520_v29 = vsel %vm2468_vm3, %v11925_v39, 0.0 }
 0x4b0   :  { %v5521_v43 = vadd.f32 %v5520_v29, %v5519_v5 }
 0x4b2   :  { %v5523_v0 = vadd.f32 %v5522_v57, %v5521_v43 }
 0x4b4   :  { %v5525_v24 = vadd.f32 %v5524_v51, %v5523_v0 }
 0x4ba   :  { %v11931_v59 = vpop.f32.mrf.mxu1 }
 0x4bb   :  { %15416 = vst [vmem:[#allocation32_spill] sm:$0xff] %v11931_v59  ;;  %v5530_v49 = vsel %vm2468_vm3, %v11931_v59, 0.0 }
 0x4bc   :  { %v11935_v11 = vpop.f32.mrf.mxu1 }
 0x4bd   :  { %15417 = vst [vmem:[#allocation33_spill] sm:$0xff] %v11935_v11  ;;  %v5526_v6 = vsel %vm2468_vm3, %v11935_v11, 0.0 }
 0x4be   :  { %v11937_v2 = vpop.f32.mrf.mxu1  ;;  %v5527_v17 = vadd.f32 %v5526_v6, %v5525_v24 }
 0x4bf   :  { %15418 = vst [vmem:[#allocation34_spill] sm:$0xff] %v11937_v2  ;;  %v5532_v40 = vsel %vm2468_vm3, %v11937_v2, 0.0 }
 0x4c0   :  { %v11941_v58 = vpop.f32.mrf.mxu1 }
 0x4c1   :  { %15419 = vst [vmem:[#allocation35_spill] sm:$0xff] %v11941_v58  ;;  %v5528_v33 = vsel %vm2468_vm3, %v11941_v58, 0.0 }
 0x4c2   :  { %v5529_v19 = vadd.f32 %v5528_v33, %v5527_v17 }
 0x4c4   :  { %v5531_v14 = vadd.f32 %v5530_v49, %v5529_v19 }
 0x4c6   :  { %v5533_v29 = vadd.f32 %v5532_v40, %v5531_v14 }
 0x4cb   :  { %v11949_v36 = vpop.f32.mrf.mxu1 }
 0x4cc   :  { %15420 = vst [vmem:[#allocation36_spill] sm:$0xff] %v11949_v36  ;;  %v5538_v6 = vsel %vm2468_vm3, %v11949_v36, 0.0 }
 0x4cd   :  { %v11951_v34 = vpop.f32.mrf.mxu1 }
 0x4ce   :  { %15421 = vst [vmem:[#allocation37_spill] sm:$0xff] %v11951_v34  ;;  %v5534_v57 = vsel %vm2468_vm3, %v11951_v34, 0.0 }
 0x4cf   :  { %v11955_v5 = vpop.f32.mrf.mxu1  ;;  %v5535_v0 = vadd.f32 %v5534_v57, %v5533_v29 }
 0x4d0   :  { %15422 = vst [vmem:[#allocation13_spill] sm:$0xff] %v11955_v5  ;;  %v5540_v19 = vsel %vm2468_vm3, %v11955_v5, 0.0 }
 0x4d1   :  { %v11957_v43 = vpop.f32.mrf.mxu1 }
 0x4d2   :  { %15423 = vst [vmem:[#allocation15_spill] sm:$0xff] %v11957_v43  ;;  %v5536_v51 = vsel %vm2468_vm3, %v11957_v43, 0.0 }
 0x4d3   :  { %v5537_v24 = vadd.f32 %v5536_v51, %v5535_v0 }
 0x4d5   :  { %v5539_v17 = vadd.f32 %v5538_v6, %v5537_v24 }
 0x4d7   :  { %v5541_v14 = vadd.f32 %v5540_v19, %v5539_v17 }
 0x4dd   :  { %v11965_v33 = vpop.f32.mrf.mxu1 }
 0x4de   :  { %15424 = vst [vmem:[#allocation12_spill] sm:$0xff] %v11965_v33  ;;  %v5546_v6 = vsel %vm2468_vm3, %v11965_v33, 0.0 }
 0x4df   :  { %v11969_v49 = vpop.f32.mrf.mxu1 }
 0x4e0   :  { %15425 = vst [vmem:[#allocation14_spill] sm:$0xff] %v11969_v49  ;;  %v5542_v29 = vsel %vm2468_vm3, %v11969_v49, 0.0 }
 0x4e1   :  { %v11971_v40 = vpop.f32.mrf.mxu1  ;;  %v5543_v0 = vadd.f32 %v5542_v29, %v5541_v14 }
 0x4e2   :  { %15426 = vst [vmem:[#allocation17_spill] sm:$0xff] %v11971_v40  ;;  %v5548_v17 = vsel %vm2468_vm3, %v11971_v40, 0.0 }
 0x4e3   :  { %v11975_v57 = vpop.f32.mrf.mxu1 }
 0x4e4   :  { %15427 = vst [vmem:[#allocation19_spill] sm:$0xff] %v11975_v57  ;;  %v5544_v51 = vsel %vm2468_vm3, %v11975_v57, 0.0 }
 0x4e5   :  { %v5545_v24 = vadd.f32 %v5544_v51, %v5543_v0 }
 0x4e7   :  { %v5547_v36 = vadd.f32 %v5546_v6, %v5545_v24 }
 0x4e9   :  { %v5549_v43 = vadd.f32 %v5548_v17, %v5547_v36 }
 0x4ee   :  { %v7701_v5 = vpop.f32.mrf.mxu1 }
 0x4ef   :  { %v5554_v0 = vsel %vm2468_vm3, %v7701_v5, 0.0 }
 0x4f0   :  { %v5408_v19 = vpop.f32.mrf.mxu1 }
 0x4f1   :  { %v5550_v49 = vsel %vm2468_vm3, %v5408_v19, 0.0 }
 0x4f2   :  { %v7702_v34 = vpop.f32.mrf.mxu1  ;;  %v5551_v2 = vadd.f32 %v5550_v49, %v5549_v43 }
 0x4f3   :  { %v5556_v33 = vsel %vm2468_vm3, %v7702_v34, 0.0 }
 0x4f4   :  { %v5411_v59 = vpop.f32.mrf.mxu1 }
 0x4f5   :  { %v5552_v14 = vsel %vm2468_vm3, %v5411_v59, 0.0 }
 0x4f6   :  { %v5553_v29 = vadd.f32 %v5552_v14, %v5551_v2 }
 0x4f8   :  { %v5555_v51 = vadd.f32 %v5554_v0, %v5553_v29 }
 0x4fa   :  { %v5557_v6 = vadd.f32 %v5556_v33, %v5555_v51 }
 0x500   :  { %v7705_v24 = vpop.f32.mrf.mxu1 }
 0x501   :  { %v5562_v49 = vsel %vm2468_vm3, %v7705_v24, 0.0 }
 0x502   :  { %v5424_v57 = vpop.f32.mrf.mxu1 }
 0x503   :  { %v5558_v40 = vsel %vm2468_vm3, %v5424_v57, 0.0 }
 0x504   :  { %v5559_v58 = vadd.f32 %v5558_v40, %v5557_v6  ;;  %v7706_v36 = vpop.f32.mrf.mxu1 }
 0x505   :  { %v5564_v2 = vsel %vm2468_vm3, %v7706_v36, 0.0 }
 0x506   :  { %v5427_v17 = vpop.f32.mrf.mxu1 }
 0x507   :  { %v5560_v11 = vsel %vm2468_vm3, %v5427_v17, 0.0 }
 0x508   :  { %v5561_v43 = vadd.f32 %v5560_v11, %v5559_v58 }
 0x50a   :  { %v5563_v10 = vadd.f32 %v5562_v49, %v5561_v43 }
 0x50c   :  { %v5565_v14 = vadd.f32 %v5564_v2, %v5563_v10 }
 0x50e   :  { %v5566_v29 = vrot.slane %v5565_v14, 4 }
 0x510   :  { %v5567_v0 = vadd.f32 %v5566_v29, %v5565_v14 }
 0x512   :  { %v5568_v41 = vrot.slane %v5567_v0, 2 }
 0x514   :  { %v5569_v39 = vadd.f32 %v5568_v41, %v5567_v0 }
 0x516   :  { %v5570_v33 = vrot.slane %v5569_v39, 1 }
 0x518   :  { %v5571_v51 = vadd.f32 %v5570_v33, %v5569_v39 }
 0x51a   :  { %v11991_v13 = vmul.f32 0.001953125, %v5571_v51 }
 0x51c   :  { %v11994_v40 = vsub.f32 %v5408_v19, %v11991_v13  ;;  %v11997_v6 = vsub.f32 %v5411_v59, %v11991_v13  ;;  %v12000_v11 = vsub.f32 %v7701_v5, %v11991_v13  ;;  %v12003_v58 = vsub.f32 %v7702_v34, %v11991_v13 }
 0x51d   :  { %v12006_v10 = vsub.f32 %v5424_v57, %v11991_v13  ;;  %v12009_v41 = vsub.f32 %v5427_v17, %v11991_v13  ;;  %v12012_v39 = vsub.f32 %v7705_v24, %v11991_v13  ;;  %v12015_v19 = vsub.f32 %v7706_v36, %v11991_v13 }
 0x51e   :  { %15428 = vst [vmem:[#allocation16_spill] sm:$0xff] %v12000_v11  ;;  %15429 = vst [vmem:[#allocation18_spill] sm:$0xff] %v12003_v58  ;;  %v12019_v59 = vsub.f32 %v11666_v1, %v11991_v13  ;;  %v12023_v34 = vsub.f32 %v11688_v8, %v11991_v13  ;;  %v12027_v5 = vsub.f32 %v11656_v61, %v11991_v13 }
 0x51f   :  { %15430 = vst [vmem:[#allocation21_spill] sm:$0xff] %v12006_v10  ;;  %15431 = vst [vmem:[#allocation23_spill] sm:$0xff] %v12012_v39  ;;  %v12031_v57 = vsub.f32 %v11677_v25, %v11991_v13  ;;  %v12039_v1 = vsub.f32 %v11709_v26, %v11991_v13  ;;  %v12045_v61 = vsub.f32 %v11729_v60, %v11991_v13 }
 0x520   :  { %v5637_v24 = vmul.f32 %v12019_v59, %v12019_v59  ;;  %v5638_v36 = vmul.f32 %v12023_v34, %v12023_v34  ;;  %v5639_v8 = vmul.f32 %v12027_v5, %v12027_v5  ;;  %v12053_v2 = vsub.f32 %v11699_v7, %v11991_v13 }
 0x521   :  { %v5640_v25 = vmul.f32 %v12031_v57, %v12031_v57  ;;  %v5641_v26 = vmul.f32 %v12039_v1, %v12039_v1  ;;  %v12060_v60 = vsub.f32 %v11719_v54, %v11991_v13  ;;  %v5642_v0 = vmul.f32 %v12045_v61, %v12045_v61 }
 0x522   :  { %v5701_v17 = vsel %vm2468_vm3, %v5637_v24, 0.0  ;;  %v5702_v43 = vsel %vm2468_vm3, %v5638_v36, 0.0  ;;  %v5704_v14 = vsel %vm2468_vm3, %v5639_v8, 0.0  ;;  %v12067_v7 = vsub.f32 %v11751_v46, %v11991_v13 }
 0x523   :  { %v5703_v49 = vadd.f32 %v5702_v43, %v5701_v17  ;;  %v5706_v33 = vsel %vm2468_vm3, %v5640_v25, 0.0  ;;  %v5643_v24 = vmul.f32 %v12053_v2, %v12053_v2  ;;  %v5708_v36 = vsel %vm2468_vm3, %v5641_v26, 0.0 }
 0x524   :  { %v12074_v54 = vsub.f32 %v11772_v16, %v11991_v13  ;;  %v5644_v17 = vmul.f32 %v12060_v60, %v12060_v60  ;;  %v5710_v25 = vsel %vm2468_vm3, %v5642_v0, 0.0  ;;  %v12081_v46 = vsub.f32 %v11741_v9, %v11991_v13 }
 0x525   :  { %v5705_v29 = vadd.f32 %v5704_v14, %v5703_v49  ;;  %v5645_v49 = vmul.f32 %v12067_v7, %v12067_v7  ;;  %v5712_v26 = vsel %vm2468_vm3, %v5643_v24, 0.0  ;;  %v12088_v16 = vsub.f32 %v11763_v23, %v11991_v13 }
 0x526   :  { %v5714_v0 = vsel %vm2468_vm3, %v5644_v17, 0.0  ;;  %v12095_v9 = vsub.f32 %v11790_v3, %v11991_v13  ;;  %v12102_v23 = vsub.f32 %v11803_v52, %v11991_v13  ;;  %v12109_v3 = vsub.f32 %v11779_v38, %v11991_v13 }
 0x527   :  { %v5707_v51 = vadd.f32 %v5706_v33, %v5705_v29  ;;  %v5646_v29 = vmul.f32 %v12074_v54, %v12074_v54  ;;  %v5716_v24 = vsel %vm2468_vm3, %v5645_v49, 0.0  ;;  %v12116_v52 = vsub.f32 %v11798_v28, %v11991_v13 }
 0x528   :  { %v12123_v38 = vsub.f32 %v11815_v4, %v11991_v13  ;;  %v12130_v28 = vsub.f32 %v11827_v30, %v11991_v13  ;;  %v12137_v4 = vsub.f32 %v11811_v37, %v11991_v13  ;;  %v12144_v30 = vsub.f32 %v11823_v21, %v11991_v13 }
 0x529   :  { %v5709_v8 = vadd.f32 %v5708_v36, %v5707_v51  ;;  %v5647_v51 = vmul.f32 %v12081_v46, %v12081_v46  ;;  %v5718_v17 = vsel %vm2468_vm3, %v5646_v29, 0.0  ;;  %v12151_v37 = vsub.f32 %v11837_v18, %v11991_v13 }
 0x52a   :  { %v12158_v21 = vsub.f32 %v11845_v53, %v11991_v13  ;;  %v12165_v18 = vsub.f32 %v11835_v44, %v11991_v13  ;;  %v12172_v53 = vsub.f32 %v11841_v47, %v11991_v13  ;;  %v12179_v44 = vsub.f32 %v11853_v55, %v11991_v13 }
 0x52b   :  { %v5711_v43 = vadd.f32 %v5710_v25, %v5709_v8  ;;  %v5648_v8 = vmul.f32 %v12088_v16, %v12088_v16  ;;  %v5720_v49 = vsel %vm2468_vm3, %v5647_v51, 0.0  ;;  %v12186_v47 = vsub.f32 %v11861_v63, %v11991_v13 }
 0x52c   :  { %v12193_v55 = vsub.f32 %v11851_v20, %v11991_v13  ;;  %v12200_v63 = vsub.f32 %v11857_v12, %v11991_v13  ;;  %v12207_v20 = vsub.f32 %v11869_v48, %v11991_v13  ;;  %v12214_v12 = vsub.f32 %v11877_v15, %v11991_v13 }
 0x52d   :  { %v5713_v14 = vadd.f32 %v5712_v26, %v5711_v43  ;;  %v5649_v43 = vmul.f32 %v12095_v9, %v12095_v9  ;;  %v5722_v29 = vsel %vm2468_vm3, %v5648_v8, 0.0  ;;  %v12221_v48 = vsub.f32 %v11867_v31, %v11991_v13 }
 0x52e   :  { %v12228_v15 = vsub.f32 %v11873_v42, %v11991_v13  ;;  %v12235_v31 = vsub.f32 %v11885_v32, %v11991_v13  ;;  %v12242_v42 = vsub.f32 %v11893_v27, %v11991_v13  ;;  %v12249_v32 = vsub.f32 %v11883_v22, %v11991_v13 }
 0x52f   :  { %v5715_v33 = vadd.f32 %v5714_v0, %v5713_v14  ;;  %v5650_v14 = vmul.f32 %v12102_v23, %v12102_v23  ;;  %v5724_v51 = vsel %vm2468_vm3, %v5649_v43, 0.0  ;;  %v12256_v27 = vsub.f32 %v11889_v62, %v11991_v13 }
 0x530   :  { %v12263_v22 = vsub.f32 %v11901_v56, %v11991_v13  ;;  %v12270_v62 = vsub.f32 %v11909_v50, %v11991_v13  ;;  %v12277_v56 = vsub.f32 %v11899_v45, %v11991_v13  ;;  %v12284_v50 = vsub.f32 %v11905_v35, %v11991_v13 }
 0x531   :  { %v5717_v36 = vadd.f32 %v5716_v24, %v5715_v33  ;;  %v5651_v33 = vmul.f32 %v12109_v3, %v12109_v3  ;;  %v5726_v8 = vsel %vm2468_vm3, %v5650_v14, 0.0 }
 0x532   :  { %15432 = vst [vmem:[#allocation20_spill] sm:$0xff] %v12277_v56  ;;  %15433 = vst [vmem:[#allocation22_spill] sm:$0xff] %v12284_v50 }
 0x533   :  { %v5719_v25 = vadd.f32 %v5718_v17, %v5717_v36  ;;  %v5652_v36 = vmul.f32 %v12116_v52, %v12116_v52  ;;  %v5728_v43 = vsel %vm2468_vm3, %v5651_v33, 0.0 }
 0x535   :  { %v5721_v26 = vadd.f32 %v5720_v49, %v5719_v25  ;;  %v5653_v25 = vmul.f32 %v12123_v38, %v12123_v38  ;;  %v5730_v14 = vsel %vm2468_vm3, %v5652_v36, 0.0 }
 0x537   :  { %v5723_v0 = vadd.f32 %v5722_v29, %v5721_v26  ;;  %v5654_v26 = vmul.f32 %v12130_v28, %v12130_v28  ;;  %v5732_v33 = vsel %vm2468_vm3, %v5653_v25, 0.0 }
 0x539   :  { %v5725_v24 = vadd.f32 %v5724_v51, %v5723_v0  ;;  %v5655_v0 = vmul.f32 %v12137_v4, %v12137_v4  ;;  %v5734_v36 = vsel %vm2468_vm3, %v5654_v26, 0.0 }
 0x53b   :  { %v5727_v17 = vadd.f32 %v5726_v8, %v5725_v24  ;;  %v5656_v24 = vmul.f32 %v12144_v30, %v12144_v30  ;;  %v5736_v25 = vsel %vm2468_vm3, %v5655_v0, 0.0 }
 0x53d   :  { %v5729_v49 = vadd.f32 %v5728_v43, %v5727_v17  ;;  %v5657_v17 = vmul.f32 %v12151_v37, %v12151_v37  ;;  %v5738_v26 = vsel %vm2468_vm3, %v5656_v24, 0.0 }
 0x53f   :  { %v5731_v29 = vadd.f32 %v5730_v14, %v5729_v49  ;;  %v5658_v49 = vmul.f32 %v12158_v21, %v12158_v21  ;;  %v5740_v0 = vsel %vm2468_vm3, %v5657_v17, 0.0 }
 0x541   :  { %v5733_v51 = vadd.f32 %v5732_v33, %v5731_v29  ;;  %v5659_v29 = vmul.f32 %v12165_v18, %v12165_v18  ;;  %v5742_v24 = vsel %vm2468_vm3, %v5658_v49, 0.0 }
 0x543   :  { %v5735_v8 = vadd.f32 %v5734_v36, %v5733_v51  ;;  %v5660_v51 = vmul.f32 %v12172_v53, %v12172_v53  ;;  %v5744_v17 = vsel %vm2468_vm3, %v5659_v29, 0.0 }
 0x545   :  { %v5737_v43 = vadd.f32 %v5736_v25, %v5735_v8  ;;  %v5661_v8 = vmul.f32 %v12179_v44, %v12179_v44  ;;  %v5746_v49 = vsel %vm2468_vm3, %v5660_v51, 0.0 }
 0x547   :  { %v5739_v14 = vadd.f32 %v5738_v26, %v5737_v43  ;;  %v5662_v43 = vmul.f32 %v12186_v47, %v12186_v47  ;;  %v5748_v29 = vsel %vm2468_vm3, %v5661_v8, 0.0 }
 0x549   :  { %v5741_v33 = vadd.f32 %v5740_v0, %v5739_v14  ;;  %v5663_v14 = vmul.f32 %v12193_v55, %v12193_v55  ;;  %v5750_v51 = vsel %vm2468_vm3, %v5662_v43, 0.0 }
 0x54b   :  { %v5743_v36 = vadd.f32 %v5742_v24, %v5741_v33  ;;  %v5664_v33 = vmul.f32 %v12200_v63, %v12200_v63  ;;  %v5752_v8 = vsel %vm2468_vm3, %v5663_v14, 0.0 }
 0x54d   :  { %v5745_v25 = vadd.f32 %v5744_v17, %v5743_v36  ;;  %v5665_v36 = vmul.f32 %v12207_v20, %v12207_v20  ;;  %v5754_v43 = vsel %vm2468_vm3, %v5664_v33, 0.0 }
 0x54f   :  { %v5747_v26 = vadd.f32 %v5746_v49, %v5745_v25  ;;  %v5666_v25 = vmul.f32 %v12214_v12, %v12214_v12  ;;  %v5756_v14 = vsel %vm2468_vm3, %v5665_v36, 0.0 }
 0x551   :  { %v5749_v0 = vadd.f32 %v5748_v29, %v5747_v26  ;;  %v5667_v26 = vmul.f32 %v12221_v48, %v12221_v48  ;;  %v5758_v33 = vsel %vm2468_vm3, %v5666_v25, 0.0 }
 0x553   :  { %v5751_v24 = vadd.f32 %v5750_v51, %v5749_v0  ;;  %v5668_v0 = vmul.f32 %v12228_v15, %v12228_v15  ;;  %v5760_v36 = vsel %vm2468_vm3, %v5667_v26, 0.0 }
 0x555   :  { %v5753_v17 = vadd.f32 %v5752_v8, %v5751_v24  ;;  %v5669_v24 = vmul.f32 %v12235_v31, %v12235_v31  ;;  %v5762_v25 = vsel %vm2468_vm3, %v5668_v0, 0.0 }
 0x557   :  { %v5755_v49 = vadd.f32 %v5754_v43, %v5753_v17  ;;  %v5670_v17 = vmul.f32 %v12242_v42, %v12242_v42  ;;  %v5764_v26 = vsel %vm2468_vm3, %v5669_v24, 0.0 }
 0x559   :  { %v5757_v29 = vadd.f32 %v5756_v14, %v5755_v49  ;;  %v5671_v49 = vmul.f32 %v12249_v32, %v12249_v32  ;;  %v5766_v0 = vsel %vm2468_vm3, %v5670_v17, 0.0 }
 0x55b   :  { %v5759_v51 = vadd.f32 %v5758_v33, %v5757_v29  ;;  %v5672_v29 = vmul.f32 %v12256_v27, %v12256_v27  ;;  %v5768_v24 = vsel %vm2468_vm3, %v5671_v49, 0.0 }
 0x55d   :  { %v5761_v8 = vadd.f32 %v5760_v36, %v5759_v51  ;;  %v5673_v51 = vmul.f32 %v12263_v22, %v12263_v22  ;;  %v5770_v17 = vsel %vm2468_vm3, %v5672_v29, 0.0 }
 0x55f   :  { %v5763_v43 = vadd.f32 %v5762_v25, %v5761_v8  ;;  %v5674_v8 = vmul.f32 %v12270_v62, %v12270_v62  ;;  %v5772_v49 = vsel %vm2468_vm3, %v5673_v51, 0.0 }
 0x561   :  { %v5765_v14 = vadd.f32 %v5764_v26, %v5763_v43  ;;  %v15434_v43 = vld [vmem:[#allocation29_spill] sm:$0xff]  ;;  %v5675_v26 = vmul.f32 %v12277_v56, %v12277_v56  ;;  %v5774_v29 = vsel %vm2468_vm3, %v5674_v8, 0.0 }
 0x562   :  { %v12291_v45 = vsub.f32 %v15434_v43, %v11991_v13 }
 0x563   :  { %v5767_v33 = vadd.f32 %v5766_v0, %v5765_v14  ;;  %v15436_v0 = vld [vmem:[#allocation31_spill] sm:$0xff]  ;;  %v5776_v51 = vsel %vm2468_vm3, %v5675_v26, 0.0 }
 0x564   :  { %15435 = vst [vmem:[#allocation25_spill] sm:$0xff] %v12291_v45  ;;  %v12298_v35 = vsub.f32 %v15436_v0, %v11991_v13  ;;  %v5677_v43 = vmul.f32 %v12291_v45, %v12291_v45 }
 0x565   :  { %v5769_v36 = vadd.f32 %v5768_v24, %v5767_v33  ;;  %v5676_v33 = vmul.f32 %v12284_v50, %v12284_v50 }
 0x566   :  { %15437 = vst [vmem:[#allocation10_spill] sm:$0xff] %v12298_v35  ;;  %v5678_v50 = vmul.f32 %v12298_v35, %v12298_v35  ;;  %v5780_v26 = vsel %vm2468_vm3, %v5677_v43, 0.0 }
 0x567   :  { %v5771_v25 = vadd.f32 %v5770_v17, %v5769_v36  ;;  %v15438_v36 = vld [vmem:[#allocation28_spill] sm:$0xff]  ;;  %v5778_v8 = vsel %vm2468_vm3, %v5676_v33, 0.0 }
 0x568   :  { %v12305_v17 = vsub.f32 %v15438_v36, %v11991_v13  ;;  %v5782_v33 = vsel %vm2468_vm3, %v5678_v50, 0.0 }
 0x569   :  { %v5773_v14 = vadd.f32 %v5772_v49, %v5771_v25  ;;  %v15440_v49 = vld [vmem:[#allocation30_spill] sm:$0xff] }
 0x56a   :  { %15439 = vst [vmem:[#allocation38_spill] sm:$0xff] %v12305_v17  ;;  %v12312_v0 = vsub.f32 %v15440_v49, %v11991_v13  ;;  %v5679_v45 = vmul.f32 %v12305_v17, %v12305_v17 }
 0x56b   :  { %v5775_v24 = vadd.f32 %v5774_v29, %v5773_v14  ;;  %v15442_v29 = vld [vmem:[#allocation33_spill] sm:$0xff] }
 0x56c   :  { %15441 = vst [vmem:[#allocation39_spill] sm:$0xff] %v12312_v0  ;;  %v12319_v36 = vsub.f32 %v15442_v29, %v11991_v13  ;;  %v5680_v35 = vmul.f32 %v12312_v0, %v12312_v0  ;;  %v5784_v43 = vsel %vm2468_vm3, %v5679_v45, 0.0 }
 0x56d   :  { %v5777_v25 = vadd.f32 %v5776_v51, %v5775_v24  ;;  %v15444_v51 = vld [vmem:[#allocation35_spill] sm:$0xff] }
 0x56e   :  { %15443 = vst [vmem:[#allocation40_spill] sm:$0xff] %v12319_v36  ;;  %v12326_v49 = vsub.f32 %v15444_v51, %v11991_v13  ;;  %v5681_v17 = vmul.f32 %v12319_v36, %v12319_v36  ;;  %v5786_v50 = vsel %vm2468_vm3, %v5680_v35, 0.0 }
 0x56f   :  { %v5779_v14 = vadd.f32 %v5778_v8, %v5777_v25  ;;  %v15446_v8 = vld [vmem:[#allocation32_spill] sm:$0xff] }
 0x570   :  { %15445 = vst [vmem:[#allocation41_spill] sm:$0xff] %v12326_v49  ;;  %v12333_v29 = vsub.f32 %v15446_v8, %v11991_v13  ;;  %v5682_v0 = vmul.f32 %v12326_v49, %v12326_v49  ;;  %v5788_v45 = vsel %vm2468_vm3, %v5681_v17, 0.0 }
 0x571   :  { %v5781_v24 = vadd.f32 %v5780_v26, %v5779_v14  ;;  %v15448_v26 = vld [vmem:[#allocation34_spill] sm:$0xff] }
 0x572   :  { %15447 = vst [vmem:[#allocation42_spill] sm:$0xff] %v12333_v29  ;;  %v12340_v51 = vsub.f32 %v15448_v26, %v11991_v13  ;;  %v5683_v36 = vmul.f32 %v12333_v29, %v12333_v29  ;;  %v5790_v35 = vsel %vm2468_vm3, %v5682_v0, 0.0 }
 0x573   :  { %v5783_v25 = vadd.f32 %v5782_v33, %v5781_v24  ;;  %v15450_v33 = vld [vmem:[#allocation37_spill] sm:$0xff] }
 0x574   :  { %15449 = vst [vmem:[#allocation43_spill] sm:$0xff] %v12340_v51  ;;  %v12347_v8 = vsub.f32 %v15450_v33, %v11991_v13  ;;  %v5684_v49 = vmul.f32 %v12340_v51, %v12340_v51  ;;  %v5792_v17 = vsel %vm2468_vm3, %v5683_v36, 0.0 }
 0x575   :  { %v5785_v14 = vadd.f32 %v5784_v43, %v5783_v25  ;;  %v15452_v43 = vld [vmem:[#allocation15_spill] sm:$0xff] }
 0x576   :  { %15451 = vst [vmem:[#allocation27_spill] sm:$0xff] %v12347_v8  ;;  %v12354_v26 = vsub.f32 %v15452_v43, %v11991_v13  ;;  %v5685_v29 = vmul.f32 %v12347_v8, %v12347_v8  ;;  %v5794_v0 = vsel %vm2468_vm3, %v5684_v49, 0.0 }
 0x577   :  { %v5787_v24 = vadd.f32 %v5786_v50, %v5785_v14  ;;  %v15454_v50 = vld [vmem:[#allocation36_spill] sm:$0xff] }
 0x578   :  { %15453 = vst [vmem:[#allocation24_spill] sm:$0xff] %v12354_v26  ;;  %v12361_v33 = vsub.f32 %v15454_v50, %v11991_v13  ;;  %v5686_v51 = vmul.f32 %v12354_v26, %v12354_v26  ;;  %v5796_v36 = vsel %vm2468_vm3, %v5685_v29, 0.0 }
 0x579   :  { %v5789_v25 = vadd.f32 %v5788_v45, %v5787_v24  ;;  %v15456_v45 = vld [vmem:[#allocation13_spill] sm:$0xff] }
 0x57a   :  { %15455 = vst [vmem:[#allocation26_spill] sm:$0xff] %v12361_v33  ;;  %v12368_v43 = vsub.f32 %v15456_v45, %v11991_v13  ;;  %v5687_v8 = vmul.f32 %v12361_v33, %v12361_v33  ;;  %v5798_v49 = vsel %vm2468_vm3, %v5686_v51, 0.0 }
 0x57b   :  { %v5791_v14 = vadd.f32 %v5790_v35, %v5789_v25  ;;  %v15458_v35 = vld [vmem:[#allocation14_spill] sm:$0xff] }
 0x57c   :  { %15457 = vst [vmem:[#allocation29_spill] sm:$0xff] %v12368_v43  ;;  %v12375_v50 = vsub.f32 %v15458_v35, %v11991_v13  ;;  %v5688_v26 = vmul.f32 %v12368_v43, %v12368_v43  ;;  %v5800_v29 = vsel %vm2468_vm3, %v5687_v8, 0.0 }
 0x57d   :  { %v5793_v24 = vadd.f32 %v5792_v17, %v5791_v14  ;;  %v15459_v17 = vld [vmem:[#allocation19_spill] sm:$0xff] }
 0x57e   :  { %v12382_v45 = vsub.f32 %v15459_v17, %v11991_v13  ;;  %v5689_v33 = vmul.f32 %v12375_v50, %v12375_v50  ;;  %v5802_v51 = vsel %vm2468_vm3, %v5688_v26, 0.0  ;;  %v5694_v26 = vmul.f32 %v11997_v6, %v11997_v6 }
 0x57f   :  { %v5795_v25 = vadd.f32 %v5794_v0, %v5793_v24  ;;  %v15461_v0 = vld [vmem:[#allocation12_spill] sm:$0xff] }
 0x580   :  { %15460 = vst [vmem:[#allocation31_spill] sm:$0xff] %v12382_v45  ;;  %v12389_v35 = vsub.f32 %v15461_v0, %v11991_v13  ;;  %v5690_v43 = vmul.f32 %v12382_v45, %v12382_v45  ;;  %v5804_v0 = vsel %vm2468_vm3, %v5689_v33, 0.0  ;;  %v5695_v33 = vmul.f32 %v12000_v11, %v12000_v11 }
 0x581   :  { %v5797_v14 = vadd.f32 %v5796_v36, %v5795_v25  ;;  %v15462_v36 = vld [vmem:[#allocation17_spill] sm:$0xff] }
 0x582   :  { %v12396_v17 = vsub.f32 %v15462_v36, %v11991_v13  ;;  %v5693_v13 = vmul.f32 %v11994_v40, %v11994_v40 }
 0x583   :  { %v5799_v24 = vadd.f32 %v5798_v49, %v5797_v14  ;;  %v5691_v49 = vmul.f32 %v12389_v35, %v12389_v35 }
 0x584   :  { %v5692_v8 = vmul.f32 %v12396_v17, %v12396_v17 }
 0x585   :  { %v5801_v25 = vadd.f32 %v5800_v29, %v5799_v24  ;;  %v5806_v24 = vsel %vm2468_vm3, %v5690_v43, 0.0  ;;  %v5808_v36 = vsel %vm2468_vm3, %v5691_v49, 0.0  ;;  %v5814_v43 = vsel %vm2468_vm3, %v5694_v26, 0.0 }
 0x586   :  { %v5697_v49 = vmul.f32 %v12006_v10, %v12006_v10  ;;  %v5700_v26 = vmul.f32 %v12015_v19, %v12015_v19 }
 0x587   :  { %v5803_v14 = vadd.f32 %v5802_v51, %v5801_v25  ;;  %v5810_v25 = vsel %vm2468_vm3, %v5692_v8, 0.0 }
 0x589   :  { %v5805_v56 = vadd.f32 %v5804_v0, %v5803_v14  ;;  %v5812_v14 = vsel %vm2468_vm3, %v5693_v13, 0.0  ;;  %v5699_v13 = vmul.f32 %v12012_v39, %v12012_v39 }
 0x58b   :  { %v5807_v29 = vadd.f32 %v5806_v24, %v5805_v56  ;;  %v5696_v56 = vmul.f32 %v12003_v58, %v12003_v58 }
 0x58d   :  { %v5809_v45 = vadd.f32 %v5808_v36, %v5807_v29  ;;  %v5816_v29 = vsel %vm2468_vm3, %v5695_v33, 0.0  ;;  %v5818_v8 = vsel %vm2468_vm3, %v5696_v56, 0.0  ;;  %v5824_v33 = vsel %vm2468_vm3, %v5699_v13, 0.0  ;;  %v15463_v13 = vld [vmem:[#allocation11_spill] sm:$0xff] }
 0x58f   :  { %v5811_v51 = vadd.f32 %v5810_v25, %v5809_v45  ;;  %v5698_v45 = vmul.f32 %v12009_v41, %v12009_v41 }
 0x591   :  { %v5813_v0 = vadd.f32 %v5812_v14, %v5811_v51  ;;  %v5820_v51 = vsel %vm2468_vm3, %v5697_v49, 0.0 }
 0x593   :  { %v5815_v24 = vadd.f32 %v5814_v43, %v5813_v0  ;;  %v5822_v0 = vsel %vm2468_vm3, %v5698_v45, 0.0  ;;  %v3079_v45 = vld [vmem:[%s15073_s7] sm:$0x1]  ;;  %s7769_s7 = smov [#allocation4]  }
 0x595   :  { %v5817_v36 = vadd.f32 %v5816_v29, %v5815_v24  ;;  %v5826_v29 = vsel %vm2468_vm3, %v5700_v26, 0.0 }
 0x597   :  { %v5819_v25 = vadd.f32 %v5818_v8, %v5817_v36 }
 0x599   :  { %v5821_v14 = vadd.f32 %v5820_v51, %v5819_v25 }
 0x59b   :  { %v5823_v43 = vadd.f32 %v5822_v0, %v5821_v14 }
 0x59d   :  { %v5825_v24 = vadd.f32 %v5824_v33, %v5823_v43 }
 0x59f   :  { %v5827_v10 = vadd.f32 %v5826_v29, %v5825_v24 }
 0x5a1   :  { %v5828_v56 = vrot.slane %v5827_v10, 4 }
 0x5a3   :  { %v5829_v36 = vadd.f32 %v5828_v56, %v5827_v10  ;;  %v12442_v10 = vld [vmem:[%s15074_s8] ss:$0 sm:$0xff]  ;;  %s14747_s8 = sshll.u32 %s7769_s7, 4  ;;  %s14790_s8 = int_to_ptr.vmem [resolvable:$true] %s14747_s8 }
 0x5a4   :  { %s7723_s22 = scalar_lea.vmem %s14790_s8, 2048  ;;  %p7728_p1 = scmp.lt.s32.totalorder %s14790_s8, %s14790_s8 }
 0x5a5   :  { %v5830_v8 = vrot.slane %v5829_v36, 2  ;;  %p7724_p0 = scmp.ne.s32.totalorder %s14790_s8, %s7723_s22  ;;  %p7729_p2 = scmp.lt.s32.totalorder %s7723_s22, %s7723_s22 }
 0x5a7   :  { %v5831_v58 = vadd.f32 %v5830_v8, %v5829_v36  ;;  %p7730_p3 = por %p7729_p2, %p7728_p1 }
 0x5a9   :  { %v5832_v39 = vrot.slane %v5831_v58, 1  ;;  %p7731_p4 = pnand %p7730_p3, %p7724_p0 }
 0x5ab   :  { %v5833_v11 = vadd.f32 %v5832_v39, %v5831_v58 }
 0x5ad   :  { %v5834_v49 = vmul.f32 0.001953125, %v5833_v11 }
 0x5af   :  { %v5835_v25 = vadd.f32 1e-05, %v5834_v49 }
 0x5b1   :  { %7716 = vrsqrt.f32 %v5835_v25 }
 0x5be   :  { %v7717_v51 = vpop.eup %7716 }
 0x5bf   :  { %v5837_v14 = vmul.f32 %v7717_v51, %v3079_v45 }
 0x5c1   :  { %v12437_v0 = vrot.slane %v5837_v14, %v15463_v13 }
 0x5c3   :  { %v5905_v58 = vmul.f32 %v12437_v0, %v12009_v41  ;;  %v5907_v11 = vmul.f32 %v12437_v0, %v12015_v19  ;;  %v12450_v39 = vmul.f32 %v12437_v0, %v12019_v59  ;;  %v12454_v26 = vmul.f32 %v12437_v0, %v12023_v34 }
 0x5c4   :  { %v12458_v43 = vmul.f32 %v12437_v0, %v12027_v5  ;;  %v12462_v33 = vmul.f32 %v12437_v0, %v12031_v57  ;;  %v12466_v41 = vmul.f32 %v12437_v0, %v12039_v1  ;;  %v12470_v19 = vmul.f32 %v12437_v0, %v12045_v61 }
 0x5c5   :  { %v5975_v59 = vadd.f32 %v12442_v10, %v5905_v58  ;;  %v5977_v34 = vadd.f32 %v12442_v10, %v5907_v11  ;;  %v12476_v5 = vmul.f32 %v12437_v0, %v12053_v2  ;;  %v12480_v57 = vmul.f32 %v12437_v0, %v12060_v60 }
 0x5c6   :  { %v12484_v1 = vmul.f32 %v12437_v0, %v12067_v7  ;;  %v12488_v61 = vmul.f32 %v12437_v0, %v12074_v54  ;;  %v12492_v2 = vmul.f32 %v12437_v0, %v12081_v46  ;;  %v12496_v60 = vmul.f32 %v12437_v0, %v12088_v16 }
 0x5c7   :  { %v6039_v24 = vmax.f32 %v5975_v59, 0.0  ;;  %v6041_v29 = vmax.f32 %v5977_v34, 0.0  ;;  %v12500_v56 = vmul.f32 %v12437_v0, %v12095_v9  ;;  %v12504_v7 = vmul.f32 %v12437_v0, %v12102_v23 }
 0x5c8   :  { %v12508_v54 = vmul.f32 %v12437_v0, %v12109_v3  ;;  %v12512_v46 = vmul.f32 %v12437_v0, %v12116_v52  ;;  %v12516_v16 = vmul.f32 %v12437_v0, %v12123_v38  ;;  %v12520_v9 = vmul.f32 %v12437_v0, %v12130_v28 }
 0x5c9   :  { %v6751_v36 = vrot.slane %v6039_v24, 7  ;;  %v6815_v8 = vrot.slane %v6039_v24, 1  ;;  %v7087_v23 = vrot.slane %v6041_v29, 1  ;;  %v12524_v49 = vmul.f32 %v12437_v0, %v12137_v4 }
 0x5ca   :  { %v12528_v3 = vmul.f32 %v12437_v0, %v12144_v30  ;;  %v12532_v52 = vmul.f32 %v12437_v0, %v12151_v37  ;;  %v12536_v38 = vmul.f32 %v12437_v0, %v12158_v21  ;;  %v12540_v28 = vmul.f32 %v12437_v0, %v12165_v18 }
 0x5cb   :  { %vm6783_vm9 = vcmp.gt.f32.partialorder %v6039_v24, %v6751_v36  ;;  %v6847_v25 = vmax.f32 %v6039_v24, %v6815_v8  ;;  %v12544_v4 = vmul.f32 %v12437_v0, %v12172_v53  ;;  %v12548_v30 = vmul.f32 %v12437_v0, %v12179_v44  ;;  %v15464_v36 = vld [vmem:[#allocation20_spill] sm:$0xff] }
 0x5cc   :  { %v15174_v37 = vmov 0   ;;  %v12553_v21 = vmul.f32 %v12437_v0, %v12186_v47  ;;  %v12557_v18 = vmul.f32 %v12437_v0, %v12193_v55  ;;  %v12561_v51 = vmul.f32 %v12437_v0, %v12200_v63 }
 0x5cd   :  { %v6799_v45 = vsel %vm6783_vm9, 1, %v15174_v37  ;;  %vm6863_vm10 = vcmp.gt.f32.partialorder %v6041_v29, %v6847_v25  ;;  %v6927_v14 = vmax.f32 %v6847_v25, %v6041_v29  ;;  %v12565_v44 = vmul.f32 %v12437_v0, %v12207_v20  ;;  %v15466_v25 = vld [vmem:[#allocation25_spill] sm:$0xff] }
 0x5ce   :  { %v6895_v53 = vrot.slane %v6799_v45, 1  ;;  %v6879_v13 = vsel %vm6863_vm10, 1, %v15174_v37  ;;  %v12570_v47 = vmul.f32 %v12437_v0, %v12214_v12  ;;  %v12574_v55 = vmul.f32 %v12437_v0, %v12221_v48  ;;  %v15478_v37 = vld [vmem:[#allocation27_spill] sm:$0xff] }
 0x5cf   :  { %v12578_v63 = vmul.f32 %v12437_v0, %v12228_v15  ;;  %v6959_v11 = vrot.slane %v6927_v14, 7  ;;  %v7007_v59 = vrot.slane %v6879_v13, 7  ;;  %v7119_v34 = vmax.f32 %v6927_v14, %v7087_v23  ;;  %v15468_v14 = vld [vmem:[#allocation38_spill] sm:$0xff] }
 0x5d0   :  { %v6911_v58 = vsel %vm6863_vm10, 0, %v6895_v53  ;;  %v12582_v24 = vmul.f32 %v12437_v0, %v12235_v31  ;;  %v12586_v12 = vmul.f32 %v12437_v0, %v12242_v42  ;;  %v12590_v48 = vmul.f32 %v12437_v0, %v12249_v32 }
 0x5d1   :  { %v7039_v20 = vrot.slane %v6911_v58, 7  ;;  %vm6991_vm11 = vcmp.gt.f32.partialorder %v6041_v29, %v6959_v11  ;;  %7197 = vst.msk [vmem:[#allocation4 + $0x7c] sm:$0x1] %vm15203_vm5, %v7119_v34  ;;  %v12598_v15 = vmul.f32 %v12437_v0, %v12256_v27  ;;  %v12602_v31 = vmul.f32 %v12437_v0, %v12263_v22  ;;  %v15465_v27 = vld [vmem:[#allocation22_spill] sm:$0xff]  ;;  %v15469_v58 = vld [vmem:[#allocation39_spill] sm:$0xff] }
 0x5d2   :  { %7261 = vst.msk [vmem:[#allocation4 + $0x7b] sm:$0x4] %vm15202_vm6, %v7119_v34  ;;  %v12606_v42 = vmul.f32 %v12437_v0, %v12270_v62  ;;  %v7023_v32 = vsel %vm6991_vm11, 1, %v7007_v59  ;;  %v12610_v8 = vmul.f32 %v12437_v0, %v15464_v36  ;;  %v12614_v23 = vmul.f32 %v12437_v0, %v15465_v27  ;;  %v15467_v62 = vld [vmem:[#allocation10_spill] sm:$0xff]  ;;  %v15471_v59 = vld [vmem:[#allocation40_spill] sm:$0xff] }
 0x5d3   :  { %7325 = vst.msk [vmem:[#allocation4 + $0x7a] sm:$0x10] %vm15201_vm7, %v7119_v34  ;;  %v7055_v29 = vsel %vm6991_vm11, 1, %v7039_v20  ;;  %v7135_v22 = vmul.u32 16, %v7023_v32  ;;  %v12618_v45 = vmul.f32 %v12437_v0, %v15466_v25  ;;  %v12622_v53 = vmul.f32 %v12437_v0, %v15467_v62  ;;  %v15473_v20 = vld [vmem:[#allocation41_spill] sm:$0xff]  ;;  %v15475_v36 = vld [vmem:[#allocation42_spill] sm:$0xff] }
 0x5d4   :  { %7389 = vst.msk [vmem:[#allocation4 + $0x79] sm:$0x40] %vm15200_vm8, %v7119_v34  ;;  %v12626_v13 = vmul.f32 %v12437_v0, %v15468_v14  ;;  %v12630_v11 = vmul.f32 %v12437_v0, %v15469_v58  ;;  %v12634_v34 = vmul.f32 %v12437_v0, %v15471_v59  ;;  %v12638_v32 = vmul.f32 %v12437_v0, %v15473_v20  ;;  %v15476_v62 = vld [vmem:[#allocation43_spill] sm:$0xff] }
 0x5d5   :  { %v12642_v27 = vmul.f32 %v12437_v0, %v15475_v36  ;;  %v7149_v25 = vadd.s32 224, %v7135_v22  ;;  %v12646_v14 = vmul.f32 %v12437_v0, %v15476_v62  ;;  %v12650_v58 = vmul.f32 %v12437_v0, %v15478_v37  ;;  %v15487_v62 = vld [vmem:[#allocation31_spill] sm:$0xff] }
 0x5d6   :  { %15470 = vst [vmem:[#allocation28_spill] sm:$0xff] %v12630_v11  ;;  %15472 = vst [vmem:[#allocation30_spill] sm:$0xff] %v12634_v34  ;;  %v15480_v11 = vld [vmem:[#allocation24_spill] sm:$0xff]  ;;  %v15482_v34 = vld [vmem:[#allocation26_spill] sm:$0xff]  ;;  %v12666_v22 = vmul.f32 %v12437_v0, %v12375_v50  ;;  %v12670_v37 = vmul.f32 %v12437_v0, %v15487_v62  ;;  %v12682_v50 = vmul.f32 %v12437_v0, %v11994_v40 }
 0x5d7   :  { %15474 = vst [vmem:[#allocation33_spill] sm:$0xff] %v12638_v32  ;;  %15477 = vst [vmem:[#allocation35_spill] sm:$0xff] %v12646_v14  ;;  %v12654_v59 = vmul.f32 %v12437_v0, %v15480_v11  ;;  %v12658_v20 = vmul.f32 %v12437_v0, %v15482_v34  ;;  %v15484_v32 = vld [vmem:[#allocation29_spill] sm:$0xff]  ;;  %v7229_v14 = vadd.s32 10, %v7149_v25  ;;  %v7293_v11 = vadd.s32 12, %v7149_v25 }
 0x5d8   :  { %15479 = vst [vmem:[#allocation32_spill] sm:$0xff] %v12650_v58  ;;  %v12662_v36 = vmul.f32 %v12437_v0, %v15484_v32  ;;  %15486 = vst [vmem:[#allocation36_spill] sm:$0xff] %v12666_v22  ;;  %v7165_v58 = vadd.s32 8, %v7149_v25  ;;  %v12674_v34 = vmul.f32 %v12437_v0, %v12389_v35  ;;  %v12678_v32 = vmul.f32 %v12437_v0, %v12396_v17 }
 0x5d9   :  { %15481 = vst [vmem:[#allocation34_spill] sm:$0xff] %v12654_v59  ;;  %15483 = vst [vmem:[#allocation37_spill] sm:$0xff] %v12658_v20  ;;  %v7357_v59 = vadd.s32 14, %v7149_v25  ;;  %v12686_v62 = vmul.f32 %v12437_v0, %v11997_v6  ;;  %v7245_v22 = vadd.s32 %v7229_v14, %v7055_v29  ;;  %v15493_v20 = vld [vmem:[#allocation16_spill] sm:$0xff]  ;;  %v5915_v14 = vadd.f32 %v12442_v10, %v12454_v26 }
 0x5da   :  { %15485 = vst [vmem:[#allocation15_spill] sm:$0xff] %v12662_v36  ;;  %15488 = vst [vmem:[#allocation13_spill] sm:$0xff] %v12670_v37  ;;  %v7181_v37 = vadd.s32 %v7165_v58, %v7055_v29  ;;  %v7309_v36 = vadd.s32 %v7293_v11, %v7055_v29  ;;  %v12690_v35 = vmul.f32 %v12437_v0, %v15493_v20 }
 0x5db   :  { %15489 = vst [vmem:[#allocation14_spill] sm:$0xff] %v12674_v34  ;;  %15490 = vst [vmem:[#allocation19_spill] sm:$0xff] %v12678_v32  ;;  %v7373_v25 = vadd.s32 %v7357_v59, %v7055_v29  ;;  %v15495_v34 = vld [vmem:[#allocation18_spill] sm:$0xff]  ;;  %v15497_v32 = vld [vmem:[#allocation21_spill] sm:$0xff]  ;;  %v5914_v29 = vadd.f32 %v12442_v10, %v12450_v39  ;;  %v5916_v58 = vadd.f32 %v12442_v10, %v12458_v43 }
 0x5dc   :  { %15491 = vst [vmem:[#allocation12_spill] sm:$0xff] %v12682_v50  ;;  %15492 = vst [vmem:[#allocation17_spill] sm:$0xff] %v12686_v62  ;;  %v12694_v17 = vmul.f32 %v12437_v0, %v15495_v34  ;;  %v12698_v40 = vmul.f32 %v12437_v0, %v15497_v32  ;;  %v15499_v50 = vld [vmem:[#allocation23_spill] sm:$0xff]  ;;  %v5918_v59 = vadd.f32 %v12442_v10, %v12466_v41 }
 0x5dd   :  { %15494 = vst [vmem:[#allocation11_spill] sm:$0xff] %v12690_v35  ;;  %v12702_v6 = vmul.f32 %v12437_v0, %v15499_v50  ;;  %7213 = vst.msk [vmem:[#allocation6 + $0x7b] sm:$0x2] %vm15199_vm12, %v7181_v37  ;;  %v5917_v0 = vadd.f32 %v12442_v10, %v12462_v33  ;;  %v5919_v20 = vadd.f32 %v12442_v10, %v12470_v19  ;;  %v15502_v37 = vld [vmem:[#allocation30_spill] sm:$0xff] }
 0x5de   :  { %15496 = vst [vmem:[#allocation20_spill] sm:$0xff] %v12694_v17  ;;  %15498 = vst [vmem:[#allocation22_spill] sm:$0xff] %v12698_v40  ;;  %v5921_v39 = vadd.f32 %v12442_v10, %v12480_v57  ;;  %v5922_v26 = vadd.f32 %v12442_v10, %v12484_v1  ;;  %v5923_v43 = vadd.f32 %v12442_v10, %v12488_v61  ;;  %v15503_v11 = vld [vmem:[#allocation33_spill] sm:$0xff]  ;;  %v15504_v34 = vld [vmem:[#allocation35_spill] sm:$0xff] }
 0x5df   :  { %15500 = vst [vmem:[#allocation25_spill] sm:$0xff] %v12702_v6  ;;  %7277 = vst.msk [vmem:[#allocation6 + $0x7a] sm:$0x8] %vm15198_vm13, %v7245_v22  ;;  %v5924_v33 = vadd.f32 %v12442_v10, %v12492_v2  ;;  %v5925_v41 = vadd.f32 %v12442_v10, %v12496_v60  ;;  %v5926_v19 = vadd.f32 %v12442_v10, %v12500_v56  ;;  %v15501_v22 = vld [vmem:[#allocation28_spill] sm:$0xff] }
 0x5e0   :  { %7341 = vst.msk [vmem:[#allocation6 + $0x79] sm:$0x20] %vm15197_vm14, %v7309_v36  ;;  %v5920_v36 = vadd.f32 %v12442_v10, %v12476_v5  ;;  %v5927_v5 = vadd.f32 %v12442_v10, %v12504_v7  ;;  %v5928_v57 = vadd.f32 %v12442_v10, %v12508_v54  ;;  %v5929_v1 = vadd.f32 %v12442_v10, %v12512_v46  ;;  %v15505_v32 = vld [vmem:[#allocation32_spill] sm:$0xff]  ;;  %v15506_v50 = vld [vmem:[#allocation34_spill] sm:$0xff] }
 0x5e1   :  { %7405 = vst.msk [vmem:[#allocation6 + $0x78] sm:$0x80] %vm15196_vm15, %v7373_v25  ;;  %v5930_v61 = vadd.f32 %v12442_v10, %v12516_v16  ;;  %v5931_v2 = vadd.f32 %v12442_v10, %v12520_v9  ;;  %v5932_v60 = vadd.f32 %v12442_v10, %v12524_v49  ;;  %v5933_v56 = vadd.f32 %v12442_v10, %v12528_v3  ;;  %v15507_v25 = vld [vmem:[#allocation37_spill] sm:$0xff]  ;;  %v15508_v6 = vld [vmem:[#allocation15_spill] sm:$0xff]  ;;  %v15509_v40 = vld [vmem:[#allocation36_spill] sm:$0xff] }
 0x5e2   :  { %v5934_v7 = vadd.f32 %v12442_v10, %v12532_v52  ;;  %v5935_v54 = vadd.f32 %v12442_v10, %v12536_v38  ;;  %v5936_v46 = vadd.f32 %v12442_v10, %v12540_v28  ;;  %v5937_v16 = vadd.f32 %v12442_v10, %v12544_v4  ;;  %v15510_v17 = vld [vmem:[#allocation13_spill] sm:$0xff]  ;;  %v15511_v35 = vld [vmem:[#allocation14_spill] sm:$0xff]  ;;  %v15512_v62 = vld [vmem:[#allocation19_spill] sm:$0xff] }
 0x5e3   :  { %v5938_v9 = vadd.f32 %v12442_v10, %v12548_v30  ;;  %v5939_v49 = vadd.f32 %v12442_v10, %v12553_v21  ;;  %v5940_v3 = vadd.f32 %v12442_v10, %v12557_v18  ;;  %v5941_v52 = vadd.f32 %v12442_v10, %v12561_v51 }
 0x5e4   :  { %v5942_v38 = vadd.f32 %v12442_v10, %v12565_v44  ;;  %v5943_v28 = vadd.f32 %v12442_v10, %v12570_v47  ;;  %v5944_v4 = vadd.f32 %v12442_v10, %v12574_v55  ;;  %v5945_v30 = vadd.f32 %v12442_v10, %v12578_v63 }
 0x5e5   :  { %v5946_v21 = vadd.f32 %v12442_v10, %v12582_v24  ;;  %v5947_v18 = vadd.f32 %v12442_v10, %v12586_v12  ;;  %v5948_v51 = vadd.f32 %v12442_v10, %v12590_v48  ;;  %v5949_v44 = vadd.f32 %v12442_v10, %v12598_v15 }
 0x5e6   :  { %v5950_v47 = vadd.f32 %v12442_v10, %v12602_v31  ;;  %v5951_v55 = vadd.f32 %v12442_v10, %v12606_v42  ;;  %v5952_v63 = vadd.f32 %v12442_v10, %v12610_v8  ;;  %v5953_v24 = vadd.f32 %v12442_v10, %v12614_v23 }
 0x5e7   :  { %v5954_v12 = vadd.f32 %v12442_v10, %v12618_v45  ;;  %v5955_v48 = vadd.f32 %v12442_v10, %v12622_v53  ;;  %v5956_v15 = vadd.f32 %v12442_v10, %v12626_v13  ;;  %v5957_v31 = vadd.f32 %v12442_v10, %v15501_v22 }
 0x5e8   :  { %v5958_v42 = vadd.f32 %v12442_v10, %v15502_v37  ;;  %v5959_v8 = vadd.f32 %v12442_v10, %v15503_v11  ;;  %v5960_v23 = vadd.f32 %v12442_v10, %v12642_v27  ;;  %v5961_v45 = vadd.f32 %v12442_v10, %v15504_v34 }
 0x5e9   :  { %v5962_v53 = vadd.f32 %v12442_v10, %v15505_v32  ;;  %v5963_v13 = vadd.f32 %v12442_v10, %v15506_v50  ;;  %v5964_v22 = vadd.f32 %v12442_v10, %v15507_v25  ;;  %v5965_v37 = vadd.f32 %v12442_v10, %v15508_v6  ;;  %v15513_v50 = vld [vmem:[#allocation12_spill] sm:$0xff]  ;;  %v15514_v6 = vld [vmem:[#allocation17_spill] sm:$0xff] }
 0x5ea   :  { %v5966_v11 = vadd.f32 %v12442_v10, %v15509_v40  ;;  %v5967_v27 = vadd.f32 %v12442_v10, %v15510_v17  ;;  %v5968_v34 = vadd.f32 %v12442_v10, %v15511_v35  ;;  %v5969_v32 = vadd.f32 %v12442_v10, %v15512_v62  ;;  %v15515_v17 = vld [vmem:[#allocation11_spill] sm:$0xff]  ;;  %v15516_v62 = vld [vmem:[#allocation20_spill] sm:$0xff] }
 0x5eb   :  { %v5970_v25 = vadd.f32 %v12442_v10, %v15513_v50  ;;  %v5971_v40 = vadd.f32 %v12442_v10, %v15514_v6  ;;  %v5972_v35 = vadd.f32 %v12442_v10, %v15515_v17  ;;  %v5973_v50 = vadd.f32 %v12442_v10, %v15516_v62  ;;  %v15517_v6 = vld [vmem:[#allocation22_spill] sm:$0xff]  ;;  %v15518_v62 = vld [vmem:[#allocation25_spill] sm:$0xff] }
 0x5ec   :  { %v5974_v17 = vadd.f32 %v12442_v10, %v15517_v6  ;;  %v5976_v6 = vadd.f32 %v12442_v10, %v15518_v62  ;;  %v12832_v10 = vmax.f32 %v5914_v29, 0.0  ;;  %v12834_v62 = vmax.f32 %v5915_v14, 0.0 }
 0x5ed   :  { %v12836_v29 = vmax.f32 %v5916_v58, 0.0  ;;  %v12840_v14 = vmax.f32 %v5918_v59, 0.0  ;;  %v12844_v58 = vmax.f32 %v5920_v36, 0.0  ;;  %v12852_v59 = vmax.f32 %v5924_v33, 0.0 }
 0x5ee   :  { %15519 = vst [vmem:[#allocation10_spill] sm:$0xff] %v12832_v10  ;;  %15520 = vst [vmem:[#allocation38_spill] sm:$0xff] %v12834_v62  ;;  %v12838_v10 = vmax.f32 %v5917_v0, 0.0  ;;  %v12842_v62 = vmax.f32 %v5919_v20, 0.0  ;;  %v12848_v0 = vmax.f32 %v5922_v26, 0.0  ;;  %v12856_v20 = vmax.f32 %v5926_v19, 0.0 }
 0x5ef   :  { %15521 = vst [vmem:[#allocation39_spill] sm:$0xff] %v12836_v29  ;;  %15523 = vst [vmem:[#allocation41_spill] sm:$0xff] %v12840_v14  ;;  %v12846_v29 = vmax.f32 %v5921_v39, 0.0  ;;  %v12854_v14 = vmax.f32 %v5925_v41, 0.0  ;;  %v12860_v36 = vmax.f32 %v5928_v57, 0.0  ;;  %v12864_v39 = vmax.f32 %v5930_v61, 0.0 }
 0x5f0   :  { %15522 = vst [vmem:[#allocation40_spill] sm:$0xff] %v12838_v10  ;;  %15524 = vst [vmem:[#allocation42_spill] sm:$0xff] %v12842_v62  ;;  %v12850_v10 = vmax.f32 %v5923_v43, 0.0  ;;  %v12858_v62 = vmax.f32 %v5927_v5, 0.0  ;;  %v12868_v26 = vmax.f32 %v5932_v60, 0.0  ;;  %v12870_v43 = vmax.f32 %v5933_v56, 0.0 }
 0x5f1   :  { %15525 = vst [vmem:[#allocation43_spill] sm:$0xff] %v12844_v58  ;;  %15526 = vst [vmem:[#allocation27_spill] sm:$0xff] %v12846_v29  ;;  %v12862_v58 = vmax.f32 %v5929_v1, 0.0  ;;  %v12866_v29 = vmax.f32 %v5931_v2, 0.0  ;;  %v12872_v33 = vmax.f32 %v5934_v7, 0.0  ;;  %v12874_v41 = vmax.f32 %v5935_v54, 0.0 }
 0x5f2   :  { %15527 = vst [vmem:[#allocation24_spill] sm:$0xff] %v12850_v10  ;;  %15528 = vst [vmem:[#allocation26_spill] sm:$0xff] %v12854_v14  ;;  %v12876_v19 = vmax.f32 %v5936_v46, 0.0  ;;  %v12878_v5 = vmax.f32 %v5937_v16, 0.0  ;;  %v12880_v57 = vmax.f32 %v5938_v9, 0.0  ;;  %v12882_v1 = vmax.f32 %v5939_v49, 0.0 }
 0x5f3   :  { %15529 = vst [vmem:[#allocation29_spill] sm:$0xff] %v12858_v62  ;;  %15530 = vst [vmem:[#allocation31_spill] sm:$0xff] %v12862_v58  ;;  %v12884_v61 = vmax.f32 %v5940_v3, 0.0  ;;  %v12886_v2 = vmax.f32 %v5941_v52, 0.0  ;;  %v12888_v60 = vmax.f32 %v5942_v38, 0.0  ;;  %v12890_v56 = vmax.f32 %v5943_v28, 0.0 }
 0x5f4   :  { %15531 = vst [vmem:[#allocation16_spill] sm:$0xff] %v12866_v29  ;;  %15532 = vst [vmem:[#allocation18_spill] sm:$0xff] %v12870_v43  ;;  %v12892_v7 = vmax.f32 %v5944_v4, 0.0  ;;  %v12894_v54 = vmax.f32 %v5945_v30, 0.0  ;;  %v12896_v46 = vmax.f32 %v5946_v21, 0.0  ;;  %v12898_v16 = vmax.f32 %v5947_v18, 0.0 }
 0x5f5   :  { %15533 = vst [vmem:[#allocation21_spill] sm:$0xff] %v12874_v41  ;;  %15534 = vst [vmem:[#allocation23_spill] sm:$0xff] %v12878_v5  ;;  %v12900_v9 = vmax.f32 %v5948_v51, 0.0  ;;  %v12902_v49 = vmax.f32 %v5949_v44, 0.0  ;;  %v12904_v3 = vmax.f32 %v5950_v47, 0.0  ;;  %v12906_v52 = vmax.f32 %v5951_v55, 0.0 }
 0x5f6   :  { %15535 = vst [vmem:[#allocation28_spill] sm:$0xff] %v12882_v1  ;;  %15536 = vst [vmem:[#allocation30_spill] sm:$0xff] %v12884_v61  ;;  %v12908_v38 = vmax.f32 %v5952_v63, 0.0  ;;  %v12910_v28 = vmax.f32 %v5953_v24, 0.0  ;;  %v12912_v4 = vmax.f32 %v5954_v12, 0.0  ;;  %v12914_v30 = vmax.f32 %v5955_v48, 0.0 }
 0x5f7   :  { %15537 = vst [vmem:[#allocation33_spill] sm:$0xff] %v12886_v2  ;;  %15538 = vst [vmem:[#allocation35_spill] sm:$0xff] %v12890_v56  ;;  %v12916_v21 = vmax.f32 %v5956_v15, 0.0  ;;  %v12918_v18 = vmax.f32 %v5957_v31, 0.0  ;;  %v12920_v51 = vmax.f32 %v5958_v42, 0.0  ;;  %v12922_v44 = vmax.f32 %v5959_v8, 0.0 }
 0x5f8   :  { %15539 = vst [vmem:[#allocation32_spill] sm:$0xff] %v12892_v7  ;;  %15540 = vst [vmem:[#allocation34_spill] sm:$0xff] %v12894_v54  ;;  %v12924_v47 = vmax.f32 %v5960_v23, 0.0  ;;  %v12926_v55 = vmax.f32 %v5961_v45, 0.0  ;;  %v12928_v63 = vmax.f32 %v5962_v53, 0.0  ;;  %v12930_v24 = vmax.f32 %v5963_v13, 0.0 }
 0x5f9   :  { %15541 = vst [vmem:[#allocation37_spill] sm:$0xff] %v12898_v16  ;;  %15542 = vst [vmem:[#allocation15_spill] sm:$0xff] %v12900_v9  ;;  %v12932_v12 = vmax.f32 %v5964_v22, 0.0  ;;  %v12934_v48 = vmax.f32 %v5965_v37, 0.0  ;;  %v12936_v15 = vmax.f32 %v5966_v11, 0.0  ;;  %v12938_v31 = vmax.f32 %v5967_v27, 0.0 }
 0x5fa   :  { %15543 = vst [vmem:[#allocation36_spill] sm:$0xff] %v12902_v49  ;;  %15544 = vst [vmem:[#allocation13_spill] sm:$0xff] %v12906_v52  ;;  %v12940_v42 = vmax.f32 %v5968_v34, 0.0  ;;  %v12942_v8 = vmax.f32 %v5969_v32, 0.0  ;;  %v12944_v23 = vmax.f32 %v5970_v25, 0.0  ;;  %v12946_v45 = vmax.f32 %v5971_v40, 0.0 }
 0x5fb   :  { %15545 = vst [vmem:[#allocation14_spill] sm:$0xff] %v12908_v38  ;;  %15546 = vst [vmem:[#allocation19_spill] sm:$0xff] %v12910_v28  ;;  %v12948_v53 = vmax.f32 %v5972_v35, 0.0  ;;  %v12950_v13 = vmax.f32 %v5973_v50, 0.0  ;;  %v12952_v22 = vmax.f32 %v5974_v17, 0.0  ;;  %v12954_v37 = vmax.f32 %v5976_v6, 0.0 }
 0x5fc   :  { %15547 = vst [vmem:[#allocation12_spill] sm:$0xff] %v12914_v30  ;;  %15548 = vst [vmem:[#allocation17_spill] sm:$0xff] %v12916_v21  ;;  %v15563_v11 = vld [vmem:[#allocation10_spill] sm:$0xff]  ;;  %v15564_v27 = vld [vmem:[#allocation41_spill] sm:$0xff]  ;;  %v6060_v34 = vrot.slane %v12848_v0, 7  ;;  %v6061_v32 = vrot.slane %v12856_v20, 7 }
 0x5fd   :  { %15549 = vst [vmem:[#allocation11_spill] sm:$0xff] %v12918_v18  ;;  %15550 = vst [vmem:[#allocation20_spill] sm:$0xff] %v12922_v44  ;;  %v6062_v25 = vrot.slane %v12864_v39, 7  ;;  %v6063_v40 = vrot.slane %v12872_v33, 7  ;;  %v6064_v35 = vrot.slane %v12880_v57, 7  ;;  %v6065_v50 = vrot.slane %v12888_v60, 7 }
 0x5fe   :  { %15551 = vst [vmem:[#allocation22_spill] sm:$0xff] %v12924_v47  ;;  %15552 = vst [vmem:[#allocation25_spill] sm:$0xff] %v12926_v55  ;;  %v6059_v55 = vrot.slane %v15564_v27, 7  ;;  %v6066_v17 = vrot.slane %v12896_v46, 7  ;;  %v6067_v6 = vrot.slane %v12904_v3, 7  ;;  %v6070_v18 = vrot.slane %v12928_v63, 7 }
 0x5ff   :  { %15553 = vst [vmem:[#allocation44_spill] sm:$0xff] %v12930_v24  ;;  %15554 = vst [vmem:[#allocation45_spill] sm:$0xff] %v12932_v12  ;;  %v6071_v28 = vrot.slane %v12936_v15, 7  ;;  %v6072_v49 = vrot.slane %v12944_v23, 7  ;;  %v6073_v54 = vrot.slane %v12952_v22, 7  ;;  %vm12983_vm2 = vcmp.gt.f32.partialorder %v12848_v0, %v6060_v34 }
 0x600   :  { %15555 = vst [vmem:[#allocation46_spill] sm:$0xff] %v12934_v48  ;;  %15556 = vst [vmem:[#allocation47_spill] sm:$0xff] %v12938_v31  ;;  %v6058_v48 = vrot.slane %v15563_v11, 7  ;;  %vm12978_vm1 = vcmp.gt.f32.partialorder %v15564_v27, %v6059_v55  ;;  %vm12988_vm3 = vcmp.gt.f32.partialorder %v12856_v20, %v6061_v32  ;;  %vm12993_vm4 = vcmp.gt.f32.partialorder %v12864_v39, %v6062_v25 }
 0x601   :  { %15557 = vst [vmem:[#allocation48_spill] sm:$0xff] %v12940_v42  ;;  %15558 = vst [vmem:[#allocation49_spill] sm:$0xff] %v12942_v8  ;;  %v6069_v8 = vrot.slane %v12920_v51, 7  ;;  %vm12998_vm9 = vcmp.gt.f32.partialorder %v12872_v33, %v6063_v40  ;;  %vm13003_vm10 = vcmp.gt.f32.partialorder %v12880_v57, %v6064_v35  ;;  %vm13008_vm11 = vcmp.gt.f32.partialorder %v12888_v60, %v6065_v50 }
 0x602   :  { %15559 = vst [vmem:[#allocation50_spill] sm:$0xff] %v12946_v45  ;;  %15560 = vst [vmem:[#allocation51_spill] sm:$0xff] %v12948_v53  ;;  %vm12973_vm0 = vcmp.gt.f32.partialorder %v15563_v11, %v6058_v48  ;;  %vm13013_vm15 = vcmp.gt.f32.partialorder %v12896_v46, %v6066_v17  ;;  %vm13018_vm14 = vcmp.gt.f32.partialorder %v12904_v3, %v6067_v6  ;;  %v15597_v14 = vmov 0  }
 0x603   :  { %15561 = vst [vmem:[#allocation52_spill] sm:$0xff] %v12950_v13  ;;  %15562 = vst [vmem:[#allocation53_spill] sm:$0xff] %v12954_v37  ;;  %v6068_v13 = vrot.slane %v12912_v4, 7  ;;  %vm13028_vm12 = vcmp.gt.f32.partialorder %v12920_v51, %v6069_v8  ;;  %vm13033_vm8 = vcmp.gt.f32.partialorder %v12928_v63, %v6070_v18  ;;  %vm13038_vm7 = vcmp.gt.f32.partialorder %v12936_v15, %v6071_v28 }
 0x604   :  { %vm13043_vm6 = vcmp.gt.f32.partialorder %v12944_v23, %v6072_v49  ;;  %vm13048_vm5 = vcmp.gt.f32.partialorder %v12952_v22, %v6073_v54  ;;  %v13055_v18 = vsel %vm12973_vm0, 1, %v15597_v14  ;;  %v13060_v28 = vsel %vm12978_vm1, 1, %v15597_v14 }
 0x605   :  { %vm13023_vm13 = vcmp.gt.f32.partialorder %v12912_v4, %v6068_v13  ;;  %v13065_v49 = vsel %vm12983_vm2, 1, %v15597_v14  ;;  %v13070_v54 = vsel %vm12988_vm3, 1, %v15597_v14  ;;  %v13075_v2 = vsel %vm12993_vm4, 1, %v15597_v14 }
 0x606   :  { %v13080_v5 = vsel %vm12998_vm9, 1, %v15597_v14  ;;  %v13085_v43 = vsel %vm13003_vm10, 1, %v15597_v14  ;;  %v13090_v58 = vsel %vm13008_vm11, 1, %v15597_v14  ;;  %v13095_v48 = vsel %vm13013_vm15, 1, %v15597_v14 }
 0x607   :  { %v13100_v55 = vsel %vm13018_vm14, 1, %v15597_v14  ;;  %v13105_v34 = vsel %vm13023_vm13, 1, %v15597_v14  ;;  %v13110_v32 = vsel %vm13028_vm12, 1, %v15597_v14  ;;  %v13115_v25 = vsel %vm13033_vm8, 1, %v15597_v14 }
 0x608   :  { %15598 = vst [vmem:[#allocation10_spill] sm:$0xff] %v13105_v34  ;;  %15599 = vst [vmem:[#allocation41_spill] sm:$0xff] %v13110_v32  ;;  %v13120_v40 = vsel %vm13038_vm7, 1, %v15597_v14  ;;  %v13125_v35 = vsel %vm13043_vm6, 1, %v15597_v14  ;;  %v13130_v50 = vsel %vm13048_vm5, 1, %v15597_v14  ;;  %v6122_v45 = vrot.slane %v15563_v11, 1 }
 0x609   :  { %15600 = vst [vmem:[#allocation54_spill] sm:$0xff] %v13115_v25  ;;  %15601 = vst [vmem:[#allocation55_spill] sm:$0xff] %v13120_v40  ;;  %v6123_v17 = vrot.slane %v15564_v27, 1  ;;  %v6124_v31 = vrot.slane %v12848_v0, 1  ;;  %v6125_v6 = vrot.slane %v12856_v20, 1  ;;  %v6126_v24 = vrot.slane %v12864_v39, 1 }
 0x60a   :  { %15602 = vst [vmem:[#allocation56_spill] sm:$0xff] %v13125_v35  ;;  %15603 = vst [vmem:[#allocation57_spill] sm:$0xff] %v13130_v50  ;;  %v6127_v44 = vrot.slane %v12872_v33, 1  ;;  %v6128_v13 = vrot.slane %v12880_v57, 1  ;;  %v6129_v30 = vrot.slane %v12888_v60, 1  ;;  %v6130_v8 = vrot.slane %v12896_v46, 1 }
 0x60b   :  { %v6131_v52 = vrot.slane %v12904_v3, 1  ;;  %v6132_v16 = vrot.slane %v12912_v4, 1  ;;  %v6133_v56 = vrot.slane %v12920_v51, 1  ;;  %v6134_v1 = vrot.slane %v12928_v63, 1 }
 0x60c   :  { %v6135_v41 = vrot.slane %v12936_v15, 1  ;;  %v6136_v29 = vrot.slane %v12944_v23, 1  ;;  %v6137_v62 = vrot.slane %v12952_v22, 1  ;;  %v13149_v10 = vmax.f32 %v15563_v11, %v6122_v45 }
 0x60d   :  { %v13152_v50 = vmax.f32 %v15564_v27, %v6123_v17  ;;  %v13155_v35 = vmax.f32 %v12848_v0, %v6124_v31  ;;  %v13158_v40 = vmax.f32 %v12856_v20, %v6125_v6  ;;  %v13161_v25 = vmax.f32 %v12864_v39, %v6126_v24 }
 0x60e   :  { %v13164_v32 = vmax.f32 %v12872_v33, %v6127_v44  ;;  %v13167_v34 = vmax.f32 %v12880_v57, %v6128_v13  ;;  %v13170_v45 = vmax.f32 %v12888_v60, %v6129_v30  ;;  %v13173_v11 = vmax.f32 %v12896_v46, %v6130_v8 }
 0x60f   :  { %v13176_v0 = vmax.f32 %v12904_v3, %v6131_v52  ;;  %v13179_v20 = vmax.f32 %v12912_v4, %v6132_v16  ;;  %v13182_v39 = vmax.f32 %v12920_v51, %v6133_v56  ;;  %v13185_v33 = vmax.f32 %v12928_v63, %v6134_v1  ;;  %v15604_v3 = vld [vmem:[#allocation39_spill] sm:$0xff] }
 0x610   :  { %v13188_v57 = vmax.f32 %v12936_v15, %v6135_v41  ;;  %v13191_v60 = vmax.f32 %v12944_v23, %v6136_v29  ;;  %v13194_v46 = vmax.f32 %v12952_v22, %v6137_v62  ;;  %vm6170_vm5 = vcmp.gt.f32.partialorder %v15604_v3, %v13149_v10  ;;  %v15605_v16 = vld [vmem:[#allocation43_spill] sm:$0xff] }
 0x611   :  { %vm6171_vm6 = vcmp.gt.f32.partialorder %v15605_v16, %v13152_v50  ;;  %vm6172_vm7 = vcmp.gt.f32.partialorder %v12852_v59, %v13155_v35  ;;  %vm6173_vm8 = vcmp.gt.f32.partialorder %v12860_v36, %v13158_v40  ;;  %vm6174_vm12 = vcmp.gt.f32.partialorder %v12868_v26, %v13161_v25 }
 0x612   :  { %vm6175_vm13 = vcmp.gt.f32.partialorder %v12876_v19, %v13164_v32  ;;  %vm6176_vm14 = vcmp.gt.f32.partialorder %v12884_v61, %v13167_v34  ;;  %vm6177_vm15 = vcmp.gt.f32.partialorder %v12892_v7, %v13170_v45  ;;  %vm6178_vm0 = vcmp.gt.f32.partialorder %v12900_v9, %v13173_v11 }
 0x613   :  { %vm6179_vm1 = vcmp.gt.f32.partialorder %v12908_v38, %v13176_v0  ;;  %vm6180_vm2 = vcmp.gt.f32.partialorder %v12916_v21, %v13179_v20  ;;  %vm6181_vm3 = vcmp.gt.f32.partialorder %v12924_v47, %v13182_v39  ;;  %vm6182_vm4 = vcmp.gt.f32.partialorder %v12932_v12, %v13185_v33 }
 0x614   :  { %vm6183_vm9 = vcmp.gt.f32.partialorder %v12940_v42, %v13188_v57  ;;  %vm6184_vm10 = vcmp.gt.f32.partialorder %v12948_v53, %v13191_v60  ;;  %vm6185_vm11 = vcmp.gt.f32.partialorder %v12954_v37, %v13194_v46  ;;  %v13232_v62 = vsel %vm6170_vm5, 1, %v15597_v14 }
 0x615   :  { %v13238_v29 = vsel %vm6171_vm6, 1, %v15597_v14  ;;  %v13244_v41 = vsel %vm6172_vm7, 1, %v15597_v14  ;;  %v13250_v1 = vsel %vm6173_vm8, 1, %v15597_v14  ;;  %v13256_v56 = vsel %vm6174_vm12, 1, %v15597_v14 }
 0x616   :  { %v13262_v52 = vsel %vm6175_vm13, 1, %v15597_v14  ;;  %v13268_v4 = vsel %vm6176_vm14, 1, %v15597_v14  ;;  %v13274_v30 = vsel %vm6177_vm15, 1, %v15597_v14  ;;  %v13280_v51 = vsel %vm6178_vm0, 1, %v15597_v14 }
 0x617   :  { %15606 = vst [vmem:[#allocation39_spill] sm:$0xff] %v13268_v4  ;;  %15607 = vst [vmem:[#allocation43_spill] sm:$0xff] %v13274_v30  ;;  %v13286_v44 = vsel %vm6179_vm1, 1, %v15597_v14  ;;  %v13292_v63 = vsel %vm6180_vm2, 1, %v15597_v14  ;;  %v13298_v24 = vsel %vm6181_vm3, 1, %v15597_v14  ;;  %v13304_v15 = vsel %vm6182_vm4, 1, %v15597_v14 }
 0x618   :  { %15608 = vst [vmem:[#allocation58_spill] sm:$0xff] %v13280_v51  ;;  %15609 = vst [vmem:[#allocation59_spill] sm:$0xff] %v13286_v44  ;;  %v13310_v31 = vsel %vm6183_vm9, 1, %v15597_v14  ;;  %v13316_v23 = vsel %vm6184_vm10, 1, %v15597_v14  ;;  %v13322_v22 = vsel %vm6185_vm11, 1, %v15597_v14  ;;  %v6202_v27 = vrot.slane %v13055_v18, 1 }
 0x619   :  { %15610 = vst [vmem:[#allocation60_spill] sm:$0xff] %v13292_v63  ;;  %15611 = vst [vmem:[#allocation61_spill] sm:$0xff] %v13298_v24  ;;  %v6203_v17 = vrot.slane %v13060_v28, 1  ;;  %v6204_v6 = vrot.slane %v13065_v49, 1  ;;  %v6205_v13 = vrot.slane %v13070_v54, 1  ;;  %v6206_v8 = vrot.slane %v13075_v2, 1 }
 0x61a   :  { %15612 = vst [vmem:[#allocation62_spill] sm:$0xff] %v13304_v15  ;;  %15613 = vst [vmem:[#allocation63_spill] sm:$0xff] %v13310_v31  ;;  %v6207_v31 = vrot.slane %v13080_v5, 1  ;;  %v6209_v15 = vrot.slane %v13090_v58, 1  ;;  %v6210_v24 = vrot.slane %v13095_v48, 1  ;;  %v6211_v14 = vrot.slane %v13100_v55, 1 }
 0x61b   :  { %15614 = vst [vmem:[#allocation64_spill] sm:$0xff] %v13316_v23  ;;  %15615 = vst [vmem:[#allocation65_spill] sm:$0xff] %v13322_v22  ;;  %v6208_v23 = vrot.slane %v13085_v43, 1  ;;  %v15616_v22 = vld [vmem:[#allocation10_spill] sm:$0xff]  ;;  %v15617_v63 = vld [vmem:[#allocation41_spill] sm:$0xff]  ;;  %v13343_v43 = vsel %vm6170_vm5, 0, %v6202_v27 }
 0x61c   :  { %v6212_v18 = vrot.slane %v15616_v22, 1  ;;  %v6213_v28 = vrot.slane %v15617_v63, 1  ;;  %v15618_v44 = vld [vmem:[#allocation54_spill] sm:$0xff]  ;;  %v15619_v51 = vld [vmem:[#allocation55_spill] sm:$0xff]  ;;  %v15620_v30 = vld [vmem:[#allocation56_spill] sm:$0xff]  ;;  %v13348_v58 = vsel %vm6171_vm6, 0, %v6203_v17  ;;  %v13422_v17 = vmax.f32 %v13149_v10, %v15604_v3 }
 0x61d   :  { %v6214_v49 = vrot.slane %v15618_v44, 1  ;;  %v6215_v54 = vrot.slane %v15619_v51, 1  ;;  %v6216_v2 = vrot.slane %v15620_v30, 1  ;;  %v15621_v4 = vld [vmem:[#allocation57_spill] sm:$0xff]  ;;  %v13353_v48 = vsel %vm6172_vm7, 0, %v6204_v6 }
 0x61e   :  { %v6217_v5 = vrot.slane %v15621_v4, 1  ;;  %v13358_v55 = vsel %vm6173_vm8, 0, %v6205_v13  ;;  %v13363_v4 = vsel %vm6174_vm12, 0, %v6206_v8  ;;  %v13368_v30 = vsel %vm6175_vm13, 0, %v6207_v31  ;;  %15622 = vst [vmem:[#allocation10_spill] sm:$0xff] %v13422_v17 }
 0x61f   :  { %v13373_v51 = vsel %vm6176_vm14, 0, %v6208_v23  ;;  %v13378_v44 = vsel %vm6177_vm15, 0, %v6209_v15  ;;  %v13383_v63 = vsel %vm6178_vm0, 0, %v6210_v24  ;;  %v13388_v31 = vsel %vm6179_vm1, 0, %v6211_v14 }
 0x620   :  { %v13393_v23 = vsel %vm6180_vm2, 0, %v6212_v18  ;;  %v13398_v15 = vsel %vm6181_vm3, 0, %v6213_v28  ;;  %v13403_v24 = vsel %vm6182_vm4, 0, %v6214_v49  ;;  %v13408_v14 = vsel %vm6183_vm9, 0, %v6215_v54 }
 0x621   :  { %v13413_v22 = vsel %vm6184_vm10, 0, %v6216_v2  ;;  %v13418_v27 = vsel %vm6185_vm11, 0, %v6217_v5  ;;  %v13426_v6 = vmax.f32 %v13152_v50, %v15605_v16  ;;  %v13430_v13 = vmax.f32 %v13155_v35, %v12852_v59 }
 0x622   :  { %v13434_v8 = vmax.f32 %v13158_v40, %v12860_v36  ;;  %v13438_v18 = vmax.f32 %v13161_v25, %v12868_v26  ;;  %v13442_v10 = vmax.f32 %v13164_v32, %v12876_v19  ;;  %v13446_v50 = vmax.f32 %v13167_v34, %v12884_v61 }
 0x623   :  { %15623 = vst [vmem:[#allocation41_spill] sm:$0xff] %v13426_v6  ;;  %15624 = vst [vmem:[#allocation54_spill] sm:$0xff] %v13430_v13  ;;  %v13450_v35 = vmax.f32 %v13170_v45, %v12892_v7  ;;  %v13454_v40 = vmax.f32 %v13173_v11, %v12900_v9  ;;  %v13458_v25 = vmax.f32 %v13176_v0, %v12908_v38  ;;  %v6266_v28 = vrot.slane %v13422_v17, 7 }
 0x624   :  { %15625 = vst [vmem:[#allocation55_spill] sm:$0xff] %v13434_v8  ;;  %15626 = vst [vmem:[#allocation56_spill] sm:$0xff] %v13438_v18  ;;  %v13462_v32 = vmax.f32 %v13179_v20, %v12916_v21  ;;  %v13466_v34 = vmax.f32 %v13182_v39, %v12924_v47  ;;  %v13470_v45 = vmax.f32 %v13185_v33, %v12932_v12  ;;  %v6267_v39 = vrot.slane %v13426_v6, 7 }
 0x625   :  { %15627 = vst [vmem:[#allocation57_spill] sm:$0xff] %v13442_v10  ;;  %15628 = vst [vmem:[#allocation66_spill] sm:$0xff] %v13446_v50  ;;  %v13474_v11 = vmax.f32 %v13188_v57, %v12940_v42  ;;  %v13478_v0 = vmax.f32 %v13191_v60, %v12948_v53  ;;  %v13482_v20 = vmax.f32 %v13194_v46, %v12954_v37  ;;  %v6268_v49 = vrot.slane %v13430_v13, 7 }
 0x626   :  { %15629 = vst [vmem:[#allocation67_spill] sm:$0xff] %v13450_v35  ;;  %15630 = vst [vmem:[#allocation68_spill] sm:$0xff] %v13454_v40  ;;  %v6269_v33 = vrot.slane %v13434_v8, 7  ;;  %v6270_v54 = vrot.slane %v13438_v18, 7  ;;  %v6271_v57 = vrot.slane %v13442_v10, 7  ;;  %v6272_v2 = vrot.slane %v13446_v50, 7 }
 0x627   :  { %15631 = vst [vmem:[#allocation69_spill] sm:$0xff] %v13458_v25  ;;  %15632 = vst [vmem:[#allocation70_spill] sm:$0xff] %v13462_v32  ;;  %v6273_v60 = vrot.slane %v13450_v35, 7  ;;  %v6274_v5 = vrot.slane %v13454_v40, 7  ;;  %v6275_v46 = vrot.slane %v13458_v25, 7  ;;  %v6276_v17 = vrot.slane %v13462_v32, 7 }
 0x628   :  { %15633 = vst [vmem:[#allocation71_spill] sm:$0xff] %v13466_v34  ;;  %15634 = vst [vmem:[#allocation72_spill] sm:$0xff] %v13470_v45  ;;  %v6277_v6 = vrot.slane %v13466_v34, 7  ;;  %v6278_v13 = vrot.slane %v13470_v45, 7  ;;  %v6279_v8 = vrot.slane %v13474_v11, 7  ;;  %v6280_v18 = vrot.slane %v13478_v0, 7 }
 0x629   :  { %15635 = vst [vmem:[#allocation73_spill] sm:$0xff] %v13474_v11  ;;  %15636 = vst [vmem:[#allocation74_spill] sm:$0xff] %v13478_v0  ;;  %v6281_v10 = vrot.slane %v13482_v20, 7  ;;  %vm13501_vm5 = vcmp.gt.f32.partialorder %v15604_v3, %v6266_v28  ;;  %vm13506_vm6 = vcmp.gt.f32.partialorder %v15605_v16, %v6267_v39  ;;  %vm13511_vm7 = vcmp.gt.f32.partialorder %v12852_v59, %v6268_v49  ;;  %v15670_v32 = vld [vmem:[#allocation39_spill] sm:$0xff] }
 0x62a   :  { %15637 = vst [vmem:[#allocation75_spill] sm:$0xff] %v13482_v20  ;;  %vm13516_vm8 = vcmp.gt.f32.partialorder %v12860_v36, %v6269_v33  ;;  %vm13521_vm12 = vcmp.gt.f32.partialorder %v12868_v26, %v6270_v54  ;;  %vm13526_vm13 = vcmp.gt.f32.partialorder %v12876_v19, %v6271_v57  ;;  %vm13531_vm14 = vcmp.gt.f32.partialorder %v12884_v61, %v6272_v2  ;;  %v15671_v35 = vld [vmem:[#allocation43_spill] sm:$0xff]  ;;  %v15679_v61 = vld [vmem:[#allocation65_spill] sm:$0xff] }
 0x62b   :  { %vm13536_vm15 = vcmp.gt.f32.partialorder %v12892_v7, %v6273_v60  ;;  %vm13541_vm0 = vcmp.gt.f32.partialorder %v12900_v9, %v6274_v5  ;;  %vm13546_vm1 = vcmp.gt.f32.partialorder %v12908_v38, %v6275_v46  ;;  %vm13551_vm2 = vcmp.gt.f32.partialorder %v12916_v21, %v6276_v17  ;;  %v15675_v21 = vld [vmem:[#allocation61_spill] sm:$0xff]  ;;  %v15676_v38 = vld [vmem:[#allocation62_spill] sm:$0xff]  ;;  %v15677_v9 = vld [vmem:[#allocation63_spill] sm:$0xff] }
 0x62c   :  { %vm13556_vm3 = vcmp.gt.f32.partialorder %v12924_v47, %v6277_v6  ;;  %vm13561_vm4 = vcmp.gt.f32.partialorder %v12932_v12, %v6278_v13  ;;  %vm13566_vm9 = vcmp.gt.f32.partialorder %v12940_v42, %v6279_v8  ;;  %vm13571_vm10 = vcmp.gt.f32.partialorder %v12948_v53, %v6280_v18  ;;  %v15673_v42 = vld [vmem:[#allocation59_spill] sm:$0xff]  ;;  %v15674_v47 = vld [vmem:[#allocation60_spill] sm:$0xff]  ;;  %v15685_v5 = vld [vmem:[#allocation30_spill] sm:$0xff] }
 0x62d   :  { %vm13576_vm11 = vcmp.gt.f32.partialorder %v12954_v37, %v6281_v10  ;;  %v6314_v13 = vrot.slane %v13232_v62, 7  ;;  %v6315_v20 = vrot.slane %v13238_v29, 7  ;;  %v6316_v11 = vrot.slane %v13244_v41, 7  ;;  %v15672_v10 = vld [vmem:[#allocation58_spill] sm:$0xff]  ;;  %v15678_v7 = vld [vmem:[#allocation64_spill] sm:$0xff] }
 0x62e   :  { %v6317_v8 = vrot.slane %v13250_v1, 7  ;;  %v6318_v45 = vrot.slane %v13256_v56, 7  ;;  %v6319_v18 = vrot.slane %v13262_v52, 7  ;;  %v6320_v40 = vrot.slane %v15670_v32, 7  ;;  %v15686_v17 = vld [vmem:[#allocation32_spill] sm:$0xff] }
 0x62f   :  { %v6321_v53 = vrot.slane %v15671_v35, 7  ;;  %v6322_v37 = vrot.slane %v15672_v10, 7  ;;  %v6323_v12 = vrot.slane %v15673_v42, 7  ;;  %v6324_v62 = vrot.slane %v15674_v47, 7 }
 0x630   :  { %v6325_v29 = vrot.slane %v15675_v21, 7  ;;  %v6326_v41 = vrot.slane %v15676_v38, 7  ;;  %v6327_v1 = vrot.slane %v15677_v9, 7  ;;  %v6328_v56 = vrot.slane %v15678_v7, 7 }
 0x631   :  { %v6329_v52 = vrot.slane %v15679_v61, 7  ;;  %v13598_v32 = vsel %vm13501_vm5, 1, %v6314_v13  ;;  %v13602_v35 = vsel %vm13506_vm6, 1, %v6315_v20  ;;  %v13606_v47 = vsel %vm13511_vm7, 1, %v6316_v11 }
 0x632   :  { %v13610_v38 = vsel %vm13516_vm8, 1, %v6317_v8  ;;  %v13614_v7 = vsel %vm13521_vm12, 1, %v6318_v45  ;;  %v13618_v61 = vsel %vm13526_vm13, 1, %v6319_v18  ;;  %v13622_v9 = vsel %vm13531_vm14, 1, %v6320_v40 }
 0x633   :  { %v13626_v21 = vsel %vm13536_vm15, 1, %v6321_v53  ;;  %v13630_v42 = vsel %vm13541_vm0, 1, %v6322_v37  ;;  %v13634_v45 = vsel %vm13546_vm1, 1, %v6323_v12  ;;  %v13638_v11 = vsel %vm13551_vm2, 1, %v6324_v62 }
 0x634   :  { %v13642_v40 = vsel %vm13556_vm3, 1, %v6325_v29  ;;  %v13646_v53 = vsel %vm13561_vm4, 1, %v6326_v41  ;;  %v13650_v37 = vsel %vm13566_vm9, 1, %v6327_v1  ;;  %v13654_v12 = vsel %vm13571_vm10, 1, %v6328_v56 }
 0x635   :  { %v13658_v20 = vsel %vm13576_vm11, 1, %v6329_v52  ;;  %v6346_v13 = vrot.slane %v13343_v43, 7  ;;  %v6347_v8 = vrot.slane %v13348_v58, 7  ;;  %v6348_v18 = vrot.slane %v13353_v48, 7 }
 0x636   :  { %v6349_v10 = vrot.slane %v13358_v55, 7  ;;  %v6350_v62 = vrot.slane %v13363_v4, 7  ;;  %v6351_v29 = vrot.slane %v13368_v30, 7  ;;  %v6352_v41 = vrot.slane %v13373_v51, 7 }
 0x637   :  { %v6353_v1 = vrot.slane %v13378_v44, 7  ;;  %v6354_v56 = vrot.slane %v13383_v63, 7  ;;  %v6355_v52 = vrot.slane %v13388_v31, 7  ;;  %v6356_v43 = vrot.slane %v13393_v23, 7 }
 0x638   :  { %v6357_v58 = vrot.slane %v13398_v15, 7  ;;  %v6358_v48 = vrot.slane %v13403_v24, 7  ;;  %v6359_v55 = vrot.slane %v13408_v14, 7  ;;  %v6360_v4 = vrot.slane %v13413_v22, 7 }
 0x639   :  { %v6361_v30 = vrot.slane %v13418_v27, 7  ;;  %v13678_v51 = vsel %vm13501_vm5, 1, %v6346_v13  ;;  %v13682_v44 = vsel %vm13506_vm6, 1, %v6347_v8  ;;  %v13686_v63 = vsel %vm13511_vm7, 1, %v6348_v18  ;;  %v15687_v8 = vld [vmem:[#allocation15_spill] sm:$0xff]  ;;  %v15688_v18 = vld [vmem:[#allocation14_spill] sm:$0xff] }
 0x63a   :  { %v13690_v31 = vsel %vm13516_vm8, 1, %v6349_v10  ;;  %v13694_v23 = vsel %vm13521_vm12, 1, %v6350_v62  ;;  %v13698_v15 = vsel %vm13526_vm13, 1, %v6351_v29  ;;  %v13702_v24 = vsel %vm13531_vm14, 1, %v6352_v41  ;;  %v15689_v62 = vld [vmem:[#allocation17_spill] sm:$0xff]  ;;  %v15690_v29 = vld [vmem:[#allocation22_spill] sm:$0xff] }
 0x63b   :  { %v13706_v14 = vsel %vm13536_vm15, 1, %v6353_v1  ;;  %v13710_v22 = vsel %vm13541_vm0, 1, %v6354_v56  ;;  %v13714_v27 = vsel %vm13546_vm1, 1, %v6355_v52  ;;  %v13718_v50 = vsel %vm13551_vm2, 1, %v6356_v43  ;;  %v15691_v41 = vld [vmem:[#allocation45_spill] sm:$0xff]  ;;  %v15692_v1 = vld [vmem:[#allocation48_spill] sm:$0xff] }
 0x63c   :  { %v13722_v25 = vsel %vm13556_vm3, 1, %v6357_v58  ;;  %v13726_v34 = vsel %vm13561_vm4, 1, %v6358_v48  ;;  %v13730_v0 = vsel %vm13566_vm9, 1, %v6359_v55  ;;  %v13734_v28 = vsel %vm13571_vm10, 1, %v6360_v4  ;;  %v15693_v56 = vld [vmem:[#allocation51_spill] sm:$0xff]  ;;  %v15694_v52 = vld [vmem:[#allocation53_spill] sm:$0xff] }
 0x63d   :  { %15680 = vst [vmem:[#allocation39_spill] sm:$0xff] %v13722_v25  ;;  %15681 = vst [vmem:[#allocation43_spill] sm:$0xff] %v13726_v34  ;;  %v13738_v39 = vsel %vm13576_vm11, 1, %v6361_v30  ;;  %v6394_v49 = vrot.slane %v15604_v3, 1  ;;  %v6395_v33 = vrot.slane %v15605_v16, 1  ;;  %v6396_v54 = vrot.slane %v12852_v59, 1 }
 0x63e   :  { %15682 = vst [vmem:[#allocation58_spill] sm:$0xff] %v13730_v0  ;;  %15683 = vst [vmem:[#allocation59_spill] sm:$0xff] %v13734_v28  ;;  %v6397_v57 = vrot.slane %v12860_v36, 1  ;;  %v6398_v2 = vrot.slane %v12868_v26, 1  ;;  %v6399_v60 = vrot.slane %v12876_v19, 1  ;;  %v6400_v46 = vrot.slane %v15685_v5, 1 }
 0x63f   :  { %15684 = vst [vmem:[#allocation60_spill] sm:$0xff] %v13738_v39  ;;  %v6401_v13 = vrot.slane %v15686_v17, 1  ;;  %v6402_v6 = vrot.slane %v15687_v8, 1  ;;  %v6403_v10 = vrot.slane %v15688_v18, 1  ;;  %v6404_v3 = vrot.slane %v15689_v62, 1  ;;  %v15695_v43 = vld [vmem:[#allocation10_spill] sm:$0xff] }
 0x640   :  { %v6405_v16 = vrot.slane %v15690_v29, 1  ;;  %v6406_v59 = vrot.slane %v15691_v41, 1  ;;  %v6407_v36 = vrot.slane %v15692_v1, 1  ;;  %v6408_v26 = vrot.slane %v15693_v56, 1  ;;  %v15696_v48 = vld [vmem:[#allocation41_spill] sm:$0xff]  ;;  %v15697_v4 = vld [vmem:[#allocation54_spill] sm:$0xff] }
 0x641   :  { %v6409_v19 = vrot.slane %v15694_v52, 1  ;;  %v6426_v58 = vmax.f32 %v15695_v43, %v6394_v49  ;;  %v6427_v55 = vmax.f32 %v15696_v48, %v6395_v33  ;;  %v6428_v30 = vmax.f32 %v15697_v4, %v6396_v54  ;;  %v15698_v5 = vld [vmem:[#allocation55_spill] sm:$0xff]  ;;  %v15699_v8 = vld [vmem:[#allocation56_spill] sm:$0xff]  ;;  %v15700_v62 = vld [vmem:[#allocation57_spill] sm:$0xff] }
 0x642   :  { %v6429_v17 = vmax.f32 %v15698_v5, %v6397_v57  ;;  %v6430_v18 = vmax.f32 %v15699_v8, %v6398_v2  ;;  %v6431_v29 = vmax.f32 %v15700_v62, %v6399_v60  ;;  %v15701_v39 = vld [vmem:[#allocation66_spill] sm:$0xff]  ;;  %v15702_v28 = vld [vmem:[#allocation67_spill] sm:$0xff]  ;;  %v15703_v0 = vld [vmem:[#allocation68_spill] sm:$0xff]  ;;  %vm15707_vm5 = vcmask 253952  }
 0x643   :  { %v6432_v41 = vmax.f32 %v15701_v39, %v6400_v46  ;;  %v6433_v1 = vmax.f32 %v15702_v28, %v6401_v13  ;;  %v6434_v56 = vmax.f32 %v15703_v0, %v6402_v6  ;;  %v15704_v34 = vld [vmem:[#allocation69_spill] sm:$0xff]  ;;  %v15705_v25 = vld [vmem:[#allocation70_spill] sm:$0xff]  ;;  %v15706_v43 = vld [vmem:[#allocation71_spill] sm:$0xff]  ;;  %6489 = vst.msk [vmem:[#allocation4] sm:$0x1] %vm15707_vm5, %v6426_v58  ;;  %vm15711_vm12 = vcmask 256002  }
 0x644   :  { %v6435_v52 = vmax.f32 %v15704_v34, %v6403_v10  ;;  %v6436_v49 = vmax.f32 %v15705_v25, %v6404_v3  ;;  %v6437_v33 = vmax.f32 %v15706_v43, %v6405_v16  ;;  %vm15708_vm6 = vmmov %vm15707_vm5  ;;  %6555 = vst.msk [vmem:[#allocation4 - $0x1] sm:$0x4] %vm15711_vm12, %v6426_v58  ;;  %vm15715_vm0 = vcmask 258052   ;;  %v15723_v25 = vld [vmem:[#allocation72_spill] sm:$0xff]  ;;  %v15724_v0 = vld [vmem:[#allocation73_spill] sm:$0xff] }
 0x645   :  { %6490 = vst.msk [vmem:[#allocation4 + $0x8] sm:$0x1] %vm15708_vm6, %v6427_v55  ;;  %vm15709_vm7 = vmmov %vm15707_vm5  ;;  %vm15719_vm4 = vcmask 260102   ;;  %v6438_v34 = vmax.f32 %v15723_v25, %v6406_v59  ;;  %v6439_v28 = vmax.f32 %v15724_v0, %v6407_v36  ;;  %v15725_v39 = vld [vmem:[#allocation74_spill] sm:$0xff]  ;;  %v15726_v57 = vld [vmem:[#allocation75_spill] sm:$0xff]  ;;  %v13805_v60 = vmul.u32 16, %v13598_v32 }
 0x646   :  { %6491 = vst.msk [vmem:[#allocation4 + $0x10] sm:$0x1] %vm15709_vm7, %v6428_v30  ;;  %vm15710_vm8 = vmmov %vm15707_vm5  ;;  %v6440_v54 = vmax.f32 %v15725_v39, %v6408_v26  ;;  %v6441_v2 = vmax.f32 %v15726_v57, %v6409_v19  ;;  %v6443_v46 = vmul.u32 16, %v13602_v35  ;;  %v15751_v32 = vld [vmem:[#allocation38_spill] sm:$0xff]  ;;  %v6444_v10 = vmul.u32 16, %v13606_v47  ;;  %v15765_v47 = vld [vmem:[#allocation24_spill] sm:$0xff] }
 0x647   :  { %6492 = vst.msk [vmem:[#allocation4 + $0x18] sm:$0x1] %vm15710_vm8, %v6429_v17  ;;  %vm15712_vm13 = vmmov %vm15711_vm12  ;;  %v6736_v35 = vrot.slane %v15751_v32, 7  ;;  %v15752_v13 = vld [vmem:[#allocation42_spill] sm:$0xff]  ;;  %v6445_v3 = vmul.u32 16, %v13610_v38  ;;  %v15766_v16 = vld [vmem:[#allocation29_spill] sm:$0xff] }
 0x648   :  { %6556 = vst.msk [vmem:[#allocation4 + $0x7] sm:$0x4] %vm15712_vm13, %v6427_v55  ;;  %vm15713_vm14 = vmmov %vm15711_vm12  ;;  %v6737_v6 = vrot.slane %v15752_v13, 7  ;;  %v6446_v36 = vmul.u32 16, %v13614_v7  ;;  %v6447_v26 = vmul.u32 16, %v13618_v61  ;;  %v13848_v19 = vadd.s32 32, %v6443_v46 }
 0x649   :  { %6557 = vst.msk [vmem:[#allocation4 + $0xf] sm:$0x4] %vm15713_vm14, %v6428_v30  ;;  %vm15714_vm15 = vmmov %vm15711_vm12  ;;  %v6448_v48 = vmul.u32 16, %v13622_v9  ;;  %v13854_v4 = vadd.s32 64, %v6444_v10  ;;  %v13859_v5 = vmul.u32 16, %v13630_v42  ;;  %v15771_v39 = vld [vmem:[#allocation39_spill] sm:$0xff] }
 0x64a   :  { %6558 = vst.msk [vmem:[#allocation4 + $0x17] sm:$0x4] %vm15714_vm15, %v6429_v17  ;;  %vm15716_vm1 = vmmov %vm15715_vm0  ;;  %v6451_v7 = vmul.u32 16, %v13634_v45  ;;  %v13864_v61 = vadd.s32 160, %v6447_v26  ;;  %v6452_v8 = vmul.u32 16, %v13638_v11  ;;  %v6473_v45 = vadd.s32 %v13848_v19, %v13682_v44  ;;  %v15772_v57 = vld [vmem:[#allocation43_spill] sm:$0xff] }
 0x64b   :  { %6621 = vst.msk [vmem:[#allocation4 - $0x2] sm:$0x10] %vm15715_vm0, %v6426_v58  ;;  %vm15717_vm2 = vmmov %vm15715_vm0  ;;  %v6453_v9 = vmul.u32 16, %v13642_v40  ;;  %v6454_v62 = vmul.u32 16, %v13646_v53  ;;  %v6474_v53 = vadd.s32 %v13854_v4, %v13686_v63  ;;  %v15773_v46 = vld [vmem:[#allocation58_spill] sm:$0xff]  ;;  %v15777_v26 = vld [vmem:[#allocation60_spill] sm:$0xff] }
 0x64c   :  { %6622 = vst.msk [vmem:[#allocation4 + $0x6] sm:$0x10] %vm15716_vm1, %v6427_v55  ;;  %vm15718_vm3 = vmmov %vm15715_vm0  ;;  %v6455_v42 = vmul.u32 16, %v13650_v37  ;;  %v13881_v11 = vadd.s32 64, %v6452_v8  ;;  %v6477_v43 = vadd.s32 %v13864_v61, %v13698_v15 }
 0x64d   :  { %6623 = vst.msk [vmem:[#allocation4 + $0xe] sm:$0x10] %vm15717_vm2, %v6428_v30  ;;  %vm15720_vm9 = vmmov %vm15719_vm4  ;;  %v13883_v40 = vadd.s32 96, %v6453_v9 }
 0x64e   :  { %6624 = vst.msk [vmem:[#allocation4 + $0x16] sm:$0x10] %vm15718_vm3, %v6429_v17  ;;  %vm15721_vm10 = vmmov %vm15719_vm4 }
 0x64f   :  { %6687 = vst.msk [vmem:[#allocation4 - $0x3] sm:$0x40] %vm15719_vm4, %v6426_v58  ;;  %vm15722_vm11 = vmmov %vm15719_vm4  ;;  %v6472_v58 = vadd.s32 %v13805_v60, %v13678_v51 }
 0x650   :  { %6688 = vst.msk [vmem:[#allocation4 + $0x5] sm:$0x40] %vm15720_vm9, %v6427_v55  ;;  %vm15727_vm6 = vmmov %vm15707_vm5  ;;  %v6449_v55 = vmul.u32 16, %v13626_v21  ;;  %v13869_v21 = vadd.s32 192, %v6448_v48  ;;  %v6522_v48 = vadd.s32 2, %v13805_v60 }
 0x651   :  { %6689 = vst.msk [vmem:[#allocation4 + $0xd] sm:$0x40] %vm15721_vm10, %v6428_v30  ;;  %vm15728_vm7 = vmmov %vm15707_vm5  ;;  %v13856_v30 = vadd.s32 96, %v6445_v3  ;;  %v15776_v3 = vld [vmem:[#allocation59_spill] sm:$0xff] }
 0x652   :  { %6690 = vst.msk [vmem:[#allocation4 + $0x15] sm:$0x40] %vm15722_vm11, %v6429_v17  ;;  %vm15729_vm8 = vmmov %vm15707_vm5  ;;  %v13862_v17 = vadd.s32 128, %v6446_v36 }
 0x653   :  { %6493 = vst.msk [vmem:[#allocation4 + $0x20] sm:$0x1] %vm15707_vm5, %v6430_v18  ;;  %vm15730_vm13 = vmmov %vm15711_vm12  ;;  %v6475_v37 = vadd.s32 %v13856_v30, %v13690_v31  ;;  %v6525_v8 = vadd.s32 2, %v13856_v30 }
 0x654   :  { %6494 = vst.msk [vmem:[#allocation4 + $0x28] sm:$0x1] %vm15727_vm6, %v6431_v29  ;;  %vm15731_vm14 = vmmov %vm15711_vm12  ;;  %v6526_v9 = vadd.s32 2, %v13862_v17 }
 0x655   :  { %6495 = vst.msk [vmem:[#allocation4 + $0x30] sm:$0x1] %vm15728_vm7, %v6432_v41  ;;  %vm15732_vm15 = vmmov %vm15711_vm12 }
 0x656   :  { %6496 = vst.msk [vmem:[#allocation4 + $0x38] sm:$0x1] %vm15729_vm8, %v6433_v1  ;;  %vm15733_vm1 = vmmov %vm15715_vm0 }
 0x657   :  { %6559 = vst.msk [vmem:[#allocation4 + $0x1f] sm:$0x4] %vm15711_vm12, %v6430_v18  ;;  %vm15734_vm2 = vmmov %vm15715_vm0 }
 0x658   :  { %6560 = vst.msk [vmem:[#allocation4 + $0x27] sm:$0x4] %vm15730_vm13, %v6431_v29  ;;  %vm15735_vm3 = vmmov %vm15715_vm0 }
 0x659   :  { %6561 = vst.msk [vmem:[#allocation4 + $0x2f] sm:$0x4] %vm15731_vm14, %v6432_v41  ;;  %vm15736_vm9 = vmmov %vm15719_vm4 }
 0x65a   :  { %6562 = vst.msk [vmem:[#allocation4 + $0x37] sm:$0x4] %vm15732_vm15, %v6433_v1  ;;  %vm15737_vm10 = vmmov %vm15719_vm4 }
 0x65b   :  { %6625 = vst.msk [vmem:[#allocation4 + $0x1e] sm:$0x10] %vm15715_vm0, %v6430_v18  ;;  %vm15738_vm11 = vmmov %vm15719_vm4 }
 0x65c   :  { %6626 = vst.msk [vmem:[#allocation4 + $0x26] sm:$0x10] %vm15733_vm1, %v6431_v29  ;;  %vm15739_vm6 = vmmov %vm15707_vm5 }
 0x65d   :  { %6627 = vst.msk [vmem:[#allocation4 + $0x2e] sm:$0x10] %vm15734_vm2, %v6432_v41  ;;  %vm15740_vm7 = vmmov %vm15707_vm5 }
 0x65e   :  { %6628 = vst.msk [vmem:[#allocation4 + $0x36] sm:$0x10] %vm15735_vm3, %v6433_v1  ;;  %vm15741_vm8 = vmmov %vm15707_vm5 }
 0x65f   :  { %6691 = vst.msk [vmem:[#allocation4 + $0x1d] sm:$0x40] %vm15719_vm4, %v6430_v18  ;;  %vm15742_vm13 = vmmov %vm15711_vm12  ;;  %v13871_v18 = vadd.s32 224, %v6449_v55  ;;  %v6523_v55 = vadd.s32 2, %v13848_v19 }
 0x660   :  { %6692 = vst.msk [vmem:[#allocation4 + $0x25] sm:$0x40] %vm15736_vm9, %v6431_v29  ;;  %vm15743_vm14 = vmmov %vm15711_vm12  ;;  %v13875_v29 = vadd.s32 32, %v6451_v7  ;;  %v6524_v7 = vadd.s32 2, %v13854_v4 }
 0x661   :  { %6693 = vst.msk [vmem:[#allocation4 + $0x2d] sm:$0x40] %vm15737_vm10, %v6432_v41  ;;  %vm15744_vm15 = vmmov %vm15711_vm12  ;;  %v6456_v41 = vmul.u32 16, %v13654_v12  ;;  %v6479_v25 = vadd.s32 %v13871_v18, %v13706_v14 }
 0x662   :  { %6694 = vst.msk [vmem:[#allocation4 + $0x35] sm:$0x40] %vm15738_vm11, %v6433_v1  ;;  %vm15745_vm1 = vmmov %vm15715_vm0  ;;  %v6457_v1 = vmul.u32 16, %v13658_v20  ;;  %v6476_v20 = vadd.s32 %v13862_v17, %v13694_v23  ;;  %v6481_v0 = vadd.s32 %v13875_v29, %v13714_v27 }
 0x663   :  { %6497 = vst.msk [vmem:[#allocation4 + $0x40] sm:$0x1] %vm15707_vm5, %v6434_v56  ;;  %vm15746_vm2 = vmmov %vm15715_vm0 }
 0x664   :  { %6498 = vst.msk [vmem:[#allocation4 + $0x48] sm:$0x1] %vm15739_vm6, %v6435_v52  ;;  %vm15747_vm3 = vmmov %vm15715_vm0  ;;  %v13896_v12 = vadd.s32 224, %v6457_v1  ;;  %v6531_v1 = vadd.s32 2, %v13875_v29 }
 0x665   :  { %6499 = vst.msk [vmem:[#allocation4 + $0x50] sm:$0x1] %vm15740_vm7, %v6436_v49  ;;  %vm15748_vm9 = vmmov %vm15719_vm4 }
 0x666   :  { %6500 = vst.msk [vmem:[#allocation4 + $0x58] sm:$0x1] %vm15741_vm8, %v6437_v33  ;;  %vm15749_vm10 = vmmov %vm15719_vm4  ;;  %v6547_v38 = vadd.s32 %v6531_v1, %v13714_v27  ;;  %v6591_v1 = vadd.s32 4, %v13856_v30 }
 0x667   :  { %6563 = vst.msk [vmem:[#allocation4 + $0x3f] sm:$0x4] %vm15711_vm12, %v6434_v56  ;;  %vm15750_vm11 = vmmov %vm15719_vm4 }
 0x668   :  { %6564 = vst.msk [vmem:[#allocation4 + $0x47] sm:$0x4] %vm15742_vm13, %v6435_v52  ;;  %vm15753_vm6 = vmmov %vm15707_vm5 }
 0x669   :  { %6565 = vst.msk [vmem:[#allocation4 + $0x4f] sm:$0x4] %vm15743_vm14, %v6436_v49  ;;  %vm15754_vm7 = vmmov %vm15707_vm5 }
 0x66a   :  { %6566 = vst.msk [vmem:[#allocation4 + $0x57] sm:$0x4] %vm15744_vm15, %v6437_v33  ;;  %vm15755_vm8 = vmmov %vm15707_vm5 }
 0x66b   :  { %6629 = vst.msk [vmem:[#allocation4 + $0x3e] sm:$0x10] %vm15715_vm0, %v6434_v56  ;;  %vm15756_vm13 = vmmov %vm15711_vm12 }
 0x66c   :  { %6630 = vst.msk [vmem:[#allocation4 + $0x46] sm:$0x10] %vm15745_vm1, %v6435_v52  ;;  %vm15757_vm14 = vmmov %vm15711_vm12 }
 0x66d   :  { %6631 = vst.msk [vmem:[#allocation4 + $0x4e] sm:$0x10] %vm15746_vm2, %v6436_v49  ;;  %vm15758_vm15 = vmmov %vm15711_vm12 }
 0x66e   :  { %6632 = vst.msk [vmem:[#allocation4 + $0x56] sm:$0x10] %vm15747_vm3, %v6437_v33  ;;  %vm15759_vm1 = vmmov %vm15715_vm0 }
 0x66f   :  { %6695 = vst.msk [vmem:[#allocation4 + $0x3d] sm:$0x40] %vm15719_vm4, %v6434_v56  ;;  %vm15760_vm2 = vmmov %vm15715_vm0  ;;  %v13885_v56 = vadd.s32 128, %v6454_v62  ;;  %v6527_v62 = vadd.s32 2, %v13864_v61 }
 0x670   :  { %6696 = vst.msk [vmem:[#allocation4 + $0x45] sm:$0x40] %vm15748_vm9, %v6435_v52  ;;  %vm15761_vm3 = vmmov %vm15715_vm0  ;;  %v13887_v52 = vadd.s32 160, %v6455_v42  ;;  %v6528_v42 = vadd.s32 2, %v13869_v21 }
 0x671   :  { %6697 = vst.msk [vmem:[#allocation4 + $0x4d] sm:$0x40] %vm15749_vm10, %v6436_v49  ;;  %vm15762_vm9 = vmmov %vm15719_vm4  ;;  %v13894_v49 = vadd.s32 192, %v6456_v41  ;;  %v6530_v41 = vadd.s32 2, %v13859_v5 }
 0x672   :  { %6698 = vst.msk [vmem:[#allocation4 + $0x55] sm:$0x40] %vm15750_vm11, %v6437_v33  ;;  %vm15763_vm10 = vmmov %vm15719_vm4  ;;  %v6478_v33 = vadd.s32 %v13869_v21, %v13702_v24  ;;  %v6485_v10 = vadd.s32 %v13887_v52, %v15773_v46 }
 0x673   :  { %6501 = vst.msk [vmem:[#allocation4 + $0x60] sm:$0x1] %vm15707_vm5, %v6438_v34  ;;  %vm15764_vm11 = vmmov %vm15719_vm4  ;;  %vm15767_vm5 = vcmask 254977   ;;  %v6486_v36 = vadd.s32 %v13894_v49, %v15776_v3  ;;  %v6546_v59 = vadd.s32 %v6530_v41, %v13710_v22  ;;  %v6590_v41 = vadd.s32 4, %v13854_v4 }
 0x674   :  { %6502 = vst.msk [vmem:[#allocation4 + $0x68] sm:$0x1] %vm15753_vm6, %v6439_v28  ;;  %vm15768_vm6 = vmmov %vm15767_vm5 }
 0x675   :  { %6503 = vst.msk [vmem:[#allocation4 + $0x70] sm:$0x1] %vm15754_vm7, %v6440_v54  ;;  %vm15769_vm7 = vmmov %vm15767_vm5 }
 0x676   :  { %6504 = vst.msk [vmem:[#allocation4 + $0x78] sm:$0x1] %vm15755_vm8, %v6441_v2  ;;  %vm15770_vm8 = vmmov %vm15767_vm5 }
 0x677   :  { %6567 = vst.msk [vmem:[#allocation4 + $0x5f] sm:$0x4] %vm15711_vm12, %v6438_v34  ;;  %vm15774_vm12 = vmmov %vm15767_vm5 }
 0x678   :  { %6568 = vst.msk [vmem:[#allocation4 + $0x67] sm:$0x4] %vm15756_vm13, %v6439_v28  ;;  %vm15775_vm13 = vmmov %vm15767_vm5 }
 0x679   :  { %6569 = vst.msk [vmem:[#allocation4 + $0x6f] sm:$0x4] %vm15757_vm14, %v6440_v54  ;;  %vm15778_vm14 = vmmov %vm15767_vm5 }
 0x67a   :  { %6570 = vst.msk [vmem:[#allocation4 + $0x77] sm:$0x4] %vm15758_vm15, %v6441_v2  ;;  %vm15779_vm15 = vmmov %vm15767_vm5 }
 0x67b   :  { %6633 = vst.msk [vmem:[#allocation4 + $0x5e] sm:$0x10] %vm15715_vm0, %v6438_v34  ;;  %vm15780_vm0 = vmmov %vm15767_vm5 }
 0x67c   :  { %6634 = vst.msk [vmem:[#allocation4 + $0x66] sm:$0x10] %vm15759_vm1, %v6439_v28  ;;  %vm15781_vm1 = vmmov %vm15780_vm0 }
 0x67d   :  { %6635 = vst.msk [vmem:[#allocation4 + $0x6e] sm:$0x10] %vm15760_vm2, %v6440_v54  ;;  %vm15782_vm2 = vmmov %vm15780_vm0 }
 0x67e   :  { %6636 = vst.msk [vmem:[#allocation4 + $0x76] sm:$0x10] %vm15761_vm3, %v6441_v2  ;;  %vm15783_vm3 = vmmov %vm15780_vm0 }
 0x67f   :  { %6699 = vst.msk [vmem:[#allocation4 + $0x5d] sm:$0x40] %vm15719_vm4, %v6438_v34  ;;  %v6480_v34 = vadd.s32 %v13859_v5, %v13710_v22  ;;  %vm15784_vm4 = vmmov %vm15780_vm0 }
 0x680   :  { %6700 = vst.msk [vmem:[#allocation4 + $0x65] sm:$0x40] %vm15762_vm9, %v6439_v28  ;;  %v6482_v28 = vadd.s32 %v13881_v11, %v13718_v50  ;;  %vm15785_vm9 = vmmov %vm15780_vm0 }
 0x681   :  { %6701 = vst.msk [vmem:[#allocation4 + $0x6d] sm:$0x40] %vm15763_vm10, %v6440_v54  ;;  %v6483_v54 = vadd.s32 %v13883_v40, %v15771_v39  ;;  %vm15786_vm10 = vmmov %vm15780_vm0 }
 0x682   :  { %6702 = vst.msk [vmem:[#allocation4 + $0x75] sm:$0x40] %vm15764_vm11, %v6441_v2  ;;  %v6484_v2 = vadd.s32 %v13885_v56, %v15772_v57  ;;  %vm15787_vm11 = vmmov %vm15780_vm0 }
 0x683   :  { %6506 = vst.msk [vmem:[#allocation6 - $0x1] sm:$0x2] %vm15767_vm5, %v6472_v58  ;;  %v6487_v58 = vadd.s32 %v13896_v12, %v15777_v26  ;;  %vm15788_vm5 = vcmask 257027  }
 0x684   :  { %6507 = vst.msk [vmem:[#allocation6 + $0x7] sm:$0x2] %vm15768_vm6, %v6473_v45  ;;  %v6529_v45 = vadd.s32 2, %v13871_v18  ;;  %vm15789_vm6 = vmmov %vm15788_vm5 }
 0x685   :  { %6508 = vst.msk [vmem:[#allocation6 + $0xf] sm:$0x2] %vm15769_vm7, %v6474_v53  ;;  %v6532_v53 = vadd.s32 2, %v13881_v11  ;;  %vm15790_vm7 = vmmov %vm15788_vm5 }
 0x686   :  { %6509 = vst.msk [vmem:[#allocation6 + $0x17] sm:$0x2] %vm15770_vm8, %v6475_v37  ;;  %v6533_v37 = vadd.s32 2, %v13883_v40  ;;  %vm15791_vm8 = vmmov %vm15788_vm5 }
 0x687   :  { %6510 = vst.msk [vmem:[#allocation6 + $0x1f] sm:$0x2] %vm15774_vm12, %v6476_v20  ;;  %v6534_v20 = vadd.s32 2, %v13885_v56  ;;  %vm15792_vm12 = vmmov %vm15788_vm5 }
 0x688   :  { %6511 = vst.msk [vmem:[#allocation6 + $0x27] sm:$0x2] %vm15775_vm13, %v6477_v43  ;;  %v6535_v43 = vadd.s32 2, %v13887_v52  ;;  %vm15793_vm13 = vmmov %vm15788_vm5 }
 0x689   :  { %6512 = vst.msk [vmem:[#allocation6 + $0x2f] sm:$0x2] %vm15778_vm14, %v6478_v33  ;;  %v6536_v33 = vadd.s32 2, %v13894_v49  ;;  %vm15794_vm14 = vmmov %vm15788_vm5 }
 0x68a   :  { %6513 = vst.msk [vmem:[#allocation6 + $0x37] sm:$0x2] %vm15779_vm15, %v6479_v25  ;;  %v6537_v25 = vadd.s32 2, %v13896_v12  ;;  %vm15795_vm15 = vmmov %vm15788_vm5 }
 0x68b   :  { %6514 = vst.msk [vmem:[#allocation6 + $0x3f] sm:$0x2] %vm15780_vm0, %v6480_v34  ;;  %v6538_v34 = vadd.s32 %v6522_v48, %v13678_v51  ;;  %v6548_v48 = vadd.s32 %v6532_v53, %v13718_v50  ;;  %vm15796_vm0 = vmmov %vm15788_vm5  ;;  %v6594_v53 = vadd.s32 4, %v13869_v21 }
 0x68c   :  { %6515 = vst.msk [vmem:[#allocation6 + $0x47] sm:$0x2] %vm15781_vm1, %v6481_v0  ;;  %v6539_v0 = vadd.s32 %v6523_v55, %v13682_v44  ;;  %v6549_v55 = vadd.s32 %v6533_v37, %v15771_v39  ;;  %vm15797_vm1 = vmmov %vm15796_vm0  ;;  %v6595_v37 = vadd.s32 4, %v13871_v18 }
 0x68d   :  { %6516 = vst.msk [vmem:[#allocation6 + $0x4f] sm:$0x2] %vm15782_vm2, %v6482_v28  ;;  %v6540_v28 = vadd.s32 %v6524_v7, %v13686_v63  ;;  %v6550_v7 = vadd.s32 %v6534_v20, %v15772_v57  ;;  %vm15798_vm2 = vmmov %vm15796_vm0  ;;  %v6596_v20 = vadd.s32 4, %v13859_v5 }
 0x68e   :  { %6517 = vst.msk [vmem:[#allocation6 + $0x57] sm:$0x2] %vm15783_vm3, %v6483_v54  ;;  %v6541_v54 = vadd.s32 %v6525_v8, %v13690_v31  ;;  %v6551_v8 = vadd.s32 %v6535_v43, %v15773_v46  ;;  %vm15799_vm3 = vmmov %vm15796_vm0  ;;  %v6597_v43 = vadd.s32 4, %v13875_v29 }
 0x68f   :  { %6518 = vst.msk [vmem:[#allocation6 + $0x5f] sm:$0x2] %vm15784_vm4, %v6484_v2  ;;  %v6542_v2 = vadd.s32 %v6526_v9, %v13694_v23  ;;  %v6552_v9 = vadd.s32 %v6536_v33, %v15776_v3  ;;  %vm15800_vm4 = vmmov %vm15796_vm0  ;;  %v6598_v33 = vadd.s32 4, %v13881_v11 }
 0x690   :  { %6519 = vst.msk [vmem:[#allocation6 + $0x67] sm:$0x2] %vm15785_vm9, %v6485_v10  ;;  %v6543_v10 = vadd.s32 %v6527_v62, %v13698_v15  ;;  %v6553_v62 = vadd.s32 %v6537_v25, %v15777_v26  ;;  %vm15801_vm9 = vmmov %vm15796_vm0  ;;  %v6599_v25 = vadd.s32 4, %v13883_v40 }
 0x691   :  { %6520 = vst.msk [vmem:[#allocation6 + $0x6f] sm:$0x2] %vm15786_vm10, %v6486_v36  ;;  %v6544_v36 = vadd.s32 %v6528_v42, %v13702_v24  ;;  %v6588_v42 = vadd.s32 4, %v13805_v60  ;;  %vm15802_vm10 = vmmov %vm15796_vm0 }
 0x692   :  { %6521 = vst.msk [vmem:[#allocation6 + $0x77] sm:$0x2] %vm15787_vm11, %v6487_v58  ;;  %v6545_v58 = vadd.s32 %v6529_v45, %v13706_v14  ;;  %v6589_v45 = vadd.s32 4, %v13848_v19  ;;  %vm15803_vm11 = vmmov %vm15796_vm0 }
 0x693   :  { %6572 = vst.msk [vmem:[#allocation6 - $0x2] sm:$0x8] %vm15788_vm5, %v6538_v34  ;;  %v6600_v34 = vadd.s32 4, %v13885_v56  ;;  %vm15804_vm5 = vcmask 259077  }
 0x694   :  { %6573 = vst.msk [vmem:[#allocation6 + $0x6] sm:$0x8] %vm15789_vm6, %v6539_v0  ;;  %v6601_v0 = vadd.s32 4, %v13887_v52  ;;  %vm15805_vm6 = vmmov %vm15804_vm5 }
 0x695   :  { %6574 = vst.msk [vmem:[#allocation6 + $0xe] sm:$0x8] %vm15790_vm7, %v6540_v28  ;;  %v6602_v28 = vadd.s32 4, %v13894_v49  ;;  %vm15806_vm7 = vmmov %vm15804_vm5 }
 0x696   :  { %6575 = vst.msk [vmem:[#allocation6 + $0x16] sm:$0x8] %vm15791_vm8, %v6541_v54  ;;  %v6603_v54 = vadd.s32 4, %v13896_v12  ;;  %vm15807_vm8 = vmmov %vm15804_vm5 }
 0x697   :  { %6576 = vst.msk [vmem:[#allocation6 + $0x1e] sm:$0x8] %vm15792_vm12, %v6542_v2  ;;  %v6604_v2 = vadd.s32 %v6588_v42, %v13678_v51  ;;  %v6614_v42 = vadd.s32 %v6598_v33, %v13718_v50  ;;  %vm15808_vm12 = vmmov %vm15804_vm5  ;;  %v6658_v33 = vadd.s32 6, %v13862_v17 }
 0x698   :  { %6577 = vst.msk [vmem:[#allocation6 + $0x26] sm:$0x8] %vm15793_vm13, %v6543_v10  ;;  %v6605_v10 = vadd.s32 %v6589_v45, %v13682_v44  ;;  %v6615_v45 = vadd.s32 %v6599_v25, %v15771_v39  ;;  %vm15809_vm13 = vmmov %vm15804_vm5  ;;  %v6659_v25 = vadd.s32 6, %v13864_v61 }
 0x699   :  { %6578 = vst.msk [vmem:[#allocation6 + $0x2e] sm:$0x8] %vm15794_vm14, %v6544_v36  ;;  %v6606_v36 = vadd.s32 %v6590_v41, %v13686_v63  ;;  %v6616_v41 = vadd.s32 %v6600_v34, %v15772_v57  ;;  %vm15810_vm14 = vmmov %vm15804_vm5  ;;  %v6662_v34 = vadd.s32 6, %v13859_v5 }
 0x69a   :  { %6579 = vst.msk [vmem:[#allocation6 + $0x36] sm:$0x8] %vm15795_vm15, %v6545_v58  ;;  %v6607_v58 = vadd.s32 %v6591_v1, %v13690_v31  ;;  %v6617_v1 = vadd.s32 %v6601_v0, %v15773_v46  ;;  %vm15811_vm15 = vmmov %vm15804_vm5  ;;  %v6663_v0 = vadd.s32 6, %v13875_v29 }
 0x69b   :  { %6580 = vst.msk [vmem:[#allocation6 + $0x3e] sm:$0x8] %vm15796_vm0, %v6546_v59  ;;  %v6592_v59 = vadd.s32 4, %v13862_v17  ;;  %vm15812_vm0 = vmmov %vm15804_vm5  ;;  %v6666_v17 = vadd.s32 6, %v13885_v56 }
 0x69c   :  { %6581 = vst.msk [vmem:[#allocation6 + $0x46] sm:$0x8] %vm15797_vm1, %v6547_v38  ;;  %v6593_v38 = vadd.s32 4, %v13864_v61  ;;  %vm15813_vm1 = vmmov %vm15812_vm0  ;;  %v6667_v61 = vadd.s32 6, %v13887_v52 }
 0x69d   :  { %6582 = vst.msk [vmem:[#allocation6 + $0x4e] sm:$0x8] %vm15798_vm2, %v6548_v48  ;;  %v6608_v48 = vadd.s32 %v6592_v59, %v13694_v23  ;;  %v6618_v59 = vadd.s32 %v6602_v28, %v15776_v3  ;;  %vm15814_vm2 = vmmov %vm15812_vm0  ;;  %v6668_v28 = vadd.s32 6, %v13894_v49  ;;  %v6678_v49 = vadd.s32 %v6662_v34, %v13710_v22 }
 0x69e   :  { %6583 = vst.msk [vmem:[#allocation6 + $0x56] sm:$0x8] %vm15799_vm3, %v6549_v55  ;;  %v6609_v55 = vadd.s32 %v6593_v38, %v13698_v15  ;;  %v6619_v38 = vadd.s32 %v6603_v54, %v15777_v26  ;;  %vm15815_vm3 = vmmov %vm15812_vm0  ;;  %v6669_v54 = vadd.s32 6, %v13896_v12  ;;  %v6679_v12 = vadd.s32 %v6663_v0, %v13714_v27 }
 0x69f   :  { %6584 = vst.msk [vmem:[#allocation6 + $0x5e] sm:$0x8] %vm15800_vm4, %v6550_v7  ;;  %v6610_v7 = vadd.s32 %v6594_v53, %v13702_v24  ;;  %v6654_v53 = vadd.s32 6, %v13805_v60  ;;  %vm15816_vm4 = vmmov %vm15812_vm0  ;;  %v6660_v60 = vadd.s32 6, %v13869_v21 }
 0x6a0   :  { %6585 = vst.msk [vmem:[#allocation6 + $0x66] sm:$0x8] %vm15801_vm9, %v6551_v8  ;;  %v6611_v8 = vadd.s32 %v6595_v37, %v13706_v14  ;;  %v6655_v37 = vadd.s32 6, %v13848_v19  ;;  %vm15817_vm9 = vmmov %vm15812_vm0  ;;  %v6661_v19 = vadd.s32 6, %v13871_v18 }
 0x6a1   :  { %6586 = vst.msk [vmem:[#allocation6 + $0x6e] sm:$0x8] %vm15802_vm10, %v6552_v9  ;;  %v6612_v9 = vadd.s32 %v6596_v20, %v13710_v22  ;;  %v6656_v20 = vadd.s32 6, %v13854_v4  ;;  %vm15818_vm10 = vmmov %vm15812_vm0  ;;  %v6664_v4 = vadd.s32 6, %v13881_v11  ;;  %v6670_v21 = vadd.s32 %v6654_v53, %v13678_v51  ;;  %v15831_v22 = vld [vmem:[#allocation21_spill] sm:$0xff] }
 0x6a2   :  { %6587 = vst.msk [vmem:[#allocation6 + $0x76] sm:$0x8] %vm15803_vm11, %v6553_v62  ;;  %v6613_v62 = vadd.s32 %v6597_v43, %v13714_v27  ;;  %v6657_v43 = vadd.s32 6, %v13856_v30  ;;  %vm15819_vm11 = vmmov %vm15812_vm0  ;;  %v6665_v30 = vadd.s32 6, %v13883_v40  ;;  %v6671_v18 = vadd.s32 %v6655_v37, %v13682_v44 }
 0x6a3   :  { %6638 = vst.msk [vmem:[#allocation6 - $0x3] sm:$0x20] %vm15804_vm5, %v6604_v2  ;;  %v6672_v5 = vadd.s32 %v6656_v20, %v13686_v63  ;;  %v6674_v11 = vadd.s32 %v6658_v33, %v13694_v23  ;;  %v6675_v40 = vadd.s32 %v6659_v25, %v13698_v15  ;;  %v6676_v56 = vadd.s32 %v6660_v60, %v13702_v24  ;;  %v15830_v24 = vld [vmem:[#allocation16_spill] sm:$0xff]  ;;  %v15839_v2 = vld [vmem:[#allocation13_spill] sm:$0xff] }
 0x6a4   :  { %6639 = vst.msk [vmem:[#allocation6 + $0x5] sm:$0x20] %vm15805_vm6, %v6605_v10  ;;  %v6673_v29 = vadd.s32 %v6657_v43, %v13690_v31  ;;  %v6677_v52 = vadd.s32 %v6661_v19, %v13706_v14  ;;  %vm15820_vm5 = vcmask 261127   ;;  %v6680_v51 = vadd.s32 %v6664_v4, %v13718_v50  ;;  %v15836_v50 = vld [vmem:[#allocation28_spill] sm:$0xff] }
 0x6a5   :  { %6640 = vst.msk [vmem:[#allocation6 + $0xd] sm:$0x20] %vm15806_vm7, %v6606_v36  ;;  %vm15821_vm6 = vmmov %vm15820_vm5  ;;  %v6681_v44 = vadd.s32 %v6665_v30, %v15771_v39  ;;  %v6682_v63 = vadd.s32 %v6666_v17, %v15772_v57  ;;  %v6683_v31 = vadd.s32 %v6667_v61, %v15773_v46  ;;  %v6684_v23 = vadd.s32 %v6668_v28, %v15776_v3  ;;  %v15837_v57 = vld [vmem:[#allocation35_spill] sm:$0xff]  ;;  %v15838_v3 = vld [vmem:[#allocation37_spill] sm:$0xff] }
 0x6a6   :  { %6641 = vst.msk [vmem:[#allocation6 + $0x15] sm:$0x20] %vm15807_vm8, %v6607_v58  ;;  %vm15822_vm7 = vmmov %vm15820_vm5  ;;  %v6685_v15 = vadd.s32 %v6669_v54, %v15777_v26  ;;  %v6740_v14 = vrot.slane %v15830_v24, 7  ;;  %v6741_v27 = vrot.slane %v15831_v22, 7  ;;  %v6742_v39 = vrot.slane %v15836_v50, 7  ;;  %v15842_v36 = vld [vmem:[#allocation12_spill] sm:$0xff] }
 0x6a7   :  { %6642 = vst.msk [vmem:[#allocation6 + $0x1d] sm:$0x20] %vm15808_vm12, %v6608_v48  ;;  %vm15823_vm8 = vmmov %vm15820_vm5  ;;  %v6743_v46 = vrot.slane %v15837_v57, 7  ;;  %v6744_v26 = vrot.slane %v15838_v3, 7  ;;  %v6745_v10 = vrot.slane %v15839_v2, 7  ;;  %v6746_v58 = vrot.slane %v15842_v36, 7 }
 0x6a8   :  { %6643 = vst.msk [vmem:[#allocation6 + $0x25] sm:$0x20] %vm15809_vm13, %v6609_v55  ;;  %vm15824_vm12 = vmmov %vm15820_vm5  ;;  %v15843_v48 = vld [vmem:[#allocation20_spill] sm:$0xff]  ;;  %v6800_v17 = vrot.slane %v15751_v32, 1  ;;  %v6801_v61 = vrot.slane %v15752_v13, 1  ;;  %v6802_v28 = vrot.slane %v15765_v47, 1 }
 0x6a9   :  { %6644 = vst.msk [vmem:[#allocation6 + $0x2d] sm:$0x20] %vm15810_vm14, %v6610_v7  ;;  %vm15825_vm13 = vmmov %vm15820_vm5  ;;  %v6747_v55 = vrot.slane %v15843_v48, 7  ;;  %v15844_v7 = vld [vmem:[#allocation44_spill] sm:$0xff]  ;;  %v6803_v54 = vrot.slane %v15766_v16, 1 }
 0x6aa   :  { %6645 = vst.msk [vmem:[#allocation6 + $0x35] sm:$0x20] %vm15811_vm15, %v6611_v8  ;;  %vm15826_vm14 = vmmov %vm15820_vm5  ;;  %v6748_v8 = vrot.slane %v15844_v7, 7 }
 0x6ab   :  { %6646 = vst.msk [vmem:[#allocation6 + $0x3d] sm:$0x20] %vm15812_vm0, %v6612_v9  ;;  %vm15827_vm15 = vmmov %vm15820_vm5  ;;  %v15845_v9 = vld [vmem:[#allocation47_spill] sm:$0xff] }
 0x6ac   :  { %6647 = vst.msk [vmem:[#allocation6 + $0x45] sm:$0x20] %vm15813_vm1, %v6613_v62  ;;  %vm15828_vm0 = vmmov %vm15820_vm5  ;;  %v6749_v62 = vrot.slane %v15845_v9, 7 }
 0x6ad   :  { %6648 = vst.msk [vmem:[#allocation6 + $0x4d] sm:$0x20] %vm15814_vm2, %v6614_v42  ;;  %vm15829_vm1 = vmmov %vm15828_vm0  ;;  %v15846_v42 = vld [vmem:[#allocation50_spill] sm:$0xff] }
 0x6ae   :  { %6649 = vst.msk [vmem:[#allocation6 + $0x55] sm:$0x20] %vm15815_vm3, %v6615_v45  ;;  %vm15832_vm2 = vmmov %vm15828_vm0  ;;  %v6750_v45 = vrot.slane %v15846_v42, 7 }
 0x6af   :  { %6650 = vst.msk [vmem:[#allocation6 + $0x5d] sm:$0x20] %vm15816_vm4, %v6616_v41  ;;  %vm15833_vm3 = vmmov %vm15828_vm0  ;;  %v15847_v41 = vrot.slane %v15765_v47, 7 }
 0x6b0   :  { %6651 = vst.msk [vmem:[#allocation6 + $0x65] sm:$0x20] %vm15817_vm9, %v6617_v1  ;;  %vm15834_vm4 = vmmov %vm15828_vm0  ;;  %v15848_v1 = vrot.slane %v15766_v16, 7 }
 0x6b1   :  { %6652 = vst.msk [vmem:[#allocation6 + $0x6d] sm:$0x20] %vm15818_vm10, %v6618_v59  ;;  %vm15835_vm9 = vmmov %vm15828_vm0 }
 0x6b2   :  { %6653 = vst.msk [vmem:[#allocation6 + $0x75] sm:$0x20] %vm15819_vm11, %v6619_v38  ;;  %vm15840_vm10 = vmmov %vm15828_vm0 }
 0x6b3   :  { %6704 = vst.msk [vmem:[#allocation6 - $0x4] sm:$0x80] %vm15820_vm5, %v6670_v21  ;;  %vm15841_vm11 = vmmov %vm15828_vm0  ;;  %vm6768_vm5 = vcmp.gt.f32.partialorder %v15751_v32, %v6736_v35  ;;  %v15849_v35 = vmov 0   ;;  %v6804_v21 = vrot.slane %v15830_v24, 1 }
 0x6b4   :  { %6705 = vst.msk [vmem:[#allocation6 + $0x4] sm:$0x80] %vm15821_vm6, %v6671_v18  ;;  %vm6769_vm6 = vcmp.gt.f32.partialorder %v15752_v13, %v6737_v6  ;;  %v14115_v6 = vsel %vm6768_vm5, 1, %v15849_v35  ;;  %v6805_v18 = vrot.slane %v15831_v22, 1 }
 0x6b5   :  { %6706 = vst.msk [vmem:[#allocation6 + $0xc] sm:$0x80] %vm15822_vm7, %v6672_v5  ;;  %vm6770_vm7 = vcmp.gt.f32.partialorder %v15765_v47, %v15847_v41  ;;  %v14118_v59 = vsel %vm6769_vm6, 1, %v15849_v35  ;;  %v6806_v5 = vrot.slane %v15836_v50, 1 }
 0x6b6   :  { %6707 = vst.msk [vmem:[#allocation6 + $0x14] sm:$0x80] %vm15823_vm8, %v6673_v29  ;;  %vm6771_vm8 = vcmp.gt.f32.partialorder %v15766_v16, %v15848_v1  ;;  %v14121_v38 = vsel %vm6770_vm7, 1, %v15849_v35  ;;  %v6807_v29 = vrot.slane %v15837_v57, 1 }
 0x6b7   :  { %6708 = vst.msk [vmem:[#allocation6 + $0x1c] sm:$0x80] %vm15824_vm12, %v6674_v11  ;;  %vm6772_vm12 = vcmp.gt.f32.partialorder %v15830_v24, %v6740_v14  ;;  %v14124_v53 = vsel %vm6771_vm8, 1, %v15849_v35  ;;  %v6808_v11 = vrot.slane %v15838_v3, 1  ;;  %v14190_v14 = vmax.f32 %v15831_v22, %v6805_v18 }
 0x6b8   :  { %6709 = vst.msk [vmem:[#allocation6 + $0x24] sm:$0x80] %vm15825_vm13, %v6675_v40  ;;  %vm6773_vm13 = vcmp.gt.f32.partialorder %v15831_v22, %v6741_v27  ;;  %v14127_v37 = vsel %vm6772_vm12, 1, %v15849_v35  ;;  %v6809_v40 = vrot.slane %v15839_v2, 1  ;;  %v14193_v27 = vmax.f32 %v15836_v50, %v6806_v5 }
 0x6b9   :  { %6710 = vst.msk [vmem:[#allocation6 + $0x2c] sm:$0x80] %vm15826_vm14, %v6676_v56  ;;  %vm6774_vm14 = vcmp.gt.f32.partialorder %v15836_v50, %v6742_v39  ;;  %v14130_v20 = vsel %vm6773_vm13, 1, %v15849_v35  ;;  %v6810_v56 = vrot.slane %v15842_v36, 1 }
 0x6ba   :  { %6711 = vst.msk [vmem:[#allocation6 + $0x34] sm:$0x80] %vm15827_vm15, %v6677_v52  ;;  %vm6775_vm15 = vcmp.gt.f32.partialorder %v15837_v57, %v6743_v46  ;;  %v14133_v43 = vsel %vm6774_vm14, 1, %v15849_v35  ;;  %v6811_v52 = vrot.slane %v15843_v48, 1  ;;  %v15851_v46 = vld [vmem:[#allocation27_spill] sm:$0xff] }
 0x6bb   :  { %6712 = vst.msk [vmem:[#allocation6 + $0x3c] sm:$0x80] %vm15828_vm0, %v6678_v49  ;;  %vm6776_vm0 = vcmp.gt.f32.partialorder %v15838_v3, %v6744_v26  ;;  %v14136_v33 = vsel %vm6775_vm15, 1, %v15849_v35  ;;  %v6812_v49 = vrot.slane %v15844_v7, 1  ;;  %v15853_v26 = vld [vmem:[#allocation31_spill] sm:$0xff] }
 0x6bc   :  { %6713 = vst.msk [vmem:[#allocation6 + $0x44] sm:$0x80] %vm15829_vm1, %v6679_v12  ;;  %vm6777_vm1 = vcmp.gt.f32.partialorder %v15839_v2, %v6745_v10  ;;  %v14139_v25 = vsel %vm6776_vm0, 1, %v15849_v35  ;;  %v6813_v12 = vrot.slane %v15845_v9, 1  ;;  %v15855_v10 = vld [vmem:[#allocation23_spill] sm:$0xff] }
 0x6bd   :  { %6714 = vst.msk [vmem:[#allocation6 + $0x4c] sm:$0x80] %vm15832_vm2, %v6680_v51  ;;  %vm6778_vm2 = vcmp.gt.f32.partialorder %v15842_v36, %v6746_v58  ;;  %v14142_v60 = vsel %vm6777_vm1, 1, %v15849_v35  ;;  %v6814_v51 = vrot.slane %v15846_v42, 1  ;;  %v14211_v22 = vmax.f32 %v15844_v7, %v6812_v49  ;;  %v15857_v58 = vld [vmem:[#allocation34_spill] sm:$0xff] }
 0x6be   :  { %6715 = vst.msk [vmem:[#allocation6 + $0x54] sm:$0x80] %vm15833_vm3, %v6681_v44  ;;  %vm6779_vm3 = vcmp.gt.f32.partialorder %v15843_v48, %v6747_v55  ;;  %v14145_v19 = vsel %vm6778_vm2, 1, %v15849_v35  ;;  %v14175_v44 = vmax.f32 %v15751_v32, %v6800_v17  ;;  %v14196_v32 = vmax.f32 %v15837_v57, %v6807_v29  ;;  %v15850_v57 = vld [vmem:[#allocation40_spill] sm:$0xff]  ;;  %v15859_v55 = vld [vmem:[#allocation19_spill] sm:$0xff] }
 0x6bf   :  { %6716 = vst.msk [vmem:[#allocation6 + $0x5c] sm:$0x80] %vm15834_vm4, %v6682_v63  ;;  %vm6780_vm4 = vcmp.gt.f32.partialorder %v15844_v7, %v6748_v8  ;;  %v14148_v34 = vsel %vm6779_vm3, 1, %v15849_v35  ;;  %v14178_v63 = vmax.f32 %v15752_v13, %v6801_v61  ;;  %v14199_v13 = vmax.f32 %v15838_v3, %v6808_v11  ;;  %v15852_v3 = vld [vmem:[#allocation26_spill] sm:$0xff]  ;;  %v15860_v7 = vld [vmem:[#allocation11_spill] sm:$0xff]  ;;  %v15861_v8 = vld [vmem:[#allocation25_spill] sm:$0xff] }
 0x6c0   :  { %6717 = vst.msk [vmem:[#allocation6 + $0x64] sm:$0x80] %vm15835_vm9, %v6683_v31  ;;  %vm6781_vm9 = vcmp.gt.f32.partialorder %v15845_v9, %v6749_v62  ;;  %v14151_v0 = vsel %vm6780_vm4, 1, %v15849_v35  ;;  %v14181_v31 = vmax.f32 %v15765_v47, %v6802_v28  ;;  %v14202_v47 = vmax.f32 %v15839_v2, %v6809_v40  ;;  %v15854_v2 = vld [vmem:[#allocation18_spill] sm:$0xff]  ;;  %v15863_v62 = vld [vmem:[#allocation49_spill] sm:$0xff] }
 0x6c1   :  { %6718 = vst.msk [vmem:[#allocation6 + $0x6c] sm:$0x80] %vm15840_vm10, %v6684_v23  ;;  %vm6782_vm10 = vcmp.gt.f32.partialorder %v15846_v42, %v6750_v45  ;;  %v14154_v4 = vsel %vm6781_vm9, 1, %v15849_v35  ;;  %v14184_v23 = vmax.f32 %v15766_v16, %v6803_v54  ;;  %v14205_v16 = vmax.f32 %v15842_v36, %v6810_v56  ;;  %v15856_v36 = vld [vmem:[#allocation33_spill] sm:$0xff] }
 0x6c2   :  { %6719 = vst.msk [vmem:[#allocation6 + $0x74] sm:$0x80] %vm15841_vm11, %v6685_v15  ;;  %v14157_v30 = vsel %vm6782_vm10, 1, %v15849_v35  ;;  %v14187_v15 = vmax.f32 %v15830_v24, %v6804_v21  ;;  %v14208_v24 = vmax.f32 %v15843_v48, %v6811_v52  ;;  %v14214_v50 = vmax.f32 %v15845_v9, %v6813_v12  ;;  %v15858_v48 = vld [vmem:[#allocation36_spill] sm:$0xff]  ;;  %v15862_v9 = vld [vmem:[#allocation46_spill] sm:$0xff] }
 0x6c3   :  { %v14217_v39 = vmax.f32 %v15846_v42, %v6814_v51  ;;  %vm6848_vm11 = vcmp.gt.f32.partialorder %v15850_v57, %v14175_v44  ;;  %vm6849_vm5 = vcmp.gt.f32.partialorder %v15851_v46, %v14178_v63  ;;  %vm6850_vm6 = vcmp.gt.f32.partialorder %v15852_v3, %v14181_v31  ;;  %v15864_v42 = vld [vmem:[#allocation52_spill] sm:$0xff] }
 0x6c4   :  { %vm6851_vm7 = vcmp.gt.f32.partialorder %v15853_v26, %v14184_v23  ;;  %vm6852_vm8 = vcmp.gt.f32.partialorder %v15854_v2, %v14187_v15  ;;  %vm6853_vm12 = vcmp.gt.f32.partialorder %v15855_v10, %v14190_v14  ;;  %vm6854_vm13 = vcmp.gt.f32.partialorder %v15856_v36, %v14193_v27 }
 0x6c5   :  { %vm6855_vm14 = vcmp.gt.f32.partialorder %v15857_v58, %v14196_v32  ;;  %vm6856_vm15 = vcmp.gt.f32.partialorder %v15858_v48, %v14199_v13  ;;  %vm6857_vm0 = vcmp.gt.f32.partialorder %v15859_v55, %v14202_v47  ;;  %vm6858_vm1 = vcmp.gt.f32.partialorder %v15860_v7, %v14205_v16 }
 0x6c6   :  { %vm6859_vm2 = vcmp.gt.f32.partialorder %v15861_v8, %v14208_v24  ;;  %vm6860_vm3 = vcmp.gt.f32.partialorder %v15862_v9, %v14211_v22  ;;  %vm6861_vm4 = vcmp.gt.f32.partialorder %v15863_v62, %v14214_v50  ;;  %vm6862_vm9 = vcmp.gt.f32.partialorder %v15864_v42, %v14217_v39 }
 0x6c7   :  { %v14253_v45 = vsel %vm6848_vm11, 1, %v15849_v35  ;;  %v14259_v41 = vsel %vm6849_vm5, 1, %v15849_v35  ;;  %v14265_v1 = vsel %vm6850_vm6, 1, %v15849_v35  ;;  %v14271_v17 = vsel %vm6851_vm7, 1, %v15849_v35 }
 0x6c8   :  { %v14277_v61 = vsel %vm6852_vm8, 1, %v15849_v35  ;;  %v14283_v28 = vsel %vm6853_vm12, 1, %v15849_v35  ;;  %v14289_v54 = vsel %vm6854_vm13, 1, %v15849_v35  ;;  %v14295_v21 = vsel %vm6855_vm14, 1, %v15849_v35 }
 0x6c9   :  { %v14301_v18 = vsel %vm6856_vm15, 1, %v15849_v35  ;;  %v14307_v5 = vsel %vm6857_vm0, 1, %v15849_v35  ;;  %v14313_v29 = vsel %vm6858_vm1, 1, %v15849_v35  ;;  %v14319_v11 = vsel %vm6859_vm2, 1, %v15849_v35 }
 0x6ca   :  { %15865 = vst [vmem:[#allocation61_spill] sm:$0xff] %v14301_v18  ;;  %15866 = vst [vmem:[#allocation62_spill] sm:$0xff] %v14307_v5  ;;  %v14325_v40 = vsel %vm6860_vm3, 1, %v15849_v35  ;;  %v14331_v56 = vsel %vm6861_vm4, 1, %v15849_v35  ;;  %v14337_v52 = vsel %vm6862_vm9, 1, %v15849_v35  ;;  %v6880_v49 = vrot.slane %v14115_v6, 1 }
 0x6cb   :  { %15867 = vst [vmem:[#allocation63_spill] sm:$0xff] %v14313_v29  ;;  %15868 = vst [vmem:[#allocation64_spill] sm:$0xff] %v14319_v11  ;;  %v6881_v12 = vrot.slane %v14118_v59, 1  ;;  %v6882_v51 = vrot.slane %v14121_v38, 1  ;;  %v6884_v11 = vrot.slane %v14127_v37, 1  ;;  %v6885_v29 = vrot.slane %v14130_v20, 1 }
 0x6cc   :  { %15869 = vst [vmem:[#allocation65_spill] sm:$0xff] %v14325_v40  ;;  %15870 = vst [vmem:[#allocation30_spill] sm:$0xff] %v14331_v56  ;;  %v6883_v40 = vrot.slane %v14124_v53, 1  ;;  %v6886_v56 = vrot.slane %v14133_v43, 1  ;;  %v6887_v5 = vrot.slane %v14136_v33, 1  ;;  %v6888_v18 = vrot.slane %v14139_v25, 1 }
 0x6cd   :  { %v6889_v35 = vrot.slane %v14142_v60, 1  ;;  %v6890_v6 = vrot.slane %v14145_v19, 1  ;;  %v6891_v59 = vrot.slane %v14148_v34, 1  ;;  %v6892_v38 = vrot.slane %v14151_v0, 1 }
 0x6ce   :  { %v6893_v53 = vrot.slane %v14154_v4, 1  ;;  %v6894_v37 = vrot.slane %v14157_v30, 1  ;;  %v14357_v20 = vsel %vm6848_vm11, 0, %v6880_v49  ;;  %v14362_v43 = vsel %vm6849_vm5, 0, %v6881_v12 }
 0x6cf   :  { %v14367_v33 = vsel %vm6850_vm6, 0, %v6882_v51  ;;  %v14372_v25 = vsel %vm6851_vm7, 0, %v6883_v40  ;;  %v14377_v60 = vsel %vm6852_vm8, 0, %v6884_v11  ;;  %v14382_v19 = vsel %vm6853_vm12, 0, %v6885_v29 }
 0x6d0   :  { %v14387_v34 = vsel %vm6854_vm13, 0, %v6886_v56  ;;  %v14392_v0 = vsel %vm6855_vm14, 0, %v6887_v5  ;;  %v14397_v4 = vsel %vm6856_vm15, 0, %v6888_v18  ;;  %v14402_v30 = vsel %vm6857_vm0, 0, %v6889_v35 }
 0x6d1   :  { %v14407_v29 = vsel %vm6858_vm1, 0, %v6890_v6  ;;  %v14412_v5 = vsel %vm6859_vm2, 0, %v6891_v59  ;;  %v14417_v18 = vsel %vm6860_vm3, 0, %v6892_v38  ;;  %v14422_v11 = vsel %vm6861_vm4, 0, %v6893_v53 }
 0x6d2   :  { %v14427_v40 = vsel %vm6862_vm9, 0, %v6894_v37  ;;  %v14431_v56 = vmax.f32 %v14175_v44, %v15850_v57  ;;  %v14435_v49 = vmax.f32 %v14178_v63, %v15851_v46  ;;  %v14439_v12 = vmax.f32 %v14181_v31, %v15852_v3 }
 0x6d3   :  { %v14443_v51 = vmax.f32 %v14184_v23, %v15853_v26  ;;  %v14447_v35 = vmax.f32 %v14187_v15, %v15854_v2  ;;  %v14451_v44 = vmax.f32 %v14190_v14, %v15855_v10  ;;  %v14455_v63 = vmax.f32 %v14193_v27, %v15856_v36 }
 0x6d4   :  { %15871 = vst [vmem:[#allocation32_spill] sm:$0xff] %v14431_v56  ;;  %15872 = vst [vmem:[#allocation15_spill] sm:$0xff] %v14435_v49  ;;  %v14459_v31 = vmax.f32 %v14196_v32, %v15857_v58  ;;  %v14463_v23 = vmax.f32 %v14199_v13, %v15858_v48  ;;  %v14467_v15 = vmax.f32 %v14202_v47, %v15859_v55  ;;  %v6944_v6 = vrot.slane %v14431_v56, 7 }
 0x6d5   :  { %15873 = vst [vmem:[#allocation14_spill] sm:$0xff] %v14439_v12  ;;  %15874 = vst [vmem:[#allocation17_spill] sm:$0xff] %v14443_v51  ;;  %v14471_v14 = vmax.f32 %v14205_v16, %v15860_v7  ;;  %v14475_v27 = vmax.f32 %v14208_v24, %v15861_v8  ;;  %v14479_v32 = vmax.f32 %v14211_v22, %v15862_v9  ;;  %v6945_v16 = vrot.slane %v14435_v49, 7 }
 0x6d6   :  { %15875 = vst [vmem:[#allocation22_spill] sm:$0xff] %v14447_v35  ;;  %15876 = vst [vmem:[#allocation45_spill] sm:$0xff] %v14451_v44  ;;  %v14483_v13 = vmax.f32 %v14214_v50, %v15863_v62  ;;  %v14487_v47 = vmax.f32 %v14217_v39, %v15864_v42  ;;  %v6946_v59 = vrot.slane %v14439_v12, 7  ;;  %v6947_v24 = vrot.slane %v14443_v51, 7 }
 0x6d7   :  { %15877 = vst [vmem:[#allocation48_spill] sm:$0xff] %v14455_v63  ;;  %15878 = vst [vmem:[#allocation51_spill] sm:$0xff] %v14459_v31  ;;  %v6948_v38 = vrot.slane %v14447_v35, 7  ;;  %v6949_v22 = vrot.slane %v14451_v44, 7  ;;  %v6950_v53 = vrot.slane %v14455_v63, 7  ;;  %v6951_v50 = vrot.slane %v14459_v31, 7 }
 0x6d8   :  { %15879 = vst [vmem:[#allocation53_spill] sm:$0xff] %v14463_v23  ;;  %15880 = vst [vmem:[#allocation10_spill] sm:$0xff] %v14467_v15  ;;  %v6952_v37 = vrot.slane %v14463_v23, 7  ;;  %v6953_v39 = vrot.slane %v14467_v15, 7  ;;  %v6954_v56 = vrot.slane %v14471_v14, 7  ;;  %v6955_v49 = vrot.slane %v14475_v27, 7 }
 0x6d9   :  { %15881 = vst [vmem:[#allocation41_spill] sm:$0xff] %v14471_v14  ;;  %15882 = vst [vmem:[#allocation54_spill] sm:$0xff] %v14475_v27  ;;  %v6956_v12 = vrot.slane %v14479_v32, 7  ;;  %v6957_v51 = vrot.slane %v14483_v13, 7  ;;  %v6958_v35 = vrot.slane %v14487_v47, 7  ;;  %vm14505_vm10 = vcmp.gt.f32.partialorder %v15850_v57, %v6944_v6 }
 0x6da   :  { %15883 = vst [vmem:[#allocation55_spill] sm:$0xff] %v14479_v32  ;;  %15884 = vst [vmem:[#allocation56_spill] sm:$0xff] %v14483_v13  ;;  %vm14510_vm11 = vcmp.gt.f32.partialorder %v15851_v46, %v6945_v16  ;;  %vm14515_vm5 = vcmp.gt.f32.partialorder %v15852_v3, %v6946_v59  ;;  %vm14520_vm6 = vcmp.gt.f32.partialorder %v15853_v26, %v6947_v24  ;;  %v6994_v32 = vrot.slane %v14265_v1, 7 }
 0x6db   :  { %15885 = vst [vmem:[#allocation57_spill] sm:$0xff] %v14487_v47  ;;  %vm14525_vm7 = vcmp.gt.f32.partialorder %v15854_v2, %v6948_v38  ;;  %vm14530_vm8 = vcmp.gt.f32.partialorder %v15855_v10, %v6949_v22  ;;  %vm14535_vm12 = vcmp.gt.f32.partialorder %v15856_v36, %v6950_v53  ;;  %vm14540_vm13 = vcmp.gt.f32.partialorder %v15857_v58, %v6951_v50 }
 0x6dc   :  { %vm14545_vm14 = vcmp.gt.f32.partialorder %v15858_v48, %v6952_v37  ;;  %vm14550_vm15 = vcmp.gt.f32.partialorder %v15859_v55, %v6953_v39  ;;  %vm14555_vm0 = vcmp.gt.f32.partialorder %v15860_v7, %v6954_v56  ;;  %vm14560_vm1 = vcmp.gt.f32.partialorder %v15861_v8, %v6955_v49  ;;  %v15919_v8 = vld [vmem:[#allocation64_spill] sm:$0xff]  ;;  %v15920_v7 = vld [vmem:[#allocation65_spill] sm:$0xff]  ;;  %v15921_v55 = vld [vmem:[#allocation30_spill] sm:$0xff] }
 0x6dd   :  { %vm14565_vm2 = vcmp.gt.f32.partialorder %v15862_v9, %v6956_v12  ;;  %vm14570_vm3 = vcmp.gt.f32.partialorder %v15863_v62, %v6957_v51  ;;  %vm14575_vm4 = vcmp.gt.f32.partialorder %v15864_v42, %v6958_v35  ;;  %v6992_v49 = vrot.slane %v14253_v45, 7  ;;  %v15916_v35 = vld [vmem:[#allocation61_spill] sm:$0xff]  ;;  %v15917_v42 = vld [vmem:[#allocation62_spill] sm:$0xff]  ;;  %v15918_v9 = vld [vmem:[#allocation63_spill] sm:$0xff] }
 0x6de   :  { %v6993_v47 = vrot.slane %v14259_v41, 7  ;;  %v6995_v12 = vrot.slane %v14271_v17, 7  ;;  %v6996_v27 = vrot.slane %v14277_v61, 7  ;;  %v6997_v51 = vrot.slane %v14283_v28, 7  ;;  %v15922_v56 = vld [vmem:[#allocation19_spill] sm:$0xff] }
 0x6df   :  { %v6998_v15 = vrot.slane %v14289_v54, 7  ;;  %v6999_v31 = vrot.slane %v14295_v21, 7  ;;  %v7000_v63 = vrot.slane %v15916_v35, 7  ;;  %v7001_v62 = vrot.slane %v15917_v42, 7 }
 0x6e0   :  { %v7002_v45 = vrot.slane %v15918_v9, 7  ;;  %v7003_v41 = vrot.slane %v15919_v8, 7  ;;  %v7004_v1 = vrot.slane %v15920_v7, 7  ;;  %v7005_v17 = vrot.slane %v15921_v55, 7 }
 0x6e1   :  { %v7006_v61 = vrot.slane %v14337_v52, 7  ;;  %v14596_v28 = vsel %vm14505_vm10, 1, %v6992_v49  ;;  %v14600_v54 = vsel %vm14510_vm11, 1, %v6993_v47  ;;  %v14604_v42 = vsel %vm14515_vm5, 1, %v6994_v32 }
 0x6e2   :  { %v14608_v8 = vsel %vm14520_vm6, 1, %v6995_v12  ;;  %v14612_v55 = vsel %vm14525_vm7, 1, %v6996_v27  ;;  %v14616_v7 = vsel %vm14530_vm8, 1, %v6997_v51  ;;  %v14620_v9 = vsel %vm14535_vm12, 1, %v6998_v15 }
 0x6e3   :  { %v14624_v21 = vsel %vm14540_vm13, 1, %v6999_v31  ;;  %v14628_v52 = vsel %vm14545_vm14, 1, %v7000_v63  ;;  %v14632_v27 = vsel %vm14550_vm15, 1, %v7001_v62  ;;  %v14636_v32 = vsel %vm14555_vm0, 1, %v7002_v45 }
 0x6e4   :  { %v14640_v15 = vsel %vm14560_vm1, 1, %v7003_v41  ;;  %v14644_v31 = vsel %vm14565_vm2, 1, %v7004_v1  ;;  %v14648_v63 = vsel %vm14570_vm3, 1, %v7005_v17  ;;  %v14652_v62 = vsel %vm14575_vm4, 1, %v7006_v61 }
 0x6e5   :  { %v7024_v47 = vrot.slane %v14357_v20, 7  ;;  %v7025_v49 = vrot.slane %v14362_v43, 7  ;;  %v7026_v12 = vrot.slane %v14367_v33, 7  ;;  %v7027_v51 = vrot.slane %v14372_v25, 7 }
 0x6e6   :  { %v7028_v35 = vrot.slane %v14377_v60, 7  ;;  %v7029_v45 = vrot.slane %v14382_v19, 7  ;;  %v7030_v41 = vrot.slane %v14387_v34, 7  ;;  %v7031_v1 = vrot.slane %v14392_v0, 7 }
 0x6e7   :  { %v7032_v17 = vrot.slane %v14397_v4, 7  ;;  %v7033_v61 = vrot.slane %v14402_v30, 7  ;;  %v7034_v20 = vrot.slane %v14407_v29, 7  ;;  %v7035_v43 = vrot.slane %v14412_v5, 7 }
 0x6e8   :  { %v7036_v33 = vrot.slane %v14417_v18, 7  ;;  %v7037_v25 = vrot.slane %v14422_v11, 7  ;;  %v7038_v60 = vrot.slane %v14427_v40, 7  ;;  %v14671_v19 = vsel %vm14505_vm10, 1, %v7024_v47 }
 0x6e9   :  { %v14675_v34 = vsel %vm14510_vm11, 1, %v7025_v49  ;;  %v14679_v0 = vsel %vm14515_vm5, 1, %v7026_v12  ;;  %v14683_v4 = vsel %vm14520_vm6, 1, %v7027_v51  ;;  %v14687_v30 = vsel %vm14525_vm7, 1, %v7028_v35  ;;  %v15923_v49 = vld [vmem:[#allocation11_spill] sm:$0xff]  ;;  %v15924_v12 = vld [vmem:[#allocation25_spill] sm:$0xff] }
 0x6ea   :  { %v14691_v29 = vsel %vm14530_vm8, 1, %v7029_v45  ;;  %v14695_v5 = vsel %vm14535_vm12, 1, %v7030_v41  ;;  %v14699_v18 = vsel %vm14540_vm13, 1, %v7031_v1  ;;  %v14703_v11 = vsel %vm14545_vm14, 1, %v7032_v17  ;;  %v15925_v51 = vld [vmem:[#allocation46_spill] sm:$0xff]  ;;  %v15926_v35 = vld [vmem:[#allocation49_spill] sm:$0xff] }
 0x6eb   :  { %v14707_v40 = vsel %vm14550_vm15, 1, %v7033_v61  ;;  %v14711_v44 = vsel %vm14555_vm0, 1, %v7034_v20  ;;  %v14715_v23 = vsel %vm14560_vm1, 1, %v7035_v43  ;;  %v14719_v14 = vsel %vm14565_vm2, 1, %v7036_v33  ;;  %v15927_v45 = vld [vmem:[#allocation52_spill] sm:$0xff]  ;;  %v15929_v1 = vld [vmem:[#allocation15_spill] sm:$0xff] }
 0x6ec   :  { %v14723_v13 = vsel %vm14570_vm3, 1, %v7037_v25  ;;  %v14727_v6 = vsel %vm14575_vm4, 1, %v7038_v60  ;;  %v7072_v16 = vrot.slane %v15850_v57, 1  ;;  %v7073_v59 = vrot.slane %v15851_v46, 1  ;;  %v15928_v41 = vld [vmem:[#allocation32_spill] sm:$0xff]  ;;  %v15930_v17 = vld [vmem:[#allocation14_spill] sm:$0xff] }
 0x6ed   :  { %v7074_v24 = vrot.slane %v15852_v3, 1  ;;  %v7075_v38 = vrot.slane %v15853_v26, 1  ;;  %v7076_v22 = vrot.slane %v15854_v2, 1  ;;  %v7077_v53 = vrot.slane %v15855_v10, 1  ;;  %v15932_v20 = vld [vmem:[#allocation22_spill] sm:$0xff]  ;;  %v15933_v33 = vld [vmem:[#allocation45_spill] sm:$0xff] }
 0x6ee   :  { %v7078_v50 = vrot.slane %v15856_v36, 1  ;;  %v7079_v37 = vrot.slane %v15857_v58, 1  ;;  %v7080_v39 = vrot.slane %v15858_v48, 1  ;;  %v7081_v47 = vrot.slane %v15922_v56, 1  ;;  %v15931_v48 = vld [vmem:[#allocation17_spill] sm:$0xff]  ;;  %v15934_v60 = vld [vmem:[#allocation48_spill] sm:$0xff] }
 0x6ef   :  { %v7082_v57 = vrot.slane %v15923_v49, 1  ;;  %v7083_v46 = vrot.slane %v15924_v12, 1  ;;  %v7084_v3 = vrot.slane %v15925_v51, 1  ;;  %v7085_v26 = vrot.slane %v15926_v35, 1  ;;  %v15935_v49 = vld [vmem:[#allocation51_spill] sm:$0xff]  ;;  %v15936_v51 = vld [vmem:[#allocation53_spill] sm:$0xff] }
 0x6f0   :  { %v7086_v2 = vrot.slane %v15927_v45, 1  ;;  %v7104_v10 = vmax.f32 %v15928_v41, %v7072_v16  ;;  %v7105_v36 = vmax.f32 %v15929_v1, %v7073_v59  ;;  %v7106_v58 = vmax.f32 %v15930_v17, %v7074_v24  ;;  %v15937_v16 = vld [vmem:[#allocation10_spill] sm:$0xff]  ;;  %v15938_v59 = vld [vmem:[#allocation41_spill] sm:$0xff] }
 0x6f1   :  { %v7107_v61 = vmax.f32 %v15931_v48, %v7075_v38  ;;  %v7108_v43 = vmax.f32 %v15932_v20, %v7076_v22  ;;  %v7109_v25 = vmax.f32 %v15933_v33, %v7077_v53  ;;  %v7110_v56 = vmax.f32 %v15934_v60, %v7078_v50  ;;  %v15951_v24 = vld [vmem:[#allocation54_spill] sm:$0xff]  ;;  %v15952_v22 = vld [vmem:[#allocation55_spill] sm:$0xff]  ;;  %v15953_v50 = vld [vmem:[#allocation56_spill] sm:$0xff] }
 0x6f2   :  { %v7111_v12 = vmax.f32 %v15935_v49, %v7079_v37  ;;  %v7112_v35 = vmax.f32 %v15936_v51, %v7080_v39  ;;  %v7113_v45 = vmax.f32 %v15937_v16, %v7081_v47  ;;  %v7114_v41 = vmax.f32 %v15938_v59, %v7082_v57  ;;  %v15954_v39 = vld [vmem:[#allocation57_spill] sm:$0xff] }
 0x6f3   :  { %vm15939_vm9 = vcmask 253952   ;;  %vm15942_vm5 = vcmask 256002   ;;  %vm15945_vm8 = vcmask 258052   ;;  %vm15948_vm14 = vcmask 260102  }
 0x6f4   :  { %7182 = vst.msk [vmem:[#allocation4 + $0x4] sm:$0x1] %vm15939_vm9, %v7104_v10  ;;  %vm15940_vm10 = vmmov %vm15939_vm9  ;;  %v7115_v38 = vmax.f32 %v15951_v24, %v7083_v46  ;;  %v7116_v53 = vmax.f32 %v15952_v22, %v7084_v3  ;;  %v7117_v37 = vmax.f32 %v15953_v50, %v7085_v26  ;;  %v7118_v47 = vmax.f32 %v15954_v39, %v7086_v2 }
 0x6f5   :  { %7183 = vst.msk [vmem:[#allocation4 + $0xc] sm:$0x1] %vm15940_vm10, %v7105_v36  ;;  %vm15941_vm11 = vmmov %vm15939_vm9  ;;  %v14793_v57 = vmul.u32 16, %v14596_v28  ;;  %v7121_v46 = vmul.u32 16, %v14600_v54 }
 0x6f6   :  { %7184 = vst.msk [vmem:[#allocation4 + $0x14] sm:$0x1] %vm15941_vm11, %v7106_v58  ;;  %vm15943_vm6 = vmmov %vm15942_vm5  ;;  %v7122_v28 = vmul.u32 16, %v14604_v42  ;;  %v7123_v54 = vmul.u32 16, %v14608_v8 }
 0x6f7   :  { %7246 = vst.msk [vmem:[#allocation4 + $0x3] sm:$0x4] %vm15942_vm5, %v7104_v10  ;;  %vm15944_vm7 = vmmov %vm15942_vm5  ;;  %v7124_v42 = vmul.u32 16, %v14612_v55  ;;  %v7125_v8 = vmul.u32 16, %v14616_v7  ;;  %v14832_v3 = vadd.s32 32, %v7121_v46  ;;  %v7150_v26 = vadd.s32 8, %v14793_v57 }
 0x6f8   :  { %7247 = vst.msk [vmem:[#allocation4 + $0xb] sm:$0x4] %vm15943_vm6, %v7105_v36  ;;  %vm15946_vm12 = vmmov %vm15945_vm8 }
 0x6f9   :  { %7248 = vst.msk [vmem:[#allocation4 + $0x13] sm:$0x4] %vm15944_vm7, %v7106_v58  ;;  %vm15947_vm13 = vmmov %vm15945_vm8 }
 0x6fa   :  { %7310 = vst.msk [vmem:[#allocation4 + $0x2] sm:$0x10] %vm15945_vm8, %v7104_v10  ;;  %vm15949_vm15 = vmmov %vm15948_vm14 }
 0x6fb   :  { %7311 = vst.msk [vmem:[#allocation4 + $0xa] sm:$0x10] %vm15946_vm12, %v7105_v36  ;;  %vm15950_vm0 = vmmov %vm15948_vm14 }
 0x6fc   :  { %7312 = vst.msk [vmem:[#allocation4 + $0x12] sm:$0x10] %vm15947_vm13, %v7106_v58  ;;  %vm15955_vm1 = vmmov %vm15939_vm9 }
 0x6fd   :  { %7374 = vst.msk [vmem:[#allocation4 + $0x1] sm:$0x40] %vm15948_vm14, %v7104_v10  ;;  %vm15956_vm2 = vmmov %vm15955_vm1 }
 0x6fe   :  { %7375 = vst.msk [vmem:[#allocation4 + $0x9] sm:$0x40] %vm15949_vm15, %v7105_v36  ;;  %vm15957_vm3 = vmmov %vm15955_vm1 }
 0x6ff   :  { %7376 = vst.msk [vmem:[#allocation4 + $0x11] sm:$0x40] %vm15950_vm0, %v7106_v58  ;;  %vm15958_vm4 = vmmov %vm15955_vm1 }
 0x700   :  { %7185 = vst.msk [vmem:[#allocation4 + $0x1c] sm:$0x1] %vm15955_vm1, %v7107_v61  ;;  %vm15959_vm9 = vmmov %vm15942_vm5 }
 0x701   :  { %7186 = vst.msk [vmem:[#allocation4 + $0x24] sm:$0x1] %vm15956_vm2, %v7108_v43  ;;  %vm15960_vm10 = vmmov %vm15942_vm5 }
 0x702   :  { %7187 = vst.msk [vmem:[#allocation4 + $0x2c] sm:$0x1] %vm15957_vm3, %v7109_v25  ;;  %vm15961_vm11 = vmmov %vm15942_vm5 }
 0x703   :  { %7188 = vst.msk [vmem:[#allocation4 + $0x34] sm:$0x1] %vm15958_vm4, %v7110_v56  ;;  %vm15962_vm6 = vmmov %vm15945_vm8 }
 0x704   :  { %7249 = vst.msk [vmem:[#allocation4 + $0x1b] sm:$0x4] %vm15959_vm9, %v7107_v61  ;;  %vm15963_vm7 = vmmov %vm15962_vm6 }
 0x705   :  { %7250 = vst.msk [vmem:[#allocation4 + $0x23] sm:$0x4] %vm15960_vm10, %v7108_v43  ;;  %vm15964_vm8 = vmmov %vm15962_vm6 }
 0x706   :  { %7251 = vst.msk [vmem:[#allocation4 + $0x2b] sm:$0x4] %vm15961_vm11, %v7109_v25  ;;  %vm15965_vm12 = vmmov %vm15962_vm6 }
 0x707   :  { %7252 = vst.msk [vmem:[#allocation4 + $0x33] sm:$0x4] %vm15942_vm5, %v7110_v56  ;;  %vm15966_vm13 = vmmov %vm15950_vm0 }
 0x708   :  { %7313 = vst.msk [vmem:[#allocation4 + $0x1a] sm:$0x10] %vm15962_vm6, %v7107_v61  ;;  %vm15967_vm14 = vmmov %vm15950_vm0 }
 0x709   :  { %7314 = vst.msk [vmem:[#allocation4 + $0x22] sm:$0x10] %vm15963_vm7, %v7108_v43  ;;  %vm15968_vm15 = vmmov %vm15950_vm0 }
 0x70a   :  { %7315 = vst.msk [vmem:[#allocation4 + $0x2a] sm:$0x10] %vm15964_vm8, %v7109_v25  ;;  %vm15969_vm2 = vmmov %vm15955_vm1 }
 0x70b   :  { %7316 = vst.msk [vmem:[#allocation4 + $0x32] sm:$0x10] %vm15965_vm12, %v7110_v56  ;;  %vm15970_vm3 = vmmov %vm15955_vm1 }
 0x70c   :  { %7377 = vst.msk [vmem:[#allocation4 + $0x19] sm:$0x40] %vm15966_vm13, %v7107_v61  ;;  %vm15971_vm4 = vmmov %vm15955_vm1 }
 0x70d   :  { %7378 = vst.msk [vmem:[#allocation4 + $0x21] sm:$0x40] %vm15967_vm14, %v7108_v43  ;;  %vm15972_vm9 = vmmov %vm15942_vm5 }
 0x70e   :  { %7379 = vst.msk [vmem:[#allocation4 + $0x29] sm:$0x40] %vm15968_vm15, %v7109_v25  ;;  %vm15973_vm10 = vmmov %vm15942_vm5 }
 0x70f   :  { %7380 = vst.msk [vmem:[#allocation4 + $0x31] sm:$0x40] %vm15950_vm0, %v7110_v56  ;;  %vm15974_vm11 = vmmov %vm15942_vm5 }
 0x710   :  { %7189 = vst.msk [vmem:[#allocation4 + $0x3c] sm:$0x1] %vm15955_vm1, %v7111_v12  ;;  %vm15975_vm7 = vmmov %vm15962_vm6 }
 0x711   :  { %7190 = vst.msk [vmem:[#allocation4 + $0x44] sm:$0x1] %vm15969_vm2, %v7112_v35  ;;  %vm15976_vm8 = vmmov %vm15962_vm6 }
 0x712   :  { %7191 = vst.msk [vmem:[#allocation4 + $0x4c] sm:$0x1] %vm15970_vm3, %v7113_v45  ;;  %vm15977_vm12 = vmmov %vm15962_vm6 }
 0x713   :  { %7192 = vst.msk [vmem:[#allocation4 + $0x54] sm:$0x1] %vm15971_vm4, %v7114_v41  ;;  %vm15978_vm13 = vmmov %vm15950_vm0 }
 0x714   :  { %7253 = vst.msk [vmem:[#allocation4 + $0x3b] sm:$0x4] %vm15972_vm9, %v7111_v12  ;;  %vm15979_vm14 = vmmov %vm15950_vm0 }
 0x715   :  { %7254 = vst.msk [vmem:[#allocation4 + $0x43] sm:$0x4] %vm15973_vm10, %v7112_v35  ;;  %vm15980_vm15 = vmmov %vm15950_vm0 }
 0x716   :  { %7255 = vst.msk [vmem:[#allocation4 + $0x4b] sm:$0x4] %vm15974_vm11, %v7113_v45  ;;  %vm15981_vm2 = vmmov %vm15955_vm1 }
 0x717   :  { %7256 = vst.msk [vmem:[#allocation4 + $0x53] sm:$0x4] %vm15942_vm5, %v7114_v41  ;;  %vm15982_vm3 = vmmov %vm15955_vm1 }
 0x718   :  { %7317 = vst.msk [vmem:[#allocation4 + $0x3a] sm:$0x10] %vm15962_vm6, %v7111_v12  ;;  %vm15983_vm4 = vmmov %vm15955_vm1 }
 0x719   :  { %7318 = vst.msk [vmem:[#allocation4 + $0x42] sm:$0x10] %vm15975_vm7, %v7112_v35  ;;  %vm15984_vm9 = vmmov %vm15942_vm5 }
 0x71a   :  { %7319 = vst.msk [vmem:[#allocation4 + $0x4a] sm:$0x10] %vm15976_vm8, %v7113_v45  ;;  %vm15985_vm10 = vmmov %vm15942_vm5 }
 0x71b   :  { %7320 = vst.msk [vmem:[#allocation4 + $0x52] sm:$0x10] %vm15977_vm12, %v7114_v41  ;;  %vm15986_vm11 = vmmov %vm15942_vm5 }
 0x71c   :  { %7381 = vst.msk [vmem:[#allocation4 + $0x39] sm:$0x40] %vm15978_vm13, %v7111_v12  ;;  %vm15987_vm7 = vmmov %vm15962_vm6 }
 0x71d   :  { %7382 = vst.msk [vmem:[#allocation4 + $0x41] sm:$0x40] %vm15979_vm14, %v7112_v35  ;;  %vm15988_vm8 = vmmov %vm15962_vm6 }
 0x71e   :  { %7383 = vst.msk [vmem:[#allocation4 + $0x49] sm:$0x40] %vm15980_vm15, %v7113_v45  ;;  %vm15989_vm12 = vmmov %vm15962_vm6 }
 0x71f   :  { %7384 = vst.msk [vmem:[#allocation4 + $0x51] sm:$0x40] %vm15950_vm0, %v7114_v41  ;;  %vm15990_vm13 = vmmov %vm15950_vm0 }
 0x720   :  { %7193 = vst.msk [vmem:[#allocation4 + $0x5c] sm:$0x1] %vm15955_vm1, %v7115_v38  ;;  %vm15991_vm14 = vmmov %vm15950_vm0 }
 0x721   :  { %7194 = vst.msk [vmem:[#allocation4 + $0x64] sm:$0x1] %vm15981_vm2, %v7116_v53  ;;  %vm15992_vm15 = vmmov %vm15950_vm0 }
 0x722   :  { %7195 = vst.msk [vmem:[#allocation4 + $0x6c] sm:$0x1] %vm15982_vm3, %v7117_v37 }
 0x723   :  { %7196 = vst.msk [vmem:[#allocation4 + $0x74] sm:$0x1] %vm15983_vm4, %v7118_v47 }
 0x724   :  { %7257 = vst.msk [vmem:[#allocation4 + $0x5b] sm:$0x4] %vm15984_vm9, %v7115_v38 }
 0x725   :  { %7258 = vst.msk [vmem:[#allocation4 + $0x63] sm:$0x4] %vm15985_vm10, %v7116_v53 }
 0x726   :  { %7259 = vst.msk [vmem:[#allocation4 + $0x6b] sm:$0x4] %vm15986_vm11, %v7117_v37 }
 0x727   :  { %7260 = vst.msk [vmem:[#allocation4 + $0x73] sm:$0x4] %vm15942_vm5, %v7118_v47 }
 0x728   :  { %7321 = vst.msk [vmem:[#allocation4 + $0x5a] sm:$0x10] %vm15962_vm6, %v7115_v38 }
 0x729   :  { %7322 = vst.msk [vmem:[#allocation4 + $0x62] sm:$0x10] %vm15987_vm7, %v7116_v53 }
 0x72a   :  { %7323 = vst.msk [vmem:[#allocation4 + $0x6a] sm:$0x10] %vm15988_vm8, %v7117_v37 }
 0x72b   :  { %7324 = vst.msk [vmem:[#allocation4 + $0x72] sm:$0x10] %vm15989_vm12, %v7118_v47 }
 0x72c   :  { %7385 = vst.msk [vmem:[#allocation4 + $0x59] sm:$0x40] %vm15990_vm13, %v7115_v38 }
 0x72d   :  { %7386 = vst.msk [vmem:[#allocation4 + $0x61] sm:$0x40] %vm15991_vm14, %v7116_v53 }
 0x72e   :  { %7387 = vst.msk [vmem:[#allocation4 + $0x69] sm:$0x40] %vm15992_vm15, %v7117_v37 }
 0x72f   :  { %7388 = vst.msk [vmem:[#allocation4 + $0x71] sm:$0x40] %vm15950_vm0, %v7118_v47 }
 0x730   :  { %7734 = shalt.err (!%p7731_p4)
}
 0x731   :  { %s7770_s23 = smov 128   ;;  %s7771_s24 = smov 8   ;;  %v7126_v55 = vmul.u32 16, %v14620_v9  ;;  %v7127_v7 = vmul.u32 16, %v14624_v21  ;;  %v14848_v2 = vadd.s32 64, %v7122_v28  ;;  %v14850_v10 = vadd.s32 96, %v7123_v54 }
 0x732   :  { %7417 = dma.vmem_to_hbm [thread:$0]  %s14790_s8, 2048, %s15075_s9, [#allocation5], %s7770_s23, %s7770_s23, %s7771_s24   ;;  %v14853_v1 = vmul.u32 16, %v14628_v52  ;;  %v7129_v36 = vmul.u32 16, %v14632_v27  ;;  %v14856_v17 = vadd.s32 128, %v7124_v42  ;;  %v14858_v58 = vadd.s32 160, %v7125_v8 }
 0x733   :  { %v7130_v48 = vmul.u32 16, %v14636_v32  ;;  %v7131_v61 = vmul.u32 16, %v14640_v15  ;;  %v14862_v9 = vadd.s32 192, %v7126_v55  ;;  %v14864_v21 = vadd.s32 224, %v7127_v7  ;;  %s7772_s9 = smov [#allocation6]  }
 0x734   :  { %v7132_v20 = vmul.u32 16, %v14644_v31  ;;  %v7133_v43 = vmul.u32 16, %v14648_v63  ;;  %v14868_v52 = vadd.s32 32, %v7129_v36  ;;  %v7151_v27 = vadd.s32 8, %v14832_v3  ;;  %s7423_s26 = sshll.u32 %s7772_s9, 4  ;;  %s7424_s26 = int_to_ptr.vmem [resolvable:$true] %s7423_s26 }
 0x735   :  { %v7134_v33 = vmul.u32 16, %v14652_v62  ;;  %v14872_v25 = vadd.s32 64, %v7130_v48  ;;  %v14874_v60 = vadd.s32 96, %v7131_v61  ;;  %v7152_v32 = vadd.s32 8, %v14848_v2  ;;  %s7743_s27 = scalar_lea.vmem %s7424_s26, 2048  ;;  %p7748_p6 = scmp.lt.s32.totalorder %s7424_s26, %s7424_s26 }
 0x736   :  { %v14877_v15 = vadd.s32 128, %v7132_v20  ;;  %v14879_v56 = vadd.s32 160, %v7133_v43  ;;  %v7153_v31 = vadd.s32 8, %v14850_v10  ;;  %v7154_v63 = vadd.s32 8, %v14856_v17  ;;  %p7744_p5 = scmp.ne.s32.totalorder %s7424_s26, %s7743_s27  ;;  %p7749_p7 = scmp.lt.s32.totalorder %s7743_s27, %s7743_s27 }
 0x737   :  { %v14883_v49 = vadd.s32 192, %v7134_v33  ;;  %v7155_v12 = vadd.s32 8, %v14858_v58  ;;  %v7156_v62 = vadd.s32 8, %v14862_v9  ;;  %v7157_v51 = vadd.s32 8, %v14864_v21 }
 0x738   :  { %v7158_v35 = vadd.s32 8, %v14853_v1  ;;  %v7159_v16 = vadd.s32 8, %v14868_v52  ;;  %v7160_v45 = vadd.s32 8, %v14872_v25  ;;  %v7161_v59 = vadd.s32 8, %v14874_v60  ;;  %p7750_p8 = por %p7749_p7, %p7748_p6 }
 0x739   :  { %v7162_v41 = vadd.s32 8, %v14877_v15  ;;  %v7163_v24 = vadd.s32 8, %v14879_v56  ;;  %v7164_v38 = vadd.s32 8, %v14883_v49  ;;  %v7166_v22 = vadd.s32 %v7150_v26, %v14671_v19 }
 0x73a   :  { %v7167_v53 = vadd.s32 %v7151_v27, %v14675_v34  ;;  %v7168_v50 = vadd.s32 %v7152_v32, %v14679_v0  ;;  %v7169_v37 = vadd.s32 %v7153_v31, %v14683_v4  ;;  %v7170_v39 = vadd.s32 %v7154_v63, %v14687_v30  ;;  %p7751_p9 = pnand %p7750_p8, %p7744_p5 }
 0x73b   :  { %v7171_v47 = vadd.s32 %v7155_v12, %v14691_v29  ;;  %v7172_v46 = vadd.s32 %v7156_v62, %v14695_v5  ;;  %v7173_v28 = vadd.s32 %v7157_v51, %v14699_v18  ;;  %v7174_v54 = vadd.s32 %v7158_v35, %v14703_v11 }
 0x73c   :  { %vm15993_vm1 = vcmask 254977   ;;  %v7175_v42 = vadd.s32 %v7159_v16, %v14707_v40  ;;  %v7176_v8 = vadd.s32 %v7160_v45, %v14711_v44  ;;  %v7177_v26 = vadd.s32 %v7161_v59, %v14715_v23 }
 0x73d   :  { %7198 = vst.msk [vmem:[#allocation6 + $0x3] sm:$0x2] %vm15993_vm1, %v7166_v22  ;;  %v7178_v55 = vadd.s32 %v7162_v41, %v14719_v14  ;;  %vm15994_vm2 = vmmov %vm15993_vm1  ;;  %v7179_v7 = vadd.s32 %v7163_v24, %v14723_v13  ;;  %v7180_v36 = vadd.s32 %v7164_v38, %v14727_v6  ;;  %v7214_v48 = vadd.s32 10, %v14793_v57 }
 0x73e   :  { %7199 = vst.msk [vmem:[#allocation6 + $0xb] sm:$0x2] %vm15994_vm2, %v7167_v53  ;;  %vm15995_vm3 = vmmov %vm15993_vm1  ;;  %v7215_v61 = vadd.s32 10, %v14832_v3  ;;  %v7216_v20 = vadd.s32 10, %v14848_v2  ;;  %v7217_v43 = vadd.s32 10, %v14850_v10  ;;  %v7218_v27 = vadd.s32 10, %v14856_v17 }
 0x73f   :  { %7200 = vst.msk [vmem:[#allocation6 + $0x13] sm:$0x2] %vm15995_vm3, %v7168_v50  ;;  %vm15996_vm4 = vmmov %vm15993_vm1  ;;  %v7219_v33 = vadd.s32 10, %v14858_v58  ;;  %v7220_v32 = vadd.s32 10, %v14862_v9  ;;  %v7221_v31 = vadd.s32 10, %v14864_v21  ;;  %v7222_v63 = vadd.s32 10, %v14853_v1 }
 0x740   :  { %7201 = vst.msk [vmem:[#allocation6 + $0x1b] sm:$0x2] %vm15996_vm4, %v7169_v37  ;;  %vm15997_vm9 = vmmov %vm15993_vm1  ;;  %v7223_v12 = vadd.s32 10, %v14868_v52  ;;  %v7224_v62 = vadd.s32 10, %v14872_v25  ;;  %v7225_v51 = vadd.s32 10, %v14874_v60  ;;  %v7226_v35 = vadd.s32 10, %v14877_v15 }
 0x741   :  { %7202 = vst.msk [vmem:[#allocation6 + $0x23] sm:$0x2] %vm15997_vm9, %v7170_v39  ;;  %vm15998_vm10 = vmmov %vm15993_vm1  ;;  %v7227_v16 = vadd.s32 10, %v14879_v56  ;;  %v7228_v45 = vadd.s32 10, %v14883_v49  ;;  %v7230_v59 = vadd.s32 %v7214_v48, %v14671_v19  ;;  %v7231_v41 = vadd.s32 %v7215_v61, %v14675_v34 }
 0x742   :  { %7203 = vst.msk [vmem:[#allocation6 + $0x2b] sm:$0x2] %vm15998_vm10, %v7171_v47  ;;  %vm15999_vm11 = vmmov %vm15993_vm1  ;;  %v7232_v24 = vadd.s32 %v7216_v20, %v14679_v0  ;;  %v7233_v38 = vadd.s32 %v7217_v43, %v14683_v4  ;;  %v7234_v22 = vadd.s32 %v7218_v27, %v14687_v30  ;;  %v7235_v53 = vadd.s32 %v7219_v33, %v14691_v29 }
 0x743   :  { %7204 = vst.msk [vmem:[#allocation6 + $0x33] sm:$0x2] %vm15999_vm11, %v7172_v46  ;;  %vm16000_vm5 = vmmov %vm15993_vm1  ;;  %v7236_v50 = vadd.s32 %v7220_v32, %v14695_v5  ;;  %v7237_v37 = vadd.s32 %v7221_v31, %v14699_v18  ;;  %v7238_v39 = vadd.s32 %v7222_v63, %v14703_v11  ;;  %v7239_v47 = vadd.s32 %v7223_v12, %v14707_v40 }
 0x744   :  { %7205 = vst.msk [vmem:[#allocation6 + $0x3b] sm:$0x2] %vm16000_vm5, %v7173_v28  ;;  %vm16001_vm6 = vmmov %vm15993_vm1  ;;  %v7240_v46 = vadd.s32 %v7224_v62, %v14711_v44  ;;  %vm16008_vm0 = vcmask 257027   ;;  %v7241_v28 = vadd.s32 %v7225_v51, %v14715_v23  ;;  %v7282_v48 = vadd.s32 12, %v14856_v17 }
 0x745   :  { %7206 = vst.msk [vmem:[#allocation6 + $0x43] sm:$0x2] %vm16001_vm6, %v7174_v54  ;;  %vm16002_vm7 = vmmov %vm15993_vm1  ;;  %v7242_v54 = vadd.s32 %v7226_v35, %v14719_v14  ;;  %v7283_v61 = vadd.s32 12, %v14858_v58  ;;  %v7284_v20 = vadd.s32 12, %v14862_v9  ;;  %v7285_v43 = vadd.s32 12, %v14864_v21 }
 0x746   :  { %7207 = vst.msk [vmem:[#allocation6 + $0x4b] sm:$0x2] %vm16002_vm7, %v7175_v42  ;;  %vm16003_vm8 = vmmov %vm15993_vm1  ;;  %v7243_v42 = vadd.s32 %v7227_v16, %v14723_v13  ;;  %v7286_v27 = vadd.s32 12, %v14853_v1  ;;  %v7287_v33 = vadd.s32 12, %v14868_v52  ;;  %v7288_v32 = vadd.s32 12, %v14872_v25 }
 0x747   :  { %7208 = vst.msk [vmem:[#allocation6 + $0x53] sm:$0x2] %vm16003_vm8, %v7176_v8  ;;  %vm16004_vm12 = vmmov %vm15993_vm1  ;;  %v7244_v8 = vadd.s32 %v7228_v45, %v14727_v6  ;;  %v7289_v31 = vadd.s32 12, %v14874_v60  ;;  %v7290_v63 = vadd.s32 12, %v14877_v15  ;;  %v7291_v12 = vadd.s32 12, %v14879_v56 }
 0x748   :  { %7209 = vst.msk [vmem:[#allocation6 + $0x5b] sm:$0x2] %vm16004_vm12, %v7177_v26  ;;  %vm16005_vm13 = vmmov %vm15993_vm1  ;;  %v7278_v26 = vadd.s32 12, %v14793_v57  ;;  %v7292_v62 = vadd.s32 12, %v14883_v49 }
 0x749   :  { %7210 = vst.msk [vmem:[#allocation6 + $0x63] sm:$0x2] %vm16005_vm13, %v7178_v55  ;;  %vm16006_vm14 = vmmov %vm15993_vm1  ;;  %v7279_v55 = vadd.s32 12, %v14832_v3 }
 0x74a   :  { %7211 = vst.msk [vmem:[#allocation6 + $0x6b] sm:$0x2] %vm16006_vm14, %v7179_v7  ;;  %vm16007_vm15 = vmmov %vm15993_vm1  ;;  %v7280_v7 = vadd.s32 12, %v14848_v2  ;;  %v7294_v51 = vadd.s32 %v7278_v26, %v14671_v19  ;;  %v7346_v26 = vadd.s32 14, %v14856_v17  ;;  %v7354_v17 = vadd.s32 14, %v14877_v15 }
 0x74b   :  { %7212 = vst.msk [vmem:[#allocation6 + $0x73] sm:$0x2] %vm16007_vm15, %v7180_v36  ;;  %vm16009_vm1 = vmmov %vm16008_vm0  ;;  %v7281_v36 = vadd.s32 12, %v14850_v10  ;;  %v7295_v35 = vadd.s32 %v7279_v55, %v14675_v34  ;;  %vm16023_vm15 = vcmask 259077   ;;  %v7347_v55 = vadd.s32 14, %v14858_v58 }
 0x74c   :  { %7262 = vst.msk [vmem:[#allocation6 + $0x2] sm:$0x8] %vm16008_vm0, %v7230_v59  ;;  %vm16010_vm2 = vmmov %vm16008_vm0  ;;  %v7296_v16 = vadd.s32 %v7280_v7, %v14679_v0  ;;  %v7298_v59 = vadd.s32 %v7282_v48, %v14687_v30  ;;  %v7350_v7 = vadd.s32 14, %v14853_v1  ;;  %v7355_v58 = vadd.s32 14, %v14879_v56 }
 0x74d   :  { %7263 = vst.msk [vmem:[#allocation6 + $0xa] sm:$0x8] %vm16009_vm1, %v7231_v41  ;;  %vm16011_vm3 = vmmov %vm16008_vm0  ;;  %v7297_v45 = vadd.s32 %v7281_v36, %v14683_v4  ;;  %v7299_v41 = vadd.s32 %v7283_v61, %v14691_v29  ;;  %v7351_v36 = vadd.s32 14, %v14868_v52  ;;  %v7356_v48 = vadd.s32 14, %v14883_v49 }
 0x74e   :  { %7264 = vst.msk [vmem:[#allocation6 + $0x12] sm:$0x8] %vm16010_vm2, %v7232_v24  ;;  %vm16012_vm4 = vmmov %vm16008_vm0  ;;  %v7300_v24 = vadd.s32 %v7284_v20, %v14695_v5  ;;  %v7362_v52 = vadd.s32 %v7346_v26, %v14687_v30  ;;  %v7366_v56 = vadd.s32 %v7350_v7, %v14703_v11  ;;  %v7371_v30 = vadd.s32 %v7355_v58, %v14723_v13 }
 0x74f   :  { %7265 = vst.msk [vmem:[#allocation6 + $0x1a] sm:$0x8] %vm16011_vm3, %v7233_v38  ;;  %vm16013_vm9 = vmmov %vm16008_vm0  ;;  %v7301_v38 = vadd.s32 %v7285_v43, %v14699_v18 }
 0x750   :  { %7266 = vst.msk [vmem:[#allocation6 + $0x22] sm:$0x8] %vm16012_vm4, %v7234_v22  ;;  %vm16014_vm10 = vmmov %vm16008_vm0  ;;  %v7302_v22 = vadd.s32 %v7286_v27, %v14703_v11 }
 0x751   :  { %7267 = vst.msk [vmem:[#allocation6 + $0x2a] sm:$0x8] %vm16013_vm9, %v7235_v53  ;;  %vm16015_vm11 = vmmov %vm16008_vm0  ;;  %v7303_v53 = vadd.s32 %v7287_v33, %v14707_v40 }
 0x752   :  { %7268 = vst.msk [vmem:[#allocation6 + $0x32] sm:$0x8] %vm16014_vm10, %v7236_v50  ;;  %vm16016_vm5 = vmmov %vm16008_vm0  ;;  %v7304_v50 = vadd.s32 %v7288_v32, %v14711_v44 }
 0x753   :  { %7269 = vst.msk [vmem:[#allocation6 + $0x3a] sm:$0x8] %vm16015_vm11, %v7237_v37  ;;  %vm16017_vm6 = vmmov %vm16008_vm0  ;;  %v7305_v37 = vadd.s32 %v7289_v31, %v14715_v23 }
 0x754   :  { %7270 = vst.msk [vmem:[#allocation6 + $0x42] sm:$0x8] %vm16016_vm5, %v7238_v39  ;;  %vm16018_vm7 = vmmov %vm16008_vm0  ;;  %v7306_v39 = vadd.s32 %v7290_v63, %v14719_v14 }
 0x755   :  { %7271 = vst.msk [vmem:[#allocation6 + $0x4a] sm:$0x8] %vm16017_vm6, %v7239_v47  ;;  %vm16019_vm8 = vmmov %vm16008_vm0  ;;  %v7307_v47 = vadd.s32 %v7291_v12, %v14723_v13 }
 0x756   :  { %7272 = vst.msk [vmem:[#allocation6 + $0x52] sm:$0x8] %vm16018_vm7, %v7240_v46  ;;  %vm16020_vm12 = vmmov %vm16008_vm0  ;;  %v7308_v46 = vadd.s32 %v7292_v62, %v14727_v6 }
 0x757   :  { %7273 = vst.msk [vmem:[#allocation6 + $0x5a] sm:$0x8] %vm16019_vm8, %v7241_v28  ;;  %vm16021_vm13 = vmmov %vm16008_vm0  ;;  %v7342_v28 = vadd.s32 14, %v14793_v57  ;;  %v7348_v57 = vadd.s32 14, %v14862_v9 }
 0x758   :  { %7274 = vst.msk [vmem:[#allocation6 + $0x62] sm:$0x8] %vm16020_vm12, %v7242_v54  ;;  %vm16022_vm14 = vmmov %vm16008_vm0  ;;  %v7343_v54 = vadd.s32 14, %v14832_v3  ;;  %v7349_v3 = vadd.s32 14, %v14864_v21 }
 0x759   :  { %7275 = vst.msk [vmem:[#allocation6 + $0x6a] sm:$0x8] %vm16021_vm13, %v7243_v42  ;;  %vm16024_vm0 = vmmov %vm16023_vm15  ;;  %v7344_v42 = vadd.s32 14, %v14848_v2  ;;  %v7352_v2 = vadd.s32 14, %v14872_v25  ;;  %v7358_v61 = vadd.s32 %v7342_v28, %v14671_v19  ;;  %v7363_v25 = vadd.s32 %v7347_v55, %v14691_v29 }
 0x75a   :  { %7276 = vst.msk [vmem:[#allocation6 + $0x72] sm:$0x8] %vm16022_vm14, %v7244_v8  ;;  %vm16025_vm1 = vmmov %vm16024_vm0  ;;  %v7345_v8 = vadd.s32 14, %v14850_v10  ;;  %v7353_v10 = vadd.s32 14, %v14874_v60  ;;  %v7359_v9 = vadd.s32 %v7343_v54, %v14675_v34  ;;  %v7364_v60 = vadd.s32 %v7348_v57, %v14695_v5 }
 0x75b   :  { %7326 = vst.msk [vmem:[#allocation6 + $0x1] sm:$0x20] %vm16023_vm15, %v7294_v51  ;;  %vm16026_vm2 = vmmov %vm16024_vm0  ;;  %v7360_v21 = vadd.s32 %v7344_v42, %v14679_v0  ;;  %v7365_v15 = vadd.s32 %v7349_v3, %v14699_v18  ;;  %v7367_v19 = vadd.s32 %v7351_v36, %v14707_v40  ;;  %v7368_v34 = vadd.s32 %v7352_v2, %v14711_v44 }
 0x75c   :  { %7327 = vst.msk [vmem:[#allocation6 + $0x9] sm:$0x20] %vm16024_vm0, %v7295_v35  ;;  %vm16027_vm3 = vmmov %vm16024_vm0  ;;  %v7361_v1 = vadd.s32 %v7345_v8, %v14683_v4  ;;  %vm16038_vm14 = vcmask 261127   ;;  %v7369_v0 = vadd.s32 %v7353_v10, %v14715_v23  ;;  %v7370_v4 = vadd.s32 %v7354_v17, %v14719_v14 }
 0x75d   :  { %7328 = vst.msk [vmem:[#allocation6 + $0x11] sm:$0x20] %vm16025_vm1, %v7296_v16  ;;  %vm16028_vm4 = vmmov %vm16024_vm0  ;;  %v7372_v29 = vadd.s32 %v7356_v48, %v14727_v6 }
 0x75e   :  { %7329 = vst.msk [vmem:[#allocation6 + $0x19] sm:$0x20] %vm16026_vm2, %v7297_v45  ;;  %vm16029_vm9 = vmmov %vm16024_vm0 }
 0x75f   :  { %7330 = vst.msk [vmem:[#allocation6 + $0x21] sm:$0x20] %vm16027_vm3, %v7298_v59  ;;  %vm16030_vm10 = vmmov %vm16024_vm0 }
 0x760   :  { %7331 = vst.msk [vmem:[#allocation6 + $0x29] sm:$0x20] %vm16028_vm4, %v7299_v41  ;;  %vm16031_vm11 = vmmov %vm16024_vm0 }
 0x761   :  { %7332 = vst.msk [vmem:[#allocation6 + $0x31] sm:$0x20] %vm16029_vm9, %v7300_v24  ;;  %vm16032_vm5 = vmmov %vm16024_vm0 }
 0x762   :  { %7333 = vst.msk [vmem:[#allocation6 + $0x39] sm:$0x20] %vm16030_vm10, %v7301_v38  ;;  %vm16033_vm6 = vmmov %vm16024_vm0 }
 0x763   :  { %7334 = vst.msk [vmem:[#allocation6 + $0x41] sm:$0x20] %vm16031_vm11, %v7302_v22  ;;  %vm16034_vm7 = vmmov %vm16024_vm0 }
 0x764   :  { %7335 = vst.msk [vmem:[#allocation6 + $0x49] sm:$0x20] %vm16032_vm5, %v7303_v53  ;;  %vm16035_vm8 = vmmov %vm16024_vm0 }
 0x765   :  { %7336 = vst.msk [vmem:[#allocation6 + $0x51] sm:$0x20] %vm16033_vm6, %v7304_v50  ;;  %vm16036_vm12 = vmmov %vm16024_vm0 }
 0x766   :  { %7337 = vst.msk [vmem:[#allocation6 + $0x59] sm:$0x20] %vm16034_vm7, %v7305_v37  ;;  %vm16037_vm13 = vmmov %vm16024_vm0 }
 0x767   :  { %7338 = vst.msk [vmem:[#allocation6 + $0x61] sm:$0x20] %vm16035_vm8, %v7306_v39  ;;  %vm16039_vm15 = vmmov %vm16038_vm14 }
 0x768   :  { %7339 = vst.msk [vmem:[#allocation6 + $0x69] sm:$0x20] %vm16036_vm12, %v7307_v47  ;;  %vm16040_vm0 = vmmov %vm16038_vm14 }
 0x769   :  { %7340 = vst.msk [vmem:[#allocation6 + $0x71] sm:$0x20] %vm16037_vm13, %v7308_v46  ;;  %vm16041_vm1 = vmmov %vm16040_vm0 }
 0x76a   :  { %7390 = vst.msk [vmem:[#allocation6] sm:$0x80] %vm16038_vm14, %v7358_v61  ;;  %vm16042_vm2 = vmmov %vm16040_vm0 }
 0x76b   :  { %7391 = vst.msk [vmem:[#allocation6 + $0x8] sm:$0x80] %vm16039_vm15, %v7359_v9  ;;  %vm16043_vm3 = vmmov %vm16040_vm0 }
 0x76c   :  { %7392 = vst.msk [vmem:[#allocation6 + $0x10] sm:$0x80] %vm16040_vm0, %v7360_v21  ;;  %vm16044_vm4 = vmmov %vm16040_vm0 }
 0x76d   :  { %7393 = vst.msk [vmem:[#allocation6 + $0x18] sm:$0x80] %vm16041_vm1, %v7361_v1  ;;  %vm16045_vm9 = vmmov %vm16040_vm0 }
 0x76e   :  { %7394 = vst.msk [vmem:[#allocation6 + $0x20] sm:$0x80] %vm16042_vm2, %v7362_v52  ;;  %vm16046_vm10 = vmmov %vm16040_vm0 }
 0x76f   :  { %7395 = vst.msk [vmem:[#allocation6 + $0x28] sm:$0x80] %vm16043_vm3, %v7363_v25  ;;  %vm16047_vm11 = vmmov %vm16040_vm0 }
 0x770   :  { %7396 = vst.msk [vmem:[#allocation6 + $0x30] sm:$0x80] %vm16044_vm4, %v7364_v60  ;;  %vm16048_vm5 = vmmov %vm16040_vm0 }
 0x771   :  { %7397 = vst.msk [vmem:[#allocation6 + $0x38] sm:$0x80] %vm16045_vm9, %v7365_v15  ;;  %vm16049_vm6 = vmmov %vm16040_vm0 }
 0x772   :  { %7398 = vst.msk [vmem:[#allocation6 + $0x40] sm:$0x80] %vm16046_vm10, %v7366_v56  ;;  %vm16050_vm7 = vmmov %vm16040_vm0 }
 0x773   :  { %7399 = vst.msk [vmem:[#allocation6 + $0x48] sm:$0x80] %vm16047_vm11, %v7367_v19  ;;  %vm16051_vm8 = vmmov %vm16040_vm0 }
 0x774   :  { %7400 = vst.msk [vmem:[#allocation6 + $0x50] sm:$0x80] %vm16048_vm5, %v7368_v34  ;;  %vm16052_vm12 = vmmov %vm16040_vm0 }
 0x775   :  { %7401 = vst.msk [vmem:[#allocation6 + $0x58] sm:$0x80] %vm16049_vm6, %v7369_v0 }
 0x776   :  { %7402 = vst.msk [vmem:[#allocation6 + $0x60] sm:$0x80] %vm16050_vm7, %v7370_v4 }
 0x777   :  { %7403 = vst.msk [vmem:[#allocation6 + $0x68] sm:$0x80] %vm16051_vm8, %v7371_v30 }
 0x778   :  { %7404 = vst.msk [vmem:[#allocation6 + $0x70] sm:$0x80] %vm16052_vm12, %v7372_v29 }
 0x779   :  { %7754 = shalt.err (!%p7751_p9)
}
 0x77a   :  { %7429 = dma.vmem_to_hbm [thread:$0]  %s7424_s26, 2048, %s15076_s10, [#allocation7], %s7770_s23, %s7770_s23, %s7771_s24  }
 0x77b   :  { %7763 = dma.done.wait [#allocation5], 2048  }
 0x77c   :  { %7764 = vsyncadd [#allocation5], 4294965248 }
 0x77d   :  { %7765 = dma.done.wait [#allocation7], 2048  }
 0x77e   :  { %7766 = vsyncadd [#allocation7], 4294965248 }
 0x77f   :  { %7436 = vsyncpa [#allocation5], 1 }
 0x780   :  { %7437 = vsyncpa [#allocation7], 1 }

</bundles_post_ra>
